<compile_context>
chip_gen: v7x
topology: tpu7x:2x2x1
jax: 0.10.0
libtpu: 0.0.40
codegen_flags: <defaults>
</compile_context>

<pallas_src>
import functools

import jax
import jax.numpy as jnp
from jax.experimental import pallas as pl
from jax.experimental.pallas import tpu as pltpu


# ----------------------------------------------------------------------------
# small helpers
# ----------------------------------------------------------------------------
def _div_tile(n, cap):
    """Largest divisor of n that is <= cap (>= 1)."""
    t = max(1, min(n, cap))
    while n % t:
        t -= 1
    return t


def _elu(h):
    # F.elu with alpha=1 (exp(x)-1 on the negative side); exp lowers cleanly on the EUP.
    return jnp.where(h > 0, h, jnp.exp(h) - 1.0)


# ----------------------------------------------------------------------------
# Kernel 1: pow_tensor — adjacency powers, Bt graphs per grid step, channel-major output
# ----------------------------------------------------------------------------
def _pow_tensor_kernel(adj_ref, o_ref, *, cnum):
    a = adj_ref[...]                                       # (Bt, N, N)
    cur = a
    o_ref[0] = cur
    for c in range(1, cnum):                               # cnum is tiny -> static unroll
        cur = jnp.einsum("bij,bjk->bik", cur, a, preferred_element_type=jnp.float32)
        o_ref[c] = cur


def pow_tensor(adj, cnum, bt_target=16):
    """adj: (B, N, N) -> (cnum, B, N, N) channel-major; one batched kernel."""
    B, N, _ = adj.shape
    Bt = _div_tile(B, bt_target)
    return pl.pallas_call(
        functools.partial(_pow_tensor_kernel, cnum=cnum),
        out_shape=jax.ShapeDtypeStruct((cnum, B, N, N), jnp.float32),
        grid=(B // Bt,),
        in_specs=[pl.BlockSpec((Bt, N, N), lambda b: (b, 0, 0))],
        out_specs=pl.BlockSpec((cnum, Bt, N, N), lambda b: (0, b, 0, 0)),
        compiler_params=pltpu.CompilerParams(dimension_semantics=("parallel",)),
    )(adj)


# ----------------------------------------------------------------------------
# Kernel 2: fused attention-layer node path (GCN Q/K/V + attention + multi_channel MLP)
# ----------------------------------------------------------------------------
def _attn_layer_node_kernel(x_ref, adjc_ref, wq_ref, bq_ref, wk_ref, bk_ref,
                            wv_ref, bv_ref, mw1_ref, mb1_ref, mw2_ref, mb2_ref,
                            flags_ref, xout_ref, a_ref,
                            *, num_heads, scale, num_channels):
    x = x_ref[...]                                         # (Bt, N, Fin)
    Bt, N, Fin = x.shape
    x2 = x.reshape(Bt * N, Fin)                            # layout-compatible merge (N % 8 == 0)
    hid = mb1_ref.shape[-1]
    ad = wq_ref.shape[-1]
    d = ad // num_heads

    rows = jax.lax.broadcasted_iota(jnp.int32, (1, N, N), 1)
    cols = jax.lax.broadcasted_iota(jnp.int32, (1, N, N), 2)
    diag = rows == cols

    # multi_channel layer-1 accumulator: h1 = sum_c v_c @ mw1[c]  (no lane concat)
    acc1 = jnp.zeros((Bt * N, hid), jnp.float32)

    for c in range(num_channels):                          # static unroll over channels
        adj = adjc_ref[c]                                  # (Bt, N, N)
        # DenseGCNConv add_loop: adj[:, i, i] = 1
        adj = jnp.where(diag, jnp.float32(1.0), adj)
        deg = jnp.sum(adj, axis=-1, keepdims=True)         # (Bt, N, 1)
        dinv = jax.lax.rsqrt(jnp.maximum(deg, jnp.float32(1.0)))   # clamp(min=1)^-0.5

        def gcn(w, b):
            # projection (x @ W) then D^-1/2 (A+I) D^-1/2 @ h + bias, fully in VMEM
            h = jnp.dot(x2, w, preferred_element_type=jnp.float32)   # (Bt*N, dim)
            h = h.reshape(Bt, N, -1)
            h = dinv * jnp.einsum("bij,bjd->bid", adj, dinv * h,
                                  preferred_element_type=jnp.float32)
            return h + b                                   # b: (1, dim) broadcasts

        q = gcn(wq_ref[c], bq_ref[c])                      # (Bt, N, ad)
        k = gcn(wk_ref[c], bk_ref[c])                      # (Bt, N, ad)
        v = gcn(wv_ref[c], bv_ref[c])                      # (Bt, N, co)

        # multi-head tanh attention, heads collapsed to VPU broadcast multiply-adds
        # (contraction per head is only d=2 -> no tiny MXU matmuls).
        kT = jnp.swapaxes(k, -1, -2)                       # (Bt, ad, N)
        att = jnp.zeros((Bt, N, N), jnp.float32)
        for h_ in range(num_heads):
            s = jnp.zeros((Bt, N, N), jnp.float32)
            for t in range(d):
                col = h_ * d + t
                s = s + q[:, :, col:col + 1] * kT[:, col:col + 1, :]
            att = att + jnp.tanh(s * scale)                # reference scales by 1/sqrt(out_dim)
        att = att * (1.0 / num_heads)                      # head mean
        a_ref[c] = 0.5 * (att + jnp.swapaxes(att, -1, -2))  # symmetrization, in-kernel

        acc1 = acc1 + jnp.dot(v.reshape(Bt * N, -1), mw1_ref[c],
                              preferred_element_type=jnp.float32)

    # multi_channel MLP (2 layers, ELU between) + node mask + tanh
    h = acc1 + mb1_ref[...]
    h = _elu(h)
    h = jnp.dot(h, mw2_ref[...], preferred_element_type=jnp.float32) + mb2_ref[...]
    h = h.reshape(Bt, N, -1)
    xout_ref[...] = jnp.tanh(h * flags_ref[...])           # mask_x then tanh


def attn_layer_node(lp, x, adjc, flags_col, num_heads, bt_target=16):
    """x:(B,N,Fin), adjc:(C,B,N,N), flags_col:(B,N,1) -> x_out:(B,N,co), A:(C,B,N,N)."""
    C, B, N, _ = adjc.shape
    Fin = x.shape[-1]
    ad = lp["Wq"].shape[-1]
    co = lp["Wv"].shape[-1]
    (mw1, mb1), (mw2, mb2) = lp["multi_channel"]
    hid = mw1.shape[1]
    scale = 1.0 / float(co) ** 0.5
    Bt = _div_tile(B, bt_target)

    # stack/reshape small weights so every BlockSpec rank matches its array rank
    mw1_s = mw1.reshape(C, co, hid)                        # per-channel slices of layer-1 weight
    mb1_s = mb1.reshape(1, hid)
    mb2_s = mb2.reshape(1, co)

    kernel = functools.partial(_attn_layer_node_kernel, num_heads=num_heads,
                               scale=scale, num_channels=C)
    return pl.pallas_call(
        kernel,
        out_shape=(jax.ShapeDtypeStruct((B, N, co), jnp.float32),
                   jax.ShapeDtypeStruct((C, B, N, N), jnp.float32)),
        grid=(B // Bt,),
        in_specs=[
            pl.BlockSpec((Bt, N, Fin), lambda b: (b, 0, 0)),
            pl.BlockSpec((C, Bt, N, N), lambda b: (0, b, 0, 0)),
            # weights: constant block index -> stay resident in VMEM across grid steps
            pl.BlockSpec((C, Fin, ad), lambda b: (0, 0, 0)),
            pl.BlockSpec((C, 1, ad), lambda b: (0, 0, 0)),
            pl.BlockSpec((C, Fin, ad), lambda b: (0, 0, 0)),
            pl.BlockSpec((C, 1, ad), lambda b: (0, 0, 0)),
            pl.BlockSpec((C, Fin, co), lambda b: (0, 0, 0)),
            pl.BlockSpec((C, 1, co), lambda b: (0, 0, 0)),
            pl.BlockSpec((C, co, hid), lambda b: (0, 0, 0)),
            pl.BlockSpec((1, hid), lambda b: (0, 0)),
            pl.BlockSpec((hid, co), lambda b: (0, 0)),
            pl.BlockSpec((1, co), lambda b: (0, 0)),
            pl.BlockSpec((Bt, N, 1), lambda b: (b, 0, 0)),
        ],
        out_specs=(pl.BlockSpec((Bt, N, co), lambda b: (b, 0, 0)),
                   pl.BlockSpec((C, Bt, N, N), lambda b: (0, b, 0, 0))),
        compiler_params=pltpu.CompilerParams(dimension_semantics=("parallel",)),
    )(x, adjc, lp["Wq"], lp["bq"], lp["Wk"], lp["bk"], lp["Wv"], lp["bv"],
      mw1_s, mb1_s, mw2, mb2_s, flags_col)


# ----------------------------------------------------------------------------
# Kernel 3: lane-dense edge MLP over the flattened B*N*N edge axis, lane-tiled parallel grid
# ----------------------------------------------------------------------------
def _edge_mlp_kernel(*refs, n_chunks, n_layers, use_mask):
    pos = 0
    chunks = refs[pos:pos + n_chunks]; pos += n_chunks     # each (F_k, TM), edges on lanes
    mask_ref = None
    if use_mask:
        mask_ref = refs[pos]; pos += 1                     # (1, TM)
    w1 = refs[pos:pos + n_chunks]; pos += n_chunks         # (hid1, F_k) per chunk
    b1 = refs[pos]; pos += 1                               # (hid1, 1)
    rest = refs[pos:pos + 2 * (n_layers - 1)]; pos += 2 * (n_layers - 1)
    o_ref = refs[pos]

    # layer 0: sum of per-chunk matmuls == matmul over the (never materialized) concat
    h = None
    for kk in range(n_chunks):
        p = jnp.dot(w1[kk][...], chunks[kk][...], preferred_element_type=jnp.float32)
        h = p if h is None else h + p
    h = h + b1[...]
    for l in range(1, n_layers):
        h = _elu(h)                                        # activation between layers only
        wt = rest[2 * (l - 1)][...]                        # (out_l, in_l)
        bb = rest[2 * (l - 1) + 1][...]                    # (out_l, 1)
        h = jnp.dot(wt, h, preferred_element_type=jnp.float32) + bb
    if use_mask:
        h = h * mask_ref[...]
    o_ref[...] = h                                         # full-width lane-dense store


def edge_mlp(chunks, mask_flat, layers, *, apply_mask, unit, cap_units=32):
    """chunks: list of (F_k, B, N, N)-like arrays; returns (out_dim, M) with M = B*N*N."""
    chunks = [c.reshape(c.shape[0], -1) for c in chunks]   # free reshapes (contiguous)
    M = chunks[0].shape[1]
    n_chunks = len(chunks)
    n_layers = len(layers)
    out_dim = layers[-1][0].shape[1]
    if M % unit == 0:
        TM = unit * _div_tile(M // unit, cap_units)        # lane tile, multiple of N*N (>=128)
    else:
        TM = M

    args, in_specs = [], []
    for c in chunks:
        args.append(c)
        in_specs.append(pl.BlockSpec((c.shape[0], TM), lambda i: (0, i)))
    if apply_mask:
        args.append(mask_flat.reshape(1, M))
        in_specs.append(pl.BlockSpec((1, TM), lambda i: (0, i)))

    W1, b1 = layers[0]
    hid1 = W1.shape[1]
    off = 0
    for c in chunks:                                       # split layer-1 weight per chunk
        fk = c.shape[0]
        args.append(jnp.transpose(W1[off:off + fk]))       # (hid1, fk)
        in_specs.append(pl.BlockSpec((hid1, fk), lambda i: (0, 0)))
        off += fk
    assert off == W1.shape[0]
    args.append(b1.reshape(hid1, 1))
    in_specs.append(pl.BlockSpec((hid1, 1), lambda i: (0, 0)))
    for (W, b) in layers[1:]:
        args.append(jnp.transpose(W))
        in_specs.append(pl.BlockSpec((W.shape[1], W.shape[0]), lambda i: (0, 0)))
        args.append(b.reshape(-1, 1))
        in_specs.append(pl.BlockSpec((W.shape[1], 1), lambda i: (0, 0)))

    return pl.pallas_call(
        functools.partial(_edge_mlp_kernel, n_chunks=n_chunks, n_layers=n_layers,
                          use_mask=apply_mask),
        out_shape=jax.ShapeDtypeStruct((out_dim, M), jnp.float32),
        grid=(M // TM,),
        in_specs=in_specs,
        out_specs=pl.BlockSpec((out_dim, TM), lambda i: (0, i)),
        compiler_params=pltpu.CompilerParams(dimension_semantics=("parallel",)),
    )(*args)


# ----------------------------------------------------------------------------
# Model forward (only cheap reshapes + one small symmetrization epilogue stay in JAX)
# ----------------------------------------------------------------------------
def mask_adjs(adjs, flags):
    return adjs * flags[:, :, None] * flags[:, None, :]


def attention_layer_forward(lp, x, adjc, flags_col, fmask_flat, num_heads):
    C, B, N, _ = adjc.shape
    # fused node path: GCN Q/K/V + attention scores + multi_channel MLP + mask + tanh
    x_out, A = attn_layer_node(lp, x, adjc, flags_col, num_heads)
    # edge path: features per edge are [A_0..A_{C-1}, adj_0..adj_{C-1}] -> chunked, no concat,
    # no transposes; edge mask (symmetric) applied in-kernel.
    y = edge_mlp([A, adjc], fmask_flat, lp["mlp"], apply_mask=True, unit=N * N)
    out_c = y.shape[0]
    y4 = y.reshape(out_c, B, N, N)                         # free reshape, still channel-major
    # _adj + _adj^T on the small masked output (mask symmetric so it commutes); XLA fuses this.
    adj_out = y4 + jnp.swapaxes(y4, -1, -2)
    return x_out, adj_out


def score_network_a_forward(params, x, adj, flags, t):
    # t is intentionally unused — the reference ScoreNetworkA.forward ignores it.
    del t
    B, N, _ = adj.shape
    adjc = pow_tensor(adj, params["c_init"])               # (c_init, B, N, N) channel-major

    fmask = flags[:, :, None] * flags[:, None, :]          # (B, N, N)
    fmask_flat = fmask.reshape(1, B * N * N)
    flags_col = flags[:, :, None]                          # (B, N, 1)

    adj_list = [adjc]
    for lp in params["layers"]:
        x, adjc = attention_layer_forward(lp, x, adjc, flags_col, fmask_flat,
                                          params["num_heads"])
        adj_list.append(adjc)

    # final 3-layer MLP over fdim edge features; chunked inputs avoid the big concat,
    # diag-zero + flag mask fused into the kernel's masked store.
    diag_keep = 1.0 - jnp.eye(N, dtype=jnp.float32)
    final_mask = (fmask * diag_keep[None]).reshape(1, B * N * N)
    score = edge_mlp(adj_list, final_mask, params["final"], apply_mask=True, unit=N * N)
    return score.reshape(B, N, N)


# ----------------------------------------------------------------------------
# Deterministic parameter initialization (synthetic weights, no checkpoint)
# ----------------------------------------------------------------------------
def init_mlp(key, num_layers, in_dim, hid, out_dim):
    if num_layers == 1:
        dims = [(in_dim, out_dim)]
    else:
        dims = [(in_dim, hid)] + [(hid, hid)] * (num_layers - 2) + [(hid, out_dim)]
    layers = []
    for a, b in dims:
        key, k1, k2 = jax.random.split(key, 3)
        layers.append((jax.random.normal(k1, (a, b), jnp.float32) * 0.1,
                       jax.random.normal(k2, (b,), jnp.float32) * 0.01))
    return layers, key


def init_attention_layer(key, num_linears, conv_input_dim, attn_dim, conv_output_dim,
                         input_dim, output_dim, num_heads):
    C = input_dim
    p = {}
    for name, dim in (("q", attn_dim), ("k", attn_dim), ("v", conv_output_dim)):
        key, k1, k2 = jax.random.split(key, 3)
        p["W" + name] = jax.random.normal(k1, (C, conv_input_dim, dim), jnp.float32) * 0.1
        p["b" + name] = jax.random.normal(k2, (C, 1, dim), jnp.float32) * 0.01
    hidden_dim = 2 * max(input_dim, output_dim)
    p["mlp"], key = init_mlp(key, num_linears, 2 * input_dim, hidden_dim, output_dim)
    p["multi_channel"], key = init_mlp(key, 2, input_dim * conv_output_dim, hidden_dim,
                                       conv_output_dim)
    return p, key


def init_score_network_a(key, max_feat_num, max_node_num, nhid, num_layers, num_linears,
                         c_init, c_hid, c_final, adim, num_heads=4):
    layers = []
    for i in range(num_layers):
        if i == 0:
            cfg = (num_linears, max_feat_num, nhid, nhid, c_init, c_hid)
        elif i == num_layers - 1:
            cfg = (num_linears, nhid, adim, nhid, c_hid, c_final)
        else:
            cfg = (num_linears, nhid, adim, nhid, c_hid, c_hid)
        lp, key = init_attention_layer(key, *cfg, num_heads)
        layers.append(lp)
    fdim = c_hid * (num_layers - 1) + c_final + c_init
    final, key = init_mlp(key, 3, fdim, 2 * fdim, 1)
    return {"layers": layers, "final": final, "c_init": c_init, "num_heads": num_heads}


# ----------------------------------------------------------------------------
if __name__ == "__main__":
    key = jax.random.PRNGKey(0)
    B, N, F = 2, 16, 4                       # batch, max_node_num, max_feat_num
    nhid, num_layers, num_linears = 8, 2, 2
    c_init, c_hid, c_final = 2, 3, 4
    adim, num_heads = 8, 4

    kp, kx, ka = jax.random.split(key, 3)
    params = init_score_network_a(kp, F, N, nhid, num_layers, num_linears,
                                  c_init, c_hid, c_final, adim, num_heads)

    x = jax.random.normal(kx, (B, N, F), jnp.float32)
    a = jax.random.uniform(ka, (B, N, N), jnp.float32)
    adj = (0.5 * (a + jnp.swapaxes(a, 1, 2)) > 0.5).astype(jnp.float32)
    adj = adj * (1.0 - jnp.eye(N, dtype=jnp.float32))[None]       # symmetric, no self-loops
    n_nodes = jnp.array([16, 12])
    flags = (jnp.arange(N)[None, :] < n_nodes[:, None]).astype(jnp.float32)
    adj = mask_adjs(adj, flags)
    t = jnp.full((B,), 0.5, jnp.float32)                          # unused by forward

    fwd = jax.jit(functools.partial(score_network_a_forward, params))
    score = fwd(x, adj, flags, t)
    jax.block_until_ready(score)
    assert score.shape == (B, N, N) and score.dtype == jnp.float32
    assert bool(jnp.isfinite(score).all())
    print("KERNEL_OK")
</pallas_src>

<mosaic_0001>
module attributes {stable_mosaic.version = 11 : i64} {
  func.func @_pow_tensor_kernel(%arg0: i32, %arg1: memref<2x16x16xf32, #tpu.memory_space<vmem>>, %arg2: memref<2x2x16x16xf32, #tpu.memory_space<vmem>>) attributes {dimension_semantics = [#tpu.dimension_semantics<parallel>], iteration_bounds = array<i64: 1>, scalar_prefetch = 0 : i64, scratch_operands = 0 : i64, tpu.core_type = #tpu.core_type<tc>, window_params = [{transform_indices = @transform_0, window_bounds = array<i64: 2, 16, 16>}, {transform_indices = @transform_1, window_bounds = array<i64: 2, 2, 16, 16>}]} {
    %c0 = arith.constant 0 : index
    %c0_0 = arith.constant 0 : index
    %c0_1 = arith.constant 0 : index
    %0 = vector.load %arg1[%c0, %c0_0, %c0_1] : memref<2x16x16xf32, #tpu.memory_space<vmem>>, vector<2x16x16xf32>
    %c0_2 = arith.constant 0 : index
    %c0_3 = arith.constant 0 : index
    %c0_4 = arith.constant 0 : index
    %c0_5 = arith.constant 0 : index
    %1 = vector.load %arg2[%c0_2, %c0_3, %c0_4, %c0_5] : memref<2x2x16x16xf32, #tpu.memory_space<vmem>>, vector<1x2x16x16xf32>
    %2 = vector.shape_cast %1 : vector<1x2x16x16xf32> to vector<2x16x16xf32>
    %3 = vector.shape_cast %0 : vector<2x16x16xf32> to vector<1x2x16x16xf32>
    tpu.vector_store %arg2[%c0_2, %c0_3, %c0_4, %c0_5], %3 {strides = array<i32>} : memref<2x2x16x16xf32, #tpu.memory_space<vmem>>, vector<1x2x16x16xf32>,
    "tpu.trace_start"() <{level = 10 : i32, message = "bij,bjk->bik"}> : () -> ()
    %cst = arith.constant dense<0.000000e+00> : vector<2x16x16xf32>
    %4 = tpu.matmul %0, %0, %cst {dimension_numbers = #tpu.dot_dimension_numbers<[2], [1], [1], [2], [0, 0, 0, 1, 1, 2], [0], [0]>} : vector<2x16x16xf32>, vector<2x16x16xf32>, vector<2x16x16xf32> -> vector<2x16x16xf32>
    "tpu.trace_stop"() : () -> ()
    %c1 = arith.constant 1 : index
    %c0_6 = arith.constant 0 : index
    %c0_7 = arith.constant 0 : index
    %c0_8 = arith.constant 0 : index
    %5 = vector.load %arg2[%c1, %c0_6, %c0_7, %c0_8] : memref<2x2x16x16xf32, #tpu.memory_space<vmem>>, vector<1x2x16x16xf32>
    %6 = vector.shape_cast %5 : vector<1x2x16x16xf32> to vector<2x16x16xf32>
    %7 = vector.shape_cast %4 : vector<2x16x16xf32> to vector<1x2x16x16xf32>
    tpu.vector_store %arg2[%c1, %c0_6, %c0_7, %c0_8], %7 {strides = array<i32>} : memref<2x2x16x16xf32, #tpu.memory_space<vmem>>, vector<1x2x16x16xf32>,
    return
  }
  func.func @transform_0(%arg0: i32) -> (i32, i32, i32) {
    %c0_i32 = arith.constant 0 : i32
    %c0_i32_0 = arith.constant 0 : i32
    %c0_i32_1 = arith.constant 0 : i32
    return %arg0, %c0_i32, %c0_i32_0 : i32, i32, i32
  }
  func.func @transform_1(%arg0: i32) -> (i32, i32, i32, i32) {
    %c0_i32 = arith.constant 0 : i32
    %c0_i32_0 = arith.constant 0 : i32
    %c0_i32_1 = arith.constant 0 : i32
    %c0_i32_2 = arith.constant 0 : i32
    return %c0_i32, %arg0, %c0_i32_0, %c0_i32_1 : i32, i32, i32, i32
  }
}

module attributes {stable_mosaic.version = 11 : i64} {
  func.func @_attn_layer_node_kernel(%arg0: i32, %arg1: memref<2x16x4xf32, #tpu.memory_space<vmem>>, %arg2: memref<2x2x16x16xf32, #tpu.memory_space<vmem>>, %arg3: memref<2x4x8xf32, #tpu.memory_space<vmem>>, %arg4: memref<2x1x8xf32, #tpu.memory_space<vmem>>, %arg5: memref<2x4x8xf32, #tpu.memory_space<vmem>>, %arg6: memref<2x1x8xf32, #tpu.memory_space<vmem>>, %arg7: memref<2x4x8xf32, #tpu.memory_space<vmem>>, %arg8: memref<2x1x8xf32, #tpu.memory_space<vmem>>, %arg9: memref<2x8x6xf32, #tpu.memory_space<vmem>>, %arg10: memref<1x6xf32, #tpu.memory_space<vmem>>, %arg11: memref<6x8xf32, #tpu.memory_space<vmem>>, %arg12: memref<1x8xf32, #tpu.memory_space<vmem>>, %arg13: memref<2x16x1xf32, #tpu.memory_space<vmem>>, %arg14: memref<2x16x8xf32, #tpu.memory_space<vmem>>, %arg15: memref<2x2x16x16xf32, #tpu.memory_space<vmem>>) attributes {dimension_semantics = [#tpu.dimension_semantics<parallel>], iteration_bounds = array<i64: 1>, scalar_prefetch = 0 : i64, scratch_operands = 0 : i64, tpu.core_type = #tpu.core_type<tc>, window_params = [{transform_indices = @transform_0, window_bounds = array<i64: 2, 16, 4>}, {transform_indices = @transform_1, window_bounds = array<i64: 2, 2, 16, 16>}, {pipeline_mode = #tpu.pipeline_mode<synchronous>, transform_indices = @transform_2, window_bounds = array<i64: 2, 4, 8>}, {pipeline_mode = #tpu.pipeline_mode<synchronous>, transform_indices = @transform_3, window_bounds = array<i64: 2, 1, 8>}, {pipeline_mode = #tpu.pipeline_mode<synchronous>, transform_indices = @transform_4, window_bounds = array<i64: 2, 4, 8>}, {pipeline_mode = #tpu.pipeline_mode<synchronous>, transform_indices = @transform_5, window_bounds = array<i64: 2, 1, 8>}, {pipeline_mode = #tpu.pipeline_mode<synchronous>, transform_indices = @transform_6, window_bounds = array<i64: 2, 4, 8>}, {pipeline_mode = #tpu.pipeline_mode<synchronous>, transform_indices = @transform_7, window_bounds = array<i64: 2, 1, 8>}, {pipeline_mode = #tpu.pipeline_mode<synchronous>, transform_indices = @transform_8, window_bounds = array<i64: 2, 8, 6>}, {pipeline_mode = #tpu.pipeline_mode<synchronous>, transform_indices = @transform_9, window_bounds = array<i64: 1, 6>}, {pipeline_mode = #tpu.pipeline_mode<synchronous>, transform_indices = @transform_10, window_bounds = array<i64: 6, 8>}, {pipeline_mode = #tpu.pipeline_mode<synchronous>, transform_indices = @transform_11, window_bounds = array<i64: 1, 8>}, {transform_indices = @transform_12, window_bounds = array<i64: 2, 16, 1>}, {transform_indices = @transform_13, window_bounds = array<i64: 2, 16, 8>}, {transform_indices = @transform_14, window_bounds = array<i64: 2, 2, 16, 16>}]} {
    %c0 = arith.constant 0 : index
    %c0_0 = arith.constant 0 : index
    %c0_1 = arith.constant 0 : index
    %0 = vector.load %arg1[%c0, %c0_0, %c0_1] : memref<2x16x4xf32, #tpu.memory_space<vmem>>, vector<2x16x4xf32>
    %1 = vector.shape_cast %0 : vector<2x16x4xf32> to vector<32x4xf32>
    %2 = tpu.iota {dimensions = array<i32: 1>} : vector<1x16x16xi32>
    %3 = tpu.iota {dimensions = array<i32: 2>} : vector<1x16x16xi32>
    %4 = arith.cmpi eq, %2, %3 : vector<1x16x16xi32>
    %cst = arith.constant 0.000000e+00 : f32
    %5 = vector.broadcast %cst : f32 to vector<32x6xf32>
    %c0_2 = arith.constant 0 : index
    %c0_3 = arith.constant 0 : index
    %c0_4 = arith.constant 0 : index
    %c0_5 = arith.constant 0 : index
    %6 = vector.load %arg2[%c0_2, %c0_3, %c0_4, %c0_5] : memref<2x2x16x16xf32, #tpu.memory_space<vmem>>, vector<1x2x16x16xf32>
    %7 = vector.shape_cast %6 : vector<1x2x16x16xf32> to vector<2x16x16xf32>
    %cst_6 = arith.constant 1.000000e+00 : f32
    %8 = vector.shape_cast %4 : vector<1x16x16xi1> to vector<1x16x16xi1>
    %9 = vector.broadcast %8 : vector<1x16x16xi1> to vector<2x16x16xi1>
    %10 = vector.broadcast %cst_6 : f32 to vector<2x16x16xf32>
    %11 = arith.select %9, %10, %7 : vector<2x16x16xi1>, vector<2x16x16xf32>
    %cst_7 = arith.constant dense<0.000000e+00> : vector<2x16xf32>
    %12 = vector.multi_reduction <add>, %11, %cst_7 [2] : vector<2x16x16xf32> to vector<2x16xf32>
    %13 = vector.shape_cast %12 : vector<2x16xf32> to vector<2x16x1xf32>
    %cst_8 = arith.constant 1.000000e+00 : f32
    %14 = vector.broadcast %cst_8 : f32 to vector<2x16x1xf32>
    %15 = arith.maximumf %13, %14 : vector<2x16x1xf32>
    %16 = math.rsqrt %15 : vector<2x16x1xf32>
    %c0_9 = arith.constant 0 : index
    %c0_10 = arith.constant 0 : index
    %c0_11 = arith.constant 0 : index
    %17 = vector.load %arg3[%c0_9, %c0_10, %c0_11] : memref<2x4x8xf32, #tpu.memory_space<vmem>>, vector<1x4x8xf32>
    %18 = vector.shape_cast %17 : vector<1x4x8xf32> to vector<4x8xf32>
    %c0_12 = arith.constant 0 : index
    %c0_13 = arith.constant 0 : index
    %c0_14 = arith.constant 0 : index
    %19 = vector.load %arg4[%c0_12, %c0_13, %c0_14] : memref<2x1x8xf32, #tpu.memory_space<vmem>>, vector<1x1x8xf32>
    %20 = vector.shape_cast %19 : vector<1x1x8xf32> to vector<1x8xf32>
    %cst_15 = arith.constant dense<0.000000e+00> : vector<32x8xf32>
    %21 = tpu.matmul %1, %18, %cst_15 {dimension_numbers = #tpu.dot_dimension_numbers<[1], [0], [0], [1], [0, 0, 1, 1], [], []>} : vector<32x4xf32>, vector<4x8xf32>, vector<32x8xf32> -> vector<32x8xf32>
    %22 = vector.shape_cast %21 : vector<32x8xf32> to vector<2x16x8xf32>
    %23 = vector.broadcast %16 : vector<2x16x1xf32> to vector<2x16x8xf32>
    %24 = arith.mulf %23, %22 : vector<2x16x8xf32>
    "tpu.trace_start"() <{level = 10 : i32, message = "bij,bjd->bid"}> : () -> ()
    %cst_16 = arith.constant dense<0.000000e+00> : vector<2x16x8xf32>
    %25 = tpu.matmul %11, %24, %cst_16 {dimension_numbers = #tpu.dot_dimension_numbers<[2], [1], [1], [2], [0, 0, 0, 1, 1, 2], [0], [0]>} : vector<2x16x16xf32>, vector<2x16x8xf32>, vector<2x16x8xf32> -> vector<2x16x8xf32>
    "tpu.trace_stop"() : () -> ()
    %26 = vector.broadcast %16 : vector<2x16x1xf32> to vector<2x16x8xf32>
    %27 = arith.mulf %26, %25 : vector<2x16x8xf32>
    %28 = vector.shape_cast %20 : vector<1x8xf32> to vector<1x1x8xf32>
    %29 = vector.broadcast %28 : vector<1x1x8xf32> to vector<2x16x8xf32>
    %30 = arith.addf %27, %29 : vector<2x16x8xf32>
    %c0_17 = arith.constant 0 : index
    %c0_18 = arith.constant 0 : index
    %c0_19 = arith.constant 0 : index
    %31 = vector.load %arg5[%c0_17, %c0_18, %c0_19] : memref<2x4x8xf32, #tpu.memory_space<vmem>>, vector<1x4x8xf32>
    %32 = vector.shape_cast %31 : vector<1x4x8xf32> to vector<4x8xf32>
    %c0_20 = arith.constant 0 : index
    %c0_21 = arith.constant 0 : index
    %c0_22 = arith.constant 0 : index
    %33 = vector.load %arg6[%c0_20, %c0_21, %c0_22] : memref<2x1x8xf32, #tpu.memory_space<vmem>>, vector<1x1x8xf32>
    %34 = vector.shape_cast %33 : vector<1x1x8xf32> to vector<1x8xf32>
    %cst_23 = arith.constant dense<0.000000e+00> : vector<32x8xf32>
    %35 = tpu.matmul %1, %32, %cst_23 {dimension_numbers = #tpu.dot_dimension_numbers<[1], [0], [0], [1], [0, 0, 1, 1], [], []>} : vector<32x4xf32>, vector<4x8xf32>, vector<32x8xf32> -> vector<32x8xf32>
    %36 = vector.shape_cast %35 : vector<32x8xf32> to vector<2x16x8xf32>
    %37 = vector.broadcast %16 : vector<2x16x1xf32> to vector<2x16x8xf32>
    %38 = arith.mulf %37, %36 : vector<2x16x8xf32>
    "tpu.trace_start"() <{level = 10 : i32, message = "bij,bjd->bid"}> : () -> ()
    %cst_24 = arith.constant dense<0.000000e+00> : vector<2x16x8xf32>
    %39 = tpu.matmul %11, %38, %cst_24 {dimension_numbers = #tpu.dot_dimension_numbers<[2], [1], [1], [2], [0, 0, 0, 1, 1, 2], [0], [0]>} : vector<2x16x16xf32>, vector<2x16x8xf32>, vector<2x16x8xf32> -> vector<2x16x8xf32>
    "tpu.trace_stop"() : () -> ()
    %40 = vector.broadcast %16 : vector<2x16x1xf32> to vector<2x16x8xf32>
    %41 = arith.mulf %40, %39 : vector<2x16x8xf32>
    %42 = vector.shape_cast %34 : vector<1x8xf32> to vector<1x1x8xf32>
    %43 = vector.broadcast %42 : vector<1x1x8xf32> to vector<2x16x8xf32>
    %44 = arith.addf %41, %43 : vector<2x16x8xf32>
    %c0_25 = arith.constant 0 : index
    %c0_26 = arith.constant 0 : index
    %c0_27 = arith.constant 0 : index
    %45 = vector.load %arg7[%c0_25, %c0_26, %c0_27] : memref<2x4x8xf32, #tpu.memory_space<vmem>>, vector<1x4x8xf32>
    %46 = vector.shape_cast %45 : vector<1x4x8xf32> to vector<4x8xf32>
    %c0_28 = arith.constant 0 : index
    %c0_29 = arith.constant 0 : index
    %c0_30 = arith.constant 0 : index
    %47 = vector.load %arg8[%c0_28, %c0_29, %c0_30] : memref<2x1x8xf32, #tpu.memory_space<vmem>>, vector<1x1x8xf32>
    %48 = vector.shape_cast %47 : vector<1x1x8xf32> to vector<1x8xf32>
    %cst_31 = arith.constant dense<0.000000e+00> : vector<32x8xf32>
    %49 = tpu.matmul %1, %46, %cst_31 {dimension_numbers = #tpu.dot_dimension_numbers<[1], [0], [0], [1], [0, 0, 1, 1], [], []>} : vector<32x4xf32>, vector<4x8xf32>, vector<32x8xf32> -> vector<32x8xf32>
    %50 = vector.shape_cast %49 : vector<32x8xf32> to vector<2x16x8xf32>
    %51 = vector.broadcast %16 : vector<2x16x1xf32> to vector<2x16x8xf32>
    %52 = arith.mulf %51, %50 : vector<2x16x8xf32>
    "tpu.trace_start"() <{level = 10 : i32, message = "bij,bjd->bid"}> : () -> ()
    %cst_32 = arith.constant dense<0.000000e+00> : vector<2x16x8xf32>
    %53 = tpu.matmul %11, %52, %cst_32 {dimension_numbers = #tpu.dot_dimension_numbers<[2], [1], [1], [2], [0, 0, 0, 1, 1, 2], [0], [0]>} : vector<2x16x16xf32>, vector<2x16x8xf32>, vector<2x16x8xf32> -> vector<2x16x8xf32>
    "tpu.trace_stop"() : () -> ()
    %54 = vector.broadcast %16 : vector<2x16x1xf32> to vector<2x16x8xf32>
    %55 = arith.mulf %54, %53 : vector<2x16x8xf32>
    %56 = vector.shape_cast %48 : vector<1x8xf32> to vector<1x1x8xf32>
    %57 = vector.broadcast %56 : vector<1x1x8xf32> to vector<2x16x8xf32>
    %58 = arith.addf %55, %57 : vector<2x16x8xf32>
    %59 = tpu.transpose %44, [0, 2, 1] : vector<2x16x8xf32> -> vector<2x8x16xf32>
    %cst_33 = arith.constant 0.000000e+00 : f32
    %60 = vector.broadcast %cst_33 : f32 to vector<2x16x16xf32>
    %cst_34 = arith.constant 0.000000e+00 : f32
    %61 = vector.broadcast %cst_34 : f32 to vector<2x16x16xf32>
    %62 = vector.extract_strided_slice %30 {offsets = [0, 0, 0], sizes = [2, 16, 1], strides = [1, 1, 1]} : vector<2x16x8xf32> to vector<2x16x1xf32>
    %63 = vector.extract_strided_slice %59 {offsets = [0, 0, 0], sizes = [2, 1, 16], strides = [1, 1, 1]} : vector<2x8x16xf32> to vector<2x1x16xf32>
    %64 = vector.broadcast %62 : vector<2x16x1xf32> to vector<2x16x16xf32>
    %65 = vector.broadcast %63 : vector<2x1x16xf32> to vector<2x16x16xf32>
    %66 = arith.mulf %64, %65 : vector<2x16x16xf32>
    %67 = arith.addf %61, %66 : vector<2x16x16xf32>
    %68 = vector.extract_strided_slice %30 {offsets = [0, 0, 1], sizes = [2, 16, 1], strides = [1, 1, 1]} : vector<2x16x8xf32> to vector<2x16x1xf32>
    %69 = vector.extract_strided_slice %59 {offsets = [0, 1, 0], sizes = [2, 1, 16], strides = [1, 1, 1]} : vector<2x8x16xf32> to vector<2x1x16xf32>
    %70 = vector.broadcast %68 : vector<2x16x1xf32> to vector<2x16x16xf32>
    %71 = vector.broadcast %69 : vector<2x1x16xf32> to vector<2x16x16xf32>
    %72 = arith.mulf %70, %71 : vector<2x16x16xf32>
    %73 = arith.addf %67, %72 : vector<2x16x16xf32>
    %cst_35 = arith.constant 0.353553385 : f32
    %74 = vector.broadcast %cst_35 : f32 to vector<2x16x16xf32>
    %75 = arith.mulf %73, %74 : vector<2x16x16xf32>
    %76 = math.tanh %75 : vector<2x16x16xf32>
    %77 = arith.addf %60, %76 : vector<2x16x16xf32>
    %cst_36 = arith.constant 0.000000e+00 : f32
    %78 = vector.broadcast %cst_36 : f32 to vector<2x16x16xf32>
    %79 = vector.extract_strided_slice %30 {offsets = [0, 0, 2], sizes = [2, 16, 1], strides = [1, 1, 1]} : vector<2x16x8xf32> to vector<2x16x1xf32>
    %80 = vector.extract_strided_slice %59 {offsets = [0, 2, 0], sizes = [2, 1, 16], strides = [1, 1, 1]} : vector<2x8x16xf32> to vector<2x1x16xf32>
    %81 = vector.broadcast %79 : vector<2x16x1xf32> to vector<2x16x16xf32>
    %82 = vector.broadcast %80 : vector<2x1x16xf32> to vector<2x16x16xf32>
    %83 = arith.mulf %81, %82 : vector<2x16x16xf32>
    %84 = arith.addf %78, %83 : vector<2x16x16xf32>
    %85 = vector.extract_strided_slice %30 {offsets = [0, 0, 3], sizes = [2, 16, 1], strides = [1, 1, 1]} : vector<2x16x8xf32> to vector<2x16x1xf32>
    %86 = vector.extract_strided_slice %59 {offsets = [0, 3, 0], sizes = [2, 1, 16], strides = [1, 1, 1]} : vector<2x8x16xf32> to vector<2x1x16xf32>
    %87 = vector.broadcast %85 : vector<2x16x1xf32> to vector<2x16x16xf32>
    %88 = vector.broadcast %86 : vector<2x1x16xf32> to vector<2x16x16xf32>
    %89 = arith.mulf %87, %88 : vector<2x16x16xf32>
    %90 = arith.addf %84, %89 : vector<2x16x16xf32>
    %cst_37 = arith.constant 0.353553385 : f32
    %91 = vector.broadcast %cst_37 : f32 to vector<2x16x16xf32>
    %92 = arith.mulf %90, %91 : vector<2x16x16xf32>
    %93 = math.tanh %92 : vector<2x16x16xf32>
    %94 = arith.addf %77, %93 : vector<2x16x16xf32>
    %cst_38 = arith.constant 0.000000e+00 : f32
    %95 = vector.broadcast %cst_38 : f32 to vector<2x16x16xf32>
    %96 = vector.extract_strided_slice %30 {offsets = [0, 0, 4], sizes = [2, 16, 1], strides = [1, 1, 1]} : vector<2x16x8xf32> to vector<2x16x1xf32>
    %97 = vector.extract_strided_slice %59 {offsets = [0, 4, 0], sizes = [2, 1, 16], strides = [1, 1, 1]} : vector<2x8x16xf32> to vector<2x1x16xf32>
    %98 = vector.broadcast %96 : vector<2x16x1xf32> to vector<2x16x16xf32>
    %99 = vector.broadcast %97 : vector<2x1x16xf32> to vector<2x16x16xf32>
    %100 = arith.mulf %98, %99 : vector<2x16x16xf32>
    %101 = arith.addf %95, %100 : vector<2x16x16xf32>
    %102 = vector.extract_strided_slice %30 {offsets = [0, 0, 5], sizes = [2, 16, 1], strides = [1, 1, 1]} : vector<2x16x8xf32> to vector<2x16x1xf32>
    %103 = vector.extract_strided_slice %59 {offsets = [0, 5, 0], sizes = [2, 1, 16], strides = [1, 1, 1]} : vector<2x8x16xf32> to vector<2x1x16xf32>
    %104 = vector.broadcast %102 : vector<2x16x1xf32> to vector<2x16x16xf32>
    %105 = vector.broadcast %103 : vector<2x1x16xf32> to vector<2x16x16xf32>
    %106 = arith.mulf %104, %105 : vector<2x16x16xf32>
    %107 = arith.addf %101, %106 : vector<2x16x16xf32>
    %cst_39 = arith.constant 0.353553385 : f32
    %108 = vector.broadcast %cst_39 : f32 to vector<2x16x16xf32>
    %109 = arith.mulf %107, %108 : vector<2x16x16xf32>
    %110 = math.tanh %109 : vector<2x16x16xf32>
    %111 = arith.addf %94, %110 : vector<2x16x16xf32>
    %cst_40 = arith.constant 0.000000e+00 : f32
    %112 = vector.broadcast %cst_40 : f32 to vector<2x16x16xf32>
    %113 = vector.extract_strided_slice %30 {offsets = [0, 0, 6], sizes = [2, 16, 1], strides = [1, 1, 1]} : vector<2x16x8xf32> to vector<2x16x1xf32>
    %114 = vector.extract_strided_slice %59 {offsets = [0, 6, 0], sizes = [2, 1, 16], strides = [1, 1, 1]} : vector<2x8x16xf32> to vector<2x1x16xf32>
    %115 = vector.broadcast %113 : vector<2x16x1xf32> to vector<2x16x16xf32>
    %116 = vector.broadcast %114 : vector<2x1x16xf32> to vector<2x16x16xf32>
    %117 = arith.mulf %115, %116 : vector<2x16x16xf32>
    %118 = arith.addf %112, %117 : vector<2x16x16xf32>
    %119 = vector.extract_strided_slice %30 {offsets = [0, 0, 7], sizes = [2, 16, 1], strides = [1, 1, 1]} : vector<2x16x8xf32> to vector<2x16x1xf32>
    %120 = vector.extract_strided_slice %59 {offsets = [0, 7, 0], sizes = [2, 1, 16], strides = [1, 1, 1]} : vector<2x8x16xf32> to vector<2x1x16xf32>
    %121 = vector.broadcast %119 : vector<2x16x1xf32> to vector<2x16x16xf32>
    %122 = vector.broadcast %120 : vector<2x1x16xf32> to vector<2x16x16xf32>
    %123 = arith.mulf %121, %122 : vector<2x16x16xf32>
    %124 = arith.addf %118, %123 : vector<2x16x16xf32>
    %cst_41 = arith.constant 0.353553385 : f32
    %125 = vector.broadcast %cst_41 : f32 to vector<2x16x16xf32>
    %126 = arith.mulf %124, %125 : vector<2x16x16xf32>
    %127 = math.tanh %126 : vector<2x16x16xf32>
    %128 = arith.addf %111, %127 : vector<2x16x16xf32>
    %cst_42 = arith.constant 2.500000e-01 : f32
    %129 = vector.broadcast %cst_42 : f32 to vector<2x16x16xf32>
    %130 = arith.mulf %128, %129 : vector<2x16x16xf32>
    %131 = tpu.transpose %130, [0, 2, 1] : vector<2x16x16xf32> -> vector<2x16x16xf32>
    %132 = arith.addf %130, %131 : vector<2x16x16xf32>
    %cst_43 = arith.constant 5.000000e-01 : f32
    %133 = vector.broadcast %cst_43 : f32 to vector<2x16x16xf32>
    %134 = arith.mulf %133, %132 : vector<2x16x16xf32>
    %c0_44 = arith.constant 0 : index
    %c0_45 = arith.constant 0 : index
    %c0_46 = arith.constant 0 : index
    %c0_47 = arith.constant 0 : index
    %135 = vector.load %arg15[%c0_44, %c0_45, %c0_46, %c0_47] : memref<2x2x16x16xf32, #tpu.memory_space<vmem>>, vector<1x2x16x16xf32>
    %136 = vector.shape_cast %135 : vector<1x2x16x16xf32> to vector<2x16x16xf32>
    %137 = vector.shape_cast %134 : vector<2x16x16xf32> to vector<1x2x16x16xf32>
    tpu.vector_store %arg15[%c0_44, %c0_45, %c0_46, %c0_47], %137 {strides = array<i32>} : memref<2x2x16x16xf32, #tpu.memory_space<vmem>>, vector<1x2x16x16xf32>,
    %138 = vector.shape_cast %58 : vector<2x16x8xf32> to vector<32x8xf32>
    %c0_48 = arith.constant 0 : index
    %c0_49 = arith.constant 0 : index
    %c0_50 = arith.constant 0 : index
    %139 = vector.load %arg9[%c0_48, %c0_49, %c0_50] : memref<2x8x6xf32, #tpu.memory_space<vmem>>, vector<1x8x6xf32>
    %140 = vector.shape_cast %139 : vector<1x8x6xf32> to vector<8x6xf32>
    %cst_51 = arith.constant dense<0.000000e+00> : vector<32x6xf32>
    %141 = tpu.matmul %138, %140, %cst_51 {dimension_numbers = #tpu.dot_dimension_numbers<[1], [0], [0], [1], [0, 0, 1, 1], [], []>} : vector<32x8xf32>, vector<8x6xf32>, vector<32x6xf32> -> vector<32x6xf32>
    %142 = arith.addf %5, %141 : vector<32x6xf32>
    %c1 = arith.constant 1 : index
    %c0_52 = arith.constant 0 : index
    %c0_53 = arith.constant 0 : index
    %c0_54 = arith.constant 0 : index
    %143 = vector.load %arg2[%c1, %c0_52, %c0_53, %c0_54] : memref<2x2x16x16xf32, #tpu.memory_space<vmem>>, vector<1x2x16x16xf32>
    %144 = vector.shape_cast %143 : vector<1x2x16x16xf32> to vector<2x16x16xf32>
    %cst_55 = arith.constant 1.000000e+00 : f32
    %145 = vector.shape_cast %4 : vector<1x16x16xi1> to vector<1x16x16xi1>
    %146 = vector.broadcast %145 : vector<1x16x16xi1> to vector<2x16x16xi1>
    %147 = vector.broadcast %cst_55 : f32 to vector<2x16x16xf32>
    %148 = arith.select %146, %147, %144 : vector<2x16x16xi1>, vector<2x16x16xf32>
    %cst_56 = arith.constant dense<0.000000e+00> : vector<2x16xf32>
    %149 = vector.multi_reduction <add>, %148, %cst_56 [2] : vector<2x16x16xf32> to vector<2x16xf32>
    %150 = vector.shape_cast %149 : vector<2x16xf32> to vector<2x16x1xf32>
    %cst_57 = arith.constant 1.000000e+00 : f32
    %151 = vector.broadcast %cst_57 : f32 to vector<2x16x1xf32>
    %152 = arith.maximumf %150, %151 : vector<2x16x1xf32>
    %153 = math.rsqrt %152 : vector<2x16x1xf32>
    %c1_58 = arith.constant 1 : index
    %c0_59 = arith.constant 0 : index
    %c0_60 = arith.constant 0 : index
    %154 = vector.load %arg3[%c1_58, %c0_59, %c0_60] : memref<2x4x8xf32, #tpu.memory_space<vmem>>, vector<1x4x8xf32>
    %155 = vector.shape_cast %154 : vector<1x4x8xf32> to vector<4x8xf32>
    %c1_61 = arith.constant 1 : index
    %c0_62 = arith.constant 0 : index
    %c0_63 = arith.constant 0 : index
    %156 = vector.load %arg4[%c1_61, %c0_62, %c0_63] : memref<2x1x8xf32, #tpu.memory_space<vmem>>, vector<1x1x8xf32>
    %157 = vector.shape_cast %156 : vector<1x1x8xf32> to vector<1x8xf32>
    %cst_64 = arith.constant dense<0.000000e+00> : vector<32x8xf32>
    %158 = tpu.matmul %1, %155, %cst_64 {dimension_numbers = #tpu.dot_dimension_numbers<[1], [0], [0], [1], [0, 0, 1, 1], [], []>} : vector<32x4xf32>, vector<4x8xf32>, vector<32x8xf32> -> vector<32x8xf32>
    %159 = vector.shape_cast %158 : vector<32x8xf32> to vector<2x16x8xf32>
    %160 = vector.broadcast %153 : vector<2x16x1xf32> to vector<2x16x8xf32>
    %161 = arith.mulf %160, %159 : vector<2x16x8xf32>
    "tpu.trace_start"() <{level = 10 : i32, message = "bij,bjd->bid"}> : () -> ()
    %cst_65 = arith.constant dense<0.000000e+00> : vector<2x16x8xf32>
    %162 = tpu.matmul %148, %161, %cst_65 {dimension_numbers = #tpu.dot_dimension_numbers<[2], [1], [1], [2], [0, 0, 0, 1, 1, 2], [0], [0]>} : vector<2x16x16xf32>, vector<2x16x8xf32>, vector<2x16x8xf32> -> vector<2x16x8xf32>
    "tpu.trace_stop"() : () -> ()
    %163 = vector.broadcast %153 : vector<2x16x1xf32> to vector<2x16x8xf32>
    %164 = arith.mulf %163, %162 : vector<2x16x8xf32>
    %165 = vector.shape_cast %157 : vector<1x8xf32> to vector<1x1x8xf32>
    %166 = vector.broadcast %165 : vector<1x1x8xf32> to vector<2x16x8xf32>
    %167 = arith.addf %164, %166 : vector<2x16x8xf32>
    %c1_66 = arith.constant 1 : index
    %c0_67 = arith.constant 0 : index
    %c0_68 = arith.constant 0 : index
    %168 = vector.load %arg5[%c1_66, %c0_67, %c0_68] : memref<2x4x8xf32, #tpu.memory_space<vmem>>, vector<1x4x8xf32>
    %169 = vector.shape_cast %168 : vector<1x4x8xf32> to vector<4x8xf32>
    %c1_69 = arith.constant 1 : index
    %c0_70 = arith.constant 0 : index
    %c0_71 = arith.constant 0 : index
    %170 = vector.load %arg6[%c1_69, %c0_70, %c0_71] : memref<2x1x8xf32, #tpu.memory_space<vmem>>, vector<1x1x8xf32>
    %171 = vector.shape_cast %170 : vector<1x1x8xf32> to vector<1x8xf32>
    %cst_72 = arith.constant dense<0.000000e+00> : vector<32x8xf32>
    %172 = tpu.matmul %1, %169, %cst_72 {dimension_numbers = #tpu.dot_dimension_numbers<[1], [0], [0], [1], [0, 0, 1, 1], [], []>} : vector<32x4xf32>, vector<4x8xf32>, vector<32x8xf32> -> vector<32x8xf32>
    %173 = vector.shape_cast %172 : vector<32x8xf32> to vector<2x16x8xf32>
    %174 = vector.broadcast %153 : vector<2x16x1xf32> to vector<2x16x8xf32>
    %175 = arith.mulf %174, %173 : vector<2x16x8xf32>
    "tpu.trace_start"() <{level = 10 : i32, message = "bij,bjd->bid"}> : () -> ()
    %cst_73 = arith.constant dense<0.000000e+00> : vector<2x16x8xf32>
    %176 = tpu.matmul %148, %175, %cst_73 {dimension_numbers = #tpu.dot_dimension_numbers<[2], [1], [1], [2], [0, 0, 0, 1, 1, 2], [0], [0]>} : vector<2x16x16xf32>, vector<2x16x8xf32>, vector<2x16x8xf32> -> vector<2x16x8xf32>
    "tpu.trace_stop"() : () -> ()
    %177 = vector.broadcast %153 : vector<2x16x1xf32> to vector<2x16x8xf32>
    %178 = arith.mulf %177, %176 : vector<2x16x8xf32>
    %179 = vector.shape_cast %171 : vector<1x8xf32> to vector<1x1x8xf32>
    %180 = vector.broadcast %179 : vector<1x1x8xf32> to vector<2x16x8xf32>
    %181 = arith.addf %178, %180 : vector<2x16x8xf32>
    %c1_74 = arith.constant 1 : index
    %c0_75 = arith.constant 0 : index
    %c0_76 = arith.constant 0 : index
    %182 = vector.load %arg7[%c1_74, %c0_75, %c0_76] : memref<2x4x8xf32, #tpu.memory_space<vmem>>, vector<1x4x8xf32>
    %183 = vector.shape_cast %182 : vector<1x4x8xf32> to vector<4x8xf32>
    %c1_77 = arith.constant 1 : index
    %c0_78 = arith.constant 0 : index
    %c0_79 = arith.constant 0 : index
    %184 = vector.load %arg8[%c1_77, %c0_78, %c0_79] : memref<2x1x8xf32, #tpu.memory_space<vmem>>, vector<1x1x8xf32>
    %185 = vector.shape_cast %184 : vector<1x1x8xf32> to vector<1x8xf32>
    %cst_80 = arith.constant dense<0.000000e+00> : vector<32x8xf32>
    %186 = tpu.matmul %1, %183, %cst_80 {dimension_numbers = #tpu.dot_dimension_numbers<[1], [0], [0], [1], [0, 0, 1, 1], [], []>} : vector<32x4xf32>, vector<4x8xf32>, vector<32x8xf32> -> vector<32x8xf32>
    %187 = vector.shape_cast %186 : vector<32x8xf32> to vector<2x16x8xf32>
    %188 = vector.broadcast %153 : vector<2x16x1xf32> to vector<2x16x8xf32>
    %189 = arith.mulf %188, %187 : vector<2x16x8xf32>
    "tpu.trace_start"() <{level = 10 : i32, message = "bij,bjd->bid"}> : () -> ()
    %cst_81 = arith.constant dense<0.000000e+00> : vector<2x16x8xf32>
    %190 = tpu.matmul %148, %189, %cst_81 {dimension_numbers = #tpu.dot_dimension_numbers<[2], [1], [1], [2], [0, 0, 0, 1, 1, 2], [0], [0]>} : vector<2x16x16xf32>, vector<2x16x8xf32>, vector<2x16x8xf32> -> vector<2x16x8xf32>
    "tpu.trace_stop"() : () -> ()
    %191 = vector.broadcast %153 : vector<2x16x1xf32> to vector<2x16x8xf32>
    %192 = arith.mulf %191, %190 : vector<2x16x8xf32>
    %193 = vector.shape_cast %185 : vector<1x8xf32> to vector<1x1x8xf32>
    %194 = vector.broadcast %193 : vector<1x1x8xf32> to vector<2x16x8xf32>
    %195 = arith.addf %192, %194 : vector<2x16x8xf32>
    %196 = tpu.transpose %181, [0, 2, 1] : vector<2x16x8xf32> -> vector<2x8x16xf32>
    %cst_82 = arith.constant 0.000000e+00 : f32
    %197 = vector.broadcast %cst_82 : f32 to vector<2x16x16xf32>
    %cst_83 = arith.constant 0.000000e+00 : f32
    %198 = vector.broadcast %cst_83 : f32 to vector<2x16x16xf32>
    %199 = vector.extract_strided_slice %167 {offsets = [0, 0, 0], sizes = [2, 16, 1], strides = [1, 1, 1]} : vector<2x16x8xf32> to vector<2x16x1xf32>
    %200 = vector.extract_strided_slice %196 {offsets = [0, 0, 0], sizes = [2, 1, 16], strides = [1, 1, 1]} : vector<2x8x16xf32> to vector<2x1x16xf32>
    %201 = vector.broadcast %199 : vector<2x16x1xf32> to vector<2x16x16xf32>
    %202 = vector.broadcast %200 : vector<2x1x16xf32> to vector<2x16x16xf32>
    %203 = arith.mulf %201, %202 : vector<2x16x16xf32>
    %204 = arith.addf %198, %203 : vector<2x16x16xf32>
    %205 = vector.extract_strided_slice %167 {offsets = [0, 0, 1], sizes = [2, 16, 1], strides = [1, 1, 1]} : vector<2x16x8xf32> to vector<2x16x1xf32>
    %206 = vector.extract_strided_slice %196 {offsets = [0, 1, 0], sizes = [2, 1, 16], strides = [1, 1, 1]} : vector<2x8x16xf32> to vector<2x1x16xf32>
    %207 = vector.broadcast %205 : vector<2x16x1xf32> to vector<2x16x16xf32>
    %208 = vector.broadcast %206 : vector<2x1x16xf32> to vector<2x16x16xf32>
    %209 = arith.mulf %207, %208 : vector<2x16x16xf32>
    %210 = arith.addf %204, %209 : vector<2x16x16xf32>
    %cst_84 = arith.constant 0.353553385 : f32
    %211 = vector.broadcast %cst_84 : f32 to vector<2x16x16xf32>
    %212 = arith.mulf %210, %211 : vector<2x16x16xf32>
    %213 = math.tanh %212 : vector<2x16x16xf32>
    %214 = arith.addf %197, %213 : vector<2x16x16xf32>
    %cst_85 = arith.constant 0.000000e+00 : f32
    %215 = vector.broadcast %cst_85 : f32 to vector<2x16x16xf32>
    %216 = vector.extract_strided_slice %167 {offsets = [0, 0, 2], sizes = [2, 16, 1], strides = [1, 1, 1]} : vector<2x16x8xf32> to vector<2x16x1xf32>
    %217 = vector.extract_strided_slice %196 {offsets = [0, 2, 0], sizes = [2, 1, 16], strides = [1, 1, 1]} : vector<2x8x16xf32> to vector<2x1x16xf32>
    %218 = vector.broadcast %216 : vector<2x16x1xf32> to vector<2x16x16xf32>
    %219 = vector.broadcast %217 : vector<2x1x16xf32> to vector<2x16x16xf32>
    %220 = arith.mulf %218, %219 : vector<2x16x16xf32>
    %221 = arith.addf %215, %220 : vector<2x16x16xf32>
    %222 = vector.extract_strided_slice %167 {offsets = [0, 0, 3], sizes = [2, 16, 1], strides = [1, 1, 1]} : vector<2x16x8xf32> to vector<2x16x1xf32>
    %223 = vector.extract_strided_slice %196 {offsets = [0, 3, 0], sizes = [2, 1, 16], strides = [1, 1, 1]} : vector<2x8x16xf32> to vector<2x1x16xf32>
    %224 = vector.broadcast %222 : vector<2x16x1xf32> to vector<2x16x16xf32>
    %225 = vector.broadcast %223 : vector<2x1x16xf32> to vector<2x16x16xf32>
    %226 = arith.mulf %224, %225 : vector<2x16x16xf32>
    %227 = arith.addf %221, %226 : vector<2x16x16xf32>
    %cst_86 = arith.constant 0.353553385 : f32
    %228 = vector.broadcast %cst_86 : f32 to vector<2x16x16xf32>
    %229 = arith.mulf %227, %228 : vector<2x16x16xf32>
    %230 = math.tanh %229 : vector<2x16x16xf32>
    %231 = arith.addf %214, %230 : vector<2x16x16xf32>
    %cst_87 = arith.constant 0.000000e+00 : f32
    %232 = vector.broadcast %cst_87 : f32 to vector<2x16x16xf32>
    %233 = vector.extract_strided_slice %167 {offsets = [0, 0, 4], sizes = [2, 16, 1], strides = [1, 1, 1]} : vector<2x16x8xf32> to vector<2x16x1xf32>
    %234 = vector.extract_strided_slice %196 {offsets = [0, 4, 0], sizes = [2, 1, 16], strides = [1, 1, 1]} : vector<2x8x16xf32> to vector<2x1x16xf32>
    %235 = vector.broadcast %233 : vector<2x16x1xf32> to vector<2x16x16xf32>
    %236 = vector.broadcast %234 : vector<2x1x16xf32> to vector<2x16x16xf32>
    %237 = arith.mulf %235, %236 : vector<2x16x16xf32>
    %238 = arith.addf %232, %237 : vector<2x16x16xf32>
    %239 = vector.extract_strided_slice %167 {offsets = [0, 0, 5], sizes = [2, 16, 1], strides = [1, 1, 1]} : vector<2x16x8xf32> to vector<2x16x1xf32>
    %240 = vector.extract_strided_slice %196 {offsets = [0, 5, 0], sizes = [2, 1, 16], strides = [1, 1, 1]} : vector<2x8x16xf32> to vector<2x1x16xf32>
    %241 = vector.broadcast %239 : vector<2x16x1xf32> to vector<2x16x16xf32>
    %242 = vector.broadcast %240 : vector<2x1x16xf32> to vector<2x16x16xf32>
    %243 = arith.mulf %241, %242 : vector<2x16x16xf32>
    %244 = arith.addf %238, %243 : vector<2x16x16xf32>
    %cst_88 = arith.constant 0.353553385 : f32
    %245 = vector.broadcast %cst_88 : f32 to vector<2x16x16xf32>
    %246 = arith.mulf %244, %245 : vector<2x16x16xf32>
    %247 = math.tanh %246 : vector<2x16x16xf32>
    %248 = arith.addf %231, %247 : vector<2x16x16xf32>
    %cst_89 = arith.constant 0.000000e+00 : f32
    %249 = vector.broadcast %cst_89 : f32 to vector<2x16x16xf32>
    %250 = vector.extract_strided_slice %167 {offsets = [0, 0, 6], sizes = [2, 16, 1], strides = [1, 1, 1]} : vector<2x16x8xf32> to vector<2x16x1xf32>
    %251 = vector.extract_strided_slice %196 {offsets = [0, 6, 0], sizes = [2, 1, 16], strides = [1, 1, 1]} : vector<2x8x16xf32> to vector<2x1x16xf32>
    %252 = vector.broadcast %250 : vector<2x16x1xf32> to vector<2x16x16xf32>
    %253 = vector.broadcast %251 : vector<2x1x16xf32> to vector<2x16x16xf32>
    %254 = arith.mulf %252, %253 : vector<2x16x16xf32>
    %255 = arith.addf %249, %254 : vector<2x16x16xf32>
    %256 = vector.extract_strided_slice %167 {offsets = [0, 0, 7], sizes = [2, 16, 1], strides = [1, 1, 1]} : vector<2x16x8xf32> to vector<2x16x1xf32>
    %257 = vector.extract_strided_slice %196 {offsets = [0, 7, 0], sizes = [2, 1, 16], strides = [1, 1, 1]} : vector<2x8x16xf32> to vector<2x1x16xf32>
    %258 = vector.broadcast %256 : vector<2x16x1xf32> to vector<2x16x16xf32>
    %259 = vector.broadcast %257 : vector<2x1x16xf32> to vector<2x16x16xf32>
    %260 = arith.mulf %258, %259 : vector<2x16x16xf32>
    %261 = arith.addf %255, %260 : vector<2x16x16xf32>
    %cst_90 = arith.constant 0.353553385 : f32
    %262 = vector.broadcast %cst_90 : f32 to vector<2x16x16xf32>
    %263 = arith.mulf %261, %262 : vector<2x16x16xf32>
    %264 = math.tanh %263 : vector<2x16x16xf32>
    %265 = arith.addf %248, %264 : vector<2x16x16xf32>
    %cst_91 = arith.constant 2.500000e-01 : f32
    %266 = vector.broadcast %cst_91 : f32 to vector<2x16x16xf32>
    %267 = arith.mulf %265, %266 : vector<2x16x16xf32>
    %268 = tpu.transpose %267, [0, 2, 1] : vector<2x16x16xf32> -> vector<2x16x16xf32>
    %269 = arith.addf %267, %268 : vector<2x16x16xf32>
    %cst_92 = arith.constant 5.000000e-01 : f32
    %270 = vector.broadcast %cst_92 : f32 to vector<2x16x16xf32>
    %271 = arith.mulf %270, %269 : vector<2x16x16xf32>
    %c1_93 = arith.constant 1 : index
    %c0_94 = arith.constant 0 : index
    %c0_95 = arith.constant 0 : index
    %c0_96 = arith.constant 0 : index
    %272 = vector.load %arg15[%c1_93, %c0_94, %c0_95, %c0_96] : memref<2x2x16x16xf32, #tpu.memory_space<vmem>>, vector<1x2x16x16xf32>
    %273 = vector.shape_cast %272 : vector<1x2x16x16xf32> to vector<2x16x16xf32>
    %274 = vector.shape_cast %271 : vector<2x16x16xf32> to vector<1x2x16x16xf32>
    tpu.vector_store %arg15[%c1_93, %c0_94, %c0_95, %c0_96], %274 {strides = array<i32>} : memref<2x2x16x16xf32, #tpu.memory_space<vmem>>, vector<1x2x16x16xf32>,
    %275 = vector.shape_cast %195 : vector<2x16x8xf32> to vector<32x8xf32>
    %c1_97 = arith.constant 1 : index
    %c0_98 = arith.constant 0 : index
    %c0_99 = arith.constant 0 : index
    %276 = vector.load %arg9[%c1_97, %c0_98, %c0_99] : memref<2x8x6xf32, #tpu.memory_space<vmem>>, vector<1x8x6xf32>
    %277 = vector.shape_cast %276 : vector<1x8x6xf32> to vector<8x6xf32>
    %cst_100 = arith.constant dense<0.000000e+00> : vector<32x6xf32>
    %278 = tpu.matmul %275, %277, %cst_100 {dimension_numbers = #tpu.dot_dimension_numbers<[1], [0], [0], [1], [0, 0, 1, 1], [], []>} : vector<32x8xf32>, vector<8x6xf32>, vector<32x6xf32> -> vector<32x6xf32>
    %279 = arith.addf %142, %278 : vector<32x6xf32>
    %c0_101 = arith.constant 0 : index
    %c0_102 = arith.constant 0 : index
    %280 = vector.load %arg10[%c0_101, %c0_102] : memref<1x6xf32, #tpu.memory_space<vmem>>, vector<1x6xf32>
    %281 = vector.broadcast %280 : vector<1x6xf32> to vector<32x6xf32>
    %282 = arith.addf %279, %281 : vector<32x6xf32>
    %cst_103 = arith.constant 0.000000e+00 : f32
    %283 = vector.broadcast %cst_103 : f32 to vector<32x6xf32>
    %284 = arith.cmpf ogt, %282, %283 : vector<32x6xf32>
    %285 = math.exp %282 : vector<32x6xf32>
    %cst_104 = arith.constant 1.000000e+00 : f32
    %286 = vector.broadcast %cst_104 : f32 to vector<32x6xf32>
    %287 = arith.subf %285, %286 : vector<32x6xf32>
    %288 = arith.select %284, %282, %287 : vector<32x6xi1>, vector<32x6xf32>
    %c0_105 = arith.constant 0 : index
    %c0_106 = arith.constant 0 : index
    %289 = vector.load %arg11[%c0_105, %c0_106] : memref<6x8xf32, #tpu.memory_space<vmem>>, vector<6x8xf32>
    %cst_107 = arith.constant dense<0.000000e+00> : vector<32x8xf32>
    %290 = tpu.matmul %288, %289, %cst_107 {dimension_numbers = #tpu.dot_dimension_numbers<[1], [0], [0], [1], [0, 0, 1, 1], [], []>} : vector<32x6xf32>, vector<6x8xf32>, vector<32x8xf32> -> vector<32x8xf32>
    %c0_108 = arith.constant 0 : index
    %c0_109 = arith.constant 0 : index
    %291 = vector.load %arg12[%c0_108, %c0_109] : memref<1x8xf32, #tpu.memory_space<vmem>>, vector<1x8xf32>
    %292 = vector.broadcast %291 : vector<1x8xf32> to vector<32x8xf32>
    %293 = arith.addf %290, %292 : vector<32x8xf32>
    %294 = vector.shape_cast %293 : vector<32x8xf32> to vector<2x16x8xf32>
    %c0_110 = arith.constant 0 : index
    %c0_111 = arith.constant 0 : index
    %c0_112 = arith.constant 0 : index
    %295 = vector.load %arg13[%c0_110, %c0_111, %c0_112] : memref<2x16x1xf32, #tpu.memory_space<vmem>>, vector<2x16x1xf32>
    %296 = vector.broadcast %295 : vector<2x16x1xf32> to vector<2x16x8xf32>
    %297 = arith.mulf %294, %296 : vector<2x16x8xf32>
    %298 = math.tanh %297 : vector<2x16x8xf32>
    %c0_113 = arith.constant 0 : index
    %c0_114 = arith.constant 0 : index
    %c0_115 = arith.constant 0 : index
    %299 = vector.load %arg14[%c0_113, %c0_114, %c0_115] : memref<2x16x8xf32, #tpu.memory_space<vmem>>, vector<2x16x8xf32>
    tpu.vector_store %arg14[%c0_113, %c0_114, %c0_115], %298 {strides = array<i32>} : memref<2x16x8xf32, #tpu.memory_space<vmem>>, vector<2x16x8xf32>,
    return
  }
  func.func @transform_0(%arg0: i32) -> (i32, i32, i32) {
    %c0_i32 = arith.constant 0 : i32
    %c0_i32_0 = arith.constant 0 : i32
    %c0_i32_1 = arith.constant 0 : i32
    return %arg0, %c0_i32, %c0_i32_0 : i32, i32, i32
  }
  func.func @transform_1(%arg0: i32) -> (i32, i32, i32, i32) {
    %c0_i32 = arith.constant 0 : i32
    %c0_i32_0 = arith.constant 0 : i32
    %c0_i32_1 = arith.constant 0 : i32
    %c0_i32_2 = arith.constant 0 : i32
    return %c0_i32, %arg0, %c0_i32_0, %c0_i32_1 : i32, i32, i32, i32
  }
  func.func @transform_2(%arg0: i32) -> (i32, i32, i32) {
    %c0_i32 = arith.constant 0 : i32
    %c0_i32_0 = arith.constant 0 : i32
    %c0_i32_1 = arith.constant 0 : i32
    %c0_i32_2 = arith.constant 0 : i32
    return %c0_i32, %c0_i32_0, %c0_i32_1 : i32, i32, i32
  }
  func.func @transform_3(%arg0: i32) -> (i32, i32, i32) {
    %c0_i32 = arith.constant 0 : i32
    %c0_i32_0 = arith.constant 0 : i32
    %c0_i32_1 = arith.constant 0 : i32
    %c0_i32_2 = arith.constant 0 : i32
    return %c0_i32, %c0_i32_0, %c0_i32_1 : i32, i32, i32
  }
  func.func @transform_4(%arg0: i32) -> (i32, i32, i32) {
    %c0_i32 = arith.constant 0 : i32
    %c0_i32_0 = arith.constant 0 : i32
    %c0_i32_1 = arith.constant 0 : i32
    %c0_i32_2 = arith.constant 0 : i32
    return %c0_i32, %c0_i32_0, %c0_i32_1 : i32, i32, i32
  }
  func.func @transform_5(%arg0: i32) -> (i32, i32, i32) {
    %c0_i32 = arith.constant 0 : i32
    %c0_i32_0 = arith.constant 0 : i32
    %c0_i32_1 = arith.constant 0 : i32
    %c0_i32_2 = arith.constant 0 : i32
    return %c0_i32, %c0_i32_0, %c0_i32_1 : i32, i32, i32
  }
  func.func @transform_6(%arg0: i32) -> (i32, i32, i32) {
    %c0_i32 = arith.constant 0 : i32
    %c0_i32_0 = arith.constant 0 : i32
    %c0_i32_1 = arith.constant 0 : i32
    %c0_i32_2 = arith.constant 0 : i32
    return %c0_i32, %c0_i32_0, %c0_i32_1 : i32, i32, i32
  }
  func.func @transform_7(%arg0: i32) -> (i32, i32, i32) {
    %c0_i32 = arith.constant 0 : i32
    %c0_i32_0 = arith.constant 0 : i32
    %c0_i32_1 = arith.constant 0 : i32
    %c0_i32_2 = arith.constant 0 : i32
    return %c0_i32, %c0_i32_0, %c0_i32_1 : i32, i32, i32
  }
  func.func @transform_8(%arg0: i32) -> (i32, i32, i32) {
    %c0_i32 = arith.constant 0 : i32
    %c0_i32_0 = arith.constant 0 : i32
    %c0_i32_1 = arith.constant 0 : i32
    %c0_i32_2 = arith.constant 0 : i32
    return %c0_i32, %c0_i32_0, %c0_i32_1 : i32, i32, i32
  }
  func.func @transform_9(%arg0: i32) -> (i32, i32) {
    %c0_i32 = arith.constant 0 : i32
    %c0_i32_0 = arith.constant 0 : i32
    %c0_i32_1 = arith.constant 0 : i32
    return %c0_i32, %c0_i32_0 : i32, i32
  }
  func.func @transform_10(%arg0: i32) -> (i32, i32) {
    %c0_i32 = arith.constant 0 : i32
    %c0_i32_0 = arith.constant 0 : i32
    %c0_i32_1 = arith.constant 0 : i32
    return %c0_i32, %c0_i32_0 : i32, i32
  }
  func.func @transform_11(%arg0: i32) -> (i32, i32) {
    %c0_i32 = arith.constant 0 : i32
    %c0_i32_0 = arith.constant 0 : i32
    %c0_i32_1 = arith.constant 0 : i32
    return %c0_i32, %c0_i32_0 : i32, i32
  }
  func.func @transform_12(%arg0: i32) -> (i32, i32, i32) {
    %c0_i32 = arith.constant 0 : i32
    %c0_i32_0 = arith.constant 0 : i32
    %c0_i32_1 = arith.constant 0 : i32
    return %arg0, %c0_i32, %c0_i32_0 : i32, i32, i32
  }
  func.func @transform_13(%arg0: i32) -> (i32, i32, i32) {
    %c0_i32 = arith.constant 0 : i32
    %c0_i32_0 = arith.constant 0 : i32
    %c0_i32_1 = arith.constant 0 : i32
    return %arg0, %c0_i32, %c0_i32_0 : i32, i32, i32
  }
  func.func @transform_14(%arg0: i32) -> (i32, i32, i32, i32) {
    %c0_i32 = arith.constant 0 : i32
    %c0_i32_0 = arith.constant 0 : i32
    %c0_i32_1 = arith.constant 0 : i32
    %c0_i32_2 = arith.constant 0 : i32
    return %c0_i32, %arg0, %c0_i32_0, %c0_i32_1 : i32, i32, i32, i32
  }
}

module attributes {stable_mosaic.version = 11 : i64} {
  func.func @_edge_mlp_kernel(%arg0: i32, %arg1: memref<2x512xf32, #tpu.memory_space<vmem>>, %arg2: memref<2x512xf32, #tpu.memory_space<vmem>>, %arg3: memref<1x512xf32, #tpu.memory_space<vmem>>, %arg4: memref<6x2xf32, #tpu.memory_space<vmem>>, %arg5: memref<6x2xf32, #tpu.memory_space<vmem>>, %arg6: memref<6x1xf32, #tpu.memory_space<vmem>>, %arg7: memref<3x6xf32, #tpu.memory_space<vmem>>, %arg8: memref<3x1xf32, #tpu.memory_space<vmem>>, %arg9: memref<3x512xf32, #tpu.memory_space<vmem>>) attributes {dimension_semantics = [#tpu.dimension_semantics<parallel>], iteration_bounds = array<i64: 1>, scalar_prefetch = 0 : i64, scratch_operands = 0 : i64, tpu.core_type = #tpu.core_type<tc>, window_params = [{transform_indices = @transform_0, window_bounds = array<i64: 2, 512>}, {transform_indices = @transform_1, window_bounds = array<i64: 2, 512>}, {transform_indices = @transform_2, window_bounds = array<i64: 1, 512>}, {pipeline_mode = #tpu.pipeline_mode<synchronous>, transform_indices = @transform_3, window_bounds = array<i64: 6, 2>}, {pipeline_mode = #tpu.pipeline_mode<synchronous>, transform_indices = @transform_4, window_bounds = array<i64: 6, 2>}, {pipeline_mode = #tpu.pipeline_mode<synchronous>, transform_indices = @transform_5, window_bounds = array<i64: 6, 1>}, {pipeline_mode = #tpu.pipeline_mode<synchronous>, transform_indices = @transform_6, window_bounds = array<i64: 3, 6>}, {pipeline_mode = #tpu.pipeline_mode<synchronous>, transform_indices = @transform_7, window_bounds = array<i64: 3, 1>}, {transform_indices = @transform_8, window_bounds = array<i64: 3, 512>}]} {
    %c0 = arith.constant 0 : index
    %c0_0 = arith.constant 0 : index
    %0 = vector.load %arg4[%c0, %c0_0] : memref<6x2xf32, #tpu.memory_space<vmem>>, vector<6x2xf32>
    %c0_1 = arith.constant 0 : index
    %c0_2 = arith.constant 0 : index
    %1 = vector.load %arg1[%c0_1, %c0_2] : memref<2x512xf32, #tpu.memory_space<vmem>>, vector<2x512xf32>
    %cst = arith.constant dense<0.000000e+00> : vector<6x512xf32>
    %2 = tpu.matmul %0, %1, %cst {dimension_numbers = #tpu.dot_dimension_numbers<[1], [0], [0], [1], [0, 0, 1, 1], [], []>} : vector<6x2xf32>, vector<2x512xf32>, vector<6x512xf32> -> vector<6x512xf32>
    %c0_3 = arith.constant 0 : index
    %c0_4 = arith.constant 0 : index
    %3 = vector.load %arg5[%c0_3, %c0_4] : memref<6x2xf32, #tpu.memory_space<vmem>>, vector<6x2xf32>
    %c0_5 = arith.constant 0 : index
    %c0_6 = arith.constant 0 : index
    %4 = vector.load %arg2[%c0_5, %c0_6] : memref<2x512xf32, #tpu.memory_space<vmem>>, vector<2x512xf32>
    %cst_7 = arith.constant dense<0.000000e+00> : vector<6x512xf32>
    %5 = tpu.matmul %3, %4, %cst_7 {dimension_numbers = #tpu.dot_dimension_numbers<[1], [0], [0], [1], [0, 0, 1, 1], [], []>} : vector<6x2xf32>, vector<2x512xf32>, vector<6x512xf32> -> vector<6x512xf32>
    %6 = arith.addf %2, %5 : vector<6x512xf32>
    %c0_8 = arith.constant 0 : index
    %c0_9 = arith.constant 0 : index
    %7 = vector.load %arg6[%c0_8, %c0_9] : memref<6x1xf32, #tpu.memory_space<vmem>>, vector<6x1xf32>
    %8 = vector.broadcast %7 : vector<6x1xf32> to vector<6x512xf32>
    %9 = arith.addf %6, %8 : vector<6x512xf32>
    %cst_10 = arith.constant 0.000000e+00 : f32
    %10 = vector.broadcast %cst_10 : f32 to vector<6x512xf32>
    %11 = arith.cmpf ogt, %9, %10 : vector<6x512xf32>
    %12 = math.exp %9 : vector<6x512xf32>
    %cst_11 = arith.constant 1.000000e+00 : f32
    %13 = vector.broadcast %cst_11 : f32 to vector<6x512xf32>
    %14 = arith.subf %12, %13 : vector<6x512xf32>
    %15 = arith.select %11, %9, %14 : vector<6x512xi1>, vector<6x512xf32>
    %c0_12 = arith.constant 0 : index
    %c0_13 = arith.constant 0 : index
    %16 = vector.load %arg7[%c0_12, %c0_13] : memref<3x6xf32, #tpu.memory_space<vmem>>, vector<3x6xf32>
    %c0_14 = arith.constant 0 : index
    %c0_15 = arith.constant 0 : index
    %17 = vector.load %arg8[%c0_14, %c0_15] : memref<3x1xf32, #tpu.memory_space<vmem>>, vector<3x1xf32>
    %cst_16 = arith.constant dense<0.000000e+00> : vector<3x512xf32>
    %18 = tpu.matmul %16, %15, %cst_16 {dimension_numbers = #tpu.dot_dimension_numbers<[1], [0], [0], [1], [0, 0, 1, 1], [], []>} : vector<3x6xf32>, vector<6x512xf32>, vector<3x512xf32> -> vector<3x512xf32>
    %19 = vector.broadcast %17 : vector<3x1xf32> to vector<3x512xf32>
    %20 = arith.addf %18, %19 : vector<3x512xf32>
    %c0_17 = arith.constant 0 : index
    %c0_18 = arith.constant 0 : index
    %21 = vector.load %arg3[%c0_17, %c0_18] : memref<1x512xf32, #tpu.memory_space<vmem>>, vector<1x512xf32>
    %22 = vector.broadcast %21 : vector<1x512xf32> to vector<3x512xf32>
    %23 = arith.mulf %20, %22 : vector<3x512xf32>
    %c0_19 = arith.constant 0 : index
    %c0_20 = arith.constant 0 : index
    %24 = vector.load %arg9[%c0_19, %c0_20] : memref<3x512xf32, #tpu.memory_space<vmem>>, vector<3x512xf32>
    tpu.vector_store %arg9[%c0_19, %c0_20], %23 {strides = array<i32>} : memref<3x512xf32, #tpu.memory_space<vmem>>, vector<3x512xf32>,
    return
  }
  func.func @transform_0(%arg0: i32) -> (i32, i32) {
    %c0_i32 = arith.constant 0 : i32
    %c0_i32_0 = arith.constant 0 : i32
    return %c0_i32, %arg0 : i32, i32
  }
  func.func @transform_1(%arg0: i32) -> (i32, i32) {
    %c0_i32 = arith.constant 0 : i32
    %c0_i32_0 = arith.constant 0 : i32
    return %c0_i32, %arg0 : i32, i32
  }
  func.func @transform_2(%arg0: i32) -> (i32, i32) {
    %c0_i32 = arith.constant 0 : i32
    %c0_i32_0 = arith.constant 0 : i32
    return %c0_i32, %arg0 : i32, i32
  }
  func.func @transform_3(%arg0: i32) -> (i32, i32) {
    %c0_i32 = arith.constant 0 : i32
    %c0_i32_0 = arith.constant 0 : i32
    %c0_i32_1 = arith.constant 0 : i32
    return %c0_i32, %c0_i32_0 : i32, i32
  }
  func.func @transform_4(%arg0: i32) -> (i32, i32) {
    %c0_i32 = arith.constant 0 : i32
    %c0_i32_0 = arith.constant 0 : i32
    %c0_i32_1 = arith.constant 0 : i32
    return %c0_i32, %c0_i32_0 : i32, i32
  }
  func.func @transform_5(%arg0: i32) -> (i32, i32) {
    %c0_i32 = arith.constant 0 : i32
    %c0_i32_0 = arith.constant 0 : i32
    %c0_i32_1 = arith.constant 0 : i32
    return %c0_i32, %c0_i32_0 : i32, i32
  }
  func.func @transform_6(%arg0: i32) -> (i32, i32) {
    %c0_i32 = arith.constant 0 : i32
    %c0_i32_0 = arith.constant 0 : i32
    %c0_i32_1 = arith.constant 0 : i32
    return %c0_i32, %c0_i32_0 : i32, i32
  }
  func.func @transform_7(%arg0: i32) -> (i32, i32) {
    %c0_i32 = arith.constant 0 : i32
    %c0_i32_0 = arith.constant 0 : i32
    %c0_i32_1 = arith.constant 0 : i32
    return %c0_i32, %c0_i32_0 : i32, i32
  }
  func.func @transform_8(%arg0: i32) -> (i32, i32) {
    %c0_i32 = arith.constant 0 : i32
    %c0_i32_0 = arith.constant 0 : i32
    return %c0_i32, %arg0 : i32, i32
  }
}

module attributes {stable_mosaic.version = 11 : i64} {
  func.func @_attn_layer_node_kernel(%arg0: i32, %arg1: memref<2x16x8xf32, #tpu.memory_space<vmem>>, %arg2: memref<3x2x16x16xf32, #tpu.memory_space<vmem>>, %arg3: memref<3x8x8xf32, #tpu.memory_space<vmem>>, %arg4: memref<3x1x8xf32, #tpu.memory_space<vmem>>, %arg5: memref<3x8x8xf32, #tpu.memory_space<vmem>>, %arg6: memref<3x1x8xf32, #tpu.memory_space<vmem>>, %arg7: memref<3x8x8xf32, #tpu.memory_space<vmem>>, %arg8: memref<3x1x8xf32, #tpu.memory_space<vmem>>, %arg9: memref<3x8x8xf32, #tpu.memory_space<vmem>>, %arg10: memref<1x8xf32, #tpu.memory_space<vmem>>, %arg11: memref<8x8xf32, #tpu.memory_space<vmem>>, %arg12: memref<1x8xf32, #tpu.memory_space<vmem>>, %arg13: memref<2x16x1xf32, #tpu.memory_space<vmem>>, %arg14: memref<2x16x8xf32, #tpu.memory_space<vmem>>, %arg15: memref<3x2x16x16xf32, #tpu.memory_space<vmem>>) attributes {dimension_semantics = [#tpu.dimension_semantics<parallel>], iteration_bounds = array<i64: 1>, scalar_prefetch = 0 : i64, scratch_operands = 0 : i64, tpu.core_type = #tpu.core_type<tc>, window_params = [{transform_indices = @transform_0, window_bounds = array<i64: 2, 16, 8>}, {transform_indices = @transform_1, window_bounds = array<i64: 3, 2, 16, 16>}, {pipeline_mode = #tpu.pipeline_mode<synchronous>, transform_indices = @transform_2, window_bounds = array<i64: 3, 8, 8>}, {pipeline_mode = #tpu.pipeline_mode<synchronous>, transform_indices = @transform_3, window_bounds = array<i64: 3, 1, 8>}, {pipeline_mode = #tpu.pipeline_mode<synchronous>, transform_indices = @transform_4, window_bounds = array<i64: 3, 8, 8>}, {pipeline_mode = #tpu.pipeline_mode<synchronous>, transform_indices = @transform_5, window_bounds = array<i64: 3, 1, 8>}, {pipeline_mode = #tpu.pipeline_mode<synchronous>, transform_indices = @transform_6, window_bounds = array<i64: 3, 8, 8>}, {pipeline_mode = #tpu.pipeline_mode<synchronous>, transform_indices = @transform_7, window_bounds = array<i64: 3, 1, 8>}, {pipeline_mode = #tpu.pipeline_mode<synchronous>, transform_indices = @transform_8, window_bounds = array<i64: 3, 8, 8>}, {pipeline_mode = #tpu.pipeline_mode<synchronous>, transform_indices = @transform_9, window_bounds = array<i64: 1, 8>}, {pipeline_mode = #tpu.pipeline_mode<synchronous>, transform_indices = @transform_10, window_bounds = array<i64: 8, 8>}, {pipeline_mode = #tpu.pipeline_mode<synchronous>, transform_indices = @transform_11, window_bounds = array<i64: 1, 8>}, {transform_indices = @transform_12, window_bounds = array<i64: 2, 16, 1>}, {transform_indices = @transform_13, window_bounds = array<i64: 2, 16, 8>}, {transform_indices = @transform_14, window_bounds = array<i64: 3, 2, 16, 16>}]} {
    %c0 = arith.constant 0 : index
    %c0_0 = arith.constant 0 : index
    %c0_1 = arith.constant 0 : index
    %0 = vector.load %arg1[%c0, %c0_0, %c0_1] : memref<2x16x8xf32, #tpu.memory_space<vmem>>, vector<2x16x8xf32>
    %1 = vector.shape_cast %0 : vector<2x16x8xf32> to vector<32x8xf32>
    %2 = tpu.iota {dimensions = array<i32: 1>} : vector<1x16x16xi32>
    %3 = tpu.iota {dimensions = array<i32: 2>} : vector<1x16x16xi32>
    %4 = arith.cmpi eq, %2, %3 : vector<1x16x16xi32>
    %cst = arith.constant 0.000000e+00 : f32
    %5 = vector.broadcast %cst : f32 to vector<32x8xf32>
    %c0_2 = arith.constant 0 : index
    %c0_3 = arith.constant 0 : index
    %c0_4 = arith.constant 0 : index
    %c0_5 = arith.constant 0 : index
    %6 = vector.load %arg2[%c0_2, %c0_3, %c0_4, %c0_5] : memref<3x2x16x16xf32, #tpu.memory_space<vmem>>, vector<1x2x16x16xf32>
    %7 = vector.shape_cast %6 : vector<1x2x16x16xf32> to vector<2x16x16xf32>
    %cst_6 = arith.constant 1.000000e+00 : f32
    %8 = vector.shape_cast %4 : vector<1x16x16xi1> to vector<1x16x16xi1>
    %9 = vector.broadcast %8 : vector<1x16x16xi1> to vector<2x16x16xi1>
    %10 = vector.broadcast %cst_6 : f32 to vector<2x16x16xf32>
    %11 = arith.select %9, %10, %7 : vector<2x16x16xi1>, vector<2x16x16xf32>
    %cst_7 = arith.constant dense<0.000000e+00> : vector<2x16xf32>
    %12 = vector.multi_reduction <add>, %11, %cst_7 [2] : vector<2x16x16xf32> to vector<2x16xf32>
    %13 = vector.shape_cast %12 : vector<2x16xf32> to vector<2x16x1xf32>
    %cst_8 = arith.constant 1.000000e+00 : f32
    %14 = vector.broadcast %cst_8 : f32 to vector<2x16x1xf32>
    %15 = arith.maximumf %13, %14 : vector<2x16x1xf32>
    %16 = math.rsqrt %15 : vector<2x16x1xf32>
    %c0_9 = arith.constant 0 : index
    %c0_10 = arith.constant 0 : index
    %c0_11 = arith.constant 0 : index
    %17 = vector.load %arg3[%c0_9, %c0_10, %c0_11] : memref<3x8x8xf32, #tpu.memory_space<vmem>>, vector<1x8x8xf32>
    %18 = vector.shape_cast %17 : vector<1x8x8xf32> to vector<8x8xf32>
    %c0_12 = arith.constant 0 : index
    %c0_13 = arith.constant 0 : index
    %c0_14 = arith.constant 0 : index
    %19 = vector.load %arg4[%c0_12, %c0_13, %c0_14] : memref<3x1x8xf32, #tpu.memory_space<vmem>>, vector<1x1x8xf32>
    %20 = vector.shape_cast %19 : vector<1x1x8xf32> to vector<1x8xf32>
    %cst_15 = arith.constant dense<0.000000e+00> : vector<32x8xf32>
    %21 = tpu.matmul %1, %18, %cst_15 {dimension_numbers = #tpu.dot_dimension_numbers<[1], [0], [0], [1], [0, 0, 1, 1], [], []>} : vector<32x8xf32>, vector<8x8xf32>, vector<32x8xf32> -> vector<32x8xf32>
    %22 = vector.shape_cast %21 : vector<32x8xf32> to vector<2x16x8xf32>
    %23 = vector.broadcast %16 : vector<2x16x1xf32> to vector<2x16x8xf32>
    %24 = arith.mulf %23, %22 : vector<2x16x8xf32>
    "tpu.trace_start"() <{level = 10 : i32, message = "bij,bjd->bid"}> : () -> ()
    %cst_16 = arith.constant dense<0.000000e+00> : vector<2x16x8xf32>
    %25 = tpu.matmul %11, %24, %cst_16 {dimension_numbers = #tpu.dot_dimension_numbers<[2], [1], [1], [2], [0, 0, 0, 1, 1, 2], [0], [0]>} : vector<2x16x16xf32>, vector<2x16x8xf32>, vector<2x16x8xf32> -> vector<2x16x8xf32>
    "tpu.trace_stop"() : () -> ()
    %26 = vector.broadcast %16 : vector<2x16x1xf32> to vector<2x16x8xf32>
    %27 = arith.mulf %26, %25 : vector<2x16x8xf32>
    %28 = vector.shape_cast %20 : vector<1x8xf32> to vector<1x1x8xf32>
    %29 = vector.broadcast %28 : vector<1x1x8xf32> to vector<2x16x8xf32>
    %30 = arith.addf %27, %29 : vector<2x16x8xf32>
    %c0_17 = arith.constant 0 : index
    %c0_18 = arith.constant 0 : index
    %c0_19 = arith.constant 0 : index
    %31 = vector.load %arg5[%c0_17, %c0_18, %c0_19] : memref<3x8x8xf32, #tpu.memory_space<vmem>>, vector<1x8x8xf32>
    %32 = vector.shape_cast %31 : vector<1x8x8xf32> to vector<8x8xf32>
    %c0_20 = arith.constant 0 : index
    %c0_21 = arith.constant 0 : index
    %c0_22 = arith.constant 0 : index
    %33 = vector.load %arg6[%c0_20, %c0_21, %c0_22] : memref<3x1x8xf32, #tpu.memory_space<vmem>>, vector<1x1x8xf32>
    %34 = vector.shape_cast %33 : vector<1x1x8xf32> to vector<1x8xf32>
    %cst_23 = arith.constant dense<0.000000e+00> : vector<32x8xf32>
    %35 = tpu.matmul %1, %32, %cst_23 {dimension_numbers = #tpu.dot_dimension_numbers<[1], [0], [0], [1], [0, 0, 1, 1], [], []>} : vector<32x8xf32>, vector<8x8xf32>, vector<32x8xf32> -> vector<32x8xf32>
    %36 = vector.shape_cast %35 : vector<32x8xf32> to vector<2x16x8xf32>
    %37 = vector.broadcast %16 : vector<2x16x1xf32> to vector<2x16x8xf32>
    %38 = arith.mulf %37, %36 : vector<2x16x8xf32>
    "tpu.trace_start"() <{level = 10 : i32, message = "bij,bjd->bid"}> : () -> ()
    %cst_24 = arith.constant dense<0.000000e+00> : vector<2x16x8xf32>
    %39 = tpu.matmul %11, %38, %cst_24 {dimension_numbers = #tpu.dot_dimension_numbers<[2], [1], [1], [2], [0, 0, 0, 1, 1, 2], [0], [0]>} : vector<2x16x16xf32>, vector<2x16x8xf32>, vector<2x16x8xf32> -> vector<2x16x8xf32>
    "tpu.trace_stop"() : () -> ()
    %40 = vector.broadcast %16 : vector<2x16x1xf32> to vector<2x16x8xf32>
    %41 = arith.mulf %40, %39 : vector<2x16x8xf32>
    %42 = vector.shape_cast %34 : vector<1x8xf32> to vector<1x1x8xf32>
    %43 = vector.broadcast %42 : vector<1x1x8xf32> to vector<2x16x8xf32>
    %44 = arith.addf %41, %43 : vector<2x16x8xf32>
    %c0_25 = arith.constant 0 : index
    %c0_26 = arith.constant 0 : index
    %c0_27 = arith.constant 0 : index
    %45 = vector.load %arg7[%c0_25, %c0_26, %c0_27] : memref<3x8x8xf32, #tpu.memory_space<vmem>>, vector<1x8x8xf32>
    %46 = vector.shape_cast %45 : vector<1x8x8xf32> to vector<8x8xf32>
    %c0_28 = arith.constant 0 : index
    %c0_29 = arith.constant 0 : index
    %c0_30 = arith.constant 0 : index
    %47 = vector.load %arg8[%c0_28, %c0_29, %c0_30] : memref<3x1x8xf32, #tpu.memory_space<vmem>>, vector<1x1x8xf32>
    %48 = vector.shape_cast %47 : vector<1x1x8xf32> to vector<1x8xf32>
    %cst_31 = arith.constant dense<0.000000e+00> : vector<32x8xf32>
    %49 = tpu.matmul %1, %46, %cst_31 {dimension_numbers = #tpu.dot_dimension_numbers<[1], [0], [0], [1], [0, 0, 1, 1], [], []>} : vector<32x8xf32>, vector<8x8xf32>, vector<32x8xf32> -> vector<32x8xf32>
    %50 = vector.shape_cast %49 : vector<32x8xf32> to vector<2x16x8xf32>
    %51 = vector.broadcast %16 : vector<2x16x1xf32> to vector<2x16x8xf32>
    %52 = arith.mulf %51, %50 : vector<2x16x8xf32>
    "tpu.trace_start"() <{level = 10 : i32, message = "bij,bjd->bid"}> : () -> ()
    %cst_32 = arith.constant dense<0.000000e+00> : vector<2x16x8xf32>
    %53 = tpu.matmul %11, %52, %cst_32 {dimension_numbers = #tpu.dot_dimension_numbers<[2], [1], [1], [2], [0, 0, 0, 1, 1, 2], [0], [0]>} : vector<2x16x16xf32>, vector<2x16x8xf32>, vector<2x16x8xf32> -> vector<2x16x8xf32>
    "tpu.trace_stop"() : () -> ()
    %54 = vector.broadcast %16 : vector<2x16x1xf32> to vector<2x16x8xf32>
    %55 = arith.mulf %54, %53 : vector<2x16x8xf32>
    %56 = vector.shape_cast %48 : vector<1x8xf32> to vector<1x1x8xf32>
    %57 = vector.broadcast %56 : vector<1x1x8xf32> to vector<2x16x8xf32>
    %58 = arith.addf %55, %57 : vector<2x16x8xf32>
    %59 = tpu.transpose %44, [0, 2, 1] : vector<2x16x8xf32> -> vector<2x8x16xf32>
    %cst_33 = arith.constant 0.000000e+00 : f32
    %60 = vector.broadcast %cst_33 : f32 to vector<2x16x16xf32>
    %cst_34 = arith.constant 0.000000e+00 : f32
    %61 = vector.broadcast %cst_34 : f32 to vector<2x16x16xf32>
    %62 = vector.extract_strided_slice %30 {offsets = [0, 0, 0], sizes = [2, 16, 1], strides = [1, 1, 1]} : vector<2x16x8xf32> to vector<2x16x1xf32>
    %63 = vector.extract_strided_slice %59 {offsets = [0, 0, 0], sizes = [2, 1, 16], strides = [1, 1, 1]} : vector<2x8x16xf32> to vector<2x1x16xf32>
    %64 = vector.broadcast %62 : vector<2x16x1xf32> to vector<2x16x16xf32>
    %65 = vector.broadcast %63 : vector<2x1x16xf32> to vector<2x16x16xf32>
    %66 = arith.mulf %64, %65 : vector<2x16x16xf32>
    %67 = arith.addf %61, %66 : vector<2x16x16xf32>
    %68 = vector.extract_strided_slice %30 {offsets = [0, 0, 1], sizes = [2, 16, 1], strides = [1, 1, 1]} : vector<2x16x8xf32> to vector<2x16x1xf32>
    %69 = vector.extract_strided_slice %59 {offsets = [0, 1, 0], sizes = [2, 1, 16], strides = [1, 1, 1]} : vector<2x8x16xf32> to vector<2x1x16xf32>
    %70 = vector.broadcast %68 : vector<2x16x1xf32> to vector<2x16x16xf32>
    %71 = vector.broadcast %69 : vector<2x1x16xf32> to vector<2x16x16xf32>
    %72 = arith.mulf %70, %71 : vector<2x16x16xf32>
    %73 = arith.addf %67, %72 : vector<2x16x16xf32>
    %cst_35 = arith.constant 0.353553385 : f32
    %74 = vector.broadcast %cst_35 : f32 to vector<2x16x16xf32>
    %75 = arith.mulf %73, %74 : vector<2x16x16xf32>
    %76 = math.tanh %75 : vector<2x16x16xf32>
    %77 = arith.addf %60, %76 : vector<2x16x16xf32>
    %cst_36 = arith.constant 0.000000e+00 : f32
    %78 = vector.broadcast %cst_36 : f32 to vector<2x16x16xf32>
    %79 = vector.extract_strided_slice %30 {offsets = [0, 0, 2], sizes = [2, 16, 1], strides = [1, 1, 1]} : vector<2x16x8xf32> to vector<2x16x1xf32>
    %80 = vector.extract_strided_slice %59 {offsets = [0, 2, 0], sizes = [2, 1, 16], strides = [1, 1, 1]} : vector<2x8x16xf32> to vector<2x1x16xf32>
    %81 = vector.broadcast %79 : vector<2x16x1xf32> to vector<2x16x16xf32>
    %82 = vector.broadcast %80 : vector<2x1x16xf32> to vector<2x16x16xf32>
    %83 = arith.mulf %81, %82 : vector<2x16x16xf32>
    %84 = arith.addf %78, %83 : vector<2x16x16xf32>
    %85 = vector.extract_strided_slice %30 {offsets = [0, 0, 3], sizes = [2, 16, 1], strides = [1, 1, 1]} : vector<2x16x8xf32> to vector<2x16x1xf32>
    %86 = vector.extract_strided_slice %59 {offsets = [0, 3, 0], sizes = [2, 1, 16], strides = [1, 1, 1]} : vector<2x8x16xf32> to vector<2x1x16xf32>
    %87 = vector.broadcast %85 : vector<2x16x1xf32> to vector<2x16x16xf32>
    %88 = vector.broadcast %86 : vector<2x1x16xf32> to vector<2x16x16xf32>
    %89 = arith.mulf %87, %88 : vector<2x16x16xf32>
    %90 = arith.addf %84, %89 : vector<2x16x16xf32>
    %cst_37 = arith.constant 0.353553385 : f32
    %91 = vector.broadcast %cst_37 : f32 to vector<2x16x16xf32>
    %92 = arith.mulf %90, %91 : vector<2x16x16xf32>
    %93 = math.tanh %92 : vector<2x16x16xf32>
    %94 = arith.addf %77, %93 : vector<2x16x16xf32>
    %cst_38 = arith.constant 0.000000e+00 : f32
    %95 = vector.broadcast %cst_38 : f32 to vector<2x16x16xf32>
    %96 = vector.extract_strided_slice %30 {offsets = [0, 0, 4], sizes = [2, 16, 1], strides = [1, 1, 1]} : vector<2x16x8xf32> to vector<2x16x1xf32>
    %97 = vector.extract_strided_slice %59 {offsets = [0, 4, 0], sizes = [2, 1, 16], strides = [1, 1, 1]} : vector<2x8x16xf32> to vector<2x1x16xf32>
    %98 = vector.broadcast %96 : vector<2x16x1xf32> to vector<2x16x16xf32>
    %99 = vector.broadcast %97 : vector<2x1x16xf32> to vector<2x16x16xf32>
    %100 = arith.mulf %98, %99 : vector<2x16x16xf32>
    %101 = arith.addf %95, %100 : vector<2x16x16xf32>
    %102 = vector.extract_strided_slice %30 {offsets = [0, 0, 5], sizes = [2, 16, 1], strides = [1, 1, 1]} : vector<2x16x8xf32> to vector<2x16x1xf32>
    %103 = vector.extract_strided_slice %59 {offsets = [0, 5, 0], sizes = [2, 1, 16], strides = [1, 1, 1]} : vector<2x8x16xf32> to vector<2x1x16xf32>
    %104 = vector.broadcast %102 : vector<2x16x1xf32> to vector<2x16x16xf32>
    %105 = vector.broadcast %103 : vector<2x1x16xf32> to vector<2x16x16xf32>
    %106 = arith.mulf %104, %105 : vector<2x16x16xf32>
    %107 = arith.addf %101, %106 : vector<2x16x16xf32>
    %cst_39 = arith.constant 0.353553385 : f32
    %108 = vector.broadcast %cst_39 : f32 to vector<2x16x16xf32>
    %109 = arith.mulf %107, %108 : vector<2x16x16xf32>
    %110 = math.tanh %109 : vector<2x16x16xf32>
    %111 = arith.addf %94, %110 : vector<2x16x16xf32>
    %cst_40 = arith.constant 0.000000e+00 : f32
    %112 = vector.broadcast %cst_40 : f32 to vector<2x16x16xf32>
    %113 = vector.extract_strided_slice %30 {offsets = [0, 0, 6], sizes = [2, 16, 1], strides = [1, 1, 1]} : vector<2x16x8xf32> to vector<2x16x1xf32>
    %114 = vector.extract_strided_slice %59 {offsets = [0, 6, 0], sizes = [2, 1, 16], strides = [1, 1, 1]} : vector<2x8x16xf32> to vector<2x1x16xf32>
    %115 = vector.broadcast %113 : vector<2x16x1xf32> to vector<2x16x16xf32>
    %116 = vector.broadcast %114 : vector<2x1x16xf32> to vector<2x16x16xf32>
    %117 = arith.mulf %115, %116 : vector<2x16x16xf32>
    %118 = arith.addf %112, %117 : vector<2x16x16xf32>
    %119 = vector.extract_strided_slice %30 {offsets = [0, 0, 7], sizes = [2, 16, 1], strides = [1, 1, 1]} : vector<2x16x8xf32> to vector<2x16x1xf32>
    %120 = vector.extract_strided_slice %59 {offsets = [0, 7, 0], sizes = [2, 1, 16], strides = [1, 1, 1]} : vector<2x8x16xf32> to vector<2x1x16xf32>
    %121 = vector.broadcast %119 : vector<2x16x1xf32> to vector<2x16x16xf32>
    %122 = vector.broadcast %120 : vector<2x1x16xf32> to vector<2x16x16xf32>
    %123 = arith.mulf %121, %122 : vector<2x16x16xf32>
    %124 = arith.addf %118, %123 : vector<2x16x16xf32>
    %cst_41 = arith.constant 0.353553385 : f32
    %125 = vector.broadcast %cst_41 : f32 to vector<2x16x16xf32>
    %126 = arith.mulf %124, %125 : vector<2x16x16xf32>
    %127 = math.tanh %126 : vector<2x16x16xf32>
    %128 = arith.addf %111, %127 : vector<2x16x16xf32>
    %cst_42 = arith.constant 2.500000e-01 : f32
    %129 = vector.broadcast %cst_42 : f32 to vector<2x16x16xf32>
    %130 = arith.mulf %128, %129 : vector<2x16x16xf32>
    %131 = tpu.transpose %130, [0, 2, 1] : vector<2x16x16xf32> -> vector<2x16x16xf32>
    %132 = arith.addf %130, %131 : vector<2x16x16xf32>
    %cst_43 = arith.constant 5.000000e-01 : f32
    %133 = vector.broadcast %cst_43 : f32 to vector<2x16x16xf32>
    %134 = arith.mulf %133, %132 : vector<2x16x16xf32>
    %c0_44 = arith.constant 0 : index
    %c0_45 = arith.constant 0 : index
    %c0_46 = arith.constant 0 : index
    %c0_47 = arith.constant 0 : index
    %135 = vector.load %arg15[%c0_44, %c0_45, %c0_46, %c0_47] : memref<3x2x16x16xf32, #tpu.memory_space<vmem>>, vector<1x2x16x16xf32>
    %136 = vector.shape_cast %135 : vector<1x2x16x16xf32> to vector<2x16x16xf32>
    %137 = vector.shape_cast %134 : vector<2x16x16xf32> to vector<1x2x16x16xf32>
    tpu.vector_store %arg15[%c0_44, %c0_45, %c0_46, %c0_47], %137 {strides = array<i32>} : memref<3x2x16x16xf32, #tpu.memory_space<vmem>>, vector<1x2x16x16xf32>,
    %138 = vector.shape_cast %58 : vector<2x16x8xf32> to vector<32x8xf32>
    %c0_48 = arith.constant 0 : index
    %c0_49 = arith.constant 0 : index
    %c0_50 = arith.constant 0 : index
    %139 = vector.load %arg9[%c0_48, %c0_49, %c0_50] : memref<3x8x8xf32, #tpu.memory_space<vmem>>, vector<1x8x8xf32>
    %140 = vector.shape_cast %139 : vector<1x8x8xf32> to vector<8x8xf32>
    %cst_51 = arith.constant dense<0.000000e+00> : vector<32x8xf32>
    %141 = tpu.matmul %138, %140, %cst_51 {dimension_numbers = #tpu.dot_dimension_numbers<[1], [0], [0], [1], [0, 0, 1, 1], [], []>} : vector<32x8xf32>, vector<8x8xf32>, vector<32x8xf32> -> vector<32x8xf32>
    %142 = arith.addf %5, %141 : vector<32x8xf32>
    %c1 = arith.constant 1 : index
    %c0_52 = arith.constant 0 : index
    %c0_53 = arith.constant 0 : index
    %c0_54 = arith.constant 0 : index
    %143 = vector.load %arg2[%c1, %c0_52, %c0_53, %c0_54] : memref<3x2x16x16xf32, #tpu.memory_space<vmem>>, vector<1x2x16x16xf32>
    %144 = vector.shape_cast %143 : vector<1x2x16x16xf32> to vector<2x16x16xf32>
    %cst_55 = arith.constant 1.000000e+00 : f32
    %145 = vector.shape_cast %4 : vector<1x16x16xi1> to vector<1x16x16xi1>
    %146 = vector.broadcast %145 : vector<1x16x16xi1> to vector<2x16x16xi1>
    %147 = vector.broadcast %cst_55 : f32 to vector<2x16x16xf32>
    %148 = arith.select %146, %147, %144 : vector<2x16x16xi1>, vector<2x16x16xf32>
    %cst_56 = arith.constant dense<0.000000e+00> : vector<2x16xf32>
    %149 = vector.multi_reduction <add>, %148, %cst_56 [2] : vector<2x16x16xf32> to vector<2x16xf32>
    %150 = vector.shape_cast %149 : vector<2x16xf32> to vector<2x16x1xf32>
    %cst_57 = arith.constant 1.000000e+00 : f32
    %151 = vector.broadcast %cst_57 : f32 to vector<2x16x1xf32>
    %152 = arith.maximumf %150, %151 : vector<2x16x1xf32>
    %153 = math.rsqrt %152 : vector<2x16x1xf32>
    %c1_58 = arith.constant 1 : index
    %c0_59 = arith.constant 0 : index
    %c0_60 = arith.constant 0 : index
    %154 = vector.load %arg3[%c1_58, %c0_59, %c0_60] : memref<3x8x8xf32, #tpu.memory_space<vmem>>, vector<1x8x8xf32>
    %155 = vector.shape_cast %154 : vector<1x8x8xf32> to vector<8x8xf32>
    %c1_61 = arith.constant 1 : index
    %c0_62 = arith.constant 0 : index
    %c0_63 = arith.constant 0 : index
    %156 = vector.load %arg4[%c1_61, %c0_62, %c0_63] : memref<3x1x8xf32, #tpu.memory_space<vmem>>, vector<1x1x8xf32>
    %157 = vector.shape_cast %156 : vector<1x1x8xf32> to vector<1x8xf32>
    %cst_64 = arith.constant dense<0.000000e+00> : vector<32x8xf32>
    %158 = tpu.matmul %1, %155, %cst_64 {dimension_numbers = #tpu.dot_dimension_numbers<[1], [0], [0], [1], [0, 0, 1, 1], [], []>} : vector<32x8xf32>, vector<8x8xf32>, vector<32x8xf32> -> vector<32x8xf32>
    %159 = vector.shape_cast %158 : vector<32x8xf32> to vector<2x16x8xf32>
    %160 = vector.broadcast %153 : vector<2x16x1xf32> to vector<2x16x8xf32>
    %161 = arith.mulf %160, %159 : vector<2x16x8xf32>
    "tpu.trace_start"() <{level = 10 : i32, message = "bij,bjd->bid"}> : () -> ()
    %cst_65 = arith.constant dense<0.000000e+00> : vector<2x16x8xf32>
    %162 = tpu.matmul %148, %161, %cst_65 {dimension_numbers = #tpu.dot_dimension_numbers<[2], [1], [1], [2], [0, 0, 0, 1, 1, 2], [0], [0]>} : vector<2x16x16xf32>, vector<2x16x8xf32>, vector<2x16x8xf32> -> vector<2x16x8xf32>
    "tpu.trace_stop"() : () -> ()
    %163 = vector.broadcast %153 : vector<2x16x1xf32> to vector<2x16x8xf32>
    %164 = arith.mulf %163, %162 : vector<2x16x8xf32>
    %165 = vector.shape_cast %157 : vector<1x8xf32> to vector<1x1x8xf32>
    %166 = vector.broadcast %165 : vector<1x1x8xf32> to vector<2x16x8xf32>
    %167 = arith.addf %164, %166 : vector<2x16x8xf32>
    %c1_66 = arith.constant 1 : index
    %c0_67 = arith.constant 0 : index
    %c0_68 = arith.constant 0 : index
    %168 = vector.load %arg5[%c1_66, %c0_67, %c0_68] : memref<3x8x8xf32, #tpu.memory_space<vmem>>, vector<1x8x8xf32>
    %169 = vector.shape_cast %168 : vector<1x8x8xf32> to vector<8x8xf32>
    %c1_69 = arith.constant 1 : index
    %c0_70 = arith.constant 0 : index
    %c0_71 = arith.constant 0 : index
    %170 = vector.load %arg6[%c1_69, %c0_70, %c0_71] : memref<3x1x8xf32, #tpu.memory_space<vmem>>, vector<1x1x8xf32>
    %171 = vector.shape_cast %170 : vector<1x1x8xf32> to vector<1x8xf32>
    %cst_72 = arith.constant dense<0.000000e+00> : vector<32x8xf32>
    %172 = tpu.matmul %1, %169, %cst_72 {dimension_numbers = #tpu.dot_dimension_numbers<[1], [0], [0], [1], [0, 0, 1, 1], [], []>} : vector<32x8xf32>, vector<8x8xf32>, vector<32x8xf32> -> vector<32x8xf32>
    %173 = vector.shape_cast %172 : vector<32x8xf32> to vector<2x16x8xf32>
    %174 = vector.broadcast %153 : vector<2x16x1xf32> to vector<2x16x8xf32>
    %175 = arith.mulf %174, %173 : vector<2x16x8xf32>
    "tpu.trace_start"() <{level = 10 : i32, message = "bij,bjd->bid"}> : () -> ()
    %cst_73 = arith.constant dense<0.000000e+00> : vector<2x16x8xf32>
    %176 = tpu.matmul %148, %175, %cst_73 {dimension_numbers = #tpu.dot_dimension_numbers<[2], [1], [1], [2], [0, 0, 0, 1, 1, 2], [0], [0]>} : vector<2x16x16xf32>, vector<2x16x8xf32>, vector<2x16x8xf32> -> vector<2x16x8xf32>
    "tpu.trace_stop"() : () -> ()
    %177 = vector.broadcast %153 : vector<2x16x1xf32> to vector<2x16x8xf32>
    %178 = arith.mulf %177, %176 : vector<2x16x8xf32>
    %179 = vector.shape_cast %171 : vector<1x8xf32> to vector<1x1x8xf32>
    %180 = vector.broadcast %179 : vector<1x1x8xf32> to vector<2x16x8xf32>
    %181 = arith.addf %178, %180 : vector<2x16x8xf32>
    %c1_74 = arith.constant 1 : index
    %c0_75 = arith.constant 0 : index
    %c0_76 = arith.constant 0 : index
    %182 = vector.load %arg7[%c1_74, %c0_75, %c0_76] : memref<3x8x8xf32, #tpu.memory_space<vmem>>, vector<1x8x8xf32>
    %183 = vector.shape_cast %182 : vector<1x8x8xf32> to vector<8x8xf32>
    %c1_77 = arith.constant 1 : index
    %c0_78 = arith.constant 0 : index
    %c0_79 = arith.constant 0 : index
    %184 = vector.load %arg8[%c1_77, %c0_78, %c0_79] : memref<3x1x8xf32, #tpu.memory_space<vmem>>, vector<1x1x8xf32>
    %185 = vector.shape_cast %184 : vector<1x1x8xf32> to vector<1x8xf32>
    %cst_80 = arith.constant dense<0.000000e+00> : vector<32x8xf32>
    %186 = tpu.matmul %1, %183, %cst_80 {dimension_numbers = #tpu.dot_dimension_numbers<[1], [0], [0], [1], [0, 0, 1, 1], [], []>} : vector<32x8xf32>, vector<8x8xf32>, vector<32x8xf32> -> vector<32x8xf32>
    %187 = vector.shape_cast %186 : vector<32x8xf32> to vector<2x16x8xf32>
    %188 = vector.broadcast %153 : vector<2x16x1xf32> to vector<2x16x8xf32>
    %189 = arith.mulf %188, %187 : vector<2x16x8xf32>
    "tpu.trace_start"() <{level = 10 : i32, message = "bij,bjd->bid"}> : () -> ()
    %cst_81 = arith.constant dense<0.000000e+00> : vector<2x16x8xf32>
    %190 = tpu.matmul %148, %189, %cst_81 {dimension_numbers = #tpu.dot_dimension_numbers<[2], [1], [1], [2], [0, 0, 0, 1, 1, 2], [0], [0]>} : vector<2x16x16xf32>, vector<2x16x8xf32>, vector<2x16x8xf32> -> vector<2x16x8xf32>
    "tpu.trace_stop"() : () -> ()
    %191 = vector.broadcast %153 : vector<2x16x1xf32> to vector<2x16x8xf32>
    %192 = arith.mulf %191, %190 : vector<2x16x8xf32>
    %193 = vector.shape_cast %185 : vector<1x8xf32> to vector<1x1x8xf32>
    %194 = vector.broadcast %193 : vector<1x1x8xf32> to vector<2x16x8xf32>
    %195 = arith.addf %192, %194 : vector<2x16x8xf32>
    %196 = tpu.transpose %181, [0, 2, 1] : vector<2x16x8xf32> -> vector<2x8x16xf32>
    %cst_82 = arith.constant 0.000000e+00 : f32
    %197 = vector.broadcast %cst_82 : f32 to vector<2x16x16xf32>
    %cst_83 = arith.constant 0.000000e+00 : f32
    %198 = vector.broadcast %cst_83 : f32 to vector<2x16x16xf32>
    %199 = vector.extract_strided_slice %167 {offsets = [0, 0, 0], sizes = [2, 16, 1], strides = [1, 1, 1]} : vector<2x16x8xf32> to vector<2x16x1xf32>
    %200 = vector.extract_strided_slice %196 {offsets = [0, 0, 0], sizes = [2, 1, 16], strides = [1, 1, 1]} : vector<2x8x16xf32> to vector<2x1x16xf32>
    %201 = vector.broadcast %199 : vector<2x16x1xf32> to vector<2x16x16xf32>
    %202 = vector.broadcast %200 : vector<2x1x16xf32> to vector<2x16x16xf32>
    %203 = arith.mulf %201, %202 : vector<2x16x16xf32>
    %204 = arith.addf %198, %203 : vector<2x16x16xf32>
    %205 = vector.extract_strided_slice %167 {offsets = [0, 0, 1], sizes = [2, 16, 1], strides = [1, 1, 1]} : vector<2x16x8xf32> to vector<2x16x1xf32>
    %206 = vector.extract_strided_slice %196 {offsets = [0, 1, 0], sizes = [2, 1, 16], strides = [1, 1, 1]} : vector<2x8x16xf32> to vector<2x1x16xf32>
    %207 = vector.broadcast %205 : vector<2x16x1xf32> to vector<2x16x16xf32>
    %208 = vector.broadcast %206 : vector<2x1x16xf32> to vector<2x16x16xf32>
    %209 = arith.mulf %207, %208 : vector<2x16x16xf32>
    %210 = arith.addf %204, %209 : vector<2x16x16xf32>
    %cst_84 = arith.constant 0.353553385 : f32
    %211 = vector.broadcast %cst_84 : f32 to vector<2x16x16xf32>
    %212 = arith.mulf %210, %211 : vector<2x16x16xf32>
    %213 = math.tanh %212 : vector<2x16x16xf32>
    %214 = arith.addf %197, %213 : vector<2x16x16xf32>
    %cst_85 = arith.constant 0.000000e+00 : f32
    %215 = vector.broadcast %cst_85 : f32 to vector<2x16x16xf32>
    %216 = vector.extract_strided_slice %167 {offsets = [0, 0, 2], sizes = [2, 16, 1], strides = [1, 1, 1]} : vector<2x16x8xf32> to vector<2x16x1xf32>
    %217 = vector.extract_strided_slice %196 {offsets = [0, 2, 0], sizes = [2, 1, 16], strides = [1, 1, 1]} : vector<2x8x16xf32> to vector<2x1x16xf32>
    %218 = vector.broadcast %216 : vector<2x16x1xf32> to vector<2x16x16xf32>
    %219 = vector.broadcast %217 : vector<2x1x16xf32> to vector<2x16x16xf32>
    %220 = arith.mulf %218, %219 : vector<2x16x16xf32>
    %221 = arith.addf %215, %220 : vector<2x16x16xf32>
    %222 = vector.extract_strided_slice %167 {offsets = [0, 0, 3], sizes = [2, 16, 1], strides = [1, 1, 1]} : vector<2x16x8xf32> to vector<2x16x1xf32>
    %223 = vector.extract_strided_slice %196 {offsets = [0, 3, 0], sizes = [2, 1, 16], strides = [1, 1, 1]} : vector<2x8x16xf32> to vector<2x1x16xf32>
    %224 = vector.broadcast %222 : vector<2x16x1xf32> to vector<2x16x16xf32>
    %225 = vector.broadcast %223 : vector<2x1x16xf32> to vector<2x16x16xf32>
    %226 = arith.mulf %224, %225 : vector<2x16x16xf32>
    %227 = arith.addf %221, %226 : vector<2x16x16xf32>
    %cst_86 = arith.constant 0.353553385 : f32
    %228 = vector.broadcast %cst_86 : f32 to vector<2x16x16xf32>
    %229 = arith.mulf %227, %228 : vector<2x16x16xf32>
    %230 = math.tanh %229 : vector<2x16x16xf32>
    %231 = arith.addf %214, %230 : vector<2x16x16xf32>
    %cst_87 = arith.constant 0.000000e+00 : f32
    %232 = vector.broadcast %cst_87 : f32 to vector<2x16x16xf32>
    %233 = vector.extract_strided_slice %167 {offsets = [0, 0, 4], sizes = [2, 16, 1], strides = [1, 1, 1]} : vector<2x16x8xf32> to vector<2x16x1xf32>
    %234 = vector.extract_strided_slice %196 {offsets = [0, 4, 0], sizes = [2, 1, 16], strides = [1, 1, 1]} : vector<2x8x16xf32> to vector<2x1x16xf32>
    %235 = vector.broadcast %233 : vector<2x16x1xf32> to vector<2x16x16xf32>
    %236 = vector.broadcast %234 : vector<2x1x16xf32> to vector<2x16x16xf32>
    %237 = arith.mulf %235, %236 : vector<2x16x16xf32>
    %238 = arith.addf %232, %237 : vector<2x16x16xf32>
    %239 = vector.extract_strided_slice %167 {offsets = [0, 0, 5], sizes = [2, 16, 1], strides = [1, 1, 1]} : vector<2x16x8xf32> to vector<2x16x1xf32>
    %240 = vector.extract_strided_slice %196 {offsets = [0, 5, 0], sizes = [2, 1, 16], strides = [1, 1, 1]} : vector<2x8x16xf32> to vector<2x1x16xf32>
    %241 = vector.broadcast %239 : vector<2x16x1xf32> to vector<2x16x16xf32>
    %242 = vector.broadcast %240 : vector<2x1x16xf32> to vector<2x16x16xf32>
    %243 = arith.mulf %241, %242 : vector<2x16x16xf32>
    %244 = arith.addf %238, %243 : vector<2x16x16xf32>
    %cst_88 = arith.constant 0.353553385 : f32
    %245 = vector.broadcast %cst_88 : f32 to vector<2x16x16xf32>
    %246 = arith.mulf %244, %245 : vector<2x16x16xf32>
    %247 = math.tanh %246 : vector<2x16x16xf32>
    %248 = arith.addf %231, %247 : vector<2x16x16xf32>
    %cst_89 = arith.constant 0.000000e+00 : f32
    %249 = vector.broadcast %cst_89 : f32 to vector<2x16x16xf32>
    %250 = vector.extract_strided_slice %167 {offsets = [0, 0, 6], sizes = [2, 16, 1], strides = [1, 1, 1]} : vector<2x16x8xf32> to vector<2x16x1xf32>
    %251 = vector.extract_strided_slice %196 {offsets = [0, 6, 0], sizes = [2, 1, 16], strides = [1, 1, 1]} : vector<2x8x16xf32> to vector<2x1x16xf32>
    %252 = vector.broadcast %250 : vector<2x16x1xf32> to vector<2x16x16xf32>
    %253 = vector.broadcast %251 : vector<2x1x16xf32> to vector<2x16x16xf32>
    %254 = arith.mulf %252, %253 : vector<2x16x16xf32>
    %255 = arith.addf %249, %254 : vector<2x16x16xf32>
    %256 = vector.extract_strided_slice %167 {offsets = [0, 0, 7], sizes = [2, 16, 1], strides = [1, 1, 1]} : vector<2x16x8xf32> to vector<2x16x1xf32>
    %257 = vector.extract_strided_slice %196 {offsets = [0, 7, 0], sizes = [2, 1, 16], strides = [1, 1, 1]} : vector<2x8x16xf32> to vector<2x1x16xf32>
    %258 = vector.broadcast %256 : vector<2x16x1xf32> to vector<2x16x16xf32>
    %259 = vector.broadcast %257 : vector<2x1x16xf32> to vector<2x16x16xf32>
    %260 = arith.mulf %258, %259 : vector<2x16x16xf32>
    %261 = arith.addf %255, %260 : vector<2x16x16xf32>
    %cst_90 = arith.constant 0.353553385 : f32
    %262 = vector.broadcast %cst_90 : f32 to vector<2x16x16xf32>
    %263 = arith.mulf %261, %262 : vector<2x16x16xf32>
    %264 = math.tanh %263 : vector<2x16x16xf32>
    %265 = arith.addf %248, %264 : vector<2x16x16xf32>
    %cst_91 = arith.constant 2.500000e-01 : f32
    %266 = vector.broadcast %cst_91 : f32 to vector<2x16x16xf32>
    %267 = arith.mulf %265, %266 : vector<2x16x16xf32>
    %268 = tpu.transpose %267, [0, 2, 1] : vector<2x16x16xf32> -> vector<2x16x16xf32>
    %269 = arith.addf %267, %268 : vector<2x16x16xf32>
    %cst_92 = arith.constant 5.000000e-01 : f32
    %270 = vector.broadcast %cst_92 : f32 to vector<2x16x16xf32>
    %271 = arith.mulf %270, %269 : vector<2x16x16xf32>
    %c1_93 = arith.constant 1 : index
    %c0_94 = arith.constant 0 : index
    %c0_95 = arith.constant 0 : index
    %c0_96 = arith.constant 0 : index
    %272 = vector.load %arg15[%c1_93, %c0_94, %c0_95, %c0_96] : memref<3x2x16x16xf32, #tpu.memory_space<vmem>>, vector<1x2x16x16xf32>
    %273 = vector.shape_cast %272 : vector<1x2x16x16xf32> to vector<2x16x16xf32>
    %274 = vector.shape_cast %271 : vector<2x16x16xf32> to vector<1x2x16x16xf32>
    tpu.vector_store %arg15[%c1_93, %c0_94, %c0_95, %c0_96], %274 {strides = array<i32>} : memref<3x2x16x16xf32, #tpu.memory_space<vmem>>, vector<1x2x16x16xf32>,
    %275 = vector.shape_cast %195 : vector<2x16x8xf32> to vector<32x8xf32>
    %c1_97 = arith.constant 1 : index
    %c0_98 = arith.constant 0 : index
    %c0_99 = arith.constant 0 : index
    %276 = vector.load %arg9[%c1_97, %c0_98, %c0_99] : memref<3x8x8xf32, #tpu.memory_space<vmem>>, vector<1x8x8xf32>
    %277 = vector.shape_cast %276 : vector<1x8x8xf32> to vector<8x8xf32>
    %cst_100 = arith.constant dense<0.000000e+00> : vector<32x8xf32>
    %278 = tpu.matmul %275, %277, %cst_100 {dimension_numbers = #tpu.dot_dimension_numbers<[1], [0], [0], [1], [0, 0, 1, 1], [], []>} : vector<32x8xf32>, vector<8x8xf32>, vector<32x8xf32> -> vector<32x8xf32>
    %279 = arith.addf %142, %278 : vector<32x8xf32>
    %c2 = arith.constant 2 : index
    %c0_101 = arith.constant 0 : index
    %c0_102 = arith.constant 0 : index
    %c0_103 = arith.constant 0 : index
    %280 = vector.load %arg2[%c2, %c0_101, %c0_102, %c0_103] : memref<3x2x16x16xf32, #tpu.memory_space<vmem>>, vector<1x2x16x16xf32>
    %281 = vector.shape_cast %280 : vector<1x2x16x16xf32> to vector<2x16x16xf32>
    %cst_104 = arith.constant 1.000000e+00 : f32
    %282 = vector.shape_cast %4 : vector<1x16x16xi1> to vector<1x16x16xi1>
    %283 = vector.broadcast %282 : vector<1x16x16xi1> to vector<2x16x16xi1>
    %284 = vector.broadcast %cst_104 : f32 to vector<2x16x16xf32>
    %285 = arith.select %283, %284, %281 : vector<2x16x16xi1>, vector<2x16x16xf32>
    %cst_105 = arith.constant dense<0.000000e+00> : vector<2x16xf32>
    %286 = vector.multi_reduction <add>, %285, %cst_105 [2] : vector<2x16x16xf32> to vector<2x16xf32>
    %287 = vector.shape_cast %286 : vector<2x16xf32> to vector<2x16x1xf32>
    %cst_106 = arith.constant 1.000000e+00 : f32
    %288 = vector.broadcast %cst_106 : f32 to vector<2x16x1xf32>
    %289 = arith.maximumf %287, %288 : vector<2x16x1xf32>
    %290 = math.rsqrt %289 : vector<2x16x1xf32>
    %c2_107 = arith.constant 2 : index
    %c0_108 = arith.constant 0 : index
    %c0_109 = arith.constant 0 : index
    %291 = vector.load %arg3[%c2_107, %c0_108, %c0_109] : memref<3x8x8xf32, #tpu.memory_space<vmem>>, vector<1x8x8xf32>
    %292 = vector.shape_cast %291 : vector<1x8x8xf32> to vector<8x8xf32>
    %c2_110 = arith.constant 2 : index
    %c0_111 = arith.constant 0 : index
    %c0_112 = arith.constant 0 : index
    %293 = vector.load %arg4[%c2_110, %c0_111, %c0_112] : memref<3x1x8xf32, #tpu.memory_space<vmem>>, vector<1x1x8xf32>
    %294 = vector.shape_cast %293 : vector<1x1x8xf32> to vector<1x8xf32>
    %cst_113 = arith.constant dense<0.000000e+00> : vector<32x8xf32>
    %295 = tpu.matmul %1, %292, %cst_113 {dimension_numbers = #tpu.dot_dimension_numbers<[1], [0], [0], [1], [0, 0, 1, 1], [], []>} : vector<32x8xf32>, vector<8x8xf32>, vector<32x8xf32> -> vector<32x8xf32>
    %296 = vector.shape_cast %295 : vector<32x8xf32> to vector<2x16x8xf32>
    %297 = vector.broadcast %290 : vector<2x16x1xf32> to vector<2x16x8xf32>
    %298 = arith.mulf %297, %296 : vector<2x16x8xf32>
    "tpu.trace_start"() <{level = 10 : i32, message = "bij,bjd->bid"}> : () -> ()
    %cst_114 = arith.constant dense<0.000000e+00> : vector<2x16x8xf32>
    %299 = tpu.matmul %285, %298, %cst_114 {dimension_numbers = #tpu.dot_dimension_numbers<[2], [1], [1], [2], [0, 0, 0, 1, 1, 2], [0], [0]>} : vector<2x16x16xf32>, vector<2x16x8xf32>, vector<2x16x8xf32> -> vector<2x16x8xf32>
    "tpu.trace_stop"() : () -> ()
    %300 = vector.broadcast %290 : vector<2x16x1xf32> to vector<2x16x8xf32>
    %301 = arith.mulf %300, %299 : vector<2x16x8xf32>
    %302 = vector.shape_cast %294 : vector<1x8xf32> to vector<1x1x8xf32>
    %303 = vector.broadcast %302 : vector<1x1x8xf32> to vector<2x16x8xf32>
    %304 = arith.addf %301, %303 : vector<2x16x8xf32>
    %c2_115 = arith.constant 2 : index
    %c0_116 = arith.constant 0 : index
    %c0_117 = arith.constant 0 : index
    %305 = vector.load %arg5[%c2_115, %c0_116, %c0_117] : memref<3x8x8xf32, #tpu.memory_space<vmem>>, vector<1x8x8xf32>
    %306 = vector.shape_cast %305 : vector<1x8x8xf32> to vector<8x8xf32>
    %c2_118 = arith.constant 2 : index
    %c0_119 = arith.constant 0 : index
    %c0_120 = arith.constant 0 : index
    %307 = vector.load %arg6[%c2_118, %c0_119, %c0_120] : memref<3x1x8xf32, #tpu.memory_space<vmem>>, vector<1x1x8xf32>
    %308 = vector.shape_cast %307 : vector<1x1x8xf32> to vector<1x8xf32>
    %cst_121 = arith.constant dense<0.000000e+00> : vector<32x8xf32>
    %309 = tpu.matmul %1, %306, %cst_121 {dimension_numbers = #tpu.dot_dimension_numbers<[1], [0], [0], [1], [0, 0, 1, 1], [], []>} : vector<32x8xf32>, vector<8x8xf32>, vector<32x8xf32> -> vector<32x8xf32>
    %310 = vector.shape_cast %309 : vector<32x8xf32> to vector<2x16x8xf32>
    %311 = vector.broadcast %290 : vector<2x16x1xf32> to vector<2x16x8xf32>
    %312 = arith.mulf %311, %310 : vector<2x16x8xf32>
    "tpu.trace_start"() <{level = 10 : i32, message = "bij,bjd->bid"}> : () -> ()
    %cst_122 = arith.constant dense<0.000000e+00> : vector<2x16x8xf32>
    %313 = tpu.matmul %285, %312, %cst_122 {dimension_numbers = #tpu.dot_dimension_numbers<[2], [1], [1], [2], [0, 0, 0, 1, 1, 2], [0], [0]>} : vector<2x16x16xf32>, vector<2x16x8xf32>, vector<2x16x8xf32> -> vector<2x16x8xf32>
    "tpu.trace_stop"() : () -> ()
    %314 = vector.broadcast %290 : vector<2x16x1xf32> to vector<2x16x8xf32>
    %315 = arith.mulf %314, %313 : vector<2x16x8xf32>
    %316 = vector.shape_cast %308 : vector<1x8xf32> to vector<1x1x8xf32>
    %317 = vector.broadcast %316 : vector<1x1x8xf32> to vector<2x16x8xf32>
    %318 = arith.addf %315, %317 : vector<2x16x8xf32>
    %c2_123 = arith.constant 2 : index
    %c0_124 = arith.constant 0 : index
    %c0_125 = arith.constant 0 : index
    %319 = vector.load %arg7[%c2_123, %c0_124, %c0_125] : memref<3x8x8xf32, #tpu.memory_space<vmem>>, vector<1x8x8xf32>
    %320 = vector.shape_cast %319 : vector<1x8x8xf32> to vector<8x8xf32>
    %c2_126 = arith.constant 2 : index
    %c0_127 = arith.constant 0 : index
    %c0_128 = arith.constant 0 : index
    %321 = vector.load %arg8[%c2_126, %c0_127, %c0_128] : memref<3x1x8xf32, #tpu.memory_space<vmem>>, vector<1x1x8xf32>
    %322 = vector.shape_cast %321 : vector<1x1x8xf32> to vector<1x8xf32>
    %cst_129 = arith.constant dense<0.000000e+00> : vector<32x8xf32>
    %323 = tpu.matmul %1, %320, %cst_129 {dimension_numbers = #tpu.dot_dimension_numbers<[1], [0], [0], [1], [0, 0, 1, 1], [], []>} : vector<32x8xf32>, vector<8x8xf32>, vector<32x8xf32> -> vector<32x8xf32>
    %324 = vector.shape_cast %323 : vector<32x8xf32> to vector<2x16x8xf32>
    %325 = vector.broadcast %290 : vector<2x16x1xf32> to vector<2x16x8xf32>
    %326 = arith.mulf %325, %324 : vector<2x16x8xf32>
    "tpu.trace_start"() <{level = 10 : i32, message = "bij,bjd->bid"}> : () -> ()
    %cst_130 = arith.constant dense<0.000000e+00> : vector<2x16x8xf32>
    %327 = tpu.matmul %285, %326, %cst_130 {dimension_numbers = #tpu.dot_dimension_numbers<[2], [1], [1], [2], [0, 0, 0, 1, 1, 2], [0], [0]>} : vector<2x16x16xf32>, vector<2x16x8xf32>, vector<2x16x8xf32> -> vector<2x16x8xf32>
    "tpu.trace_stop"() : () -> ()
    %328 = vector.broadcast %290 : vector<2x16x1xf32> to vector<2x16x8xf32>
    %329 = arith.mulf %328, %327 : vector<2x16x8xf32>
    %330 = vector.shape_cast %322 : vector<1x8xf32> to vector<1x1x8xf32>
    %331 = vector.broadcast %330 : vector<1x1x8xf32> to vector<2x16x8xf32>
    %332 = arith.addf %329, %331 : vector<2x16x8xf32>
    %333 = tpu.transpose %318, [0, 2, 1] : vector<2x16x8xf32> -> vector<2x8x16xf32>
    %cst_131 = arith.constant 0.000000e+00 : f32
    %334 = vector.broadcast %cst_131 : f32 to vector<2x16x16xf32>
    %cst_132 = arith.constant 0.000000e+00 : f32
    %335 = vector.broadcast %cst_132 : f32 to vector<2x16x16xf32>
    %336 = vector.extract_strided_slice %304 {offsets = [0, 0, 0], sizes = [2, 16, 1], strides = [1, 1, 1]} : vector<2x16x8xf32> to vector<2x16x1xf32>
    %337 = vector.extract_strided_slice %333 {offsets = [0, 0, 0], sizes = [2, 1, 16], strides = [1, 1, 1]} : vector<2x8x16xf32> to vector<2x1x16xf32>
    %338 = vector.broadcast %336 : vector<2x16x1xf32> to vector<2x16x16xf32>
    %339 = vector.broadcast %337 : vector<2x1x16xf32> to vector<2x16x16xf32>
    %340 = arith.mulf %338, %339 : vector<2x16x16xf32>
    %341 = arith.addf %335, %340 : vector<2x16x16xf32>
    %342 = vector.extract_strided_slice %304 {offsets = [0, 0, 1], sizes = [2, 16, 1], strides = [1, 1, 1]} : vector<2x16x8xf32> to vector<2x16x1xf32>
    %343 = vector.extract_strided_slice %333 {offsets = [0, 1, 0], sizes = [2, 1, 16], strides = [1, 1, 1]} : vector<2x8x16xf32> to vector<2x1x16xf32>
    %344 = vector.broadcast %342 : vector<2x16x1xf32> to vector<2x16x16xf32>
    %345 = vector.broadcast %343 : vector<2x1x16xf32> to vector<2x16x16xf32>
    %346 = arith.mulf %344, %345 : vector<2x16x16xf32>
    %347 = arith.addf %341, %346 : vector<2x16x16xf32>
    %cst_133 = arith.constant 0.353553385 : f32
    %348 = vector.broadcast %cst_133 : f32 to vector<2x16x16xf32>
    %349 = arith.mulf %347, %348 : vector<2x16x16xf32>
    %350 = math.tanh %349 : vector<2x16x16xf32>
    %351 = arith.addf %334, %350 : vector<2x16x16xf32>
    %cst_134 = arith.constant 0.000000e+00 : f32
    %352 = vector.broadcast %cst_134 : f32 to vector<2x16x16xf32>
    %353 = vector.extract_strided_slice %304 {offsets = [0, 0, 2], sizes = [2, 16, 1], strides = [1, 1, 1]} : vector<2x16x8xf32> to vector<2x16x1xf32>
    %354 = vector.extract_strided_slice %333 {offsets = [0, 2, 0], sizes = [2, 1, 16], strides = [1, 1, 1]} : vector<2x8x16xf32> to vector<2x1x16xf32>
    %355 = vector.broadcast %353 : vector<2x16x1xf32> to vector<2x16x16xf32>
    %356 = vector.broadcast %354 : vector<2x1x16xf32> to vector<2x16x16xf32>
    %357 = arith.mulf %355, %356 : vector<2x16x16xf32>
    %358 = arith.addf %352, %357 : vector<2x16x16xf32>
    %359 = vector.extract_strided_slice %304 {offsets = [0, 0, 3], sizes = [2, 16, 1], strides = [1, 1, 1]} : vector<2x16x8xf32> to vector<2x16x1xf32>
    %360 = vector.extract_strided_slice %333 {offsets = [0, 3, 0], sizes = [2, 1, 16], strides = [1, 1, 1]} : vector<2x8x16xf32> to vector<2x1x16xf32>
    %361 = vector.broadcast %359 : vector<2x16x1xf32> to vector<2x16x16xf32>
    %362 = vector.broadcast %360 : vector<2x1x16xf32> to vector<2x16x16xf32>
    %363 = arith.mulf %361, %362 : vector<2x16x16xf32>
    %364 = arith.addf %358, %363 : vector<2x16x16xf32>
    %cst_135 = arith.constant 0.353553385 : f32
    %365 = vector.broadcast %cst_135 : f32 to vector<2x16x16xf32>
    %366 = arith.mulf %364, %365 : vector<2x16x16xf32>
    %367 = math.tanh %366 : vector<2x16x16xf32>
    %368 = arith.addf %351, %367 : vector<2x16x16xf32>
    %cst_136 = arith.constant 0.000000e+00 : f32
    %369 = vector.broadcast %cst_136 : f32 to vector<2x16x16xf32>
    %370 = vector.extract_strided_slice %304 {offsets = [0, 0, 4], sizes = [2, 16, 1], strides = [1, 1, 1]} : vector<2x16x8xf32> to vector<2x16x1xf32>
    %371 = vector.extract_strided_slice %333 {offsets = [0, 4, 0], sizes = [2, 1, 16], strides = [1, 1, 1]} : vector<2x8x16xf32> to vector<2x1x16xf32>
    %372 = vector.broadcast %370 : vector<2x16x1xf32> to vector<2x16x16xf32>
    %373 = vector.broadcast %371 : vector<2x1x16xf32> to vector<2x16x16xf32>
    %374 = arith.mulf %372, %373 : vector<2x16x16xf32>
    %375 = arith.addf %369, %374 : vector<2x16x16xf32>
    %376 = vector.extract_strided_slice %304 {offsets = [0, 0, 5], sizes = [2, 16, 1], strides = [1, 1, 1]} : vector<2x16x8xf32> to vector<2x16x1xf32>
    %377 = vector.extract_strided_slice %333 {offsets = [0, 5, 0], sizes = [2, 1, 16], strides = [1, 1, 1]} : vector<2x8x16xf32> to vector<2x1x16xf32>
    %378 = vector.broadcast %376 : vector<2x16x1xf32> to vector<2x16x16xf32>
    %379 = vector.broadcast %377 : vector<2x1x16xf32> to vector<2x16x16xf32>
    %380 = arith.mulf %378, %379 : vector<2x16x16xf32>
    %381 = arith.addf %375, %380 : vector<2x16x16xf32>
    %cst_137 = arith.constant 0.353553385 : f32
    %382 = vector.broadcast %cst_137 : f32 to vector<2x16x16xf32>
    %383 = arith.mulf %381, %382 : vector<2x16x16xf32>
    %384 = math.tanh %383 : vector<2x16x16xf32>
    %385 = arith.addf %368, %384 : vector<2x16x16xf32>
    %cst_138 = arith.constant 0.000000e+00 : f32
    %386 = vector.broadcast %cst_138 : f32 to vector<2x16x16xf32>
    %387 = vector.extract_strided_slice %304 {offsets = [0, 0, 6], sizes = [2, 16, 1], strides = [1, 1, 1]} : vector<2x16x8xf32> to vector<2x16x1xf32>
    %388 = vector.extract_strided_slice %333 {offsets = [0, 6, 0], sizes = [2, 1, 16], strides = [1, 1, 1]} : vector<2x8x16xf32> to vector<2x1x16xf32>
    %389 = vector.broadcast %387 : vector<2x16x1xf32> to vector<2x16x16xf32>
    %390 = vector.broadcast %388 : vector<2x1x16xf32> to vector<2x16x16xf32>
    %391 = arith.mulf %389, %390 : vector<2x16x16xf32>
    %392 = arith.addf %386, %391 : vector<2x16x16xf32>
    %393 = vector.extract_strided_slice %304 {offsets = [0, 0, 7], sizes = [2, 16, 1], strides = [1, 1, 1]} : vector<2x16x8xf32> to vector<2x16x1xf32>
    %394 = vector.extract_strided_slice %333 {offsets = [0, 7, 0], sizes = [2, 1, 16], strides = [1, 1, 1]} : vector<2x8x16xf32> to vector<2x1x16xf32>
    %395 = vector.broadcast %393 : vector<2x16x1xf32> to vector<2x16x16xf32>
    %396 = vector.broadcast %394 : vector<2x1x16xf32> to vector<2x16x16xf32>
    %397 = arith.mulf %395, %396 : vector<2x16x16xf32>
    %398 = arith.addf %392, %397 : vector<2x16x16xf32>
    %cst_139 = arith.constant 0.353553385 : f32
    %399 = vector.broadcast %cst_139 : f32 to vector<2x16x16xf32>
    %400 = arith.mulf %398, %399 : vector<2x16x16xf32>
    %401 = math.tanh %400 : vector<2x16x16xf32>
    %402 = arith.addf %385, %401 : vector<2x16x16xf32>
    %cst_140 = arith.constant 2.500000e-01 : f32
    %403 = vector.broadcast %cst_140 : f32 to vector<2x16x16xf32>
    %404 = arith.mulf %402, %403 : vector<2x16x16xf32>
    %405 = tpu.transpose %404, [0, 2, 1] : vector<2x16x16xf32> -> vector<2x16x16xf32>
    %406 = arith.addf %404, %405 : vector<2x16x16xf32>
    %cst_141 = arith.constant 5.000000e-01 : f32
    %407 = vector.broadcast %cst_141 : f32 to vector<2x16x16xf32>
    %408 = arith.mulf %407, %406 : vector<2x16x16xf32>
    %c2_142 = arith.constant 2 : index
    %c0_143 = arith.constant 0 : index
    %c0_144 = arith.constant 0 : index
    %c0_145 = arith.constant 0 : index
    %409 = vector.load %arg15[%c2_142, %c0_143, %c0_144, %c0_145] : memref<3x2x16x16xf32, #tpu.memory_space<vmem>>, vector<1x2x16x16xf32>
    %410 = vector.shape_cast %409 : vector<1x2x16x16xf32> to vector<2x16x16xf32>
    %411 = vector.shape_cast %408 : vector<2x16x16xf32> to vector<1x2x16x16xf32>
    tpu.vector_store %arg15[%c2_142, %c0_143, %c0_144, %c0_145], %411 {strides = array<i32>} : memref<3x2x16x16xf32, #tpu.memory_space<vmem>>, vector<1x2x16x16xf32>,
    %412 = vector.shape_cast %332 : vector<2x16x8xf32> to vector<32x8xf32>
    %c2_146 = arith.constant 2 : index
    %c0_147 = arith.constant 0 : index
    %c0_148 = arith.constant 0 : index
    %413 = vector.load %arg9[%c2_146, %c0_147, %c0_148] : memref<3x8x8xf32, #tpu.memory_space<vmem>>, vector<1x8x8xf32>
    %414 = vector.shape_cast %413 : vector<1x8x8xf32> to vector<8x8xf32>
    %cst_149 = arith.constant dense<0.000000e+00> : vector<32x8xf32>
    %415 = tpu.matmul %412, %414, %cst_149 {dimension_numbers = #tpu.dot_dimension_numbers<[1], [0], [0], [1], [0, 0, 1, 1], [], []>} : vector<32x8xf32>, vector<8x8xf32>, vector<32x8xf32> -> vector<32x8xf32>
    %416 = arith.addf %279, %415 : vector<32x8xf32>
    %c0_150 = arith.constant 0 : index
    %c0_151 = arith.constant 0 : index
    %417 = vector.load %arg10[%c0_150, %c0_151] : memref<1x8xf32, #tpu.memory_space<vmem>>, vector<1x8xf32>
    %418 = vector.broadcast %417 : vector<1x8xf32> to vector<32x8xf32>
    %419 = arith.addf %416, %418 : vector<32x8xf32>
    %cst_152 = arith.constant 0.000000e+00 : f32
    %420 = vector.broadcast %cst_152 : f32 to vector<32x8xf32>
    %421 = arith.cmpf ogt, %419, %420 : vector<32x8xf32>
    %422 = math.exp %419 : vector<32x8xf32>
    %cst_153 = arith.constant 1.000000e+00 : f32
    %423 = vector.broadcast %cst_153 : f32 to vector<32x8xf32>
    %424 = arith.subf %422, %423 : vector<32x8xf32>
    %425 = arith.select %421, %419, %424 : vector<32x8xi1>, vector<32x8xf32>
    %c0_154 = arith.constant 0 : index
    %c0_155 = arith.constant 0 : index
    %426 = vector.load %arg11[%c0_154, %c0_155] : memref<8x8xf32, #tpu.memory_space<vmem>>, vector<8x8xf32>
    %cst_156 = arith.constant dense<0.000000e+00> : vector<32x8xf32>
    %427 = tpu.matmul %425, %426, %cst_156 {dimension_numbers = #tpu.dot_dimension_numbers<[1], [0], [0], [1], [0, 0, 1, 1], [], []>} : vector<32x8xf32>, vector<8x8xf32>, vector<32x8xf32> -> vector<32x8xf32>
    %c0_157 = arith.constant 0 : index
    %c0_158 = arith.constant 0 : index
    %428 = vector.load %arg12[%c0_157, %c0_158] : memref<1x8xf32, #tpu.memory_space<vmem>>, vector<1x8xf32>
    %429 = vector.broadcast %428 : vector<1x8xf32> to vector<32x8xf32>
    %430 = arith.addf %427, %429 : vector<32x8xf32>
    %431 = vector.shape_cast %430 : vector<32x8xf32> to vector<2x16x8xf32>
    %c0_159 = arith.constant 0 : index
    %c0_160 = arith.constant 0 : index
    %c0_161 = arith.constant 0 : index
    %432 = vector.load %arg13[%c0_159, %c0_160, %c0_161] : memref<2x16x1xf32, #tpu.memory_space<vmem>>, vector<2x16x1xf32>
    %433 = vector.broadcast %432 : vector<2x16x1xf32> to vector<2x16x8xf32>
    %434 = arith.mulf %431, %433 : vector<2x16x8xf32>
    %435 = math.tanh %434 : vector<2x16x8xf32>
    %c0_162 = arith.constant 0 : index
    %c0_163 = arith.constant 0 : index
    %c0_164 = arith.constant 0 : index
    %436 = vector.load %arg14[%c0_162, %c0_163, %c0_164] : memref<2x16x8xf32, #tpu.memory_space<vmem>>, vector<2x16x8xf32>
    tpu.vector_store %arg14[%c0_162, %c0_163, %c0_164], %435 {strides = array<i32>} : memref<2x16x8xf32, #tpu.memory_space<vmem>>, vector<2x16x8xf32>,
    return
  }
  func.func @transform_0(%arg0: i32) -> (i32, i32, i32) {
    %c0_i32 = arith.constant 0 : i32
    %c0_i32_0 = arith.constant 0 : i32
    %c0_i32_1 = arith.constant 0 : i32
    return %arg0, %c0_i32, %c0_i32_0 : i32, i32, i32
  }
  func.func @transform_1(%arg0: i32) -> (i32, i32, i32, i32) {
    %c0_i32 = arith.constant 0 : i32
    %c0_i32_0 = arith.constant 0 : i32
    %c0_i32_1 = arith.constant 0 : i32
    %c0_i32_2 = arith.constant 0 : i32
    return %c0_i32, %arg0, %c0_i32_0, %c0_i32_1 : i32, i32, i32, i32
  }
  func.func @transform_2(%arg0: i32) -> (i32, i32, i32) {
    %c0_i32 = arith.constant 0 : i32
    %c0_i32_0 = arith.constant 0 : i32
    %c0_i32_1 = arith.constant 0 : i32
    %c0_i32_2 = arith.constant 0 : i32
    return %c0_i32, %c0_i32_0, %c0_i32_1 : i32, i32, i32
  }
  func.func @transform_3(%arg0: i32) -> (i32, i32, i32) {
    %c0_i32 = arith.constant 0 : i32
    %c0_i32_0 = arith.constant 0 : i32
    %c0_i32_1 = arith.constant 0 : i32
    %c0_i32_2 = arith.constant 0 : i32
    return %c0_i32, %c0_i32_0, %c0_i32_1 : i32, i32, i32
  }
  func.func @transform_4(%arg0: i32) -> (i32, i32, i32) {
    %c0_i32 = arith.constant 0 : i32
    %c0_i32_0 = arith.constant 0 : i32
    %c0_i32_1 = arith.constant 0 : i32
    %c0_i32_2 = arith.constant 0 : i32
    return %c0_i32, %c0_i32_0, %c0_i32_1 : i32, i32, i32
  }
  func.func @transform_5(%arg0: i32) -> (i32, i32, i32) {
    %c0_i32 = arith.constant 0 : i32
    %c0_i32_0 = arith.constant 0 : i32
    %c0_i32_1 = arith.constant 0 : i32
    %c0_i32_2 = arith.constant 0 : i32
    return %c0_i32, %c0_i32_0, %c0_i32_1 : i32, i32, i32
  }
  func.func @transform_6(%arg0: i32) -> (i32, i32, i32) {
    %c0_i32 = arith.constant 0 : i32
    %c0_i32_0 = arith.constant 0 : i32
    %c0_i32_1 = arith.constant 0 : i32
    %c0_i32_2 = arith.constant 0 : i32
    return %c0_i32, %c0_i32_0, %c0_i32_1 : i32, i32, i32
  }
  func.func @transform_7(%arg0: i32) -> (i32, i32, i32) {
    %c0_i32 = arith.constant 0 : i32
    %c0_i32_0 = arith.constant 0 : i32
    %c0_i32_1 = arith.constant 0 : i32
    %c0_i32_2 = arith.constant 0 : i32
    return %c0_i32, %c0_i32_0, %c0_i32_1 : i32, i32, i32
  }
  func.func @transform_8(%arg0: i32) -> (i32, i32, i32) {
    %c0_i32 = arith.constant 0 : i32
    %c0_i32_0 = arith.constant 0 : i32
    %c0_i32_1 = arith.constant 0 : i32
    %c0_i32_2 = arith.constant 0 : i32
    return %c0_i32, %c0_i32_0, %c0_i32_1 : i32, i32, i32
  }
  func.func @transform_9(%arg0: i32) -> (i32, i32) {
    %c0_i32 = arith.constant 0 : i32
    %c0_i32_0 = arith.constant 0 : i32
    %c0_i32_1 = arith.constant 0 : i32
    return %c0_i32, %c0_i32_0 : i32, i32
  }
  func.func @transform_10(%arg0: i32) -> (i32, i32) {
    %c0_i32 = arith.constant 0 : i32
    %c0_i32_0 = arith.constant 0 : i32
    %c0_i32_1 = arith.constant 0 : i32
    return %c0_i32, %c0_i32_0 : i32, i32
  }
  func.func @transform_11(%arg0: i32) -> (i32, i32) {
    %c0_i32 = arith.constant 0 : i32
    %c0_i32_0 = arith.constant 0 : i32
    %c0_i32_1 = arith.constant 0 : i32
    return %c0_i32, %c0_i32_0 : i32, i32
  }
  func.func @transform_12(%arg0: i32) -> (i32, i32, i32) {
    %c0_i32 = arith.constant 0 : i32
    %c0_i32_0 = arith.constant 0 : i32
    %c0_i32_1 = arith.constant 0 : i32
    return %arg0, %c0_i32, %c0_i32_0 : i32, i32, i32
  }
  func.func @transform_13(%arg0: i32) -> (i32, i32, i32) {
    %c0_i32 = arith.constant 0 : i32
    %c0_i32_0 = arith.constant 0 : i32
    %c0_i32_1 = arith.constant 0 : i32
    return %arg0, %c0_i32, %c0_i32_0 : i32, i32, i32
  }
  func.func @transform_14(%arg0: i32) -> (i32, i32, i32, i32) {
    %c0_i32 = arith.constant 0 : i32
    %c0_i32_0 = arith.constant 0 : i32
    %c0_i32_1 = arith.constant 0 : i32
    %c0_i32_2 = arith.constant 0 : i32
    return %c0_i32, %arg0, %c0_i32_0, %c0_i32_1 : i32, i32, i32, i32
  }
}

module attributes {stable_mosaic.version = 11 : i64} {
  func.func @_edge_mlp_kernel(%arg0: i32, %arg1: memref<3x512xf32, #tpu.memory_space<vmem>>, %arg2: memref<3x512xf32, #tpu.memory_space<vmem>>, %arg3: memref<1x512xf32, #tpu.memory_space<vmem>>, %arg4: memref<8x3xf32, #tpu.memory_space<vmem>>, %arg5: memref<8x3xf32, #tpu.memory_space<vmem>>, %arg6: memref<8x1xf32, #tpu.memory_space<vmem>>, %arg7: memref<4x8xf32, #tpu.memory_space<vmem>>, %arg8: memref<4x1xf32, #tpu.memory_space<vmem>>, %arg9: memref<4x512xf32, #tpu.memory_space<vmem>>) attributes {dimension_semantics = [#tpu.dimension_semantics<parallel>], iteration_bounds = array<i64: 1>, scalar_prefetch = 0 : i64, scratch_operands = 0 : i64, tpu.core_type = #tpu.core_type<tc>, window_params = [{transform_indices = @transform_0, window_bounds = array<i64: 3, 512>}, {transform_indices = @transform_1, window_bounds = array<i64: 3, 512>}, {transform_indices = @transform_2, window_bounds = array<i64: 1, 512>}, {pipeline_mode = #tpu.pipeline_mode<synchronous>, transform_indices = @transform_3, window_bounds = array<i64: 8, 3>}, {pipeline_mode = #tpu.pipeline_mode<synchronous>, transform_indices = @transform_4, window_bounds = array<i64: 8, 3>}, {pipeline_mode = #tpu.pipeline_mode<synchronous>, transform_indices = @transform_5, window_bounds = array<i64: 8, 1>}, {pipeline_mode = #tpu.pipeline_mode<synchronous>, transform_indices = @transform_6, window_bounds = array<i64: 4, 8>}, {pipeline_mode = #tpu.pipeline_mode<synchronous>, transform_indices = @transform_7, window_bounds = array<i64: 4, 1>}, {transform_indices = @transform_8, window_bounds = array<i64: 4, 512>}]} {
    %c0 = arith.constant 0 : index
    %c0_0 = arith.constant 0 : index
    %0 = vector.load %arg4[%c0, %c0_0] : memref<8x3xf32, #tpu.memory_space<vmem>>, vector<8x3xf32>
    %c0_1 = arith.constant 0 : index
    %c0_2 = arith.constant 0 : index
    %1 = vector.load %arg1[%c0_1, %c0_2] : memref<3x512xf32, #tpu.memory_space<vmem>>, vector<3x512xf32>
    %cst = arith.constant dense<0.000000e+00> : vector<8x512xf32>
    %2 = tpu.matmul %0, %1, %cst {dimension_numbers = #tpu.dot_dimension_numbers<[1], [0], [0], [1], [0, 0, 1, 1], [], []>} : vector<8x3xf32>, vector<3x512xf32>, vector<8x512xf32> -> vector<8x512xf32>
    %c0_3 = arith.constant 0 : index
    %c0_4 = arith.constant 0 : index
    %3 = vector.load %arg5[%c0_3, %c0_4] : memref<8x3xf32, #tpu.memory_space<vmem>>, vector<8x3xf32>
    %c0_5 = arith.constant 0 : index
    %c0_6 = arith.constant 0 : index
    %4 = vector.load %arg2[%c0_5, %c0_6] : memref<3x512xf32, #tpu.memory_space<vmem>>, vector<3x512xf32>
    %cst_7 = arith.constant dense<0.000000e+00> : vector<8x512xf32>
    %5 = tpu.matmul %3, %4, %cst_7 {dimension_numbers = #tpu.dot_dimension_numbers<[1], [0], [0], [1], [0, 0, 1, 1], [], []>} : vector<8x3xf32>, vector<3x512xf32>, vector<8x512xf32> -> vector<8x512xf32>
    %6 = arith.addf %2, %5 : vector<8x512xf32>
    %c0_8 = arith.constant 0 : index
    %c0_9 = arith.constant 0 : index
    %7 = vector.load %arg6[%c0_8, %c0_9] : memref<8x1xf32, #tpu.memory_space<vmem>>, vector<8x1xf32>
    %8 = vector.broadcast %7 : vector<8x1xf32> to vector<8x512xf32>
    %9 = arith.addf %6, %8 : vector<8x512xf32>
    %cst_10 = arith.constant 0.000000e+00 : f32
    %10 = vector.broadcast %cst_10 : f32 to vector<8x512xf32>
    %11 = arith.cmpf ogt, %9, %10 : vector<8x512xf32>
    %12 = math.exp %9 : vector<8x512xf32>
    %cst_11 = arith.constant 1.000000e+00 : f32
    %13 = vector.broadcast %cst_11 : f32 to vector<8x512xf32>
    %14 = arith.subf %12, %13 : vector<8x512xf32>
    %15 = arith.select %11, %9, %14 : vector<8x512xi1>, vector<8x512xf32>
    %c0_12 = arith.constant 0 : index
    %c0_13 = arith.constant 0 : index
    %16 = vector.load %arg7[%c0_12, %c0_13] : memref<4x8xf32, #tpu.memory_space<vmem>>, vector<4x8xf32>
    %c0_14 = arith.constant 0 : index
    %c0_15 = arith.constant 0 : index
    %17 = vector.load %arg8[%c0_14, %c0_15] : memref<4x1xf32, #tpu.memory_space<vmem>>, vector<4x1xf32>
    %cst_16 = arith.constant dense<0.000000e+00> : vector<4x512xf32>
    %18 = tpu.matmul %16, %15, %cst_16 {dimension_numbers = #tpu.dot_dimension_numbers<[1], [0], [0], [1], [0, 0, 1, 1], [], []>} : vector<4x8xf32>, vector<8x512xf32>, vector<4x512xf32> -> vector<4x512xf32>
    %19 = vector.broadcast %17 : vector<4x1xf32> to vector<4x512xf32>
    %20 = arith.addf %18, %19 : vector<4x512xf32>
    %c0_17 = arith.constant 0 : index
    %c0_18 = arith.constant 0 : index
    %21 = vector.load %arg3[%c0_17, %c0_18] : memref<1x512xf32, #tpu.memory_space<vmem>>, vector<1x512xf32>
    %22 = vector.broadcast %21 : vector<1x512xf32> to vector<4x512xf32>
    %23 = arith.mulf %20, %22 : vector<4x512xf32>
    %c0_19 = arith.constant 0 : index
    %c0_20 = arith.constant 0 : index
    %24 = vector.load %arg9[%c0_19, %c0_20] : memref<4x512xf32, #tpu.memory_space<vmem>>, vector<4x512xf32>
    tpu.vector_store %arg9[%c0_19, %c0_20], %23 {strides = array<i32>} : memref<4x512xf32, #tpu.memory_space<vmem>>, vector<4x512xf32>,
    return
  }
  func.func @transform_0(%arg0: i32) -> (i32, i32) {
    %c0_i32 = arith.constant 0 : i32
    %c0_i32_0 = arith.constant 0 : i32
    return %c0_i32, %arg0 : i32, i32
  }
  func.func @transform_1(%arg0: i32) -> (i32, i32) {
    %c0_i32 = arith.constant 0 : i32
    %c0_i32_0 = arith.constant 0 : i32
    return %c0_i32, %arg0 : i32, i32
  }
  func.func @transform_2(%arg0: i32) -> (i32, i32) {
    %c0_i32 = arith.constant 0 : i32
    %c0_i32_0 = arith.constant 0 : i32
    return %c0_i32, %arg0 : i32, i32
  }
  func.func @transform_3(%arg0: i32) -> (i32, i32) {
    %c0_i32 = arith.constant 0 : i32
    %c0_i32_0 = arith.constant 0 : i32
    %c0_i32_1 = arith.constant 0 : i32
    return %c0_i32, %c0_i32_0 : i32, i32
  }
  func.func @transform_4(%arg0: i32) -> (i32, i32) {
    %c0_i32 = arith.constant 0 : i32
    %c0_i32_0 = arith.constant 0 : i32
    %c0_i32_1 = arith.constant 0 : i32
    return %c0_i32, %c0_i32_0 : i32, i32
  }
  func.func @transform_5(%arg0: i32) -> (i32, i32) {
    %c0_i32 = arith.constant 0 : i32
    %c0_i32_0 = arith.constant 0 : i32
    %c0_i32_1 = arith.constant 0 : i32
    return %c0_i32, %c0_i32_0 : i32, i32
  }
  func.func @transform_6(%arg0: i32) -> (i32, i32) {
    %c0_i32 = arith.constant 0 : i32
    %c0_i32_0 = arith.constant 0 : i32
    %c0_i32_1 = arith.constant 0 : i32
    return %c0_i32, %c0_i32_0 : i32, i32
  }
  func.func @transform_7(%arg0: i32) -> (i32, i32) {
    %c0_i32 = arith.constant 0 : i32
    %c0_i32_0 = arith.constant 0 : i32
    %c0_i32_1 = arith.constant 0 : i32
    return %c0_i32, %c0_i32_0 : i32, i32
  }
  func.func @transform_8(%arg0: i32) -> (i32, i32) {
    %c0_i32 = arith.constant 0 : i32
    %c0_i32_0 = arith.constant 0 : i32
    return %c0_i32, %arg0 : i32, i32
  }
}

module attributes {stable_mosaic.version = 11 : i64} {
  func.func @_edge_mlp_kernel(%arg0: i32, %arg1: memref<2x512xf32, #tpu.memory_space<vmem>>, %arg2: memref<3x512xf32, #tpu.memory_space<vmem>>, %arg3: memref<4x512xf32, #tpu.memory_space<vmem>>, %arg4: memref<1x512xf32, #tpu.memory_space<vmem>>, %arg5: memref<18x2xf32, #tpu.memory_space<vmem>>, %arg6: memref<18x3xf32, #tpu.memory_space<vmem>>, %arg7: memref<18x4xf32, #tpu.memory_space<vmem>>, %arg8: memref<18x1xf32, #tpu.memory_space<vmem>>, %arg9: memref<18x18xf32, #tpu.memory_space<vmem>>, %arg10: memref<18x1xf32, #tpu.memory_space<vmem>>, %arg11: memref<1x18xf32, #tpu.memory_space<vmem>>, %arg12: memref<1x1xf32, #tpu.memory_space<vmem>>, %arg13: memref<1x512xf32, #tpu.memory_space<vmem>>) attributes {dimension_semantics = [#tpu.dimension_semantics<parallel>], iteration_bounds = array<i64: 1>, scalar_prefetch = 0 : i64, scratch_operands = 0 : i64, tpu.core_type = #tpu.core_type<tc>, window_params = [{transform_indices = @transform_0, window_bounds = array<i64: 2, 512>}, {transform_indices = @transform_1, window_bounds = array<i64: 3, 512>}, {transform_indices = @transform_2, window_bounds = array<i64: 4, 512>}, {transform_indices = @transform_3, window_bounds = array<i64: 1, 512>}, {pipeline_mode = #tpu.pipeline_mode<synchronous>, transform_indices = @transform_4, window_bounds = array<i64: 18, 2>}, {pipeline_mode = #tpu.pipeline_mode<synchronous>, transform_indices = @transform_5, window_bounds = array<i64: 18, 3>}, {pipeline_mode = #tpu.pipeline_mode<synchronous>, transform_indices = @transform_6, window_bounds = array<i64: 18, 4>}, {pipeline_mode = #tpu.pipeline_mode<synchronous>, transform_indices = @transform_7, window_bounds = array<i64: 18, 1>}, {pipeline_mode = #tpu.pipeline_mode<synchronous>, transform_indices = @transform_8, window_bounds = array<i64: 18, 18>}, {pipeline_mode = #tpu.pipeline_mode<synchronous>, transform_indices = @transform_9, window_bounds = array<i64: 18, 1>}, {pipeline_mode = #tpu.pipeline_mode<synchronous>, transform_indices = @transform_10, window_bounds = array<i64: 1, 18>}, {pipeline_mode = #tpu.pipeline_mode<synchronous>, transform_indices = @transform_11, window_bounds = array<i64: 1, 1>}, {transform_indices = @transform_12, window_bounds = array<i64: 1, 512>}]} {
    %c0 = arith.constant 0 : index
    %c0_0 = arith.constant 0 : index
    %0 = vector.load %arg5[%c0, %c0_0] : memref<18x2xf32, #tpu.memory_space<vmem>>, vector<18x2xf32>
    %c0_1 = arith.constant 0 : index
    %c0_2 = arith.constant 0 : index
    %1 = vector.load %arg1[%c0_1, %c0_2] : memref<2x512xf32, #tpu.memory_space<vmem>>, vector<2x512xf32>
    %cst = arith.constant dense<0.000000e+00> : vector<18x512xf32>
    %2 = tpu.matmul %0, %1, %cst {dimension_numbers = #tpu.dot_dimension_numbers<[1], [0], [0], [1], [0, 0, 1, 1], [], []>} : vector<18x2xf32>, vector<2x512xf32>, vector<18x512xf32> -> vector<18x512xf32>
    %c0_3 = arith.constant 0 : index
    %c0_4 = arith.constant 0 : index
    %3 = vector.load %arg6[%c0_3, %c0_4] : memref<18x3xf32, #tpu.memory_space<vmem>>, vector<18x3xf32>
    %c0_5 = arith.constant 0 : index
    %c0_6 = arith.constant 0 : index
    %4 = vector.load %arg2[%c0_5, %c0_6] : memref<3x512xf32, #tpu.memory_space<vmem>>, vector<3x512xf32>
    %cst_7 = arith.constant dense<0.000000e+00> : vector<18x512xf32>
    %5 = tpu.matmul %3, %4, %cst_7 {dimension_numbers = #tpu.dot_dimension_numbers<[1], [0], [0], [1], [0, 0, 1, 1], [], []>} : vector<18x3xf32>, vector<3x512xf32>, vector<18x512xf32> -> vector<18x512xf32>
    %6 = arith.addf %2, %5 : vector<18x512xf32>
    %c0_8 = arith.constant 0 : index
    %c0_9 = arith.constant 0 : index
    %7 = vector.load %arg7[%c0_8, %c0_9] : memref<18x4xf32, #tpu.memory_space<vmem>>, vector<18x4xf32>
    %c0_10 = arith.constant 0 : index
    %c0_11 = arith.constant 0 : index
    %8 = vector.load %arg3[%c0_10, %c0_11] : memref<4x512xf32, #tpu.memory_space<vmem>>, vector<4x512xf32>
    %cst_12 = arith.constant dense<0.000000e+00> : vector<18x512xf32>
    %9 = tpu.matmul %7, %8, %cst_12 {dimension_numbers = #tpu.dot_dimension_numbers<[1], [0], [0], [1], [0, 0, 1, 1], [], []>} : vector<18x4xf32>, vector<4x512xf32>, vector<18x512xf32> -> vector<18x512xf32>
    %10 = arith.addf %6, %9 : vector<18x512xf32>
    %c0_13 = arith.constant 0 : index
    %c0_14 = arith.constant 0 : index
    %11 = vector.load %arg8[%c0_13, %c0_14] : memref<18x1xf32, #tpu.memory_space<vmem>>, vector<18x1xf32>
    %12 = vector.broadcast %11 : vector<18x1xf32> to vector<18x512xf32>
    %13 = arith.addf %10, %12 : vector<18x512xf32>
    %cst_15 = arith.constant 0.000000e+00 : f32
    %14 = vector.broadcast %cst_15 : f32 to vector<18x512xf32>
    %15 = arith.cmpf ogt, %13, %14 : vector<18x512xf32>
    %16 = math.exp %13 : vector<18x512xf32>
    %cst_16 = arith.constant 1.000000e+00 : f32
    %17 = vector.broadcast %cst_16 : f32 to vector<18x512xf32>
    %18 = arith.subf %16, %17 : vector<18x512xf32>
    %19 = arith.select %15, %13, %18 : vector<18x512xi1>, vector<18x512xf32>
    %c0_17 = arith.constant 0 : index
    %c0_18 = arith.constant 0 : index
    %20 = vector.load %arg9[%c0_17, %c0_18] : memref<18x18xf32, #tpu.memory_space<vmem>>, vector<18x18xf32>
    %c0_19 = arith.constant 0 : index
    %c0_20 = arith.constant 0 : index
    %21 = vector.load %arg10[%c0_19, %c0_20] : memref<18x1xf32, #tpu.memory_space<vmem>>, vector<18x1xf32>
    %cst_21 = arith.constant dense<0.000000e+00> : vector<18x512xf32>
    %22 = tpu.matmul %20, %19, %cst_21 {dimension_numbers = #tpu.dot_dimension_numbers<[1], [0], [0], [1], [0, 0, 1, 1], [], []>} : vector<18x18xf32>, vector<18x512xf32>, vector<18x512xf32> -> vector<18x512xf32>
    %23 = vector.broadcast %21 : vector<18x1xf32> to vector<18x512xf32>
    %24 = arith.addf %22, %23 : vector<18x512xf32>
    %cst_22 = arith.constant 0.000000e+00 : f32
    %25 = vector.broadcast %cst_22 : f32 to vector<18x512xf32>
    %26 = arith.cmpf ogt, %24, %25 : vector<18x512xf32>
    %27 = math.exp %24 : vector<18x512xf32>
    %cst_23 = arith.constant 1.000000e+00 : f32
    %28 = vector.broadcast %cst_23 : f32 to vector<18x512xf32>
    %29 = arith.subf %27, %28 : vector<18x512xf32>
    %30 = arith.select %26, %24, %29 : vector<18x512xi1>, vector<18x512xf32>
    %c0_24 = arith.constant 0 : index
    %c0_25 = arith.constant 0 : index
    %31 = vector.load %arg11[%c0_24, %c0_25] : memref<1x18xf32, #tpu.memory_space<vmem>>, vector<1x18xf32>
    %c0_26 = arith.constant 0 : index
    %c0_27 = arith.constant 0 : index
    %32 = vector.load %arg12[%c0_26, %c0_27] : memref<1x1xf32, #tpu.memory_space<vmem>>, vector<1x1xf32>
    %cst_28 = arith.constant dense<0.000000e+00> : vector<1x512xf32>
    %33 = tpu.matmul %31, %30, %cst_28 {dimension_numbers = #tpu.dot_dimension_numbers<[1], [0], [0], [1], [0, 0, 1, 1], [], []>} : vector<1x18xf32>, vector<18x512xf32>, vector<1x512xf32> -> vector<1x512xf32>
    %34 = vector.broadcast %32 : vector<1x1xf32> to vector<1x512xf32>
    %35 = arith.addf %33, %34 : vector<1x512xf32>
    %c0_29 = arith.constant 0 : index
    %c0_30 = arith.constant 0 : index
    %36 = vector.load %arg4[%c0_29, %c0_30] : memref<1x512xf32, #tpu.memory_space<vmem>>, vector<1x512xf32>
    %37 = arith.mulf %35, %36 : vector<1x512xf32>
    %c0_31 = arith.constant 0 : index
    %c0_32 = arith.constant 0 : index
    %38 = vector.load %arg13[%c0_31, %c0_32] : memref<1x512xf32, #tpu.memory_space<vmem>>, vector<1x512xf32>
    tpu.vector_store %arg13[%c0_31, %c0_32], %37 {strides = array<i32>} : memref<1x512xf32, #tpu.memory_space<vmem>>, vector<1x512xf32>,
    return
  }
  func.func @transform_0(%arg0: i32) -> (i32, i32) {
    %c0_i32 = arith.constant 0 : i32
    %c0_i32_0 = arith.constant 0 : i32
    return %c0_i32, %arg0 : i32, i32
  }
  func.func @transform_1(%arg0: i32) -> (i32, i32) {
    %c0_i32 = arith.constant 0 : i32
    %c0_i32_0 = arith.constant 0 : i32
    return %c0_i32, %arg0 : i32, i32
  }
  func.func @transform_2(%arg0: i32) -> (i32, i32) {
    %c0_i32 = arith.constant 0 : i32
    %c0_i32_0 = arith.constant 0 : i32
    return %c0_i32, %arg0 : i32, i32
  }
  func.func @transform_3(%arg0: i32) -> (i32, i32) {
    %c0_i32 = arith.constant 0 : i32
    %c0_i32_0 = arith.constant 0 : i32
    return %c0_i32, %arg0 : i32, i32
  }
  func.func @transform_4(%arg0: i32) -> (i32, i32) {
    %c0_i32 = arith.constant 0 : i32
    %c0_i32_0 = arith.constant 0 : i32
    %c0_i32_1 = arith.constant 0 : i32
    return %c0_i32, %c0_i32_0 : i32, i32
  }
  func.func @transform_5(%arg0: i32) -> (i32, i32) {
    %c0_i32 = arith.constant 0 : i32
    %c0_i32_0 = arith.constant 0 : i32
    %c0_i32_1 = arith.constant 0 : i32
    return %c0_i32, %c0_i32_0 : i32, i32
  }
  func.func @transform_6(%arg0: i32) -> (i32, i32) {
    %c0_i32 = arith.constant 0 : i32
    %c0_i32_0 = arith.constant 0 : i32
    %c0_i32_1 = arith.constant 0 : i32
    return %c0_i32, %c0_i32_0 : i32, i32
  }
  func.func @transform_7(%arg0: i32) -> (i32, i32) {
    %c0_i32 = arith.constant 0 : i32
    %c0_i32_0 = arith.constant 0 : i32
    %c0_i32_1 = arith.constant 0 : i32
    return %c0_i32, %c0_i32_0 : i32, i32
  }
  func.func @transform_8(%arg0: i32) -> (i32, i32) {
    %c0_i32 = arith.constant 0 : i32
    %c0_i32_0 = arith.constant 0 : i32
    %c0_i32_1 = arith.constant 0 : i32
    return %c0_i32, %c0_i32_0 : i32, i32
  }
  func.func @transform_9(%arg0: i32) -> (i32, i32) {
    %c0_i32 = arith.constant 0 : i32
    %c0_i32_0 = arith.constant 0 : i32
    %c0_i32_1 = arith.constant 0 : i32
    return %c0_i32, %c0_i32_0 : i32, i32
  }
  func.func @transform_10(%arg0: i32) -> (i32, i32) {
    %c0_i32 = arith.constant 0 : i32
    %c0_i32_0 = arith.constant 0 : i32
    %c0_i32_1 = arith.constant 0 : i32
    return %c0_i32, %c0_i32_0 : i32, i32
  }
  func.func @transform_11(%arg0: i32) -> (i32, i32) {
    %c0_i32 = arith.constant 0 : i32
    %c0_i32_0 = arith.constant 0 : i32
    %c0_i32_1 = arith.constant 0 : i32
    return %c0_i32, %c0_i32_0 : i32, i32
  }
  func.func @transform_12(%arg0: i32) -> (i32, i32) {
    %c0_i32 = arith.constant 0 : i32
    %c0_i32_0 = arith.constant 0 : i32
    return %c0_i32, %arg0 : i32, i32
  }
}

</mosaic_0001>

<bundles_post_ra>
// kernel: score_network_a_forward.6
= control target key start
LH: loop header
LB: loop body
LE: loop exit
PB: predicated region body
PF: predicated region fallthrough
CT: control target
= control target key end

     0   :  { %6 = vsyncpa [#allocation3], 0  ;;  %s268_s6 = smov [#allocation2]   ;;  %s329_s0 = inlined_call_operand.hbm [shape: f32[2,16,16], index: 0, kind: input, shape index: {}]   ;;  %s330_s1 = inlined_call_operand.vmem [shape: f32[2,2,16,16], index: 1, kind: output, shape index: {}]  }
   0x1   :  { %s12_s7 = sshll.u32 %s268_s6, 4  ;;  %s244_s10 = scalar_lea.hbm %s329_s0, 512  ;;  %s13_s7 = int_to_ptr.vmem [resolvable:$true] %s12_s7 }
   0x2   :  { %p245_p0 = scmp.ne.s32.totalorder %s329_s0, %s244_s10  ;;  %p248_p1 = scmp.lt.u32.totalorder %s244_s10, %s329_s0 }
   0x4   :  { %p250_p2 = pnand %p248_p1, %p245_p0 }
   0x6   :  { %253 = shalt.err (!%p250_p2)
}
   0x7   :  { %s254_s15 = scalar_lea.vmem %s13_s7, 512  ;;  %p259_p4 = scmp.lt.s32.totalorder %s13_s7, %s13_s7 }
   0x8   :  { %p255_p3 = scmp.ne.s32.totalorder %s13_s7, %s254_s15  ;;  %p260_p5 = scmp.lt.s32.totalorder %s254_s15, %s254_s15 }
   0xa   :  { %p261_p6 = por %p260_p5, %p259_p4 }
   0xc   :  { %p262_p7 = pnand %p261_p6, %p255_p3 }
   0xe   :  { %265 = shalt.err (!%p262_p7)
}
   0xf   :  { %s269_s16 = smov 128   ;;  %s270_s17 = smov 8  }
  0x10   :  { %18 = dma.hbm_to_vmem [thread:$0]  %s329_s0, 512, %s13_s7, [#allocation3], %s269_s16, %s269_s16, %s270_s17  }
  0x11   :  { %266 = dma.done.wait [#allocation3], 512  }
  0x12   :  { %267 = vsyncadd [#allocation3], 4294966784  ;;  %vm26_vm0 = vcmask 130048   ;;  %v22_v0 = vld [vmem:[#allocation2] sm:$0xff]  ;;  %v23_v1 = vld [vmem:[#allocation2 + $0x8] sm:$0xff] }
  0x13   :  { %v24_v2 = vld [vmem:[#allocation2 + $0x10] sm:$0xff]  ;;  %27 = vst.msk [vmem:[%s330_s1] sm:$0xff] %vm26_vm0, %v22_v0  ;;  %28 = vst.msk [vmem:[%s330_s1 + $0x8] sm:$0xff] %vm26_vm0, %v23_v1  ;;  %v233_v3 = vpack.c.bf16 %v23_v1, %v22_v0  ;;  %v25_v4 = vld [vmem:[#allocation2 + $0x18] sm:$0xff]  ;;  %223 = vmatprep.mubr.msk.f32.mxu0 %vm26_vm0, %v22_v0 }
  0x14   :  { %29 = vst.msk [vmem:[%s330_s1 + $0x10] sm:$0xff] %vm26_vm0, %v24_v2  ;;  %230 = vmatprep.mubr.msk.f32.mxu1 %vm26_vm0, %v24_v2  ;;  %30 = vst.msk [vmem:[%s330_s1 + $0x18] sm:$0xff] %vm26_vm0, %v25_v4  ;;  %v237_v5 = vpack.c.bf16 %v25_v4, %v24_v2 }
  0x15   :  { %234 = vmatprep.subr.bf16.mxu0 %v233_v3 }
  0x16   :  { %238 = vmatprep.subr.bf16.mxu1 %v237_v5  ;;  %236 = vmatpush3.bf16.msra.mxu0 %v233_v3 }
  0x17   :  { %240 = vmatpush3.bf16.msra.mxu1 %v237_v5 }
  0x19   :  { %224 = vmatmul.mubr.msk.f32.vlgmr.msra.gmra.mrb[0].mxu0 %vm26_vm0, %v23_v1 }
  0x1a   :  { %231 = vmatmul.mubr.msk.f32.vlgmr.msra.gmra.mrb[0].mxu1 %vm26_vm0, %v25_v4 }
  0xec   :  { %v225_v6 = vpop.f32.mrb[0].mxu0 }
  0xed   :  { %208 = vst.msk [vmem:[%s330_s1 + $0x28] sm:$0xff] %vm26_vm0, %v225_v6  ;;  %v232_v7 = vpop.f32.mrb[0].mxu1  ;;  %v103_v8 = vpop.f32.mrb[1].mxu0 }
  0xee   :  { %210 = vst.msk [vmem:[%s330_s1 + $0x38] sm:$0xff] %vm26_vm0, %v232_v7  ;;  %207 = vst.msk [vmem:[%s330_s1 + $0x20] sm:$0xff] %vm26_vm0, %v103_v8  ;;  %v184_v9 = vpop.f32.mrb[1].mxu1 }
  0xef   :  { %209 = vst.msk [vmem:[%s330_s1 + $0x30] sm:$0xff] %vm26_vm0, %v184_v9 }
  0xf0   :  { %202 = vsyncpa [#allocation3], 1 }

// kernel: score_network_a_forward.8
= control target key start
LH: loop header
LB: loop body
LE: loop exit
PB: predicated region body
PF: predicated region fallthrough
CT: control target
= control target key end

     0   :  { %v38_v0 = vlaneseq  ;;  %v653_v2 = vmov 1983009808   ;;  %v654_v4 = vmov 0.0   ;;  %v655_v7 = vmov 0   ;;  %s750_s1 = inlined_call_operand.vmem [shape: f32[2,512], index: 1, kind: input, shape index: {}]   ;;  %s751_s0 = inlined_call_operand.vmem [shape: f32[2,512], index: 0, kind: input, shape index: {}]   ;;  %s752_s5 = inlined_call_operand.vmem [shape: f32[6,1], index: 5, kind: input, shape index: {}]   ;;  %s753_s7 = inlined_call_operand.vmem [shape: f32[3,1], index: 7, kind: input, shape index: {}]   ;;  %s754_s4 = inlined_call_operand.vmem [shape: f32[6,2], index: 4, kind: input, shape index: {}]   ;;  %s755_s3 = inlined_call_operand.vmem [shape: f32[6,2], index: 3, kind: input, shape index: {}]   ;;  %s756_s6 = inlined_call_operand.vmem [shape: f32[3,6], index: 6, kind: input, shape index: {}]   ;;  %s757_s2 = inlined_call_operand.vmem [shape: f32[1,512], index: 2, kind: input, shape index: {}]   ;;  %s758_s8 = inlined_call_operand.vmem [shape: f32[3,512], index: 8, kind: output, shape index: {}]  }
   0x1   :  { %v32_v1 = vld [vmem:[%s750_s1] sm:$0xff]  ;;  %v36_v3 = vunpack.c.l.s4 %v653_v2  ;;  %128 = vmatprep.mubr.f32.mxu0 %v654_v4  ;;  %199 = vmatprep.mubr.f32.mxu1 %v654_v4  ;;  %vm55_vm0 = vcmask 1041408   ;;  %vm51_vm1 = vcmask 15360   ;;  %vm418_vm2 = vcmask 1045504  }
   0x2   :  { %v30_v5 = vld [vmem:[%s751_s0] sm:$0xff]  ;;  %v707_v6 = vshrl.u32 %v38_v0, 7  ;;  %642 = vset.pattern.permute.xlu0 %v655_v7  ;;  %v34_v10 = vcombine.high %v32_v1, %v32_v1  ;;  %vm414_vm6 = vcmask 48128  }
   0x3   :  { %v377_v8 = vld [vmem:[%s752_s5] sm:$0x3f]  ;;  %v37_v9 = vunpack.c.0.s8 %v36_v3  ;;  %v207_v11 = vcombine.high %v30_v5, %v30_v5 }
   0x4   :  { %380 = vperm.xlu0 %642, %v377_v8   ;;  %v408_v12 = vld [vmem:[%s753_s7] sm:$0x7]  ;;  %v577_v50 = vsub.s32 0, %v707_v6  ;;  %v585_v52 = vsub.s32 2, %v707_v6  ;;  %v581_v53 = vsub.s32 1, %v707_v6  ;;  %v589_v54 = vsub.s32 3, %v707_v6 }
   0x5   :  { %v40_v13 = vsub.s32 %v37_v9, %v707_v6  ;;  %v31_v20 = vld [vmem:[%s754_s4] sm:$0x3f] }
   0x6   :  { %v29_v23 = vld [vmem:[%s755_s3] sm:$0x3f] }
   0x7   :  { %v41_v14 = vrot.slane %v32_v1, %v40_v13  ;;  %v48_v15 = vrot.slane %v34_v10, %v40_v13  ;;  %v214_v16 = vrot.slane %v30_v5, %v40_v13  ;;  %v221_v17 = vrot.slane %v207_v11, %v40_v13  ;;  %v407_v46 = vld [vmem:[%s756_s6] sm:$0x7] }
   0x8   :  { %411 = vperm.xlu0 %642, %v408_v12   ;;  %v573_v51 = vld [vmem:[%s757_s2] sm:$0xf] }
   0x9   :  { %v49_v18 = vcombine.high %v41_v14, %v41_v14  ;;  %v50_v19 = vcombine.high %v48_v15, %v48_v15  ;;  %v222_v21 = vcombine.high %v214_v16, %v214_v16  ;;  %v223_v22 = vcombine.high %v221_v17, %v221_v17 }
   0xa   :  { %v578_v55 = vrot.slane %v573_v51, %v577_v50  ;;  %v586_v58 = vrot.slane %v573_v51, %v585_v52  ;;  %v582_v59 = vrot.slane %v573_v51, %v581_v53  ;;  %v590_v63 = vrot.slane %v573_v51, %v589_v54 }
   0xb   :  { %613 = vmatprep.subr.msk.mxu0 %vm55_vm0, %v49_v18  ;;  %616 = vmatprep.subr.msk.mxu1 %vm55_vm0, %v50_v19 }
   0xc   :  { %614 = vmatpush1.msk.msra.mxu0 %vm55_vm0, %v41_v14  ;;  %617 = vmatpush1.msk.msra.mxu1 %vm55_vm0, %v48_v15 }
   0xd   :  { %615 = vmatmul.mubr.msk.f32.vlgmr.msra.gmra.mrb[0].mxu0 %vm51_vm1, %v31_v20  ;;  %618 = vmatmul.mubr.msk.f32.vlgmr.msra.gmra.mrb[0].mxu1 %vm51_vm1, %v31_v20 }
   0xe   :  { %619 = vmatprep.subr.msk.mxu0 %vm55_vm0, %v222_v21  ;;  %622 = vmatprep.subr.msk.mxu1 %vm55_vm0, %v223_v22 }
   0xf   :  { %620 = vmatpush1.msk.msra.mxu0 %vm55_vm0, %v214_v16  ;;  %623 = vmatpush1.msk.msra.mxu1 %vm55_vm0, %v221_v17 }
  0x10   :  { %299 = vmatprep.mubr.f32.mxu0 %v654_v4  ;;  %370 = vmatprep.mubr.f32.mxu1 %v654_v4 }
  0x15   :  { %621 = vmatmul.mubr.msk.f32.vlgmr.msra.gmra.mrb[0].mxu0 %vm51_vm1, %v29_v23  ;;  %624 = vmatmul.mubr.msk.f32.vlgmr.msra.gmra.mrb[0].mxu1 %vm51_vm1, %v29_v23 }
  0x16   :  { %495 = vmatprep.mubr.f32.mxu0 %v654_v4  ;;  %566 = vmatprep.mubr.f32.mxu1 %v654_v4 }
  0x83   :  { %v381_v24 = vpop.permute.xlu0 %380 }
  0x87   :  { %v412_v56 = vpop.permute.xlu0 %411 }
  0xe8   :  { %v301_v25 = vpop.f32.mrb[0].mxu0  ;;  %v372_v26 = vpop.f32.mrb[0].mxu1 }
  0xe9   :  { %v383_v27 = vadd.f32 %v381_v24, %v301_v25  ;;  %v385_v28 = vadd.f32 %v381_v24, %v372_v26  ;;  %v303_v29 = vpop.f32.mrb[1].mxu0  ;;  %v374_v30 = vpop.f32.mrb[1].mxu1 }
  0xea   :  { %v384_v31 = vadd.f32 %v381_v24, %v303_v29  ;;  %v386_v32 = vadd.f32 %v381_v24, %v374_v30 }
  0xeb   :  { %v391_v33 = vmul.f32 1.442695, %v383_v27  ;;  %v395_v34 = vmul.f32 1.442695, %v385_v28  ;;  %vm387_vm4 = vcmp.gt.f32.partialorder %v383_v27, 0.0  ;;  %vm389_vm7 = vcmp.gt.f32.partialorder %v385_v28, 0.0 }
  0xec   :  { %v393_v35 = vmul.f32 1.442695, %v384_v31  ;;  %v397_v36 = vmul.f32 1.442695, %v386_v32  ;;  %vm388_vm3 = vcmp.gt.f32.partialorder %v384_v31, 0.0  ;;  %vm390_vm5 = vcmp.gt.f32.partialorder %v386_v32, 0.0 }
  0xed   :  { %645 = vpow2.f32 %v391_v33 }
  0xee   :  { %647 = vpow2.f32 %v395_v34 }
  0xef   :  { %649 = vpow2.f32 %v393_v35 }
  0xf0   :  { %651 = vpow2.f32 %v397_v36 }
  0xf7   :  { %v646_v37 = vpop.eup %645 }
  0xf8   :  { %v648_v38 = vpop.eup %647  ;;  %v625_v40 = vadd.f32 -1.0, %v646_v37 }
  0xf9   :  { %v650_v39 = vpop.eup %649  ;;  %v627_v42 = vadd.f32 -1.0, %v648_v38 }
  0xfa   :  { %v652_v41 = vpop.eup %651  ;;  %v626_v43 = vadd.f32 -1.0, %v650_v39  ;;  %v403_v47 = vsel %vm387_vm4, %v383_v27, %v625_v40 }
  0xfb   :  { %v628_v44 = vadd.f32 -1.0, %v652_v41  ;;  %v405_v49 = vsel %vm389_vm7, %v385_v28, %v627_v42 }
  0xfc   :  { %v404_v45 = vsel %vm388_vm3, %v384_v31, %v626_v43 }
  0xfd   :  { %629 = vmatprep.subr.msk.mxu0 %vm418_vm2, %v404_v45  ;;  %v406_v48 = vsel %vm390_vm5, %v386_v32, %v628_v44 }
  0xfe   :  { %632 = vmatprep.subr.msk.mxu1 %vm418_vm2, %v406_v48  ;;  %630 = vmatpush1.msk.msra.mxu0 %vm418_vm2, %v403_v47 }
  0xff   :  { %633 = vmatpush1.msk.msra.mxu1 %vm418_vm2, %v405_v49  ;;  %631 = vmatmul.mubr.msk.f32.vlgmr.msra.gmra.mrb[2].mxu0 %vm414_vm6, %v407_v46 }
 0x100   :  { %634 = vmatmul.mubr.msk.f32.vlgmr.msra.gmra.mrb[2].mxu1 %vm414_vm6, %v407_v46 }
 0x1d2   :  { %v497_v57 = vpop.f32.mrb[2].mxu0 }
 0x1d3   :  { %v498_v60 = vadd.f32 %v497_v57, %v412_v56  ;;  %v568_v61 = vpop.f32.mrb[2].mxu1  ;;  %v499_v62 = vpop.f32.mrb[3].mxu0 }
 0x1d4   :  { %v569_v0 = vadd.f32 %v568_v61, %v412_v56  ;;  %v500_v1 = vadd.f32 %v499_v62, %v412_v56  ;;  %v570_v2 = vpop.f32.mrb[3].mxu1 }
 0x1d5   :  { %v595_v3 = vmul.f32 %v578_v55, %v498_v60  ;;  %v571_v4 = vadd.f32 %v570_v2, %v412_v56 }
 0x1d6   :  { %v597_v5 = vmul.f32 %v586_v58, %v569_v0  ;;  %v596_v7 = vmul.f32 %v582_v59, %v500_v1 }
 0x1d7   :  { %v598_v8 = vmul.f32 %v590_v63, %v571_v4 }
 0x1d8   :  { %v603_v9 = vcombine.low %v595_v3, %v596_v7 }
 0x1d9   :  { %v604_v10 = vcombine.low %v597_v5, %v598_v8 }
 0x1da   :  { %607 = vst [vmem:[%s758_s8] sm:$0x77] %v603_v9 }
 0x1db   :  { %608 = vst [vmem:[%s758_s8 + $0x8] sm:$0x77] %v604_v10 }

// kernel: score_network_a_forward.7
= control target key start
LH: loop header
LB: loop body
LE: loop exit
PB: predicated region body
PF: predicated region fallthrough
CT: control target
= control target key end

     0   :  { %vm105_vm0 = vcmask 1043456   ;;  %vm92_vm1 = vcmask 31744   ;;  %v50_v0 = vlaneseq  ;;  %vm69_vm2 = vcmask 130048   ;;  %s4417_s2 = inlined_call_operand.vmem [shape: f32[2,4,8], index: 2, kind: input, shape index: {}]   ;;  %s4418_s0 = inlined_call_operand.vmem [shape: f32[2,16,4], index: 0, kind: input, shape index: {}]   ;;  %s4419_s4 = inlined_call_operand.vmem [shape: f32[2,4,8], index: 4, kind: input, shape index: {}]   ;;  %s4420_s6 = inlined_call_operand.vmem [shape: f32[2,4,8], index: 6, kind: input, shape index: {}]   ;;  %s4421_s1 = inlined_call_operand.vmem [shape: f32[2,2,16,16], index: 1, kind: input, shape index: {}]   ;;  %s4422_s12 = inlined_call_operand.vmem [shape: f32[2,16,1], index: 12, kind: input, shape index: {}]   ;;  %s4423_s8 = inlined_call_operand.vmem [shape: f32[2,8,6], index: 8, kind: input, shape index: {}]   ;;  %s4424_s3 = inlined_call_operand.vmem [shape: f32[2,1,8], index: 3, kind: input, shape index: {}]   ;;  %s4425_s5 = inlined_call_operand.vmem [shape: f32[2,1,8], index: 5, kind: input, shape index: {}]   ;;  %s4426_s7 = inlined_call_operand.vmem [shape: f32[2,1,8], index: 7, kind: input, shape index: {}]   ;;  %s4427_s10 = inlined_call_operand.vmem [shape: f32[6,8], index: 10, kind: input, shape index: {}]   ;;  %s4428_s9 = inlined_call_operand.vmem [shape: f32[1,6], index: 9, kind: input, shape index: {}]   ;;  %s4429_s14 = inlined_call_operand.vmem [shape: f32[2,2,16,16], index: 14, kind: output, shape index: {1}]   ;;  %s4430_s11 = inlined_call_operand.vmem [shape: f32[1,8], index: 11, kind: input, shape index: {}]   ;;  %s4431_s13 = inlined_call_operand.vmem [shape: f32[2,16,8], index: 13, kind: output, shape index: {0}]  }
   0x1   :  { %v90_v1 = vld [vmem:[%s4417_s2] sm:$0xf]  ;;  %v3662_v3 = vld [vmem:[%s4418_s0 + $0x8] sm:$0xff]  ;;  %v3673_v5 = vld [vmem:[%s4418_s0 + $0x10] sm:$0xff]  ;;  %v4432_v38 = vmov 0   ;;  %vm2619_vm5 = vcmask 64512  }
   0x2   :  { %v3657_v2 = vld [vmem:[%s4418_s0] sm:$0xff]  ;;  %3186 = vmatprep.subr.msk.mxu0 %vm105_vm0, %v90_v1  ;;  %v3675_v6 = vshrl.u32 %v50_v0, 7  ;;  %v54_v7 = vand.u32 127, %v50_v0  ;;  %3390 = vmatprep.subr.msk.mxu1 %vm105_vm0, %v90_v1  ;;  %v3682_v8 = vld [vmem:[%s4418_s0 + $0x18] sm:$0xff]  ;;  %v58_v12 = vld [vmem:[%s4421_s1 + $0x8] sm:$0xff]  ;;  %vm2866_vm6 = vcmask 1045504  }
   0x3   :  { %3188 = vmatprep.mubr.msk.f32.mxu0 %vm92_vm1, %v3657_v2  ;;  %v374_v4 = vld [vmem:[%s4419_s4] sm:$0xf]  ;;  %3187 = vmatpush3.msk.msra.mxu0 %vm105_vm0, %v90_v1  ;;  %v59_v14 = vld [vmem:[%s4421_s1 + $0x10] sm:$0xff]  ;;  %v60_v15 = vld [vmem:[%s4421_s1 + $0x18] sm:$0xff]  ;;  %vm2853_vm7 = vcmask 48128  }
   0x4   :  { %3189 = vmatmul.mubr.msk.f32.vlgmr.msra.gmra.mrb[0].mxu0 %vm92_vm1, %v3662_v3  ;;  %3208 = vmatprep.subr.msk.mxu0 %vm105_vm0, %v374_v4  ;;  %v632_v9 = vld [vmem:[%s4420_s6] sm:$0xf]  ;;  %vm55_vm3 = vcmp.eq.s32.totalorder %v3675_v6, %v54_v7  ;;  %v52_v11 = vadd.s32 8, %v3675_v6  ;;  %v3033_v18 = vld [vmem:[%s4417_s2 + $0x4] sm:$0xf]  ;;  %v3030_v24 = vld [vmem:[%s4421_s1 + $0x28] sm:$0xff] }
   0x5   :  { %v57_v10 = vld [vmem:[%s4421_s1] sm:$0xff]  ;;  %3391 = vmatpush3.msk.msra.mxu1 %vm105_vm0, %v90_v1  ;;  %3191 = vmatprep.mubr.msk.f32.mxu1 %vm92_vm1, %v3673_v5  ;;  %v3718_v17 = vsel %vm55_vm3, 1.0, %v59_v14  ;;  %v3031_v27 = vld [vmem:[%s4421_s1 + $0x30] sm:$0xff]  ;;  %v3032_v30 = vld [vmem:[%s4421_s1 + $0x38] sm:$0xff] }
   0x6   :  { %v3703_v13 = vsel %vm55_vm3, 1.0, %v57_v10  ;;  %3209 = vmatpush3.msk.msra.mxu0 %vm105_vm0, %v374_v4  ;;  %3210 = vmatprep.mubr.msk.f32.mxu0 %vm92_vm1, %v3657_v2  ;;  %vm56_vm4 = vcmp.eq.s32.totalorder %v52_v11, %v54_v7  ;;  %v76_v20 = vsel %vm69_vm2, %v3718_v17, 0.0  ;;  %v3029_v21 = vld [vmem:[%s4421_s1 + $0x20] sm:$0xff]  ;;  %v3773_v31 = vsel %vm55_vm3, 1.0, %v3031_v27 }
   0x7   :  { %v70_v16 = vsel %vm69_vm2, %v3703_v13, 0.0  ;;  %3192 = vmatmul.mubr.msk.f32.vlgmr.msra.gmra.mrb[0].mxu1 %vm92_vm1, %v3682_v8  ;;  %3230 = vmatprep.subr.msk.mxu0 %vm105_vm0, %v632_v9  ;;  %v3727_v19 = vsel %vm56_vm4, 1.0, %v58_v12  ;;  %v3737_v22 = vsel %vm56_vm4, 1.0, %v60_v15  ;;  %v3750_v25 = vsel %vm55_vm3, 1.0, %v3029_v21  ;;  %v3045_v32 = vld [vmem:[%s4419_s4 + $0x4] sm:$0xf] }
   0x8   :  { %3211 = vmatmul.mubr.msk.f32.vlgmr.msra.gmra.mrb[2].mxu0 %vm92_vm1, %v3662_v3  ;;  %71 = vadd.xlane.f32.xlu0 %v70_v16  ;;  %v73_v23 = vsel %vm69_vm2, %v3727_v19, 0.0  ;;  %v79_v26 = vsel %vm69_vm2, %v3737_v22, 0.0  ;;  %v3762_v28 = vsel %vm56_vm4, 1.0, %v3030_v24  ;;  %v1352_v29 = vsel %vm69_vm2, %v3750_v25, 0.0  ;;  %v3057_v37 = vld [vmem:[%s4420_s6 + $0x4] sm:$0xf] }
   0x9   :  { %3213 = vmatprep.mubr.msk.f32.mxu0 %vm92_vm1, %v3673_v5  ;;  %3231 = vmatpush3.msk.msra.mxu0 %vm105_vm0, %v632_v9  ;;  %v1355_v33 = vsel %vm69_vm2, %v3762_v28, 0.0  ;;  %v3783_v34 = vsel %vm56_vm4, 1.0, %v3032_v30  ;;  %v1358_v35 = vsel %vm69_vm2, %v3773_v31, 0.0  ;;  %v2955_v39 = vld [vmem:[%s4422_s12] sm:$0xff] }
   0xa   :  { %3252 = vmatprep.subr.msk.mxu0 %vm105_vm0, %v3033_v18  ;;  %77 = vadd.xlane.f32.xlu1 %v76_v20  ;;  %v1361_v36 = vsel %vm69_vm2, %v3783_v34, 0.0 }
   0xb   :  { %3198 = vmatprep.mubr.msk.f32.mxu1 %vm69_vm2, %v3703_v13  ;;  %3405 = vset.pattern.permute.xlu0 %v4432_v38 }
   0xc   :  { %3214 = vmatmul.mubr.msk.f32.gmra.mrb[4].mxu0 %vm92_vm1, %v3682_v8  ;;  %74 = vadd.xlane.f32.xlu0 %v73_v23 }
   0xd   :  { %3232 = vmatprep.mubr.msk.f32.mxu0 %vm92_vm1, %v3657_v2  ;;  %3406 = vset.pattern.permute.xlu1 %v4432_v38 }
   0xe   :  { %80 = vadd.xlane.f32.xlu1 %v79_v26 }
  0x10   :  { %3233 = vmatmul.mubr.msk.f32.vlgmr.msra.gmra.mrb[6].mxu0 %vm92_vm1, %v3662_v3  ;;  %1353 = vadd.xlane.f32.xlu0 %v1352_v29 }
  0x11   :  { %3235 = vmatprep.mubr.msk.f32.mxu0 %vm92_vm1, %v3673_v5  ;;  %3253 = vmatpush3.msk.msra.mxu0 %vm105_vm0, %v3033_v18 }
  0x12   :  { %3274 = vmatprep.subr.msk.mxu0 %vm105_vm0, %v3045_v32  ;;  %1356 = vadd.xlane.f32.xlu1 %v1355_v33 }
  0x14   :  { %3236 = vmatmul.mubr.msk.f32.gmra.mrb[8].mxu0 %vm92_vm1, %v3682_v8  ;;  %1359 = vadd.xlane.f32.xlu0 %v1358_v35 }
  0x15   :  { %3254 = vmatprep.mubr.msk.f32.mxu0 %vm92_vm1, %v3657_v2 }
  0x16   :  { %1362 = vadd.xlane.f32.xlu1 %v1361_v36 }
  0x18   :  { %3255 = vmatmul.mubr.msk.f32.vlgmr.msra.gmra.mrb[10].mxu0 %vm92_vm1, %v3662_v3 }
  0x19   :  { %3257 = vmatprep.mubr.msk.f32.mxu0 %vm92_vm1, %v3673_v5  ;;  %3275 = vmatpush3.msk.msra.mxu0 %vm105_vm0, %v3045_v32 }
  0x1a   :  { %3296 = vmatprep.subr.msk.mxu0 %vm105_vm0, %v3057_v37 }
  0x1c   :  { %3258 = vmatmul.mubr.msk.f32.gmra.mrb[12].mxu0 %vm92_vm1, %v3682_v8 }
  0x1d   :  { %3276 = vmatprep.mubr.msk.f32.mxu0 %vm92_vm1, %v3657_v2 }
  0x20   :  { %3277 = vmatmul.mubr.msk.f32.vlgmr.msra.gmra.mrb[14].mxu0 %vm92_vm1, %v3662_v3 }
  0x21   :  { %3279 = vmatprep.mubr.msk.f32.mxu0 %vm92_vm1, %v3673_v5  ;;  %3297 = vmatpush3.msk.msra.mxu0 %vm105_vm0, %v3057_v37 }
  0x24   :  { %3280 = vmatmul.mubr.msk.f32.gmra.mrb[16].mxu0 %vm92_vm1, %v3682_v8 }
  0x25   :  { %3298 = vmatprep.mubr.msk.f32.mxu0 %vm92_vm1, %v3657_v2 }
  0x28   :  { %3299 = vmatmul.mubr.msk.f32.vlgmr.msra.gmra.mrb[18].mxu0 %vm92_vm1, %v3662_v3 }
  0x29   :  { %3301 = vmatprep.mubr.msk.f32.mxu0 %vm92_vm1, %v3673_v5 }
  0x2a   :  { %2961 = vperm.xlu0 %3405, %v2955_v39  }
  0x2c   :  { %3302 = vmatmul.mubr.msk.f32.gmra.mrb[20].mxu0 %vm92_vm1, %v3682_v8 }
  0x95   :  { %v72_v40 = vpop.xlane.xlu0 %71 }
  0x96   :  { %v82_v45 = vmax.f32 %v72_v40, 1.0 }
  0x97   :  { %v78_v41 = vpop.xlane.xlu1 %77 }
  0x98   :  { %v84_v47 = vmax.f32 %v78_v41, 1.0 }
  0x99   :  { %v75_v42 = vpop.xlane.xlu0 %74 }
  0x9a   :  { %v83_v43 = vmax.f32 %v75_v42, 1.0 }
  0x9b   :  { %v81_v44 = vpop.xlane.xlu1 %80 }
  0x9c   :  { %v85_v46 = vmax.f32 %v81_v44, 1.0  ;;  %3472 = vrsqrt.f32 %v83_v43 }
  0x9d   :  { %3474 = vrsqrt.f32 %v82_v45  ;;  %v1354_v52 = vpop.xlane.xlu0 %1353 }
  0x9e   :  { %3476 = vrsqrt.f32 %v85_v46  ;;  %v1364_v3 = vmax.f32 %v1354_v52, 1.0 }
  0x9f   :  { %3478 = vrsqrt.f32 %v84_v47  ;;  %v1357_v49 = vpop.xlane.xlu1 %1356 }
  0xa0   :  { %v1365_v63 = vmax.f32 %v1357_v49, 1.0 }
  0xa1   :  { %v1360_v7 = vpop.xlane.xlu0 %1359 }
  0xa2   :  { %3480 = vrsqrt.f32 %v1365_v63  ;;  %v1366_v15 = vmax.f32 %v1360_v7, 1.0  ;;  %v2956_v7 = vld [vmem:[%s4422_s12 + $0x8] sm:$0xff] }
  0xa3   :  { %v1363_v4 = vpop.xlane.xlu1 %1362  ;;  %3482 = vrsqrt.f32 %v1364_v3  ;;  %2966 = vperm.xlu1 %3406, %v2956_v7  }
  0xa4   :  { %v1367_v11 = vmax.f32 %v1363_v4, 1.0 }
  0xa6   :  { %v3830_v48 = vpop.eup %3472  ;;  %3484 = vrsqrt.f32 %v1367_v11 }
  0xa7   :  { %v3832_v50 = vpop.eup %3474  ;;  %3486 = vrsqrt.f32 %v1366_v15 }
  0xa8   :  { %v3834_v53 = vpop.eup %3476 }
  0xa9   :  { %v3837_v56 = vpop.eup %3478 }
  0xac   :  { %v3857_v32 = vpop.eup %3480 }
  0xad   :  { %v3862_v35 = vpop.eup %3482 }
  0xb0   :  { %v3867_v41 = vpop.eup %3484 }
  0xb1   :  { %v3872_v43 = vpop.eup %3486 }
  0xd7   :  { %v3190_v51 = vpop.f32.mrb[0].mxu0 }
  0xd8   :  { %v195_v54 = vmul.f32 %v3830_v48, %v3190_v51  ;;  %v175_v55 = vpop.f32.mrb[1].mxu0 }
  0xd9   :  { %v194_v57 = vmul.f32 %v3832_v50, %v175_v55 }
  0xda   :  { %v3193_v58 = vpop.f32.mrb[0].mxu1 }
  0xdb   :  { %v3342_v59 = vpack.c.bf16 %v195_v54, %v194_v57  ;;  %v197_v60 = vmul.f32 %v3834_v53, %v3193_v58  ;;  %v3212_v61 = vpop.f32.mrb[2].mxu0  ;;  %v185_v62 = vpop.f32.mrb[1].mxu1 }
  0xdc   :  { %v465_v0 = vmul.f32 %v3830_v48, %v3212_v61  ;;  %v196_v1 = vmul.f32 %v3837_v56, %v185_v62  ;;  %v445_v2 = vpop.f32.mrb[3].mxu0 }
  0xdd   :  { %v464_v5 = vmul.f32 %v3832_v50, %v445_v2  ;;  %3343 = vmatprep.subr.bf16.mxu1 %v3342_v59 }
  0xde   :  { %v3346_v8 = vpack.c.bf16 %v197_v60, %v196_v1  ;;  %3345 = vmatpush3.bf16.msra.mxu1 %v3342_v59 }
  0xdf   :  { %v3350_v9 = vpack.c.bf16 %v465_v0, %v464_v5  ;;  %v3215_v10 = vpop.f32.mrb[4].mxu0 }
  0xe0   :  { %3347 = vmatprep.subr.bf16.mxu1 %v3346_v8  ;;  %v467_v12 = vmul.f32 %v3834_v53, %v3215_v10  ;;  %v455_v14 = vpop.f32.mrb[5].mxu0 }
  0xe1   :  { %3199 = vmatmul.mubr.msk.f32.vlgmr.msra.gmra.mrb[2].mxu1 %vm69_vm2, %v3727_v19  ;;  %v466_v16 = vmul.f32 %v3837_v56, %v455_v14 }
  0xe2   :  { %3349 = vmatpush3.bf16.msra.mxu1 %v3346_v8  ;;  %3205 = vmatprep.mubr.msk.f32.mxu1 %vm69_vm2, %v3718_v17  ;;  %v3569_v8 = vmov 2  }
  0xe3   :  { %v3354_v18 = vpack.c.bf16 %v467_v12, %v466_v16  ;;  %3351 = vmatprep.subr.bf16.mxu1 %v3350_v9  ;;  %v3234_v20 = vpop.f32.mrb[6].mxu0  ;;  %3408 = vset.pattern.permute.xlu0 %v3569_v8  ;;  %v3570_v16 = vmov 4  }
  0xe4   :  { %v723_v21 = vmul.f32 %v3830_v48, %v3234_v20  ;;  %v703_v23 = vpop.f32.mrb[7].mxu0 }
  0xe5   :  { %v722_v24 = vmul.f32 %v3832_v50, %v703_v23  ;;  %3206 = vmatmul.mubr.msk.f32.vlgmr.msra.gmra.mrb[4].mxu1 %vm69_vm2, %v3737_v22 }
  0xe6   :  { %3353 = vmatpush3.bf16.msra.mxu1 %v3350_v9  ;;  %3220 = vmatprep.mubr.msk.f32.mxu1 %vm69_vm2, %v3703_v13 }
  0xe7   :  { %v3358_v26 = vpack.c.bf16 %v723_v21, %v722_v24  ;;  %3355 = vmatprep.subr.bf16.mxu1 %v3354_v18  ;;  %v3237_v27 = vpop.f32.mrb[8].mxu0 }
  0xe8   :  { %v725_v29 = vmul.f32 %v3834_v53, %v3237_v27  ;;  %v713_v30 = vpop.f32.mrb[9].mxu0  ;;  %v3573_v27 = vmov 3  }
  0xe9   :  { %3221 = vmatmul.mubr.msk.f32.vlgmr.msra.gmra.mrb[6].mxu1 %vm69_vm2, %v3727_v19  ;;  %v724_v33 = vmul.f32 %v3837_v56, %v713_v30 }
  0xea   :  { %3357 = vmatpush3.bf16.msra.mxu1 %v3354_v18  ;;  %3227 = vmatprep.mubr.msk.f32.mxu1 %vm69_vm2, %v3718_v17  ;;  %v3571_v18 = vmov 1  }
  0xeb   :  { %3359 = vmatprep.subr.bf16.mxu1 %v3358_v26  ;;  %v3362_v36 = vpack.c.bf16 %v725_v29, %v724_v33  ;;  %v3256_v37 = vpop.f32.mrb[10].mxu0 }
  0xec   :  { %v1465_v39 = vmul.f32 %v3857_v32, %v3256_v37  ;;  %v1445_v40 = vpop.f32.mrb[11].mxu0 }
  0xed   :  { %3228 = vmatmul.mubr.msk.f32.vlgmr.msra.gmra.mrb[8].mxu1 %vm69_vm2, %v3737_v22  ;;  %v1464_v42 = vmul.f32 %v3862_v35, %v1445_v40  ;;  %v3575_v40 = vmov 7  }
  0xee   :  { %3361 = vmatpush3.bf16.msra.mxu1 %v3358_v26  ;;  %3242 = vmatprep.mubr.msk.f32.mxu1 %vm69_vm2, %v3703_v13  ;;  %v4434_v26 = vmov 6  }
  0xef   :  { %v3366_v44 = vpack.c.bf16 %v1465_v39, %v1464_v42  ;;  %3363 = vmatprep.subr.bf16.mxu1 %v3362_v36  ;;  %v3259_v45 = vpop.f32.mrb[12].mxu0 }
  0xf0   :  { %v1467_v46 = vmul.f32 %v3867_v41, %v3259_v45  ;;  %v1455_v47 = vpop.f32.mrb[13].mxu0 }
  0xf1   :  { %3243 = vmatmul.mubr.msk.f32.vlgmr.msra.gmra.mrb[10].mxu1 %vm69_vm2, %v3727_v19  ;;  %v1466_v49 = vmul.f32 %v3872_v43, %v1455_v47  ;;  %v3056_v47 = vld [vmem:[%s4425_s5 + $0x1] ss:$0 sm:$0xff] }
  0xf2   :  { %3365 = vmatpush3.bf16.msra.mxu1 %v3362_v36  ;;  %3249 = vmatprep.mubr.msk.f32.mxu1 %vm69_vm2, %v3718_v17  ;;  %v4435_v36 = vmov 5  }
  0xf3   :  { %v3370_v51 = vpack.c.bf16 %v1467_v46, %v1466_v49  ;;  %3367 = vmatprep.subr.bf16.mxu1 %v3366_v44  ;;  %v3278_v52 = vpop.f32.mrb[14].mxu0 }
  0xf4   :  { %v1737_v13 = vmul.f32 %v3857_v32, %v3278_v52  ;;  %v1717_v54 = vpop.f32.mrb[15].mxu0 }
  0xf5   :  { %3250 = vmatmul.mubr.msk.f32.vlgmr.msra.gmra.mrb[12].mxu1 %vm69_vm2, %v3737_v22  ;;  %v1736_v55 = vmul.f32 %v3862_v35, %v1717_v54 }
  0xf6   :  { %3369 = vmatpush3.bf16.msra.mxu1 %v3366_v44  ;;  %3264 = vmatprep.mubr.msk.f32.mxu1 %vm69_vm2, %v3750_v25 }
  0xf7   :  { %v3374_v19 = vpack.c.bf16 %v1737_v13, %v1736_v55  ;;  %3371 = vmatprep.subr.bf16.mxu1 %v3370_v51  ;;  %v3281_v57 = vpop.f32.mrb[16].mxu0 }
  0xf8   :  { %v1739_v17 = vmul.f32 %v3867_v41, %v3281_v57  ;;  %v1727_v58 = vpop.f32.mrb[17].mxu0 }
  0xf9   :  { %3265 = vmatmul.mubr.msk.f32.vlgmr.msra.gmra.mrb[14].mxu1 %vm69_vm2, %v3762_v28  ;;  %v1738_v59 = vmul.f32 %v3872_v43, %v1727_v58 }
  0xfa   :  { %3373 = vmatpush3.bf16.msra.mxu1 %v3370_v51  ;;  %3271 = vmatprep.mubr.msk.f32.mxu1 %vm69_vm2, %v3773_v31 }
  0xfb   :  { %v3378_v22 = vpack.c.bf16 %v1739_v17, %v1738_v59  ;;  %3375 = vmatprep.subr.bf16.mxu1 %v3374_v19  ;;  %v3300_v60 = vpop.f32.mrb[18].mxu0 }
  0xfc   :  { %v1997_v61 = vmul.f32 %v3857_v32, %v3300_v60  ;;  %v1977_v62 = vpop.f32.mrb[19].mxu0 }
  0xfd   :  { %3272 = vmatmul.mubr.msk.f32.vlgmr.msra.gmra.mrb[16].mxu1 %vm69_vm2, %v3783_v34  ;;  %v1996_v63 = vmul.f32 %v3862_v35, %v1977_v62  ;;  %v3068_v62 = vld [vmem:[%s4426_s7 + $0x1] ss:$0 sm:$0xff] }
  0xfe   :  { %3377 = vmatpush3.bf16.msra.mxu1 %v3374_v19  ;;  %3286 = vmatprep.mubr.msk.f32.mxu1 %vm69_vm2, %v3750_v25 }
  0xff   :  { %v3382_v0 = vpack.c.bf16 %v1997_v61, %v1996_v63  ;;  %3379 = vmatprep.subr.bf16.mxu1 %v3378_v22  ;;  %v3303_v1 = vpop.f32.mrb[20].mxu0 }
 0x100   :  { %v1999_v2 = vmul.f32 %v3867_v41, %v3303_v1  ;;  %v1987_v3 = vpop.f32.mrb[21].mxu0 }
 0x101   :  { %3287 = vmatmul.mubr.msk.f32.vlgmr.msra.gmra.mrb[18].mxu1 %vm69_vm2, %v3762_v28  ;;  %v1998_v4 = vmul.f32 %v3872_v43, %v1987_v3 }
 0x102   :  { %3381 = vmatpush3.bf16.msra.mxu1 %v3378_v22  ;;  %3293 = vmatprep.mubr.msk.f32.mxu1 %vm69_vm2, %v3773_v31 }
 0x103   :  { %v3386_v5 = vpack.c.bf16 %v1999_v2, %v1998_v4  ;;  %3383 = vmatprep.subr.bf16.mxu1 %v3382_v0 }
 0x105   :  { %3294 = vmatmul.mubr.msk.f32.vlgmr.msra.gmra.mrb[20].mxu1 %vm69_vm2, %v3783_v34 }
 0x106   :  { %3385 = vmatpush3.bf16.msra.mxu1 %v3382_v0  ;;  %3308 = vmatprep.mubr.msk.f32.mxu1 %vm69_vm2, %v3750_v25  ;;  %v3073_v25 = vld [vmem:[%s4423_s8 + $0x8] sm:$0xff] }
 0x107   :  { %3387 = vmatprep.subr.bf16.mxu1 %v3386_v5  ;;  %3318 = vmatprep.subr.mxu0 %v3073_v25 }
 0x108   :  { %3319 = vmatpush3.msra.mxu0 %v3073_v25 }
 0x109   :  { %3309 = vmatmul.mubr.msk.f32.vlgmr.msra.gmra.mrb[22].mxu1 %vm69_vm2, %v3762_v28  ;;  %v3926_v28 = vld [vmem:[%s4423_s8] sm:$0xff] }
 0x10a   :  { %3389 = vmatpush3.bf16.msra.mxu1 %v3386_v5  ;;  %3315 = vmatprep.mubr.msk.f32.mxu1 %vm69_vm2, %v3773_v31  ;;  %v3932_v31 = vld [vmem:[%s4424_s3] ss:$0 sm:$0xff] }
 0x10b   :  { %3326 = vmatprep.subr.mxu0 %v3926_v28 }
 0x10d   :  { %3316 = vmatmul.mubr.msk.f32.vlgmr.msra.gmra.mrb[24].mxu1 %vm69_vm2, %v3783_v34 }
 0x1b4   :  { %v3200_v34 = vpop.f32.mrb[2].mxu1 }
 0x1b5   :  { %v361_v9 = vmul.f32 %v3830_v48, %v3200_v34  ;;  %v270_v10 = vpop.f32.mrb[3].mxu1 }
 0x1b6   :  { %v360_v24 = vmul.f32 %v3832_v50, %v270_v10  ;;  %v3028_v10 = vld [vmem:[%s4426_s7] ss:$0 sm:$0xff] }
 0x1b7   :  { %v371_v11 = vadd.f32 %v3932_v31, %v361_v9 }
 0x1b8   :  { %v3207_v12 = vpop.f32.mrb[4].mxu1  ;;  %v370_v33 = vadd.f32 %v3932_v31, %v360_v24 }
 0x1b9   :  { %1039 = vperm.xlu0 %3408, %v371_v11   ;;  %961 = vperm.xlu1 %3406, %v371_v11   ;;  %v3936_v14 = vpop.f32.mrb[5].mxu1  ;;  %v363_v59 = vmul.f32 %v3834_v53, %v3207_v12 }
 0x1bb   :  { %v373_v2 = vadd.f32 %v3932_v31, %v363_v59 }
 0x1bc   :  { %v3938_v15 = vpop.f32.mrb[6].mxu1 }
 0x1bd   :  { %3410 = vset.pattern.permute.xlu0 %v3570_v16  ;;  %3407 = vset.pattern.permute.xlu1 %v3571_v18  ;;  %v3942_v20 = vpop.f32.mrb[7].mxu1 }
 0x1be   :  { %1115 = vperm.xlu0 %3410, %v371_v11   ;;  %995 = vperm.xlu1 %3407, %v371_v11  }
 0x1c0   :  { %v3944_v21 = vpop.f32.mrb[8].mxu1 }
 0x1c1   :  { %v3946_v23 = vpop.f32.mrb[9].mxu1 }
 0x1c2   :  { %3412 = vset.pattern.permute.xlu0 %v4434_v26  ;;  %3409 = vset.pattern.permute.xlu1 %v3573_v27 }
 0x1c3   :  { %1191 = vperm.xlu0 %3412, %v371_v11   ;;  %1071 = vperm.xlu1 %3409, %v371_v11  }
 0x1c4   :  { %v3951_v29 = vpop.f32.mrb[10].mxu1 }
 0x1c5   :  { %v3953_v30 = vpop.f32.mrb[11].mxu1  ;;  %v877_v12 = vmul.f32 %v3830_v48, %v3951_v29 }
 0x1c6   :  { %v876_v9 = vmul.f32 %v3832_v50, %v3953_v30 }
 0x1c7   :  { %3414 = vset.pattern.permute.xlu0 %v4432_v38  ;;  %3411 = vset.pattern.permute.xlu1 %v4435_v36 }
 0x1c8   :  { %1147 = vperm.xlu1 %3411, %v371_v11   ;;  %956 = vperm.xlu0 %3414, %v370_v33   ;;  %v3958_v37 = vpop.f32.mrb[12].mxu1  ;;  %v886_v30 = vadd.f32 %v3028_v10, %v876_v9 }
 0x1c9   :  { %v3960_v39 = vpop.f32.mrb[13].mxu1 }
 0x1cc   :  { %3413 = vset.pattern.permute.xlu1 %v3575_v40  ;;  %3415 = vset.pattern.permute.xlu0 %v3571_v18  ;;  %v3964_v42 = vpop.f32.mrb[14].mxu1 }
 0x1cd   :  { %1223 = vperm.xlu1 %3413, %v371_v11   ;;  %991 = vperm.xlu0 %3415, %v370_v33   ;;  %v3966_v44 = vpop.f32.mrb[15].mxu1 }
 0x1d0   :  { %v3968_v45 = vpop.f32.mrb[16].mxu1 }
 0x1d1   :  { %3416 = vset.pattern.permute.xlu1 %v3569_v8  ;;  %3417 = vset.pattern.permute.xlu0 %v3573_v27  ;;  %v3972_v46 = vpop.f32.mrb[17].mxu1 }
 0x1d2   :  { %1035 = vperm.xlu1 %3416, %v370_v33   ;;  %1067 = vperm.xlu0 %3417, %v370_v33  }
 0x1d4   :  { %v3288_v49 = vpop.f32.mrb[18].mxu1 }
 0x1d5   :  { %v1891_v51 = vmul.f32 %v3857_v32, %v3288_v49  ;;  %v1806_v52 = vpop.f32.mrb[19].mxu1  ;;  %v362_v49 = vmul.f32 %v3837_v56, %v3936_v14  ;;  %v618_v14 = vmul.f32 %v3832_v50, %v3942_v20  ;;  %v1631_v50 = vmul.f32 %v3857_v32, %v3964_v42  ;;  %v4062_v42 = vpop.permute.xlu1 %2966 }
 0x1d6   :  { %v1890_v13 = vmul.f32 %v3862_v35, %v1806_v52  ;;  %3418 = vset.pattern.permute.xlu1 %v3570_v16  ;;  %3419 = vset.pattern.permute.xlu0 %v4435_v36  ;;  %v620_v20 = vmul.f32 %v3837_v56, %v3946_v23  ;;  %4439 = vst [vmem:[#allocation3_spill] sm:$0xff] %v4062_v42 }
 0x1d7   :  { %v3981_v54 = vadd.f32 %v3056_v47, %v1891_v51  ;;  %1111 = vperm.xlu1 %3418, %v370_v33   ;;  %1143 = vperm.xlu0 %3419, %v370_v33   ;;  %v3018_v51 = vld [vmem:[%s4425_s5] ss:$0 sm:$0xff] }
 0x1d8   :  { %v3983_v55 = vadd.f32 %v3056_v47, %v1890_v13  ;;  %v3295_v19 = vpop.f32.mrb[20].mxu1  ;;  %v628_v52 = vadd.f32 %v3018_v51, %v618_v14 }
 0x1d9   :  { %v1893_v57 = vmul.f32 %v3867_v41, %v3295_v19  ;;  %v1881_v17 = vpop.f32.mrb[21].mxu1  ;;  %v621_v19 = vmul.f32 %v3834_v53, %v3944_v21 }
 0x1da   :  { %v1892_v58 = vmul.f32 %v3872_v43, %v1881_v17  ;;  %v4059_v17 = vpop.permute.xlu0 %2961 }
 0x1db   :  { %v3988_v22 = vadd.f32 %v3056_v47, %v1893_v57  ;;  %3420 = vset.pattern.permute.xlu1 %v4434_v26  ;;  %3421 = vset.pattern.permute.xlu0 %v3575_v40  ;;  %v630_v57 = vadd.f32 %v3018_v51, %v620_v20  ;;  %4438 = vst [vmem:[#allocation2_spill] sm:$0xff] %v4059_v17 }
 0x1dc   :  { %v3992_v60 = vadd.f32 %v3056_v47, %v1892_v58  ;;  %1187 = vperm.xlu1 %3420, %v370_v33   ;;  %1219 = vperm.xlu0 %3421, %v370_v33   ;;  %v3310_v61 = vpop.f32.mrb[22].mxu1  ;;  %v878_v33 = vmul.f32 %v3837_v56, %v3960_v39  ;;  %v879_v47 = vmul.f32 %v3834_v53, %v3958_v37 }
 0x1dd   :  { %v2151_v63 = vmul.f32 %v3857_v32, %v3310_v61  ;;  %v2066_v0 = vpop.f32.mrb[23].mxu1  ;;  %v372_v37 = vadd.f32 %v3932_v31, %v362_v49  ;;  %v619_v31 = vmul.f32 %v3830_v48, %v3938_v15  ;;  %v3044_v48 = vld [vmem:[%s4424_s3 + $0x1] ss:$0 sm:$0xff]  ;;  %v631_v32 = vadd.f32 %v3018_v51, %v621_v19 }
 0x1de   :  { %v2150_v1 = vmul.f32 %v3862_v35, %v2066_v0  ;;  %v888_v29 = vadd.f32 %v3028_v10, %v878_v33  ;;  %v889_v39 = vadd.f32 %v3028_v10, %v879_v47  ;;  %v1641_v15 = vadd.f32 %v3044_v48, %v1631_v50 }
 0x1df   :  { %v2161_v5 = vadd.f32 %v3068_v62, %v2151_v63  ;;  %v629_v13 = vadd.f32 %v3018_v51, %v619_v31  ;;  %v1630_v56 = vmul.f32 %v3862_v35, %v3966_v44  ;;  %v2845_v35 = vld [vmem:[%s4427_s10] sm:$0x3f]  ;;  %v1633_v44 = vmul.f32 %v3867_v41, %v3968_v45 }
 0x1e0   :  { %v2160_v3 = vadd.f32 %v3068_v62, %v2150_v1  ;;  %3422 = vset.pattern.permute.xlu1 %v4432_v38  ;;  %3423 = vset.pattern.permute.xlu0 %v3571_v18  ;;  %v3317_v4 = vpop.f32.mrb[24].mxu1  ;;  %v4139_v33 = vsub.s32 0, %v3675_v6  ;;  %v4145_v47 = vsub.s32 2, %v3675_v6 }
 0x1e1   :  { %1003 = vperm.xlu0 %3423, %v373_v2   ;;  %971 = vperm.xlu1 %3422, %v373_v2   ;;  %v2141_v7 = vpop.f32.mrb[25].mxu1  ;;  %v2153_v25 = vmul.f32 %v3867_v41, %v3317_v4  ;;  %v4071_v21 = vadd.f32 %v3044_v48, %v1630_v56  ;;  %v1632_v41 = vmul.f32 %v3872_v43, %v3972_v46 }
 0x1e2   :  { %v2152_v34 = vmul.f32 %v3872_v43, %v2141_v7  ;;  %3320 = vmatprep.mubr.msk.f32.mxu0 %vm2619_vm5, %v2160_v3  ;;  %3334 = vmatprep.subr.msk.mxu1 %vm2866_vm6, %v2845_v35 }
 0x1e3   :  { %3321 = vmatmul.mubr.msk.f32.vlgmr.msra.gmra.mrb[22].mxu0 %vm2619_vm5, %v2161_v5  ;;  %v2163_v24 = vadd.f32 %v3068_v62, %v2153_v25  ;;  %3335 = vmatpush3.msk.msra.mxu1 %vm2866_vm6, %v2845_v35 }
 0x1e4   :  { %v2162_v11 = vadd.f32 %v3068_v62, %v2152_v34  ;;  %3327 = vmatpush3.msra.mxu0 %v3926_v28  ;;  %v887_v28 = vadd.f32 %v3028_v10, %v877_v12  ;;  %v4088_v62 = vadd.f32 %v3044_v48, %v1633_v44 }
 0x1e5   :  { %3425 = vset.pattern.permute.xlu0 %v3573_v27  ;;  %3424 = vset.pattern.permute.xlu1 %v3569_v8 }
 0x1e6   :  { %1079 = vperm.xlu0 %3425, %v373_v2   ;;  %1047 = vperm.xlu1 %3424, %v373_v2  }
 0x1e7   :  { %3323 = vmatprep.mubr.msk.f32.mxu0 %vm2619_vm5, %v2162_v11 }
 0x1e8   :  { %3324 = vmatmul.mubr.msk.f32.gmra.mrb[24].mxu0 %vm2619_vm5, %v2163_v24 }
 0x1e9   :  { %3328 = vmatprep.mubr.msk.f32.mxu0 %vm2619_vm5, %v886_v30 }
 0x1ea   :  { %3427 = vset.pattern.permute.xlu0 %v4435_v36  ;;  %3426 = vset.pattern.permute.xlu1 %v3570_v16 }
 0x1eb   :  { %1155 = vperm.xlu0 %3427, %v373_v2   ;;  %1123 = vperm.xlu1 %3426, %v373_v2  }
 0x1ec   :  { %3329 = vmatmul.mubr.msk.f32.vlgmr.msra.gmra.mrb[22].mxu0 %vm2619_vm5, %v887_v28  ;;  %v4142_v28 = vsub.s32 1, %v3675_v6 }
 0x1ed   :  { %3331 = vmatprep.mubr.msk.f32.mxu0 %vm2619_vm5, %v888_v29  ;;  %v4148_v29 = vsub.s32 3, %v3675_v6 }
 0x1ef   :  { %3429 = vset.pattern.permute.xlu0 %v3575_v40  ;;  %3428 = vset.pattern.permute.xlu1 %v4434_v26 }
 0x1f0   :  { %3332 = vmatmul.mubr.msk.f32.gmra.mrb[24].mxu0 %vm2619_vm5, %v889_v39  ;;  %1231 = vperm.xlu0 %3429, %v373_v2   ;;  %v4155_v39 = vsub.s32 5, %v3675_v6 }
 0x1f1   :  { %1199 = vperm.xlu1 %3428, %v373_v2   ;;  %v4102_v2 = vadd.f32 %v3044_v48, %v1632_v41 }
 0x1f5   :  { %3430 = vset.pattern.permute.xlu1 %v4432_v38 }
 0x1f6   :  { %966 = vperm.xlu1 %3430, %v372_v37  }
 0x1fa   :  { %3431 = vset.pattern.permute.xlu1 %v3571_v18 }
 0x1fb   :  { %999 = vperm.xlu1 %3431, %v372_v37  }
 0x1ff   :  { %3432 = vset.pattern.permute.xlu1 %v3569_v8 }
 0x200   :  { %1043 = vperm.xlu1 %3432, %v372_v37  }
 0x204   :  { %3433 = vset.pattern.permute.xlu1 %v3573_v27 }
 0x205   :  { %1075 = vperm.xlu1 %3433, %v372_v37  }
 0x209   :  { %3434 = vset.pattern.permute.xlu1 %v3570_v16 }
 0x20a   :  { %1119 = vperm.xlu1 %3434, %v372_v37  }
 0x20e   :  { %3435 = vset.pattern.permute.xlu1 %v4435_v36  ;;  %890 = vxpose.xlu0.b32.start [1/2] (short) (narrow) %v628_v52, 8 }
 0x20f   :  { %1151 = vperm.xlu1 %3435, %v372_v37  }
 0x212   :  { %891 = vxpose.xlu0.b32.end [2/2] (short) (narrow) %v629_v13, 8 }
 0x213   :  { %3436 = vset.pattern.permute.xlu1 %v4434_v26 }
 0x214   :  { %1195 = vperm.xlu1 %3436, %v372_v37  }
 0x218   :  { %3437 = vset.pattern.permute.xlu1 %v3575_v40 }
 0x219   :  { %1227 = vperm.xlu1 %3437, %v372_v37   ;;  %v4164_v37 = vsub.s32 7, %v3675_v6 }
 0x238   :  { %v4064_v58 = vpop.permute.xlu0 %1039  ;;  %v4069_v53 = vpop.permute.xlu1 %961 }
 0x23b   :  { %3438 = vset.pattern.permute.xlu0 %v4432_v38 }
 0x23c   :  { %2235 = vperm.xlu0 %3438, %v1641_v15  }
 0x23d   :  { %v4073_v23 = vpop.permute.xlu0 %1115  ;;  %v4077_v59 = vpop.permute.xlu1 %995 }
 0x240   :  { %3441 = vset.pattern.permute.xlu0 %v3573_v27 }
 0x241   :  { %2345 = vperm.xlu0 %3441, %v1641_v15  }
 0x242   :  { %922 = vxpose.xlu1.b32.start [1/2] (short) (narrow) %v630_v57, 8  ;;  %v4084_v61 = vpop.permute.xlu0 %1191  ;;  %v4090_v63 = vpop.permute.xlu1 %1071 }
 0x245   :  { %3443 = vset.pattern.permute.xlu0 %v4435_v36 }
 0x246   :  { %923 = vxpose.xlu1.b32.end [2/2] (short) (narrow) %v631_v32, 8  ;;  %2421 = vperm.xlu0 %3443, %v1641_v15  }
 0x247   :  { %v4093_v0 = vpop.permute.xlu0 %956  ;;  %v4098_v45 = vpop.permute.xlu1 %1147 }
 0x24a   :  { %3445 = vset.pattern.permute.xlu0 %v3575_v40 }
 0x24b   :  { %2497 = vperm.xlu0 %3445, %v1641_v15  }
 0x24c   :  { %v992_v1 = vpop.permute.xlu0 %991  ;;  %v4105_v3 = vpop.permute.xlu1 %1223 }
 0x24f   :  { %3450 = vset.pattern.permute.xlu0 %v3570_v16 }
 0x250   :  { %2385 = vperm.xlu0 %3450, %v4071_v21  }
 0x251   :  { %v1068_v4 = vpop.permute.xlu0 %1067  ;;  %v1036_v43 = vpop.permute.xlu1 %1035 }
 0x254   :  { %3452 = vset.pattern.permute.xlu0 %v4434_v26 }
 0x255   :  { %2461 = vperm.xlu0 %3452, %v4071_v21  }
 0x256   :  { %v1144_v46 = vpop.permute.xlu0 %1143  ;;  %v1112_v5 = vpop.permute.xlu1 %1111 }
 0x259   :  { %3455 = vset.pattern.permute.xlu0 %v3571_v18 }
 0x25a   :  { %2277 = vperm.xlu0 %3455, %v4088_v62  }
 0x25b   :  { %v1220_v7 = vpop.permute.xlu0 %1219  ;;  %v1188_v25 = vpop.permute.xlu1 %1187 }
 0x25e   :  { %3458 = vset.pattern.permute.xlu0 %v3570_v16 }
 0x25f   :  { %2397 = vperm.xlu0 %3458, %v4088_v62  }
 0x260   :  { %v4114_v34 = vpop.permute.xlu0 %1003  ;;  %v4118_v9 = vpop.permute.xlu1 %971 }
 0x263   :  { %3464 = vset.pattern.permute.xlu0 %v3569_v8 }
 0x264   :  { %3439 = vset.pattern.permute.xlu1 %v3571_v18  ;;  %2317 = vperm.xlu0 %3464, %v4102_v2  }
 0x265   :  { %2269 = vperm.xlu1 %3439, %v1641_v15   ;;  %v4121_v10 = vpop.permute.xlu0 %1079  ;;  %v4124_v11 = vpop.permute.xlu1 %1047 }
 0x268   :  { %3469 = vset.pattern.permute.xlu0 %v3575_v40 }
 0x269   :  { %3440 = vset.pattern.permute.xlu1 %v3569_v8  ;;  %2501 = vperm.xlu0 %3469, %v4102_v2  }
 0x26a   :  { %2313 = vperm.xlu1 %3440, %v1641_v15   ;;  %v4128_v12 = vpop.permute.xlu0 %1155  ;;  %v4132_v24 = vpop.permute.xlu1 %1123 }
 0x26e   :  { %3442 = vset.pattern.permute.xlu1 %v3570_v16 }
 0x26f   :  { %2389 = vperm.xlu1 %3442, %v1641_v15   ;;  %v4135_v30 = vpop.permute.xlu0 %1231 }
 0x270   :  { %v4161_v49 = vpop.permute.xlu1 %1199 }
 0x273   :  { %3444 = vset.pattern.permute.xlu1 %v4434_v26 }
 0x274   :  { %2465 = vperm.xlu1 %3444, %v1641_v15  }
 0x275   :  { %v4200_v35 = vpop.permute.xlu1 %966 }
 0x278   :  { %3446 = vset.pattern.permute.xlu1 %v4432_v38 }
 0x279   :  { %2230 = vperm.xlu1 %3446, %v4071_v21  }
 0x27d   :  { %3447 = vset.pattern.permute.xlu1 %v3571_v18 }
 0x27e   :  { %2265 = vperm.xlu1 %3447, %v4071_v21  }
 0x282   :  { %3448 = vset.pattern.permute.xlu1 %v3569_v8 }
 0x283   :  { %2309 = vperm.xlu1 %3448, %v4071_v21  }
 0x287   :  { %3449 = vset.pattern.permute.xlu1 %v3573_v27  ;;  %2164 = vxpose.xlu0.b32.start [1/2] (short) (narrow) %v3983_v55, 8  ;;  %v4152_v55 = vsub.s32 4, %v3675_v6 }
 0x288   :  { %2341 = vperm.xlu1 %3449, %v4071_v21  }
 0x289   :  { %4440 = vst [vmem:[#allocation4_spill] sm:$0xff] %v4152_v55 }
 0x28b   :  { %2165 = vxpose.xlu0.b32.end [2/2] (short) (narrow) %v3981_v54, 8  ;;  %v4159_v54 = vsub.s32 6, %v3675_v6 }
 0x28c   :  { %3451 = vset.pattern.permute.xlu1 %v4435_v36 }
 0x28d   :  { %2417 = vperm.xlu1 %3451, %v4071_v21  }
 0x28e   :  { %v906_v14 = vpop.trf.xlu0 }
 0x28f   :  { %v4167_v51 = vrot.slane %v906_v14, %v4139_v33  ;;  %v4170_v31 = vrot.slane %v906_v14, %v4142_v28  ;;  %v4173_v52 = vrot.slane %v906_v14, %v4145_v47  ;;  %v4176_v13 = vrot.slane %v906_v14, %v4148_v29  ;;  %2196 = vxpose.xlu0.b32.start [1/2] (short) (narrow) %v3992_v60, 8 }
 0x290   :  { %v4180_v50 = vrot.slane %v906_v14, %v4152_v55  ;;  %v4183_v6 = vrot.slane %v906_v14, %v4155_v39  ;;  %v4189_v20 = vrot.slane %v906_v14, %v4159_v54  ;;  %v4197_v56 = vrot.slane %v906_v14, %v4164_v37  ;;  %v1000_v14 = vpop.permute.xlu1 %999 }
 0x291   :  { %v982_v48 = vmul.f32 %v4167_v51, %v4093_v0  ;;  %v1014_v15 = vmul.f32 %v4170_v31, %v992_v1  ;;  %3453 = vset.pattern.permute.xlu1 %v3575_v40  ;;  %v1058_v19 = vmul.f32 %v4173_v52, %v1036_v43  ;;  %v1090_v60 = vmul.f32 %v4176_v13, %v1068_v4 }
 0x292   :  { %2493 = vperm.xlu1 %3453, %v4071_v21   ;;  %v1134_v32 = vmul.f32 %v4180_v50, %v1112_v5  ;;  %v1166_v0 = vmul.f32 %v4183_v6, %v1144_v46  ;;  %v1210_v1 = vmul.f32 %v4189_v20, %v1188_v25  ;;  %v1242_v21 = vmul.f32 %v4197_v56, %v1220_v7 }
 0x293   :  { %v1018_v57 = vadd.f32 %v1014_v15, %v982_v48  ;;  %2197 = vxpose.xlu0.b32.end [2/2] (short) (narrow) %v3988_v22, 8  ;;  %v1094_v44 = vadd.f32 %v1090_v60, %v1058_v19 }
 0x294   :  { %v1170_v4 = vadd.f32 %v1166_v0, %v1134_v32  ;;  %v1246_v22 = vadd.f32 %v1242_v21, %v1210_v1  ;;  %v1044_v25 = vpop.permute.xlu1 %1043  ;;  %v3082_v1 = vld [vmem:[%s4428_s9] ss:$0 sm:$0xff] }
 0x295   :  { %v1022_v41 = vmul.f32 0.35355338, %v1018_v57  ;;  %v1098_v43 = vmul.f32 0.35355338, %v1094_v44 }
 0x296   :  { %3454 = vset.pattern.permute.xlu1 %v4432_v38  ;;  %v1174_v5 = vmul.f32 0.35355338, %v1170_v4  ;;  %v1250_v46 = vmul.f32 0.35355338, %v1246_v22 }
 0x297   :  { %3488 = vtanh.f32 %v1022_v41  ;;  %2245 = vperm.xlu1 %3454, %v4088_v62  }
 0x298   :  { %3490 = vtanh.f32 %v1098_v43  ;;  %v1076_v60 = vpop.permute.xlu1 %1075 }
 0x299   :  { %3492 = vtanh.f32 %v1174_v5 }
 0x29a   :  { %3494 = vtanh.f32 %v1250_v46 }
 0x29b   :  { %3456 = vset.pattern.permute.xlu1 %v3569_v8 }
 0x29c   :  { %2321 = vperm.xlu1 %3456, %v4088_v62   ;;  %v1120_v44 = vpop.permute.xlu1 %1119 }
 0x2a0   :  { %3457 = vset.pattern.permute.xlu1 %v3573_v27  ;;  %v1152_v0 = vpop.permute.xlu1 %1151 }
 0x2a1   :  { %v3489_v48 = vpop.eup %3488  ;;  %2353 = vperm.xlu1 %3457, %v4088_v62  }
 0x2a2   :  { %v3491_v7 = vpop.eup %3490 }
 0x2a3   :  { %v1106_v15 = vadd.f32 %v3491_v7, %v3489_v48  ;;  %v3493_v19 = vpop.eup %3492 }
 0x2a4   :  { %v3495_v8 = vpop.eup %3494  ;;  %v1196_v41 = vpop.permute.xlu1 %1195 }
 0x2a5   :  { %3459 = vset.pattern.permute.xlu1 %v4435_v36  ;;  %v1182_v57 = vadd.f32 %v3493_v19, %v1106_v15 }
 0x2a6   :  { %2429 = vperm.xlu1 %3459, %v4088_v62  }
 0x2a7   :  { %v4213_v32 = vadd.f32 %v3495_v8, %v1182_v57 }
 0x2a8   :  { %v1228_v43 = vpop.permute.xlu1 %1227 }
 0x2aa   :  { %3460 = vset.pattern.permute.xlu1 %v4434_v26 }
 0x2ab   :  { %2473 = vperm.xlu1 %3460, %v4088_v62  }
 0x2af   :  { %3461 = vset.pattern.permute.xlu1 %v3575_v40 }
 0x2b0   :  { %2505 = vperm.xlu1 %3461, %v4088_v62  }
 0x2b4   :  { %3462 = vset.pattern.permute.xlu1 %v4432_v38 }
 0x2b5   :  { %2240 = vperm.xlu1 %3462, %v4102_v2  }
 0x2b9   :  { %3463 = vset.pattern.permute.xlu1 %v3571_v18 }
 0x2ba   :  { %2273 = vperm.xlu1 %3463, %v4102_v2  }
 0x2be   :  { %3465 = vset.pattern.permute.xlu1 %v3573_v27 }
 0x2bf   :  { %v3330_v40 = vpop.f32.mrb[22].mxu0  ;;  %2349 = vperm.xlu1 %3465, %v4102_v2  }
 0x2c0   :  { %v4228_v62 = vadd.f32 %v3330_v40, %v3082_v1  ;;  %v2795_v4 = vpop.f32.mrb[23].mxu0 }
 0x2c1   :  { %v4230_v21 = vadd.f32 %v3082_v1, %v2795_v4 }
 0x2c2   :  { %v2831_v5 = vmul.f32 1.442695, %v4228_v62  ;;  %v938_v18 = vpop.trf.xlu1  ;;  %vm2826_vm9 = vcmp.gt.f32.partialorder %v4228_v62, 0.0 }
 0x2c3   :  { %v2829_v22 = vmul.f32 1.442695, %v4230_v21  ;;  %v981_v46 = vrot.slane %v938_v18, %v4139_v33  ;;  %v1013_v48 = vrot.slane %v938_v18, %v4142_v28  ;;  %v3333_v7 = vpop.f32.mrb[24].mxu0  ;;  %3466 = vset.pattern.permute.xlu1 %v3570_v16  ;;  %v1057_v27 = vrot.slane %v938_v18, %v4145_v47 }
 0x2c4   :  { %3496 = vpow2.f32 %v2831_v5  ;;  %v1089_v15 = vrot.slane %v938_v18, %v4148_v29  ;;  %v1133_v19 = vrot.slane %v938_v18, %v4152_v55  ;;  %v2805_v57 = vpop.f32.mrb[25].mxu0  ;;  %2393 = vperm.xlu1 %3466, %v4102_v2   ;;  %v1165_v17 = vrot.slane %v938_v18, %v4155_v39 }
 0x2c5   :  { %3498 = vpow2.f32 %v2829_v22  ;;  %v984_v8 = vmul.f32 %v981_v46, %v4200_v35  ;;  %v985_v40 = vmul.f32 %v981_v46, %v4118_v9  ;;  %v1016_v4 = vmul.f32 %v1013_v48, %v1000_v14 }
 0x2c6   :  { %v1017_v38 = vmul.f32 %v1013_v48, %v4114_v34  ;;  %v1060_v26 = vmul.f32 %v1057_v27, %v1044_v25  ;;  %v1061_v16 = vmul.f32 %v1057_v27, %v4124_v11  ;;  %v1092_v5 = vmul.f32 %v1089_v15, %v1076_v60 }
 0x2c7   :  { %v1093_v36 = vmul.f32 %v1089_v15, %v4121_v10  ;;  %v1209_v42 = vrot.slane %v938_v18, %v4159_v54  ;;  %v1241_v55 = vrot.slane %v938_v18, %v4164_v37  ;;  %v4249_v22 = vadd.f32 %v3333_v7, %v3082_v1  ;;  %v4261_v15 = vpop.permute.xlu0 %2235 }
 0x2c8   :  { %v4251_v35 = vadd.f32 %v3082_v1, %v2805_v57  ;;  %v4441_v9 = vmov 5   ;;  %v1021_v14 = vadd.f32 %v1017_v38, %v985_v40  ;;  %v1137_v25 = vmul.f32 %v1133_v19, %v4132_v24 }
 0x2c9   :  { %3467 = vset.pattern.permute.xlu1 %v4441_v9  ;;  %v1097_v34 = vadd.f32 %v1093_v36, %v1061_v16  ;;  %v1020_v11 = vadd.f32 %v1016_v4, %v984_v8  ;;  %v1169_v10 = vmul.f32 %v1165_v17, %v4128_v12  ;;  %v1213_v60 = vmul.f32 %v1209_v42, %v4161_v49 }
 0x2ca   :  { %2425 = vperm.xlu1 %3467, %v4102_v2   ;;  %v1245_v46 = vmul.f32 %v1241_v55, %v4135_v30  ;;  %v2835_v18 = vmul.f32 1.442695, %v4249_v22  ;;  %v2833_v1 = vmul.f32 1.442695, %v4251_v35  ;;  %v1096_v7 = vadd.f32 %v1092_v5, %v1060_v26 }
 0x2cb   :  { %v1024_v48 = vmul.f32 0.35355338, %v1020_v11  ;;  %v1136_v27 = vmul.f32 %v1133_v19, %v1120_v44  ;;  %v1168_v38 = vmul.f32 %v1165_v17, %v1152_v0  ;;  %v1212_v36 = vmul.f32 %v1209_v42, %v1196_v41 }
 0x2cc   :  { %3500 = vpow2.f32 %v2835_v18  ;;  %v1244_v24 = vmul.f32 %v1241_v55, %v1228_v43  ;;  %v4442_v57 = vmov 6   ;;  %v1100_v12 = vmul.f32 0.35355338, %v1096_v7 }
 0x2cd   :  { %3502 = vpow2.f32 %v2833_v1  ;;  %v1025_v49 = vmul.f32 0.35355338, %v1021_v14  ;;  %v1101_v8 = vmul.f32 0.35355338, %v1097_v34  ;;  %v1172_v40 = vadd.f32 %v1168_v38, %v1136_v27  ;;  %v4273_v14 = vpop.permute.xlu0 %2345 }
 0x2ce   :  { %3468 = vset.pattern.permute.xlu1 %v4442_v57  ;;  %v3497_v30 = vpop.eup %3496  ;;  %3504 = vtanh.f32 %v1024_v48  ;;  %v1248_v4 = vadd.f32 %v1244_v24, %v1212_v36  ;;  %v1173_v26 = vadd.f32 %v1169_v10, %v1137_v25  ;;  %v1249_v17 = vadd.f32 %v1245_v46, %v1213_v60 }
 0x2cf   :  { %2469 = vperm.xlu1 %3468, %v4102_v2   ;;  %v3499_v44 = vpop.eup %3498  ;;  %v3084_v19 = vadd.f32 -1.0, %v3497_v30  ;;  %3506 = vtanh.f32 %v1100_v12  ;;  %v1176_v55 = vmul.f32 0.35355338, %v1172_v40  ;;  %vm2825_vm8 = vcmp.gt.f32.partialorder %v4230_v21, 0.0 }
 0x2d0   :  { %v3083_v42 = vadd.f32 -1.0, %v3499_v44  ;;  %v1252_v0 = vmul.f32 0.35355338, %v1248_v4  ;;  %3508 = vtanh.f32 %v1025_v49  ;;  %v1177_v41 = vmul.f32 0.35355338, %v1173_v26 }
 0x2d1   :  { %3510 = vtanh.f32 %v1101_v8  ;;  %v1253_v43 = vmul.f32 0.35355338, %v1249_v17  ;;  %v983_v16 = vmul.f32 %v4167_v51, %v4069_v53  ;;  %v1015_v5 = vmul.f32 %v4170_v31, %v4077_v59 }
 0x2d2   :  { %v2841_v2 = vsel %vm2825_vm8, %v4230_v21, %v3083_v42  ;;  %3512 = vtanh.f32 %v1176_v55  ;;  %v2842_v9 = vsel %vm2826_vm9, %v4228_v62, %v3084_v19  ;;  %v1059_v34 = vmul.f32 %v4173_v52, %v4064_v58  ;;  %v4284_v58 = vpop.permute.xlu0 %2421 }
 0x2d3   :  { %3336 = vmatprep.mubr.msk.f32.mxu1 %vm2853_vm7, %v2841_v2  ;;  %3514 = vtanh.f32 %v1252_v0  ;;  %v1091_v21 = vmul.f32 %v4176_v13, %v4090_v63  ;;  %v1019_v59 = vadd.f32 %v1015_v5, %v983_v16  ;;  %v1135_v60 = vmul.f32 %v4180_v50, %v4073_v23 }
 0x2d4   :  { %3337 = vmatmul.mubr.msk.f32.vlgmr.msra.gmra.mrb[26].mxu1 %vm2853_vm7, %v2842_v9  ;;  %3516 = vtanh.f32 %v1177_v41  ;;  %vm2827_vm10 = vcmp.gt.f32.partialorder %v4251_v35, 0.0  ;;  %v1167_v52 = vmul.f32 %v4183_v6, %v4098_v45  ;;  %vm2828_vm11 = vcmp.gt.f32.partialorder %v4249_v22, 0.0 }
 0x2d5   :  { %3518 = vtanh.f32 %v1253_v43  ;;  %v1095_v25 = vadd.f32 %v1091_v21, %v1059_v34  ;;  %v1023_v1 = vmul.f32 0.35355338, %v1019_v59  ;;  %v1211_v6 = vmul.f32 %v4189_v20, %v4084_v61 }
 0x2d6   :  { %v3501_v53 = vpop.eup %3500  ;;  %v1171_v45 = vadd.f32 %v1167_v52, %v1135_v60  ;;  %v4297_v24 = vpop.permute.xlu0 %2497  ;;  %v4308_v16 = vmul.f32 0.25, %v4213_v32 }
 0x2d7   :  { %v3503_v51 = vpop.eup %3502  ;;  %v3086_v31 = vadd.f32 -1.0, %v3501_v53  ;;  %v1099_v50 = vmul.f32 0.35355338, %v1095_v25  ;;  %3520 = vtanh.f32 %v1023_v1 }
 0x2d8   :  { %v3505_v62 = vpop.eup %3504  ;;  %v3085_v11 = vadd.f32 -1.0, %v3503_v51  ;;  %v1175_v30 = vmul.f32 0.35355338, %v1171_v45 }
 0x2d9   :  { %v3507_v10 = vpop.eup %3506  ;;  %v2844_v48 = vsel %vm2828_vm11, %v4249_v22, %v3086_v31  ;;  %3522 = vtanh.f32 %v1099_v50 }
 0x2da   :  { %v3509_v63 = vpop.eup %3508  ;;  %v2843_v13 = vsel %vm2827_vm10, %v4251_v35, %v3085_v11  ;;  %v1108_v46 = vadd.f32 %v3507_v10, %v3505_v62  ;;  %v1243_v35 = vmul.f32 %v4197_v56, %v4105_v3  ;;  %v2386_v26 = vpop.permute.xlu0 %2385  ;;  %3524 = vtanh.f32 %v1175_v30 }
 0x2db   :  { %v3511_v18 = vpop.eup %3510  ;;  %3339 = vmatprep.mubr.msk.f32.mxu1 %vm2853_vm7, %v2843_v13 }
 0x2dc   :  { %v3513_v23 = vpop.eup %3512  ;;  %3340 = vmatmul.mubr.msk.f32.gmra.mrb[28].mxu1 %vm2853_vm7, %v2844_v48  ;;  %v1109_v7 = vadd.f32 %v3511_v18, %v3509_v63  ;;  %v1247_v40 = vadd.f32 %v1243_v35, %v1211_v6  ;;  %v4443_v63 = vld [vmem:[#allocation4_spill] sm:$0xff] }
 0x2dd   :  { %v3515_v27 = vpop.eup %3514  ;;  %v1184_v38 = vadd.f32 %v3513_v23, %v1108_v46 }
 0x2de   :  { %v3517_v36 = vpop.eup %3516  ;;  %v1251_v3 = vmul.f32 0.35355338, %v1247_v40  ;;  %v2462_v19 = vpop.permute.xlu0 %2461 }
 0x2df   :  { %v1260_v57 = vadd.f32 %v3515_v27, %v1184_v38  ;;  %v1185_v22 = vadd.f32 %v3517_v36, %v1109_v7  ;;  %v3519_v12 = vpop.eup %3518 }
 0x2e0   :  { %3526 = vtanh.f32 %v1251_v3 }
 0x2e1   :  { %v4299_v49 = vmul.f32 0.25, %v1260_v57  ;;  %v1261_v8 = vadd.f32 %v3519_v12, %v1185_v22  ;;  %v3521_v20 = vpop.eup %3520 }
 0x2e2   :  { %v4305_v0 = vpop.permute.xlu0 %2277 }
 0x2e3   :  { %1298 = vxpose.xlu0.b32.start [1/2] (short) (narrow) %v4299_v49, 16  ;;  %v4302_v61 = vmul.f32 0.25, %v1261_v8  ;;  %v3523_v44 = vpop.eup %3522 }
 0x2e4   :  { %v2270_v4 = vpop.permute.xlu1 %2269  ;;  %v1107_v17 = vadd.f32 %v3523_v44, %v3521_v20  ;;  %v3525_v55 = vpop.eup %3524 }
 0x2e6   :  { %v1183_v41 = vadd.f32 %v3525_v55, %v1107_v17  ;;  %v4310_v9 = vpop.permute.xlu0 %2397 }
 0x2e7   :  { %1299 = vxpose.xlu0.b32.end [2/2] (short) (narrow) %v4302_v61, 16 }
 0x2e9   :  { %v2314_v56 = vpop.permute.xlu1 %2313 }
 0x2ea   :  { %v3527_v43 = vpop.eup %3526  ;;  %v4316_v53 = vpop.permute.xlu0 %2317 }
 0x2eb   :  { %v1259_v5 = vadd.f32 %v3527_v43, %v1183_v41 }
 0x2ed   :  { %v4313_v21 = vmul.f32 0.25, %v1259_v5 }
 0x2ee   :  { %v2390_v42 = vpop.permute.xlu1 %2389  ;;  %v4318_v31 = vpop.permute.xlu0 %2501 }
 0x2f3   :  { %v2466_v2 = vpop.permute.xlu1 %2465 }
 0x2f8   :  { %1266 = vxpose.xlu1.b32.start [1/2] (short) (narrow) %v4308_v16, 16  ;;  %v2231_v34 = vpop.permute.xlu1 %2230 }
 0x2fc   :  { %1267 = vxpose.xlu1.b32.end [2/2] (short) (narrow) %v4313_v21, 16 }
 0x2fd   :  { %v2266_v51 = vpop.permute.xlu1 %2265 }
 0x302   :  { %v2310_v59 = vpop.permute.xlu1 %2309 }
 0x307   :  { %v2342_v62 = vpop.permute.xlu1 %2341  ;;  %v2180_v25 = vpop.trf.xlu0 }
 0x308   :  { %v2251_v32 = vrot.slane %v2180_v25, %v4139_v33  ;;  %v2283_v11 = vrot.slane %v2180_v25, %v4142_v28  ;;  %v2327_v10 = vrot.slane %v2180_v25, %v4145_v47  ;;  %v2359_v60 = vrot.slane %v2180_v25, %v4148_v29 }
 0x309   :  { %v2403_v52 = vrot.slane %v2180_v25, %v4443_v63  ;;  %v2435_v48 = vrot.slane %v2180_v25, %v4155_v39  ;;  %v2479_v27 = vrot.slane %v2180_v25, %v4159_v54  ;;  %v2511_v38 = vrot.slane %v2180_v25, %v4164_v37 }
 0x30a   :  { %v2257_v13 = vmul.f32 %v2251_v32, %v4261_v15  ;;  %v2289_v46 = vmul.f32 %v2283_v11, %v2270_v4  ;;  %v2256_v18 = vmul.f32 %v2251_v32, %v2231_v34  ;;  %v2288_v1 = vmul.f32 %v2283_v11, %v2266_v51 }
 0x30b   :  { %v2332_v23 = vmul.f32 %v2327_v10, %v2310_v59  ;;  %v2364_v50 = vmul.f32 %v2359_v60, %v2342_v62  ;;  %v2333_v36 = vmul.f32 %v2327_v10, %v2314_v56  ;;  %v2365_v45 = vmul.f32 %v2359_v60, %v4273_v14 }
 0x30c   :  { %v2418_v7 = vpop.permute.xlu1 %2417  ;;  %v2408_v6 = vmul.f32 %v2403_v52, %v2386_v26  ;;  %v2293_v57 = vadd.f32 %v2289_v46, %v2257_v13  ;;  %v2409_v22 = vmul.f32 %v2403_v52, %v2390_v42  ;;  %v2441_v15 = vmul.f32 %v2435_v48, %v4284_v58 }
 0x30d   :  { %v2440_v35 = vmul.f32 %v2435_v48, %v2418_v7  ;;  %v2292_v8 = vadd.f32 %v2288_v1, %v2256_v18  ;;  %v2368_v30 = vadd.f32 %v2364_v50, %v2332_v23  ;;  %v2369_v40 = vadd.f32 %v2365_v45, %v2333_v36 }
 0x30e   :  { %v2485_v3 = vmul.f32 %v2479_v27, %v2466_v2  ;;  %v2517_v20 = vmul.f32 %v2511_v38, %v4297_v24  ;;  %v2484_v17 = vmul.f32 %v2479_v27, %v2462_v19  ;;  %v2445_v56 = vadd.f32 %v2441_v15, %v2409_v22 }
 0x30f   :  { %v2444_v12 = vadd.f32 %v2440_v35, %v2408_v6  ;;  %v2296_v41 = vmul.f32 0.35355338, %v2292_v8  ;;  %v2297_v14 = vmul.f32 0.35355338, %v2293_v57  ;;  %v2372_v43 = vmul.f32 0.35355338, %v2368_v30  ;;  %v2212_v2 = vpop.trf.xlu0 }
 0x310   :  { %v2521_v42 = vadd.f32 %v2517_v20, %v2485_v3  ;;  %v2373_v58 = vmul.f32 0.35355338, %v2369_v40  ;;  %v2449_v51 = vmul.f32 0.35355338, %v2445_v56  ;;  %v2255_v19 = vrot.slane %v2212_v2, %v4139_v33 }
 0x311   :  { %v2448_v4 = vmul.f32 0.35355338, %v2444_v12  ;;  %v2494_v44 = vpop.permute.xlu1 %2493  ;;  %v2287_v62 = vrot.slane %v2212_v2, %v4142_v28  ;;  %v2363_v25 = vrot.slane %v2212_v2, %v4148_v29  ;;  %v2331_v60 = vrot.slane %v2212_v2, %v4145_v47 }
 0x312   :  { %v2516_v55 = vmul.f32 %v2511_v38, %v2494_v44  ;;  %v2525_v24 = vmul.f32 0.35355338, %v2521_v42  ;;  %v2407_v28 = vrot.slane %v2212_v2, %v4443_v63  ;;  %v2439_v7 = vrot.slane %v2212_v2, %v4155_v39 }
 0x313   :  { %3528 = vtanh.f32 %v2448_v4  ;;  %v2291_v13 = vmul.f32 %v2287_v62, %v4305_v0 }
 0x314   :  { %v2520_v26 = vadd.f32 %v2516_v55, %v2484_v17  ;;  %3530 = vtanh.f32 %v2296_v41  ;;  %v2411_v57 = vmul.f32 %v2407_v28, %v4310_v9 }
 0x315   :  { %3532 = vtanh.f32 %v2372_v43 }
 0x316   :  { %v2524_v5 = vmul.f32 0.35355338, %v2520_v26  ;;  %v2246_v34 = vpop.permute.xlu1 %2245  ;;  %3534 = vtanh.f32 %v2297_v14 }
 0x317   :  { %v2259_v11 = vmul.f32 %v2255_v19, %v2246_v34  ;;  %v2515_v34 = vrot.slane %v2212_v2, %v4164_v37 }
 0x318   :  { %3536 = vtanh.f32 %v2524_v5  ;;  %v2483_v5 = vrot.slane %v2212_v2, %v4159_v54 }
 0x319   :  { %3538 = vtanh.f32 %v2373_v58  ;;  %v2295_v50 = vadd.f32 %v2291_v13, %v2259_v11  ;;  %v2334_v58 = vmul.f32 %v2331_v60, %v4316_v53  ;;  %v2518_v53 = vmul.f32 %v2515_v34, %v4318_v31 }
 0x31a   :  { %3540 = vtanh.f32 %v2449_v51 }
 0x31b   :  { %v2322_v59 = vpop.permute.xlu1 %2321  ;;  %3542 = vtanh.f32 %v2525_v24  ;;  %v2299_v0 = vmul.f32 0.35355338, %v2295_v50 }
 0x31c   :  { %v2335_v1 = vmul.f32 %v2331_v60, %v2322_v59 }
 0x31d   :  { %v3529_v32 = vpop.eup %3528 }
 0x31e   :  { %v3531_v10 = vpop.eup %3530 }
 0x31f   :  { %v3533_v52 = vpop.eup %3532 }
 0x320   :  { %v2354_v46 = vpop.permute.xlu1 %2353  ;;  %v3535_v18 = vpop.eup %3534  ;;  %v2380_v33 = vadd.f32 %v3533_v52, %v3531_v10 }
 0x321   :  { %v2367_v48 = vmul.f32 %v2363_v25, %v2354_v46 }
 0x322   :  { %v3537_v23 = vpop.eup %3536  ;;  %v2456_v38 = vadd.f32 %v3529_v32, %v2380_v33  ;;  %v4444_v33 = vmov 0  }
 0x323   :  { %v3539_v29 = vpop.eup %3538  ;;  %v2371_v27 = vadd.f32 %v2367_v48, %v2335_v1 }
 0x324   :  { %v2381_v36 = vadd.f32 %v3539_v29, %v3535_v18  ;;  %v3541_v45 = vpop.eup %3540  ;;  %v2532_v35 = vadd.f32 %v3537_v23, %v2456_v38 }
 0x325   :  { %v2375_v47 = vmul.f32 0.35355338, %v2371_v27  ;;  %v2430_v6 = vpop.permute.xlu1 %2429  ;;  %v3543_v12 = vpop.eup %3542 }
 0x326   :  { %v2443_v22 = vmul.f32 %v2439_v7, %v2430_v6  ;;  %v2457_v15 = vadd.f32 %v3541_v45, %v2381_v36  ;;  %v4340_v8 = vmul.f32 0.25, %v2532_v35 }
 0x327   :  { %3544 = vtanh.f32 %v2375_v47 }
 0x328   :  { %v2447_v63 = vadd.f32 %v2443_v22, %v2411_v57  ;;  %v2533_v30 = vadd.f32 %v3543_v12, %v2457_v15  ;;  %2540 = vxpose.xlu0.b32.start [1/2] (short) (narrow) %v4340_v8, 16  ;;  %3546 = vtanh.f32 %v2299_v0 }
 0x32a   :  { %v2451_v39 = vmul.f32 0.35355338, %v2447_v63  ;;  %v2474_v40 = vpop.permute.xlu1 %2473  ;;  %v4343_v4 = vmul.f32 0.25, %v2533_v30 }
 0x32b   :  { %v2487_v10 = vmul.f32 %v2483_v5, %v2474_v40 }
 0x32c   :  { %3548 = vtanh.f32 %v2451_v39  ;;  %2541 = vxpose.xlu0.b32.end [2/2] (short) (narrow) %v4343_v4, 16 }
 0x32f   :  { %v2506_v3 = vpop.permute.xlu1 %2505 }
 0x330   :  { %v2519_v59 = vmul.f32 %v2515_v34, %v2506_v3 }
 0x331   :  { %v3545_v9 = vpop.eup %3544 }
 0x332   :  { %v3547_v20 = vpop.eup %3546  ;;  %v2523_v18 = vadd.f32 %v2519_v59, %v2487_v10 }
 0x333   :  { %v2383_v17 = vadd.f32 %v3547_v20, %v3545_v9 }
 0x334   :  { %v2241_v44 = vpop.permute.xlu1 %2240  ;;  %v2527_v60 = vmul.f32 0.35355338, %v2523_v18 }
 0x335   :  { %v2258_v51 = vmul.f32 %v2255_v19, %v2241_v44  ;;  %v2957_v19 = vld [vmem:[%s4422_s12 + $0x10] sm:$0xff] }
 0x336   :  { %v3549_v55 = vpop.eup %3548 }
 0x337   :  { %v2459_v56 = vadd.f32 %v3549_v55, %v2383_v17  ;;  %v4445_v17 = vld [vmem:[#allocation3_spill] sm:$0xff] }
 0x339   :  { %v2274_v41 = vpop.permute.xlu1 %2273 }
 0x33a   :  { %v2290_v43 = vmul.f32 %v2287_v62, %v2274_v41  ;;  %v4446_v41 = vld [vmem:[#allocation2_spill] sm:$0xff] }
 0x33c   :  { %v2294_v32 = vadd.f32 %v2290_v43, %v2258_v51 }
 0x33e   :  { %v2350_v14 = vpop.permute.xlu1 %2349  ;;  %v2298_v1 = vmul.f32 0.35355338, %v2294_v32 }
 0x33f   :  { %v2366_v26 = vmul.f32 %v2363_v25, %v2350_v14 }
 0x341   :  { %v2370_v24 = vadd.f32 %v2366_v26, %v2334_v58 }
 0x343   :  { %v2394_v42 = vpop.permute.xlu1 %2393  ;;  %v2374_v46 = vmul.f32 0.35355338, %v2370_v24 }
 0x344   :  { %v2410_v52 = vmul.f32 %v2407_v28, %v2394_v42 }
 0x345   :  { %3550 = vtanh.f32 %v2374_v46 }
 0x346   :  { %3552 = vtanh.f32 %v2298_v1 }
 0x349   :  { %v2426_v11 = vpop.permute.xlu1 %2425 }
 0x34a   :  { %v2442_v13 = vmul.f32 %v2439_v7, %v2426_v11 }
 0x34c   :  { %v2446_v25 = vadd.f32 %v2442_v13, %v2410_v52 }
 0x34e   :  { %v2450_v62 = vmul.f32 0.35355338, %v2446_v25  ;;  %v2470_v48 = vpop.permute.xlu1 %2469 }
 0x34f   :  { %v2486_v54 = vmul.f32 %v2483_v5, %v2470_v48  ;;  %v3551_v23 = vpop.eup %3550 }
 0x350   :  { %3554 = vtanh.f32 %v2450_v62  ;;  %v3553_v50 = vpop.eup %3552 }
 0x351   :  { %v2522_v37 = vadd.f32 %v2518_v53, %v2486_v54  ;;  %3556 = vtanh.f32 %v2527_v60  ;;  %v2382_v7 = vadd.f32 %v3553_v50, %v3551_v23 }
 0x353   :  { %v2526_v2 = vmul.f32 0.35355338, %v2522_v37 }
 0x355   :  { %3558 = vtanh.f32 %v2526_v2  ;;  %3470 = vset.pattern.permute.xlu0 %v4444_v33 }
 0x356   :  { %2971 = vperm.xlu0 %3470, %v2957_v19  }
 0x35a   :  { %v3555_v28 = vpop.eup %3554 }
 0x35b   :  { %v3557_v31 = vpop.eup %3556  ;;  %v2458_v29 = vadd.f32 %v3555_v28, %v2382_v7 }
 0x35c   :  { %v2535_v45 = vadd.f32 %v3557_v31, %v2459_v56 }
 0x35e   :  { %v2539_v35 = vmul.f32 0.25, %v2535_v45 }
 0x35f   :  { %v3559_v27 = vpop.eup %3558 }
 0x360   :  { %v2534_v38 = vadd.f32 %v3559_v27, %v2458_v29 }
 0x362   :  { %v2538_v36 = vmul.f32 0.25, %v2534_v38 }
 0x363   :  { %v1314_v47 = vpop.trf.xlu0 }
 0x364   :  { %2572 = vxpose.xlu1.b32.start [1/2] (short) (narrow) %v2538_v36, 16  ;;  %v1332_v6 = vadd.f32 %v1314_v47, %v4299_v49 }
 0x366   :  { %v1336_v0 = vmul.f32 0.5, %v1332_v6 }
 0x367   :  { %v1315_v57 = vpop.trf.xlu0 }
 0x368   :  { %2573 = vxpose.xlu1.b32.end [2/2] (short) (narrow) %v2539_v35, 16  ;;  %1340 = vst.msk [vmem:[%s4429_s14 + $0x10] sm:$0xff] %vm69_vm2, %v1336_v0  ;;  %v1333_v22 = vadd.f32 %v1315_v57, %v4302_v61  ;;  %v2958_v61 = vld [vmem:[%s4422_s12 + $0x18] sm:$0xff] }
 0x36a   :  { %v1337_v15 = vmul.f32 0.5, %v1333_v22 }
 0x36c   :  { %1341 = vst.msk [vmem:[%s4429_s14 + $0x18] sm:$0xff] %vm69_vm2, %v1337_v15 }
 0x378   :  { %v1282_v12 = vpop.trf.xlu1 }
 0x379   :  { %v1330_v49 = vadd.f32 %v1282_v12, %v4308_v16  ;;  %v3087_v16 = vld [vmem:[%s4430_s11] ss:$0 sm:$0xff] }
 0x37b   :  { %v1334_v63 = vmul.f32 0.5, %v1330_v49 }
 0x37c   :  { %v1283_v30 = vpop.trf.xlu1 }
 0x37d   :  { %1338 = vst.msk [vmem:[%s4429_s14] sm:$0xff] %vm69_vm2, %v1334_v63  ;;  %v1331_v39 = vadd.f32 %v1283_v30, %v4313_v21 }
 0x37f   :  { %v1335_v40 = vmul.f32 0.5, %v1331_v39 }
 0x381   :  { %1339 = vst.msk [vmem:[%s4429_s14 + $0x8] sm:$0xff] %vm69_vm2, %v1335_v40 }
 0x386   :  { %3471 = vset.pattern.permute.xlu1 %v4444_v33 }
 0x387   :  { %2976 = vperm.xlu1 %3471, %v2958_v61  }
 0x3a7   :  { %v3338_v3 = vpop.f32.mrb[26].mxu1 }
 0x3a8   :  { %v2942_v9 = vadd.f32 %v3338_v3, %v3087_v16  ;;  %v2936_v21 = vpop.f32.mrb[27].mxu1  ;;  %v2556_v20 = vpop.trf.xlu0 }
 0x3a9   :  { %v2937_v44 = vadd.f32 %v3087_v16, %v2936_v21  ;;  %v2604_v56 = vadd.f32 %v2556_v20, %v4340_v8 }
 0x3aa   :  { %v2980_v55 = vmul.f32 %v4445_v17, %v2942_v9 }
 0x3ab   :  { %v2979_v14 = vmul.f32 %v4446_v41, %v2937_v44  ;;  %v2608_v26 = vmul.f32 0.5, %v2604_v56 }
 0x3ac   :  { %3560 = vtanh.f32 %v2980_v55  ;;  %v2557_v43 = vpop.trf.xlu0 }
 0x3ad   :  { %3562 = vtanh.f32 %v2979_v14  ;;  %3069 = vst.msk [vmem:[%s4429_s14 + $0x20] sm:$0xff] %vm69_vm2, %v2608_v26  ;;  %v2605_v42 = vadd.f32 %v2557_v43, %v4343_v4 }
 0x3af   :  { %v3341_v58 = vpop.f32.mrb[28].mxu1  ;;  %v2609_v34 = vmul.f32 0.5, %v2605_v42 }
 0x3b0   :  { %v2952_v5 = vadd.f32 %v3341_v58, %v3087_v16  ;;  %v2946_v51 = vpop.f32.mrb[29].mxu1 }
 0x3b1   :  { %3070 = vst.msk [vmem:[%s4429_s14 + $0x28] sm:$0xff] %vm69_vm2, %v2609_v34  ;;  %v2947_v4 = vadd.f32 %v3087_v16, %v2946_v51 }
 0x3b6   :  { %v3561_v8 = vpop.eup %3560 }
 0x3b7   :  { %v3563_v24 = vpop.eup %3562  ;;  %2988 = vst.msk [vmem:[%s4431_s13 + $0x8] sm:$0xff] %vm2619_vm5, %v3561_v8 }
 0x3b8   :  { %2987 = vst.msk [vmem:[%s4431_s13] sm:$0xff] %vm2619_vm5, %v3563_v24 }
 0x3d5   :  { %v2972_v59 = vpop.permute.xlu0 %2971 }
 0x3d6   :  { %v2981_v32 = vmul.f32 %v2972_v59, %v2947_v4 }
 0x3d8   :  { %3564 = vtanh.f32 %v2981_v32 }
 0x3e2   :  { %v3565_v11 = vpop.eup %3564 }
 0x3e3   :  { %2989 = vst.msk [vmem:[%s4431_s13 + $0x10] sm:$0xff] %vm2619_vm5, %v3565_v11 }
 0x3e4   :  { %v2588_v10 = vpop.trf.xlu1 }
 0x3e5   :  { %v2606_v52 = vadd.f32 %v2588_v10, %v2538_v36 }
 0x3e7   :  { %v2610_v13 = vmul.f32 0.5, %v2606_v52 }
 0x3e8   :  { %v2589_v46 = vpop.trf.xlu1 }
 0x3e9   :  { %3071 = vst.msk [vmem:[%s4429_s14 + $0x30] sm:$0xff] %vm69_vm2, %v2610_v13  ;;  %v2607_v18 = vadd.f32 %v2589_v46, %v2539_v35 }
 0x3eb   :  { %v2611_v1 = vmul.f32 0.5, %v2607_v18 }
 0x3ed   :  { %3072 = vst.msk [vmem:[%s4429_s14 + $0x38] sm:$0xff] %vm69_vm2, %v2611_v1 }
 0x406   :  { %v2977_v25 = vpop.permute.xlu1 %2976 }
 0x407   :  { %v2982_v62 = vmul.f32 %v2977_v25, %v2952_v5 }
 0x409   :  { %3566 = vtanh.f32 %v2982_v62 }
 0x413   :  { %v3567_v48 = vpop.eup %3566 }
 0x414   :  { %2990 = vst.msk [vmem:[%s4431_s13 + $0x18] sm:$0xff] %vm2619_vm5, %v3567_v48 }

// kernel: score_network_a_forward.10
= control target key start
LH: loop header
LB: loop body
LE: loop exit
PB: predicated region body
PF: predicated region fallthrough
CT: control target
= control target key end

     0   :  { %vm43_vm0 = vcmask 1042432   ;;  %v611_v2 = vmov 0.0   ;;  %v612_v7 = vmov 0   ;;  %vm39_vm1 = vcmask 23552   ;;  %s706_s1 = inlined_call_operand.vmem [shape: f32[3,512], index: 1, kind: input, shape index: {}]   ;;  %s707_s4 = inlined_call_operand.vmem [shape: f32[8,3], index: 4, kind: input, shape index: {}]   ;;  %s708_s0 = inlined_call_operand.vmem [shape: f32[3,512], index: 0, kind: input, shape index: {}]   ;;  %s709_s5 = inlined_call_operand.vmem [shape: f32[8,1], index: 5, kind: input, shape index: {}]   ;;  %s710_s3 = inlined_call_operand.vmem [shape: f32[8,3], index: 3, kind: input, shape index: {}]   ;;  %s711_s7 = inlined_call_operand.vmem [shape: f32[4,1], index: 7, kind: input, shape index: {}]   ;;  %s712_s6 = inlined_call_operand.vmem [shape: f32[4,8], index: 6, kind: input, shape index: {}]   ;;  %s713_s2 = inlined_call_operand.vmem [shape: f32[1,512], index: 2, kind: input, shape index: {}]   ;;  %s714_s8 = inlined_call_operand.vmem [shape: f32[4,512], index: 8, kind: output, shape index: {}]  }
   0x1   :  { %v33_v0 = vld [vmem:[%s706_s1] sm:$0x77]  ;;  %v34_v1 = vld [vmem:[%s706_s1 + $0x8] sm:$0x77]  ;;  %116 = vmatprep.mubr.f32.mxu0 %v611_v2  ;;  %187 = vmatprep.mubr.f32.mxu1 %v611_v2  ;;  %vm388_vm5 = vcmask 64512   ;;  %v536_v40 = vlaneseq }
   0x2   :  { %v37_v3 = vcombine.high %v33_v0, %v33_v0  ;;  %v38_v4 = vcombine.high %v34_v1, %v34_v1  ;;  %v30_v5 = vld [vmem:[%s708_s0] sm:$0x77]  ;;  %v31_v6 = vld [vmem:[%s708_s0 + $0x8] sm:$0x77]  ;;  %598 = vset.pattern.permute.xlu0 %v612_v7 }
   0x3   :  { %v32_v8 = vld [vmem:[%s707_s4] sm:$0xff]  ;;  %v196_v9 = vcombine.high %v30_v5, %v30_v5  ;;  %v197_v10 = vcombine.high %v31_v6, %v31_v6  ;;  %v537_v41 = vshrl.u32 %v536_v40, 7 }
   0x4   :  { %574 = vmatprep.subr.msk.mxu0 %vm43_vm0, %v37_v3  ;;  %577 = vmatprep.subr.msk.mxu1 %vm43_vm0, %v38_v4  ;;  %v351_v11 = vld [vmem:[%s709_s5] sm:$0xff] }
   0x5   :  { %575 = vmatpush1.msk.msra.mxu0 %vm43_vm0, %v33_v0  ;;  %578 = vmatpush1.msk.msra.mxu1 %vm43_vm0, %v34_v1  ;;  %v29_v12 = vld [vmem:[%s710_s3] sm:$0xff]  ;;  %v538_v42 = vsub.s32 0, %v537_v41  ;;  %v546_v44 = vsub.s32 2, %v537_v41  ;;  %v542_v45 = vsub.s32 1, %v537_v41  ;;  %v550_v46 = vsub.s32 3, %v537_v41 }
   0x6   :  { %576 = vmatmul.mubr.msk.f32.vlgmr.msra.gmra.mrb[0].mxu0 %vm39_vm1, %v32_v8  ;;  %579 = vmatmul.mubr.msk.f32.vlgmr.msra.gmra.mrb[0].mxu1 %vm39_vm1, %v32_v8  ;;  %v382_v13 = vld [vmem:[%s711_s7] sm:$0xf] }
   0x7   :  { %580 = vmatprep.subr.msk.mxu0 %vm43_vm0, %v196_v9  ;;  %583 = vmatprep.subr.msk.mxu1 %vm43_vm0, %v197_v10  ;;  %v381_v36 = vld [vmem:[%s712_s6] sm:$0xf] }
   0x8   :  { %581 = vmatpush1.msk.msra.mxu0 %vm43_vm0, %v30_v5  ;;  %584 = vmatpush1.msk.msra.mxu1 %vm43_vm0, %v31_v6  ;;  %v534_v43 = vld [vmem:[%s713_s2] sm:$0xf] }
   0x9   :  { %273 = vmatprep.mubr.f32.mxu0 %v611_v2  ;;  %344 = vmatprep.mubr.f32.mxu1 %v611_v2  ;;  %v539_v47 = vrot.slane %v534_v43, %v538_v42  ;;  %v547_v50 = vrot.slane %v534_v43, %v546_v44  ;;  %v543_v51 = vrot.slane %v534_v43, %v542_v45 }
   0xa   :  { %354 = vperm.xlu0 %598, %v351_v11   ;;  %v551_v55 = vrot.slane %v534_v43, %v550_v46 }
   0xe   :  { %582 = vmatmul.mubr.msk.f32.vlgmr.msra.gmra.mrb[0].mxu0 %vm39_vm1, %v29_v12  ;;  %585 = vmatmul.mubr.msk.f32.vlgmr.msra.gmra.mrb[0].mxu1 %vm39_vm1, %v29_v12 }
   0xf   :  { %385 = vperm.xlu0 %598, %v382_v13   ;;  %456 = vmatprep.mubr.f32.mxu0 %v611_v2 }
  0x10   :  { %527 = vmatprep.mubr.f32.mxu1 %v611_v2 }
  0x89   :  { %v355_v14 = vpop.permute.xlu0 %354 }
  0x8e   :  { %v386_v48 = vpop.permute.xlu0 %385 }
  0xe1   :  { %v275_v15 = vpop.f32.mrb[0].mxu0  ;;  %v346_v16 = vpop.f32.mrb[0].mxu1 }
  0xe2   :  { %v357_v17 = vadd.f32 %v355_v14, %v275_v15  ;;  %v359_v18 = vadd.f32 %v355_v14, %v346_v16  ;;  %v277_v19 = vpop.f32.mrb[1].mxu0  ;;  %v348_v20 = vpop.f32.mrb[1].mxu1 }
  0xe3   :  { %v358_v21 = vadd.f32 %v355_v14, %v277_v19  ;;  %v360_v22 = vadd.f32 %v355_v14, %v348_v20 }
  0xe4   :  { %v365_v23 = vmul.f32 1.442695, %v357_v17  ;;  %v369_v24 = vmul.f32 1.442695, %v359_v18  ;;  %vm361_vm3 = vcmp.gt.f32.partialorder %v357_v17, 0.0  ;;  %vm363_vm6 = vcmp.gt.f32.partialorder %v359_v18, 0.0 }
  0xe5   :  { %v367_v25 = vmul.f32 1.442695, %v358_v21  ;;  %v371_v26 = vmul.f32 1.442695, %v360_v22  ;;  %vm362_vm2 = vcmp.gt.f32.partialorder %v358_v21, 0.0  ;;  %vm364_vm4 = vcmp.gt.f32.partialorder %v360_v22, 0.0 }
  0xe6   :  { %603 = vpow2.f32 %v365_v23 }
  0xe7   :  { %605 = vpow2.f32 %v369_v24 }
  0xe8   :  { %607 = vpow2.f32 %v367_v25 }
  0xe9   :  { %609 = vpow2.f32 %v371_v26 }
  0xf0   :  { %v604_v27 = vpop.eup %603 }
  0xf1   :  { %v606_v28 = vpop.eup %605  ;;  %v586_v30 = vadd.f32 -1.0, %v604_v27 }
  0xf2   :  { %v608_v29 = vpop.eup %607  ;;  %v588_v33 = vadd.f32 -1.0, %v606_v28 }
  0xf3   :  { %v610_v31 = vpop.eup %609  ;;  %v587_v32 = vadd.f32 -1.0, %v608_v29  ;;  %v377_v38 = vsel %vm361_vm3, %v357_v17, %v586_v30 }
  0xf4   :  { %v589_v34 = vadd.f32 -1.0, %v610_v31  ;;  %v379_v39 = vsel %vm363_vm6, %v359_v18, %v588_v33 }
  0xf5   :  { %v378_v35 = vsel %vm362_vm2, %v358_v21, %v587_v32 }
  0xf6   :  { %392 = vmatprep.subr.mxu0 %v378_v35  ;;  %v380_v37 = vsel %vm364_vm4, %v360_v22, %v589_v34 }
  0xf7   :  { %463 = vmatprep.subr.mxu1 %v380_v37  ;;  %393 = vmatpush1.msra.mxu0 %v377_v38 }
  0xf8   :  { %464 = vmatpush1.msra.mxu1 %v379_v39  ;;  %590 = vmatmul.mubr.msk.f32.vlgmr.msra.gmra.mrb[2].mxu0 %vm388_vm5, %v381_v36 }
  0xf9   :  { %591 = vmatmul.mubr.msk.f32.vlgmr.msra.gmra.mrb[2].mxu1 %vm388_vm5, %v381_v36 }
 0x1cb   :  { %v458_v49 = vpop.f32.mrb[2].mxu0 }
 0x1cc   :  { %v459_v52 = vadd.f32 %v458_v49, %v386_v48  ;;  %v529_v53 = vpop.f32.mrb[2].mxu1  ;;  %v460_v54 = vpop.f32.mrb[3].mxu0 }
 0x1cd   :  { %v530_v56 = vadd.f32 %v529_v53, %v386_v48  ;;  %v461_v57 = vadd.f32 %v460_v54, %v386_v48  ;;  %v531_v58 = vpop.f32.mrb[3].mxu1 }
 0x1ce   :  { %v556_v59 = vmul.f32 %v539_v47, %v459_v52  ;;  %v532_v60 = vadd.f32 %v531_v58, %v386_v48 }
 0x1cf   :  { %v558_v61 = vmul.f32 %v547_v50, %v530_v56  ;;  %v557_v62 = vmul.f32 %v543_v51, %v461_v57 }
 0x1d0   :  { %v559_v63 = vmul.f32 %v551_v55, %v532_v60 }
 0x1d1   :  { %v564_v0 = vcombine.low %v556_v59, %v557_v62 }
 0x1d2   :  { %v565_v1 = vcombine.low %v558_v61, %v559_v63 }
 0x1d3   :  { %568 = vst [vmem:[%s714_s8] sm:$0xff] %v564_v0 }
 0x1d4   :  { %569 = vst [vmem:[%s714_s8 + $0x8] sm:$0xff] %v565_v1 }

// kernel: mul.28
= control target key start
LH: loop header
LB: loop body
LE: loop exit
PB: predicated region body
PF: predicated region fallthrough
CT: control target
= control target key end

     0   :  { %s100_s0 = inlined_call_operand.vmem [shape: f32[1,512], index: 0, kind: input, shape index: {}]   ;;  %s101_s1 = inlined_call_operand.vmem [shape: f32[1,512], index: 1, kind: input, shape index: {}]   ;;  %s102_s2 = inlined_call_operand.vmem [shape: f32[1,512], index: 2, kind: output, shape index: {}]  }
   0x1   :  { %v3_v0 = vld [vmem:[%s100_s0] sm:$0x1]  ;;  %v40_v2 = vld [vmem:[%s100_s0 + $0x1] sm:$0x1]  ;;  %v43_v5 = vld [vmem:[%s100_s0 + $0x2] sm:$0x1] }
   0x2   :  { %v4_v1 = vld [vmem:[%s101_s1] sm:$0x1]  ;;  %v41_v4 = vld [vmem:[%s101_s1 + $0x1] sm:$0x1]  ;;  %v44_v6 = vld [vmem:[%s101_s1 + $0x2] sm:$0x1] }
   0x3   :  { %v7_v3 = vmul.f32 %v4_v1, %v3_v0  ;;  %v16_v7 = vmul.f32 %v41_v4, %v40_v2  ;;  %v26_v8 = vmul.f32 %v44_v6, %v43_v5  ;;  %v46_v9 = vld [vmem:[%s100_s0 + $0x3] sm:$0x1] }
   0x4   :  { %v47_v10 = vld [vmem:[%s101_s1 + $0x3] sm:$0x1] }
   0x5   :  { %9 = vst [vmem:[%s102_s2] sm:$0x1] %v7_v3  ;;  %v36_v11 = vmul.f32 %v47_v10, %v46_v9  ;;  %42 = vst [vmem:[%s102_s2 + $0x1] sm:$0x1] %v16_v7 }
   0x6   :  { %45 = vst [vmem:[%s102_s2 + $0x2] sm:$0x1] %v26_v8 }
   0x7   :  { %48 = vst [vmem:[%s102_s2 + $0x3] sm:$0x1] %v36_v11 }

// kernel: score_network_a_forward.11
= control target key start
LH: loop header
LB: loop body
LE: loop exit
PB: predicated region body
PF: predicated region fallthrough
CT: control target
= control target key end

     0   :  { %vm66_vm0 = vcmask 1042432   ;;  %v1410_v2 = vmov 0.0   ;;  %v1411_v3 = vmov 1983009808   ;;  %v246_v5 = vlaneseq  ;;  %s1748_s1 = inlined_call_operand.vmem [shape: f32[3,512], index: 1, kind: input, shape index: {}]   ;;  %s1749_s5 = inlined_call_operand.vmem [shape: f32[18,3], index: 5, kind: input, shape index: {}]   ;;  %s1750_s0 = inlined_call_operand.vmem [shape: f32[2,512], index: 0, kind: input, shape index: {}]   ;;  %s1751_s11 = inlined_call_operand.<no memory space> [shape: f32[1,1], index: 11, kind: input, shape index: {}]   ;;  %s1752_s7 = inlined_call_operand.vmem [shape: f32[18,1], index: 7, kind: input, shape index: {}]   ;;  %s1753_s2 = inlined_call_operand.vmem [shape: f32[4,512], index: 2, kind: input, shape index: {}]   ;;  %s1754_s4 = inlined_call_operand.vmem [shape: f32[18,2], index: 4, kind: input, shape index: {}]   ;;  %s1755_s9 = inlined_call_operand.vmem [shape: f32[18,1], index: 9, kind: input, shape index: {}]   ;;  %s1756_s6 = inlined_call_operand.vmem [shape: f32[18,4], index: 6, kind: input, shape index: {}]   ;;  %s1757_s8 = inlined_call_operand.vmem [shape: f32[18,18], index: 8, kind: input, shape index: {}]   ;;  %s1758_s10 = inlined_call_operand.vmem [shape: f32[1,18], index: 10, kind: input, shape index: {}]   ;;  %s1759_s3 = inlined_call_operand.vmem [shape: f32[1,512], index: 3, kind: input, shape index: {}]   ;;  %s1760_s12 = inlined_call_operand.vmem [shape: f32[1,512], index: 12, kind: output, shape index: {}]  }
   0x1   :  { %v50_v0 = vld [vmem:[%s1748_s1] sm:$0x77]  ;;  %v51_v1 = vld [vmem:[%s1748_s1 + $0x8] sm:$0x77]  ;;  %139 = vmatprep.mubr.f32.mxu0 %v1410_v2  ;;  %222 = vmatprep.mubr.f32.mxu1 %v1410_v2  ;;  %v244_v4 = vunpack.c.l.s4 %v1411_v3  ;;  %v17_v6 = vstv %s1751_s11  ;;  %vm56_vm1 = vcmask 23552   ;;  %vm269_vm2 = vcmask 1041408  }
   0x2   :  { %v54_v7 = vcombine.high %v50_v0, %v50_v0  ;;  %v55_v8 = vcombine.high %v51_v1, %v51_v1  ;;  %v46_v9 = vld [vmem:[%s1750_s0] sm:$0xff]  ;;  %18 = vst [vmem:[#allocation2] sm:$0x1] %v17_v6  ;;  %v1497_v12 = vshrl.u32 %v246_v5, 7  ;;  %v652_v16 = vld [vmem:[%s1752_s7 + $0x10] sm:$0x3] }
   0x3   :  { %v47_v10 = vld [vmem:[%s1749_s5] sm:$0xff]  ;;  %v245_v11 = vunpack.c.0.s8 %v244_v4  ;;  %v242_v13 = vcombine.high %v46_v9, %v46_v9  ;;  %v48_v17 = vld [vmem:[%s1749_s5 + $0x8] sm:$0xff]  ;;  %v1412_v20 = vmov 0   ;;  %v49_v25 = vld [vmem:[%s1749_s5 + $0x10] sm:$0x3]  ;;  %vm463_vm3 = vcmask 1043456  }
   0x4   :  { %1241 = vmatprep.subr.msk.mxu0 %vm66_vm0, %v54_v7  ;;  %1246 = vmatprep.subr.msk.mxu1 %vm66_vm0, %v55_v8  ;;  %v650_v15 = vld [vmem:[%s1752_s7] sm:$0xff]  ;;  %v448_v24 = vld [vmem:[%s1753_s2 + $0x8] sm:$0xff]  ;;  %vm259_vm4 = vcmask 15360   ;;  %v745_v32 = vld [vmem:[%s1755_s9 + $0x10] sm:$0x3]  ;;  %vm453_vm5 = vcmask 31744  }
   0x5   :  { %1242 = vmatpush1.msk.msra.mxu0 %vm66_vm0, %v50_v0  ;;  %1247 = vmatpush1.msk.msra.mxu1 %vm66_vm0, %v51_v1  ;;  %v248_v14 = vsub.s32 %v245_v11, %v1497_v12  ;;  %v447_v23 = vld [vmem:[%s1753_s2] sm:$0xff]  ;;  %v452_v27 = vcombine.high %v448_v24, %v448_v24  ;;  %v651_v28 = vld [vmem:[%s1752_s7 + $0x8] sm:$0xff]  ;;  %v45_v35 = vld [vmem:[%s1754_s4 + $0x10] sm:$0x3] }
   0x6   :  { %1243 = vmatmul.mubr.msk.f32.vlgmr.msra.gmra.mrb[0].mxu0 %vm56_vm1, %v47_v10  ;;  %1248 = vmatmul.mubr.msk.f32.vlgmr.msra.gmra.mrb[0].mxu1 %vm56_vm1, %v47_v10  ;;  %v451_v26 = vcombine.high %v447_v23, %v447_v23  ;;  %v743_v29 = vld [vmem:[%s1755_s9] sm:$0xff]  ;;  %v744_v31 = vld [vmem:[%s1755_s9 + $0x8] sm:$0xff]  ;;  %v446_v38 = vld [vmem:[%s1756_s6 + $0x10] sm:$0x3] }
   0x7   :  { %145 = vmatprep.mubr.f32.mxu0 %v1410_v2  ;;  %228 = vmatprep.mubr.f32.mxu1 %v1410_v2  ;;  %v249_v18 = vrot.slane %v46_v9, %v248_v14  ;;  %v256_v19 = vrot.slane %v242_v13, %v248_v14  ;;  %v43_v30 = vld [vmem:[%s1754_s4] sm:$0xff]  ;;  %v44_v33 = vld [vmem:[%s1754_s4 + $0x8] sm:$0xff] }
   0x8   :  { %1355 = vset.pattern.permute.xlu0 %v1412_v20  ;;  %1356 = vset.pattern.permute.xlu1 %v1412_v20  ;;  %v444_v36 = vld [vmem:[%s1756_s6] sm:$0xff]  ;;  %v445_v37 = vld [vmem:[%s1756_s6 + $0x8] sm:$0xff] }
   0x9   :  { %v257_v21 = vcombine.high %v249_v18, %v249_v18  ;;  %v258_v22 = vcombine.high %v256_v19, %v256_v19  ;;  %655 = vperm.xlu0 %1355, %v650_v15   ;;  %665 = vperm.xlu1 %1356, %v652_v16   ;;  %v1010_v34 = vld [vmem:[#allocation2] sm:$0x1] }
   0xa   :  { %1244 = vmatmul.mubr.msk.f32.gmra.mrb[2].mxu0 %vm56_vm1, %v48_v17  ;;  %1249 = vmatmul.mubr.msk.f32.gmra.mrb[2].mxu1 %vm56_vm1, %v48_v17 }
   0xb   :  { %1251 = vmatprep.subr.msk.mxu0 %vm269_vm2, %v257_v21  ;;  %1256 = vmatprep.subr.msk.mxu1 %vm269_vm2, %v258_v22 }
   0xc   :  { %151 = vmatprep.mubr.f32.mxu0 %v1410_v2  ;;  %234 = vmatprep.mubr.f32.mxu1 %v1410_v2 }
   0xd   :  { %1252 = vmatpush1.msk.msra.mxu0 %vm269_vm2, %v249_v18  ;;  %1257 = vmatpush1.msk.msra.mxu1 %vm269_vm2, %v256_v19 }
   0xe   :  { %1245 = vmatmul.mubr.msk.f32.gmra.mrb[4].mxu0 %vm56_vm1, %v49_v25  ;;  %1250 = vmatmul.mubr.msk.f32.gmra.mrb[4].mxu1 %vm56_vm1, %v49_v25  ;;  %vm761_vm1 = vcmask 146432  }
   0xf   :  { %342 = vmatprep.mubr.f32.mxu0 %v1410_v2  ;;  %425 = vmatprep.mubr.f32.mxu1 %v1410_v2 }
  0x10   :  { %1261 = vmatprep.subr.msk.mxu0 %vm463_vm3, %v451_v26  ;;  %1266 = vmatprep.subr.msk.mxu1 %vm463_vm3, %v452_v27 }
  0x11   :  { %660 = vperm.xlu0 %1355, %v651_v28   ;;  %748 = vperm.xlu1 %1356, %v743_v29  }
  0x12   :  { %1253 = vmatmul.mubr.msk.f32.vlgmr.msra.gmra.mrb[0].mxu0 %vm259_vm4, %v43_v30  ;;  %1258 = vmatmul.mubr.msk.f32.vlgmr.msra.gmra.mrb[0].mxu1 %vm259_vm4, %v43_v30 }
  0x13   :  { %348 = vmatprep.mubr.f32.mxu0 %v1410_v2  ;;  %431 = vmatprep.mubr.f32.mxu1 %v1410_v2 }
  0x14   :  { %1262 = vmatpush1.msk.msra.mxu0 %vm463_vm3, %v447_v23  ;;  %1267 = vmatpush1.msk.msra.mxu1 %vm463_vm3, %v448_v24 }
  0x15   :  { %753 = vperm.xlu0 %1355, %v744_v31   ;;  %758 = vperm.xlu1 %1356, %v745_v32  }
  0x16   :  { %1254 = vmatmul.mubr.msk.f32.gmra.mrb[2].mxu0 %vm259_vm4, %v44_v33  ;;  %1259 = vmatmul.mubr.msk.f32.gmra.mrb[2].mxu1 %vm259_vm4, %v44_v33 }
  0x17   :  { %354 = vmatprep.mubr.f32.mxu0 %v1410_v2  ;;  %437 = vmatprep.mubr.f32.mxu1 %v1410_v2 }
  0x19   :  { %1013 = vperm.xlu0 %1355, %v1010_v34  }
  0x1a   :  { %1255 = vmatmul.mubr.msk.f32.gmra.mrb[4].mxu0 %vm259_vm4, %v45_v35  ;;  %1260 = vmatmul.mubr.msk.f32.gmra.mrb[4].mxu1 %vm259_vm4, %v45_v35 }
  0x1b   :  { %536 = vmatprep.mubr.f32.mxu0 %v1410_v2  ;;  %619 = vmatprep.mubr.f32.mxu1 %v1410_v2 }
  0x1e   :  { %1263 = vmatmul.mubr.msk.f32.vlgmr.msra.gmra.mrb[0].mxu0 %vm453_vm5, %v444_v36  ;;  %1268 = vmatmul.mubr.msk.f32.vlgmr.msra.gmra.mrb[0].mxu1 %vm453_vm5, %v444_v36 }
  0x1f   :  { %542 = vmatprep.mubr.f32.mxu0 %v1410_v2  ;;  %625 = vmatprep.mubr.f32.mxu1 %v1410_v2 }
  0x22   :  { %1264 = vmatmul.mubr.msk.f32.gmra.mrb[2].mxu0 %vm453_vm5, %v445_v37  ;;  %1269 = vmatmul.mubr.msk.f32.gmra.mrb[2].mxu1 %vm453_vm5, %v445_v37 }
  0x23   :  { %548 = vmatprep.mubr.f32.mxu0 %v1410_v2  ;;  %631 = vmatprep.mubr.f32.mxu1 %v1410_v2 }
  0x26   :  { %1265 = vmatmul.mubr.msk.f32.gmra.mrb[4].mxu0 %vm453_vm5, %v446_v38  ;;  %1270 = vmatmul.mubr.msk.f32.gmra.mrb[4].mxu1 %vm453_vm5, %v446_v38 }
  0x27   :  { %847 = vmatprep.mubr.f32.mxu0 %v1410_v2  ;;  %930 = vmatprep.mubr.f32.mxu1 %v1410_v2 }
  0x88   :  { %v656_v39 = vpop.permute.xlu0 %655  ;;  %v666_v0 = vpop.permute.xlu1 %665 }
  0x90   :  { %v661_v50 = vpop.permute.xlu0 %660 }
  0xf1   :  { %v538_v40 = vpop.f32.mrb[0].mxu0  ;;  %v621_v41 = vpop.f32.mrb[0].mxu1 }
  0xf2   :  { %v1590_v42 = vadd.f32 %v656_v39, %v538_v40  ;;  %v1592_v43 = vadd.f32 %v656_v39, %v621_v41  ;;  %v540_v44 = vpop.f32.mrb[1].mxu0  ;;  %v623_v45 = vpop.f32.mrb[1].mxu1 }
  0xf3   :  { %v1594_v46 = vadd.f32 %v656_v39, %v540_v44  ;;  %v1596_v47 = vadd.f32 %v656_v39, %v623_v45 }
  0xf4   :  { %v692_v48 = vmul.f32 1.442695, %v1590_v42  ;;  %v696_v49 = vmul.f32 1.442695, %v1592_v43  ;;  %vm680_vm6 = vcmp.gt.f32.partialorder %v1590_v42, 0.0  ;;  %vm682_vm7 = vcmp.gt.f32.partialorder %v1592_v43, 0.0 }
  0xf5   :  { %v694_v51 = vmul.f32 1.442695, %v1594_v46  ;;  %v698_v52 = vmul.f32 1.442695, %v1596_v47  ;;  %v544_v53 = vpop.f32.mrb[2].mxu0  ;;  %v627_v54 = vpop.f32.mrb[2].mxu1 }
  0xf6   :  { %1362 = vpow2.f32 %v692_v48  ;;  %v672_v55 = vadd.f32 %v661_v50, %v544_v53  ;;  %v674_v56 = vadd.f32 %v661_v50, %v627_v54  ;;  %v546_v57 = vpop.f32.mrb[3].mxu0  ;;  %v629_v58 = vpop.f32.mrb[3].mxu1  ;;  %vm681_vm8 = vcmp.gt.f32.partialorder %v1594_v46, 0.0 }
  0xf7   :  { %1364 = vpow2.f32 %v696_v49  ;;  %v1602_v59 = vadd.f32 %v661_v50, %v546_v57  ;;  %v1604_v60 = vadd.f32 %v661_v50, %v629_v58  ;;  %vm683_vm9 = vcmp.gt.f32.partialorder %v1596_v47, 0.0  ;;  %v741_v58 = vld [vmem:[%s1757_s8 + $0x8] sm:$0xff] }
  0xf8   :  { %1366 = vpow2.f32 %v694_v51  ;;  %v700_v61 = vmul.f32 1.442695, %v672_v55  ;;  %v704_v1 = vmul.f32 1.442695, %v674_v56  ;;  %vm684_vm10 = vcmp.gt.f32.partialorder %v672_v55, 0.0 }
  0xf9   :  { %v550_v62 = vpop.f32.mrb[4].mxu0  ;;  %v633_v63 = vpop.f32.mrb[4].mxu1  ;;  %1368 = vpow2.f32 %v698_v52  ;;  %v702_v3 = vmul.f32 1.442695, %v1602_v59  ;;  %v706_v4 = vmul.f32 1.442695, %v1604_v60 }
  0xfa   :  { %1370 = vpow2.f32 %v700_v61  ;;  %v1608_v6 = vadd.f32 %v666_v0, %v550_v62  ;;  %v1610_v7 = vadd.f32 %v666_v0, %v633_v63  ;;  %v552_v8 = vpop.f32.mrb[5].mxu0  ;;  %v635_v9 = vpop.f32.mrb[5].mxu1  ;;  %vm686_vm11 = vcmp.gt.f32.partialorder %v674_v56, 0.0 }
  0xfb   :  { %1372 = vpow2.f32 %v704_v1  ;;  %v1612_v10 = vadd.f32 %v666_v0, %v552_v8  ;;  %v1614_v11 = vadd.f32 %v666_v0, %v635_v9  ;;  %vm685_vm12 = vcmp.gt.f32.partialorder %v1602_v59, 0.0  ;;  %v754_v8 = vpop.permute.xlu0 %753 }
  0xfc   :  { %1374 = vpow2.f32 %v702_v3  ;;  %v708_v13 = vmul.f32 1.442695, %v1608_v6  ;;  %v712_v14 = vmul.f32 1.442695, %v1610_v7  ;;  %vm687_vm13 = vcmp.gt.f32.partialorder %v1604_v60, 0.0 }
  0xfd   :  { %1376 = vpow2.f32 %v706_v4  ;;  %v710_v15 = vmul.f32 1.442695, %v1612_v10  ;;  %v714_v16 = vmul.f32 1.442695, %v1614_v11  ;;  %vm689_vm14 = vcmp.gt.f32.partialorder %v1612_v10, 0.0 }
  0xfe   :  { %1378 = vpow2.f32 %v708_v13  ;;  %vm691_vm15 = vcmp.gt.f32.partialorder %v1614_v11, 0.0  ;;  %vm688_vm0 = vcmp.gt.f32.partialorder %v1608_v6, 0.0  ;;  %vm690_vm3 = vcmp.gt.f32.partialorder %v1610_v7, 0.0 }
  0xff   :  { %1380 = vpow2.f32 %v712_v14 }
 0x100   :  { %v1363_v17 = vpop.eup %1362  ;;  %1382 = vpow2.f32 %v710_v15 }
 0x101   :  { %v1365_v18 = vpop.eup %1364  ;;  %1384 = vpow2.f32 %v714_v16  ;;  %v1271_v21 = vadd.f32 -1.0, %v1363_v17 }
 0x102   :  { %v1367_v19 = vpop.eup %1366  ;;  %v1273_v23 = vadd.f32 -1.0, %v1365_v18 }
 0x103   :  { %v1369_v20 = vpop.eup %1368  ;;  %v1272_v25 = vadd.f32 -1.0, %v1367_v19  ;;  %v728_v31 = vsel %vm680_vm6, %v1590_v42, %v1271_v21 }
 0x104   :  { %v1371_v22 = vpop.eup %1370  ;;  %v1274_v28 = vadd.f32 -1.0, %v1369_v20  ;;  %v730_v35 = vsel %vm682_vm7, %v1592_v43, %v1273_v23 }
 0x105   :  { %v1373_v24 = vpop.eup %1372  ;;  %v1275_v26 = vadd.f32 -1.0, %v1371_v22  ;;  %v729_v41 = vsel %vm681_vm8, %v1594_v46, %v1272_v25 }
 0x106   :  { %v1375_v27 = vpop.eup %1374  ;;  %v1277_v29 = vadd.f32 -1.0, %v1373_v24  ;;  %v731_v48 = vsel %vm683_vm9, %v1596_v47, %v1274_v28 }
 0x107   :  { %v1377_v30 = vpop.eup %1376  ;;  %v732_v32 = vsel %vm684_vm10, %v672_v55, %v1275_v26  ;;  %v1276_v33 = vadd.f32 -1.0, %v1375_v27  ;;  %v740_v55 = vld [vmem:[%s1757_s8] sm:$0xff] }
 0x108   :  { %v1379_v34 = vpop.eup %1378  ;;  %v1313_v36 = vpack.c.bf16 %v732_v32, %v728_v31  ;;  %v734_v37 = vsel %vm686_vm11, %v674_v56, %v1277_v29  ;;  %v1278_v38 = vadd.f32 -1.0, %v1377_v30 }
 0x109   :  { %v1381_v39 = vpop.eup %1380  ;;  %v1317_v40 = vpack.c.bf16 %v734_v37, %v730_v35  ;;  %v733_v42 = vsel %vm685_vm12, %v1602_v59, %v1276_v33  ;;  %v1279_v52 = vadd.f32 -1.0, %v1379_v34  ;;  %v742_v59 = vld [vmem:[%s1757_s8 + $0x10] sm:$0x3] }
 0x10a   :  { %v1383_v44 = vpop.eup %1382  ;;  %v1311_v45 = vpack.c.bf16 %v733_v42, %v729_v41  ;;  %v735_v43 = vsel %vm687_vm13, %v1604_v60, %v1278_v38  ;;  %v1281_v54 = vadd.f32 -1.0, %v1381_v39  ;;  %v749_v60 = vpop.permute.xlu1 %748 }
 0x10b   :  { %v1385_v49 = vpop.eup %1384  ;;  %v1315_v50 = vpack.c.bf16 %v735_v43, %v731_v48  ;;  %v1280_v51 = vadd.f32 -1.0, %v1383_v44  ;;  %v736_v56 = vsel %vm688_vm0, %v1608_v6, %v1279_v52 }
 0x10c   :  { %1312 = vmatprep.subr.bf16.mxu0 %v1311_v45  ;;  %v1282_v53 = vadd.f32 -1.0, %v1385_v49  ;;  %v738_v57 = vsel %vm690_vm3, %v1610_v7, %v1281_v54 }
 0x10d   :  { %1316 = vmatprep.subr.bf16.mxu1 %v1315_v50  ;;  %1314 = vmatpush1.bf16.msra.mxu0 %v1313_v36  ;;  %v737_v46 = vsel %vm689_vm14, %v1612_v10, %v1280_v51 }
 0x10e   :  { %1318 = vmatpush1.bf16.msra.mxu1 %v1317_v40  ;;  %1283 = vmatprep.subr.msk.mxu0 %vm269_vm2, %v737_v46  ;;  %v739_v47 = vsel %vm691_vm15, %v1614_v11, %v1282_v53  ;;  %v759_v22 = vpop.permute.xlu1 %758 }
 0x10f   :  { %1288 = vmatprep.subr.msk.mxu1 %vm269_vm2, %v739_v47 }
 0x111   :  { %1284 = vmatpush1.msk.msra.mxu0 %vm269_vm2, %v736_v56 }
 0x112   :  { %1289 = vmatpush1.msk.msra.mxu1 %vm269_vm2, %v738_v57  ;;  %1285 = vmatmul.mubr.msk.f32.vlgmr.msra.gmra.mrb[6].mxu0 %vm761_vm1, %v740_v55 }
 0x113   :  { %1290 = vmatmul.mubr.msk.f32.vlgmr.msra.gmra.mrb[6].mxu1 %vm761_vm1, %v740_v55  ;;  %853 = vmatprep.mubr.f32.mxu0 %v1410_v2 }
 0x114   :  { %936 = vmatprep.mubr.f32.mxu1 %v1410_v2 }
 0x116   :  { %1286 = vmatmul.mubr.msk.f32.gmra.mrb[8].mxu0 %vm761_vm1, %v741_v58 }
 0x117   :  { %1291 = vmatmul.mubr.msk.f32.gmra.mrb[8].mxu1 %vm761_vm1, %v741_v58  ;;  %859 = vmatprep.mubr.f32.mxu0 %v1410_v2 }
 0x118   :  { %942 = vmatprep.mubr.f32.mxu1 %v1410_v2 }
 0x11a   :  { %1287 = vmatmul.mubr.msk.f32.gmra.mrb[10].mxu0 %vm761_vm1, %v742_v59 }
 0x11b   :  { %1292 = vmatmul.mubr.msk.f32.gmra.mrb[10].mxu1 %vm761_vm1, %v742_v59  ;;  %1099 = vmatprep.mubr.f32.mxu0 %v1410_v2 }
 0x11c   :  { %1170 = vmatprep.mubr.f32.mxu1 %v1410_v2 }
 0x1e5   :  { %v849_v61 = vpop.f32.mrb[6].mxu0 }
 0x1e6   :  { %v1671_v62 = vadd.f32 %v849_v61, %v749_v60  ;;  %v932_v63 = vpop.f32.mrb[6].mxu1  ;;  %v851_v0 = vpop.f32.mrb[7].mxu0 }
 0x1e7   :  { %v1673_v1 = vadd.f32 %v932_v63, %v749_v60  ;;  %v1675_v3 = vadd.f32 %v851_v0, %v749_v60  ;;  %v934_v4 = vpop.f32.mrb[7].mxu1 }
 0x1e8   :  { %v961_v6 = vmul.f32 1.442695, %v1671_v62  ;;  %v1678_v7 = vadd.f32 %v934_v4, %v749_v60  ;;  %vm949_vm4 = vcmp.gt.f32.partialorder %v1671_v62, 0.0 }
 0x1e9   :  { %v965_v9 = vmul.f32 1.442695, %v1673_v1  ;;  %v963_v2 = vmul.f32 1.442695, %v1675_v3  ;;  %v855_v11 = vpop.f32.mrb[8].mxu0  ;;  %vm951_vm5 = vcmp.gt.f32.partialorder %v1673_v1, 0.0 }
 0x1ea   :  { %v967_v10 = vmul.f32 1.442695, %v1678_v7  ;;  %v938_v13 = vpop.f32.mrb[8].mxu1  ;;  %1386 = vpow2.f32 %v961_v6  ;;  %v856_v14 = vadd.f32 %v855_v11, %v754_v8  ;;  %v857_v16 = vpop.f32.mrb[9].mxu0  ;;  %vm950_vm6 = vcmp.gt.f32.partialorder %v1675_v3, 0.0 }
 0x1eb   :  { %v939_v15 = vadd.f32 %v938_v13, %v754_v8  ;;  %v940_v17 = vpop.f32.mrb[9].mxu1  ;;  %1388 = vpow2.f32 %v965_v9  ;;  %v1683_v18 = vadd.f32 %v857_v16, %v754_v8  ;;  %vm952_vm7 = vcmp.gt.f32.partialorder %v1678_v7, 0.0  ;;  %v1009_v13 = vld [vmem:[%s1758_s10] sm:$0x1] }
 0x1ec   :  { %v1685_v19 = vadd.f32 %v940_v17, %v754_v8  ;;  %1390 = vpow2.f32 %v963_v2  ;;  %v969_v20 = vmul.f32 1.442695, %v856_v14  ;;  %vm953_vm8 = vcmp.gt.f32.partialorder %v856_v14, 0.0  ;;  %v1014_v17 = vpop.permute.xlu0 %1013 }
 0x1ed   :  { %v861_v21 = vpop.f32.mrb[10].mxu0  ;;  %1392 = vpow2.f32 %v967_v10  ;;  %v973_v23 = vmul.f32 1.442695, %v939_v15  ;;  %v971_v24 = vmul.f32 1.442695, %v1683_v18  ;;  %vm955_vm9 = vcmp.gt.f32.partialorder %v939_v15, 0.0 }
 0x1ee   :  { %1394 = vpow2.f32 %v969_v20  ;;  %v975_v25 = vmul.f32 1.442695, %v1685_v19  ;;  %v1689_v26 = vadd.f32 %v861_v21, %v759_v22  ;;  %v944_v27 = vpop.f32.mrb[10].mxu1  ;;  %v863_v28 = vpop.f32.mrb[11].mxu0  ;;  %vm954_vm10 = vcmp.gt.f32.partialorder %v1683_v18, 0.0 }
 0x1ef   :  { %1396 = vpow2.f32 %v973_v23  ;;  %v1691_v29 = vadd.f32 %v944_v27, %v759_v22  ;;  %v1693_v30 = vadd.f32 %v863_v28, %v759_v22  ;;  %v946_v31 = vpop.f32.mrb[11].mxu1  ;;  %vm956_vm11 = vcmp.gt.f32.partialorder %v1685_v19, 0.0 }
 0x1f0   :  { %1398 = vpow2.f32 %v971_v24  ;;  %v977_v32 = vmul.f32 1.442695, %v1689_v26  ;;  %v1696_v33 = vadd.f32 %v946_v31, %v759_v22  ;;  %vm957_vm14 = vcmp.gt.f32.partialorder %v1689_v26, 0.0 }
 0x1f1   :  { %1400 = vpow2.f32 %v975_v25  ;;  %v981_v34 = vmul.f32 1.442695, %v1691_v29  ;;  %v979_v35 = vmul.f32 1.442695, %v1693_v30  ;;  %vm958_vm12 = vcmp.gt.f32.partialorder %v1693_v30, 0.0 }
 0x1f2   :  { %1402 = vpow2.f32 %v977_v32  ;;  %v983_v36 = vmul.f32 1.442695, %v1696_v33  ;;  %vm960_vm13 = vcmp.gt.f32.partialorder %v1696_v33, 0.0  ;;  %vm959_vm15 = vcmp.gt.f32.partialorder %v1691_v29, 0.0 }
 0x1f3   :  { %1404 = vpow2.f32 %v981_v34  ;;  %v1018_v16 = vsub.s32 0, %v1497_v12  ;;  %v1185_v20 = vsub.s32 1, %v1497_v12  ;;  %v1413_v21 = vmov 1966171168  }
 0x1f4   :  { %v1387_v37 = vpop.eup %1386  ;;  %1406 = vpow2.f32 %v979_v35  ;;  %v1210_v22 = vunpack.c.l.s4 %v1413_v21  ;;  %v1193_v23 = vsub.s32 3, %v1497_v12 }
 0x1f5   :  { %v1389_v38 = vpop.eup %1388  ;;  %1408 = vpow2.f32 %v983_v36  ;;  %v1293_v41 = vadd.f32 -1.0, %v1387_v37  ;;  %v1019_v24 = vrot.slane %v1014_v17, %v1018_v16 }
 0x1f6   :  { %v1391_v39 = vpop.eup %1390  ;;  %v1295_v44 = vadd.f32 -1.0, %v1389_v38 }
 0x1f7   :  { %v1393_v40 = vpop.eup %1392  ;;  %v1294_v48 = vadd.f32 -1.0, %v1391_v39  ;;  %v997_v53 = vsel %vm949_vm4, %v1671_v62, %v1293_v41 }
 0x1f8   :  { %v1395_v42 = vpop.eup %1394  ;;  %v1296_v50 = vadd.f32 -1.0, %v1393_v40  ;;  %v999_v55 = vsel %vm951_vm5, %v1673_v1, %v1295_v44 }
 0x1f9   :  { %v1397_v45 = vpop.eup %1396  ;;  %v1297_v43 = vadd.f32 -1.0, %v1395_v42  ;;  %v998_v61 = vsel %vm950_vm6, %v1675_v3, %v1294_v48 }
 0x1fa   :  { %v1399_v49 = vpop.eup %1398  ;;  %v1299_v51 = vadd.f32 -1.0, %v1397_v45  ;;  %v1000_v4 = vsel %vm952_vm7, %v1678_v7, %v1296_v50 }
 0x1fb   :  { %v1401_v52 = vpop.eup %1400  ;;  %v1001_v54 = vsel %vm953_vm8, %v856_v14, %v1297_v43  ;;  %v1298_v46 = vadd.f32 -1.0, %v1399_v49 }
 0x1fc   :  { %v1403_v47 = vpop.eup %1402  ;;  %v1321_v56 = vpack.c.bf16 %v1001_v54, %v997_v53  ;;  %v1003_v57 = vsel %vm955_vm9, %v939_v15, %v1299_v51  ;;  %v1300_v58 = vadd.f32 -1.0, %v1401_v52 }
 0x1fd   :  { %v1405_v59 = vpop.eup %1404  ;;  %v1325_v60 = vpack.c.bf16 %v1003_v57, %v999_v55  ;;  %v1002_v62 = vsel %vm954_vm10, %v1683_v18, %v1298_v46  ;;  %v1301_v2 = vadd.f32 -1.0, %v1403_v47  ;;  %v1177_v18 = vld [vmem:[%s1759_s3] sm:$0xf] }
 0x1fe   :  { %v1407_v63 = vpop.eup %1406  ;;  %v1319_v0 = vpack.c.bf16 %v1002_v62, %v998_v61  ;;  %v1004_v1 = vsel %vm956_vm11, %v1685_v19, %v1300_v58  ;;  %v1303_v11 = vadd.f32 -1.0, %v1405_v59  ;;  %v1189_v19 = vsub.s32 2, %v1497_v12 }
 0x1ff   :  { %v1409_v6 = vpop.eup %1408  ;;  %v1323_v8 = vpack.c.bf16 %v1004_v1, %v1000_v4  ;;  %v1302_v9 = vadd.f32 -1.0, %v1407_v63  ;;  %v1005_v14 = vsel %vm957_vm14, %v1689_v26, %v1301_v2  ;;  %v1182_v25 = vrot.slane %v1177_v18, %v1018_v16 }
 0x200   :  { %1320 = vmatprep.subr.bf16.mxu0 %v1319_v0  ;;  %v1304_v10 = vadd.f32 -1.0, %v1409_v6  ;;  %v1007_v15 = vsel %vm959_vm15, %v1691_v29, %v1303_v11  ;;  %v1190_v27 = vrot.slane %v1177_v18, %v1189_v19  ;;  %v1186_v28 = vrot.slane %v1177_v18, %v1185_v20 }
 0x201   :  { %1324 = vmatprep.subr.bf16.mxu1 %v1323_v8  ;;  %1322 = vmatpush1.bf16.msra.mxu0 %v1321_v56  ;;  %v1006_v3 = vsel %vm958_vm12, %v1693_v30, %v1302_v9  ;;  %v1211_v29 = vunpack.c.0.s8 %v1210_v22 }
 0x202   :  { %1326 = vmatpush1.bf16.msra.mxu1 %v1325_v60  ;;  %1305 = vmatprep.subr.msk.mxu0 %vm269_vm2, %v1006_v3  ;;  %v1008_v7 = vsel %vm960_vm13, %v1696_v33, %v1304_v10  ;;  %v1194_v33 = vrot.slane %v1177_v18, %v1193_v23 }
 0x203   :  { %1308 = vmatprep.subr.msk.mxu1 %vm269_vm2, %v1008_v7  ;;  %v1214_v41 = vsub.s32 %v1211_v29, %v1497_v12 }
 0x205   :  { %1306 = vmatpush1.msk.msra.mxu0 %vm269_vm2, %v1005_v14 }
 0x206   :  { %1309 = vmatpush1.msk.msra.mxu1 %vm269_vm2, %v1007_v15  ;;  %1307 = vmatmul.mubr.msk.f32.vlgmr.msra.gmra.mrb[12].mxu0 %vm761_vm1, %v1009_v13  ;;  %vm1234_vm2 = vcmp.lt.s32.totalorder %v246_v5, 512 }
 0x207   :  { %1310 = vmatmul.mubr.msk.f32.vlgmr.msra.gmra.mrb[12].mxu1 %vm761_vm1, %v1009_v13 }
 0x2d9   :  { %v1101_v26 = vpop.f32.mrb[12].mxu0 }
 0x2da   :  { %v1102_v30 = vadd.f32 %v1101_v26, %v1019_v24  ;;  %v1172_v31 = vpop.f32.mrb[12].mxu1  ;;  %v1103_v32 = vpop.f32.mrb[13].mxu0 }
 0x2db   :  { %v1173_v34 = vadd.f32 %v1172_v31, %v1019_v24  ;;  %v1104_v35 = vadd.f32 %v1103_v32, %v1019_v24  ;;  %v1174_v36 = vpop.f32.mrb[13].mxu1 }
 0x2dc   :  { %v1199_v37 = vmul.f32 %v1182_v25, %v1102_v30  ;;  %v1175_v38 = vadd.f32 %v1174_v36, %v1019_v24 }
 0x2dd   :  { %v1201_v39 = vmul.f32 %v1190_v27, %v1173_v34  ;;  %v1200_v40 = vmul.f32 %v1186_v28, %v1104_v35 }
 0x2de   :  { %v1202_v42 = vmul.f32 %v1194_v33, %v1175_v38 }
 0x2df   :  { %v1207_v44 = vcombine.low %v1199_v37, %v1200_v40 }
 0x2e0   :  { %v1208_v45 = vcombine.low %v1201_v39, %v1202_v42 }
 0x2e1   :  { %v1215_v48 = vrot.slane %v1207_v44, %v1214_v41 }
 0x2e2   :  { %v1222_v43 = vrot.slane %v1208_v45, %v1214_v41 }
 0x2e4   :  { %v1223_v49 = vcombine.low %v1215_v48, %v1222_v43 }
 0x2e6   :  { %v1230_v50 = vrot.slane %v1223_v49, %v1214_v41 }
 0x2e8   :  { %1236 = vst.msk [vmem:[%s1760_s12] sm:$0xf] %vm1234_vm2, %v1230_v50 }

// kernel: score_network_a_forward.9
= control target key start
LH: loop header
LB: loop body
LE: loop exit
PB: predicated region body
PF: predicated region fallthrough
CT: control target
= control target key end

     0   :  { %vm93_vm0 = vcmask 64512   ;;  %v51_v3 = vlaneseq  ;;  %vm70_vm1 = vcmask 130048   ;;  %s6350_s0 = inlined_call_operand.vmem [shape: f32[2,16,8], index: 0, kind: input, shape index: {}]   ;;  %s6351_s1 = inlined_call_operand.vmem [shape: f32[3,2,16,16], index: 1, kind: input, shape index: {}]   ;;  %s6352_s2 = inlined_call_operand.vmem [shape: f32[3,8,8], index: 2, kind: input, shape index: {}]   ;;  %s6353_s3 = inlined_call_operand.vmem [shape: f32[3,1,8], index: 3, kind: input, shape index: {}]   ;;  %s6354_s4 = inlined_call_operand.vmem [shape: f32[3,8,8], index: 4, kind: input, shape index: {}]   ;;  %s6355_s5 = inlined_call_operand.vmem [shape: f32[3,1,8], index: 5, kind: input, shape index: {}]   ;;  %s6356_s6 = inlined_call_operand.vmem [shape: f32[3,8,8], index: 6, kind: input, shape index: {}]   ;;  %s6357_s7 = inlined_call_operand.vmem [shape: f32[3,1,8], index: 7, kind: input, shape index: {}]   ;;  %s6358_s8 = inlined_call_operand.vmem [shape: f32[3,8,8], index: 8, kind: input, shape index: {}]   ;;  %s6359_s9 = inlined_call_operand.vmem [shape: f32[1,8], index: 9, kind: input, shape index: {}]   ;;  %s6360_s10 = inlined_call_operand.vmem [shape: f32[8,8], index: 10, kind: input, shape index: {}]   ;;  %s6361_s11 = inlined_call_operand.vmem [shape: f32[1,8], index: 11, kind: input, shape index: {}]   ;;  %s6362_s12 = inlined_call_operand.vmem [shape: f32[2,16,1], index: 12, kind: input, shape index: {}]   ;;  %s6363_s13 = inlined_call_operand.hbm [shape: f32[2,16,8], index: 13, kind: output, shape index: {0}]   ;;  %s6364_s14 = inlined_call_operand.vmem [shape: f32[3,2,16,16], index: 14, kind: output, shape index: {1}]  }
   0x1   :  { %v91_v0 = vld [vmem:[%s6352_s2] sm:$0xff]  ;;  %v5303_v2 = vld [vmem:[%s6350_s0 + $0x8] sm:$0xff]  ;;  %v5313_v5 = vld [vmem:[%s6350_s0 + $0x10] sm:$0xff] }
   0x2   :  { %v5298_v1 = vld [vmem:[%s6350_s0] sm:$0xff]  ;;  %4625 = vmatprep.subr.mxu0 %v91_v0  ;;  %v5318_v7 = vshrl.u32 %v51_v3, 7  ;;  %v55_v8 = vand.u32 127, %v51_v3  ;;  %v60_v10 = vld [vmem:[%s6351_s1 + $0x10] sm:$0xff]  ;;  %v5333_v11 = vld [vmem:[%s6350_s0 + $0x18] sm:$0xff] }
   0x3   :  { %4627 = vmatprep.mubr.msk.f32.mxu0 %vm93_vm0, %v5298_v1  ;;  %v371_v4 = vld [vmem:[%s6354_s4] sm:$0xff]  ;;  %4626 = vmatpush3.msra.mxu0 %v91_v0  ;;  %v59_v14 = vld [vmem:[%s6351_s1 + $0x8] sm:$0xff]  ;;  %v61_v15 = vld [vmem:[%s6351_s1 + $0x18] sm:$0xff] }
   0x4   :  { %v626_v6 = vld [vmem:[%s6356_s6] sm:$0xff]  ;;  %4628 = vmatmul.mubr.msk.f32.vlgmr.msra.gmra.mrb[0].mxu0 %vm93_vm0, %v5303_v2  ;;  %4647 = vmatprep.subr.mxu0 %v371_v4  ;;  %vm5336_vm2 = vcmp.eq.s32.totalorder %v5318_v7, %v55_v8  ;;  %v53_v13 = vadd.s32 8, %v5318_v7 }
   0x5   :  { %v58_v9 = vld [vmem:[%s6351_s1] sm:$0xff]  ;;  %4648 = vmatpush3.msra.mxu0 %v371_v4  ;;  %4630 = vmatprep.mubr.msk.f32.mxu0 %vm93_vm0, %v5313_v5  ;;  %v5353_v17 = vsel %vm5336_vm2, 1.0, %v60_v10 }
   0x6   :  { %4669 = vmatprep.subr.mxu0 %v626_v6  ;;  %v5349_v16 = vsel %vm5336_vm2, 1.0, %v58_v9  ;;  %v77_v19 = vsel %vm70_vm1, %v5353_v17, 0.0  ;;  %vm5359_vm3 = vcmp.eq.s32.totalorder %v53_v13, %v55_v8  ;;  %v4382_v21 = vld [vmem:[%s6351_s1 + $0x20] sm:$0xff] }
   0x7   :  { %v71_v18 = vsel %vm70_vm1, %v5349_v16, 0.0  ;;  %4637 = vmatprep.mubr.msk.f32.mxu1 %vm70_vm1, %v5349_v16 }
   0x8   :  { %20 = vsyncpa [#allocation3], 0  ;;  %4631 = vmatmul.mubr.msk.f32.gmra.mrb[2].mxu0 %vm93_vm0, %v5333_v11  ;;  %72 = vadd.xlane.f32.xlu0 %v71_v18  ;;  %v5372_v22 = vsel %vm5359_vm3, 1.0, %v59_v14  ;;  %v5376_v23 = vsel %vm5359_vm3, 1.0, %v61_v15  ;;  %v4383_v25 = vld [vmem:[%s6351_s1 + $0x28] sm:$0xff]  ;;  %v5387_v26 = vsel %vm5336_vm2, 1.0, %v4382_v21 }
   0x9   :  { %4649 = vmatprep.mubr.msk.f32.mxu0 %vm93_vm0, %v5298_v1  ;;  %78 = vadd.xlane.f32.xlu1 %v77_v19  ;;  %v74_v24 = vsel %vm70_vm1, %v5372_v22, 0.0  ;;  %v4386_v27 = vld [vmem:[%s6352_s2 + $0x8] sm:$0xff]  ;;  %v80_v28 = vsel %vm70_vm1, %v5376_v23, 0.0  ;;  %v4384_v29 = vld [vmem:[%s6351_s1 + $0x30] sm:$0xff]  ;;  %v5401_v30 = vsel %vm5359_vm3, 1.0, %v4383_v25  ;;  %v1343_v31 = vsel %vm70_vm1, %v5387_v26, 0.0 }
   0xa   :  { %v4385_v32 = vld [vmem:[%s6351_s1 + $0x38] sm:$0xff]  ;;  %v5412_v33 = vsel %vm5336_vm2, 1.0, %v4384_v29  ;;  %v1346_v34 = vsel %vm70_vm1, %v5401_v30, 0.0  ;;  %v4397_v37 = vld [vmem:[%s6354_s4 + $0x8] sm:$0xff]  ;;  %v4432_v41 = vld [vmem:[%s6351_s1 + $0x40] sm:$0xff]  ;;  %v6373_v47 = vmov 0  }
   0xb   :  { %v5420_v35 = vsel %vm5359_vm3, 1.0, %v4385_v32  ;;  %v1349_v36 = vsel %vm70_vm1, %v5412_v33, 0.0  ;;  %v4408_v39 = vld [vmem:[%s6356_s6 + $0x8] sm:$0xff]  ;;  %v4435_v42 = vld [vmem:[%s6351_s1 + $0x58] sm:$0xff]  ;;  %v5479_v44 = vsel %vm5336_vm2, 1.0, %v4432_v41  ;;  %v4434_v46 = vld [vmem:[%s6351_s1 + $0x50] sm:$0xff]  ;;  %4947 = vset.pattern.permute.xlu0 %v6373_v47  ;;  %4948 = vset.pattern.permute.xlu1 %v6373_v47 }
   0xc   :  { %4650 = vmatmul.mubr.msk.f32.vlgmr.msra.gmra.mrb[4].mxu0 %vm93_vm0, %v5303_v2  ;;  %75 = vadd.xlane.f32.xlu0 %v74_v24  ;;  %v1352_v38 = vsel %vm70_vm1, %v5420_v35, 0.0  ;;  %v4433_v40 = vld [vmem:[%s6351_s1 + $0x48] sm:$0xff]  ;;  %6396 = vst [vmem:[#allocation5_spill] sm:$0xff] %v5479_v44  ;;  %v5483_v45 = vsel %vm5359_vm3, 1.0, %v4435_v42  ;;  %v2804_v49 = vsel %vm70_vm1, %v5479_v44, 0.0  ;;  %v5496_v50 = vsel %vm5336_vm2, 1.0, %v4434_v46 }
   0xd   :  { %4670 = vmatpush3.msra.mxu0 %v626_v6  ;;  %4652 = vmatprep.mubr.msk.f32.mxu0 %vm93_vm0, %v5313_v5  ;;  %v5475_v43 = vsel %vm5359_vm3, 1.0, %v4433_v40  ;;  %v2813_v51 = vsel %vm70_vm1, %v5483_v45, 0.0  ;;  %v2810_v52 = vsel %vm70_vm1, %v5496_v50, 0.0  ;;  %v4299_v53 = vld [vmem:[%s6362_s12] sm:$0xff] }
   0xe   :  { %4691 = vmatprep.subr.mxu0 %v4386_v27  ;;  %81 = vadd.xlane.f32.xlu1 %v80_v28  ;;  %v2807_v48 = vsel %vm70_vm1, %v5475_v43, 0.0 }
  0x10   :  { %4653 = vmatmul.mubr.msk.f32.gmra.mrb[6].mxu0 %vm93_vm0, %v5333_v11  ;;  %1344 = vadd.xlane.f32.xlu0 %v1343_v31 }
  0x11   :  { %4671 = vmatprep.mubr.msk.f32.mxu0 %vm93_vm0, %v5298_v1 }
  0x12   :  { %1347 = vadd.xlane.f32.xlu1 %v1346_v34 }
  0x14   :  { %4672 = vmatmul.mubr.msk.f32.vlgmr.msra.gmra.mrb[8].mxu0 %vm93_vm0, %v5303_v2  ;;  %1350 = vadd.xlane.f32.xlu0 %v1349_v36 }
  0x15   :  { %4692 = vmatpush3.msra.mxu0 %v4386_v27  ;;  %4674 = vmatprep.mubr.msk.f32.mxu0 %vm93_vm0, %v5313_v5 }
  0x16   :  { %4713 = vmatprep.subr.mxu0 %v4397_v37  ;;  %1353 = vadd.xlane.f32.xlu1 %v1352_v38 }
  0x18   :  { %4675 = vmatmul.mubr.msk.f32.gmra.mrb[10].mxu0 %vm93_vm0, %v5333_v11  ;;  %2805 = vadd.xlane.f32.xlu0 %v2804_v49 }
  0x19   :  { %4693 = vmatprep.mubr.msk.f32.mxu0 %vm93_vm0, %v5298_v1 }
  0x1a   :  { %2808 = vadd.xlane.f32.xlu1 %v2807_v48 }
  0x1c   :  { %4694 = vmatmul.mubr.msk.f32.vlgmr.msra.gmra.mrb[12].mxu0 %vm93_vm0, %v5303_v2  ;;  %2811 = vadd.xlane.f32.xlu0 %v2810_v52 }
  0x1d   :  { %4714 = vmatpush3.msra.mxu0 %v4397_v37  ;;  %4696 = vmatprep.mubr.msk.f32.mxu0 %vm93_vm0, %v5313_v5 }
  0x1e   :  { %4735 = vmatprep.subr.mxu0 %v4408_v39  ;;  %2814 = vadd.xlane.f32.xlu1 %v2813_v51 }
  0x20   :  { %4697 = vmatmul.mubr.msk.f32.gmra.mrb[14].mxu0 %vm93_vm0, %v5333_v11 }
  0x21   :  { %4715 = vmatprep.mubr.msk.f32.mxu0 %vm93_vm0, %v5298_v1 }
  0x24   :  { %4716 = vmatmul.mubr.msk.f32.vlgmr.msra.gmra.mrb[16].mxu0 %vm93_vm0, %v5303_v2 }
  0x25   :  { %4736 = vmatpush3.msra.mxu0 %v4408_v39  ;;  %4718 = vmatprep.mubr.msk.f32.mxu0 %vm93_vm0, %v5313_v5 }
  0x28   :  { %4719 = vmatmul.mubr.msk.f32.gmra.mrb[18].mxu0 %vm93_vm0, %v5333_v11 }
  0x29   :  { %4737 = vmatprep.mubr.msk.f32.mxu0 %vm93_vm0, %v5298_v1 }
  0x2c   :  { %4738 = vmatmul.mubr.msk.f32.vlgmr.msra.gmra.mrb[20].mxu0 %vm93_vm0, %v5303_v2 }
  0x2d   :  { %4740 = vmatprep.mubr.msk.f32.mxu0 %vm93_vm0, %v5313_v5 }
  0x30   :  { %4741 = vmatmul.mubr.msk.f32.gmra.mrb[22].mxu0 %vm93_vm0, %v5333_v11 }
  0x32   :  { %4305 = vperm.xlu0 %4947, %v4299_v53  }
  0x95   :  { %v73_v54 = vpop.xlane.xlu0 %72 }
  0x96   :  { %v79_v55 = vpop.xlane.xlu1 %78  ;;  %v83_v59 = vmax.f32 %v73_v54, 1.0 }
  0x97   :  { %v85_v61 = vmax.f32 %v79_v55, 1.0 }
  0x99   :  { %v76_v56 = vpop.xlane.xlu0 %75 }
  0x9a   :  { %v84_v57 = vmax.f32 %v76_v56, 1.0 }
  0x9b   :  { %v82_v58 = vpop.xlane.xlu1 %81 }
  0x9c   :  { %5046 = vrsqrt.f32 %v84_v57  ;;  %v86_v60 = vmax.f32 %v82_v58, 1.0 }
  0x9d   :  { %5048 = vrsqrt.f32 %v83_v59  ;;  %v1345_v13 = vpop.xlane.xlu0 %1344 }
  0x9e   :  { %5050 = vrsqrt.f32 %v86_v60  ;;  %v1355_v28 = vmax.f32 %v1345_v13, 1.0 }
  0x9f   :  { %5052 = vrsqrt.f32 %v85_v61  ;;  %v1348_v9 = vpop.xlane.xlu1 %1347 }
  0xa0   :  { %v1356_v24 = vmax.f32 %v1348_v9, 1.0 }
  0xa1   :  { %v1351_v32 = vpop.xlane.xlu0 %1350 }
  0xa2   :  { %5054 = vrsqrt.f32 %v1356_v24  ;;  %v1357_v40 = vmax.f32 %v1351_v32, 1.0 }
  0xa3   :  { %v1354_v29 = vpop.xlane.xlu1 %1353  ;;  %5056 = vrsqrt.f32 %v1355_v28 }
  0xa4   :  { %v1358_v37 = vmax.f32 %v1354_v29, 1.0 }
  0xa6   :  { %v5505_v62 = vpop.eup %5046  ;;  %5058 = vrsqrt.f32 %v1358_v37 }
  0xa7   :  { %v5507_v0 = vpop.eup %5048  ;;  %5060 = vrsqrt.f32 %v1357_v40 }
  0xa8   :  { %v5510_v6 = vpop.eup %5050 }
  0xa9   :  { %v5513_v14 = vpop.eup %5052 }
  0xac   :  { %v5536_v56 = vpop.eup %5054 }
  0xad   :  { %v5541_v58 = vpop.eup %5056 }
  0xd7   :  { %v4629_v63 = vpop.f32.mrb[0].mxu0 }
  0xd8   :  { %v192_v3 = vmul.f32 %v5505_v62, %v4629_v63  ;;  %v172_v4 = vpop.f32.mrb[1].mxu0 }
  0xd9   :  { %v191_v8 = vmul.f32 %v5507_v0, %v172_v4 }
  0xdb   :  { %v4632_v10 = vpop.f32.mrb[2].mxu0  ;;  %v4855_v12 = vpack.c.bf16 %v192_v3, %v191_v8  ;;  %v5546_v3 = vpop.eup %5058 }
  0xdc   :  { %v194_v15 = vmul.f32 %v5510_v6, %v4632_v10  ;;  %v182_v18 = vpop.f32.mrb[3].mxu0  ;;  %v5551_v8 = vpop.eup %5060 }
  0xdd   :  { %v193_v19 = vmul.f32 %v5513_v14, %v182_v18  ;;  %4856 = vmatprep.subr.bf16.mxu1 %v4855_v12 }
  0xde   :  { %4858 = vmatpush3.bf16.msra.mxu1 %v4855_v12 }
  0xdf   :  { %v4859_v20 = vpack.c.bf16 %v194_v15, %v193_v19  ;;  %v4651_v21 = vpop.f32.mrb[4].mxu0 }
  0xe0   :  { %v459_v25 = vmul.f32 %v5505_v62, %v4651_v21  ;;  %v439_v27 = vpop.f32.mrb[5].mxu0 }
  0xe1   :  { %v458_v31 = vmul.f32 %v5507_v0, %v439_v27  ;;  %4638 = vmatmul.mubr.msk.f32.vlgmr.msra.gmra.mrb[0].mxu1 %vm70_vm1, %v5372_v22  ;;  %4860 = vmatprep.subr.bf16.mxu1 %v4859_v20 }
  0xe2   :  { %4862 = vmatpush3.bf16.msra.mxu1 %v4859_v20  ;;  %4644 = vmatprep.mubr.msk.f32.mxu1 %vm70_vm1, %v5353_v17 }
  0xe3   :  { %v4863_v34 = vpack.c.bf16 %v459_v25, %v458_v31  ;;  %v4654_v36 = vpop.f32.mrb[6].mxu0 }
  0xe4   :  { %v461_v38 = vmul.f32 %v5510_v6, %v4654_v36  ;;  %v449_v39 = vpop.f32.mrb[7].mxu0 }
  0xe5   :  { %v460_v41 = vmul.f32 %v5513_v14, %v449_v39  ;;  %4645 = vmatmul.mubr.msk.f32.vlgmr.msra.gmra.mrb[2].mxu1 %vm70_vm1, %v5376_v23  ;;  %4864 = vmatprep.subr.bf16.mxu1 %v4863_v34 }
  0xe6   :  { %4866 = vmatpush3.bf16.msra.mxu1 %v4863_v34  ;;  %4659 = vmatprep.mubr.msk.f32.mxu1 %vm70_vm1, %v5349_v16 }
  0xe7   :  { %v4867_v42 = vpack.c.bf16 %v461_v38, %v460_v41  ;;  %v4673_v46 = vpop.f32.mrb[8].mxu0  ;;  %v4436_v41 = vld [vmem:[%s6352_s2 + $0x10] sm:$0xff] }
  0xe8   :  { %v714_v48 = vmul.f32 %v5505_v62, %v4673_v46  ;;  %v694_v49 = vpop.f32.mrb[9].mxu0 }
  0xe9   :  { %v713_v51 = vmul.f32 %v5507_v0, %v694_v49  ;;  %4660 = vmatmul.mubr.msk.f32.vlgmr.msra.gmra.mrb[4].mxu1 %vm70_vm1, %v5372_v22  ;;  %4868 = vmatprep.subr.bf16.mxu1 %v4867_v42 }
  0xea   :  { %4870 = vmatpush3.bf16.msra.mxu1 %v4867_v42  ;;  %4666 = vmatprep.mubr.msk.f32.mxu1 %vm70_vm1, %v5353_v17  ;;  %v5620_v42 = vld [vmem:[%s6353_s3] ss:$0 sm:$0xff] }
  0xeb   :  { %v4871_v52 = vpack.c.bf16 %v714_v48, %v713_v51  ;;  %v4676_v53 = vpop.f32.mrb[10].mxu0 }
  0xec   :  { %v716_v54 = vmul.f32 %v5510_v6, %v4676_v53  ;;  %v704_v55 = vpop.f32.mrb[11].mxu0 }
  0xed   :  { %v715_v57 = vmul.f32 %v5513_v14, %v704_v55  ;;  %4667 = vmatmul.mubr.msk.f32.vlgmr.msra.gmra.mrb[6].mxu1 %vm70_vm1, %v5376_v23  ;;  %4872 = vmatprep.subr.bf16.mxu1 %v4871_v52  ;;  %v6369_v55 = vmov 4  }
  0xee   :  { %4874 = vmatpush3.bf16.msra.mxu1 %v4871_v52  ;;  %4681 = vmatprep.mubr.msk.f32.mxu1 %vm70_vm1, %v5349_v16 }
  0xef   :  { %v4875_v59 = vpack.c.bf16 %v716_v54, %v715_v57  ;;  %v4695_v60 = vpop.f32.mrb[12].mxu0  ;;  %v6365_v57 = vmov 1  }
  0xf0   :  { %v1453_v61 = vmul.f32 %v5536_v56, %v4695_v60  ;;  %v1433_v63 = vpop.f32.mrb[13].mxu0 }
  0xf1   :  { %v1452_v4 = vmul.f32 %v5541_v58, %v1433_v63  ;;  %4682 = vmatmul.mubr.msk.f32.vlgmr.msra.gmra.mrb[8].mxu1 %vm70_vm1, %v5372_v22  ;;  %4876 = vmatprep.subr.bf16.mxu1 %v4875_v59 }
  0xf2   :  { %4878 = vmatpush3.bf16.msra.mxu1 %v4875_v59  ;;  %4688 = vmatprep.mubr.msk.f32.mxu1 %vm70_vm1, %v5353_v17 }
  0xf3   :  { %v4879_v16 = vpack.c.bf16 %v1453_v61, %v1452_v4  ;;  %v4698_v9 = vpop.f32.mrb[14].mxu0  ;;  %v6377_v4 = vmov 6  }
  0xf4   :  { %v1455_v10 = vmul.f32 %v5546_v3, %v4698_v9  ;;  %v1443_v12 = vpop.f32.mrb[15].mxu0 }
  0xf5   :  { %v1454_v13 = vmul.f32 %v5551_v8, %v1443_v12  ;;  %4689 = vmatmul.mubr.msk.f32.vlgmr.msra.gmra.mrb[10].mxu1 %vm70_vm1, %v5376_v23  ;;  %4880 = vmatprep.subr.bf16.mxu1 %v4879_v16 }
  0xf6   :  { %4882 = vmatpush3.bf16.msra.mxu1 %v4879_v16  ;;  %4703 = vmatprep.mubr.msk.f32.mxu1 %vm70_vm1, %v5387_v26  ;;  %v6367_v16 = vmov 3  }
  0xf7   :  { %v4883_v22 = vpack.c.bf16 %v1455_v10, %v1454_v13  ;;  %v4717_v15 = vpop.f32.mrb[16].mxu0  ;;  %v6379_v13 = vmov 5  }
  0xf8   :  { %v1722_v18 = vmul.f32 %v5536_v56, %v4717_v15  ;;  %v1702_v17 = vpop.f32.mrb[17].mxu0 }
  0xf9   :  { %v1721_v19 = vmul.f32 %v5541_v58, %v1702_v17  ;;  %4704 = vmatmul.mubr.msk.f32.vlgmr.msra.gmra.mrb[12].mxu1 %vm70_vm1, %v5401_v30  ;;  %4884 = vmatprep.subr.bf16.mxu1 %v4883_v22 }
  0xfa   :  { %4886 = vmatpush3.bf16.msra.mxu1 %v4883_v22  ;;  %4710 = vmatprep.mubr.msk.f32.mxu1 %vm70_vm1, %v5412_v33 }
  0xfb   :  { %v4887_v23 = vpack.c.bf16 %v1722_v18, %v1721_v19  ;;  %v4720_v20 = vpop.f32.mrb[18].mxu0  ;;  %v6375_v18 = vmov 7  }
  0xfc   :  { %v1724_v21 = vmul.f32 %v5546_v3, %v4720_v20  ;;  %v1712_v24 = vpop.f32.mrb[19].mxu0 }
  0xfd   :  { %v1723_v25 = vmul.f32 %v5551_v8, %v1712_v24  ;;  %4711 = vmatmul.mubr.msk.f32.vlgmr.msra.gmra.mrb[14].mxu1 %vm70_vm1, %v5420_v35  ;;  %4888 = vmatprep.subr.bf16.mxu1 %v4887_v23 }
  0xfe   :  { %4890 = vmatpush3.bf16.msra.mxu1 %v4887_v23  ;;  %4725 = vmatprep.mubr.msk.f32.mxu1 %vm70_vm1, %v5387_v26  ;;  %v2809_v23 = vpop.xlane.xlu1 %2808 }
  0xff   :  { %v4891_v27 = vpack.c.bf16 %v1724_v21, %v1723_v25  ;;  %v4739_v28 = vpop.f32.mrb[20].mxu0  ;;  %v2806_v21 = vpop.xlane.xlu0 %2805 }
 0x100   :  { %v1979_v29 = vmul.f32 %v5536_v56, %v4739_v28  ;;  %v1959_v31 = vpop.f32.mrb[21].mxu0 }
 0x101   :  { %v1978_v32 = vmul.f32 %v5541_v58, %v1959_v31  ;;  %4726 = vmatmul.mubr.msk.f32.vlgmr.msra.gmra.mrb[16].mxu1 %vm70_vm1, %v5401_v30  ;;  %4892 = vmatprep.subr.bf16.mxu1 %v4891_v27 }
 0x102   :  { %4894 = vmatpush3.bf16.msra.mxu1 %v4891_v27  ;;  %4732 = vmatprep.mubr.msk.f32.mxu1 %vm70_vm1, %v5412_v33  ;;  %v2817_v27 = vmax.f32 %v2809_v23, 1.0  ;;  %v2815_v31 = vpop.xlane.xlu1 %2814 }
 0x103   :  { %v4895_v34 = vpack.c.bf16 %v1979_v29, %v1978_v32  ;;  %v4742_v36 = vpop.f32.mrb[22].mxu0  ;;  %v2816_v29 = vmax.f32 %v2806_v21, 1.0  ;;  %v2812_v32 = vpop.xlane.xlu0 %2811 }
 0x104   :  { %v1981_v37 = vmul.f32 %v5546_v3, %v4742_v36  ;;  %v1969_v38 = vpop.f32.mrb[23].mxu0  ;;  %5062 = vrsqrt.f32 %v2817_v27  ;;  %v2819_v36 = vmax.f32 %v2815_v31, 1.0  ;;  %v4381_v31 = vld [vmem:[%s6357_s7] ss:$0 sm:$0xff] }
 0x105   :  { %v1980_v39 = vmul.f32 %v5551_v8, %v1969_v38  ;;  %4733 = vmatmul.mubr.msk.f32.vlgmr.msra.gmra.mrb[18].mxu1 %vm70_vm1, %v5420_v35  ;;  %4896 = vmatprep.subr.bf16.mxu1 %v4895_v34  ;;  %5064 = vrsqrt.f32 %v2816_v29  ;;  %v2818_v38 = vmax.f32 %v2812_v32, 1.0 }
 0x106   :  { %4898 = vmatpush3.bf16.msra.mxu1 %v4895_v34  ;;  %4747 = vmatprep.mubr.msk.f32.mxu1 %vm70_vm1, %v5387_v26  ;;  %v4300_v26 = vld [vmem:[%s6362_s12 + $0x8] sm:$0xff]  ;;  %5066 = vrsqrt.f32 %v2819_v36 }
 0x107   :  { %v4899_v40 = vpack.c.bf16 %v1981_v37, %v1980_v39  ;;  %4310 = vperm.xlu1 %4948, %v4300_v26   ;;  %5068 = vrsqrt.f32 %v2818_v38  ;;  %v4447_v38 = vld [vmem:[%s6354_s4 + $0x10] sm:$0xff] }
 0x109   :  { %4748 = vmatmul.mubr.msk.f32.vlgmr.msra.gmra.mrb[20].mxu1 %vm70_vm1, %v5401_v30  ;;  %4900 = vmatprep.subr.bf16.mxu1 %v4899_v40  ;;  %v6371_v30 = vmov 2  }
 0x10a   :  { %4902 = vmatpush3.bf16.msra.mxu1 %v4899_v40  ;;  %4754 = vmatprep.mubr.msk.f32.mxu1 %vm70_vm1, %v5412_v33  ;;  %v4423_v33 = vld [vmem:[%s6358_s8 + $0x8] sm:$0xff] }
 0x10b   :  { %4773 = vmatprep.subr.mxu1 %v4436_v41  ;;  %4950 = vset.pattern.permute.xlu0 %v6371_v30 }
 0x10c   :  { %4757 = vmatprep.subr.mxu0 %v4423_v33 }
 0x10d   :  { %4755 = vmatmul.mubr.msk.f32.vlgmr.msra.gmra.mrb[22].mxu1 %vm70_vm1, %v5420_v35  ;;  %4758 = vmatpush3.msra.mxu0 %v4423_v33  ;;  %v5614_v35 = vld [vmem:[%s6358_s8] sm:$0xff] }
 0x10e   :  { %4774 = vmatpush3.msra.mxu1 %v4436_v41  ;;  %4775 = vmatprep.mubr.msk.f32.mxu1 %vm93_vm0, %v5298_v1  ;;  %v4418_v41 = vld [vmem:[%s6357_s7 + $0x1] ss:$0 sm:$0xff] }
 0x10f   :  { %4765 = vmatprep.subr.mxu0 %v5614_v35 }
 0x111   :  { %4776 = vmatmul.mubr.msk.f32.vlgmr.msra.gmra.mrb[24].mxu1 %vm93_vm0, %v5303_v2 }
 0x112   :  { %4778 = vmatprep.mubr.msk.f32.mxu1 %vm93_vm0, %v5313_v5 }
 0x115   :  { %4779 = vmatmul.mubr.msk.f32.gmra.mrb[26].mxu1 %vm93_vm0, %v5333_v11 }
 0x116   :  { %4785 = vmatprep.mubr.msk.f32.mxu1 %vm70_vm1, %v5479_v44 }
 0x1b4   :  { %v4639_v46 = vpop.f32.mrb[0].mxu1 }
 0x1b5   :  { %v358_v48 = vmul.f32 %v5505_v62, %v4639_v46  ;;  %v267_v49 = vpop.f32.mrb[1].mxu1 }
 0x1b6   :  { %v357_v63 = vmul.f32 %v5507_v0, %v267_v49 }
 0x1b7   :  { %v368_v51 = vadd.f32 %v5620_v42, %v358_v48 }
 0x1b8   :  { %v4646_v52 = vpop.f32.mrb[2].mxu1  ;;  %v367_v12 = vadd.f32 %v5620_v42, %v357_v63 }
 0x1b9   :  { %1030 = vperm.xlu0 %4950, %v368_v51   ;;  %952 = vperm.xlu1 %4948, %v368_v51   ;;  %v5624_v53 = vpop.f32.mrb[3].mxu1  ;;  %v360_v39 = vmul.f32 %v5510_v6, %v4646_v52 }
 0x1bb   :  { %v5681_v48 = vadd.f32 %v5620_v42, %v360_v39 }
 0x1bc   :  { %v5626_v54 = vpop.f32.mrb[4].mxu1 }
 0x1bd   :  { %4952 = vset.pattern.permute.xlu0 %v6369_v55  ;;  %4949 = vset.pattern.permute.xlu1 %v6365_v57  ;;  %v5630_v59 = vpop.f32.mrb[5].mxu1 }
 0x1be   :  { %1106 = vperm.xlu0 %4952, %v368_v51   ;;  %986 = vperm.xlu1 %4949, %v368_v51  }
 0x1c0   :  { %v5632_v60 = vpop.f32.mrb[6].mxu1 }
 0x1c1   :  { %v5634_v61 = vpop.f32.mrb[7].mxu1 }
 0x1c2   :  { %4954 = vset.pattern.permute.xlu0 %v6377_v4  ;;  %4951 = vset.pattern.permute.xlu1 %v6367_v16 }
 0x1c3   :  { %1182 = vperm.xlu0 %4954, %v368_v51   ;;  %1062 = vperm.xlu1 %4951, %v368_v51  }
 0x1c4   :  { %v5639_v9 = vpop.f32.mrb[8].mxu1 }
 0x1c5   :  { %v5641_v10 = vpop.f32.mrb[9].mxu1 }
 0x1c6   :  { %v867_v29 = vmul.f32 %v5507_v0, %v5641_v10 }
 0x1c7   :  { %4956 = vset.pattern.permute.xlu0 %v6373_v47  ;;  %4953 = vset.pattern.permute.xlu1 %v6379_v13 }
 0x1c8   :  { %1138 = vperm.xlu1 %4953, %v368_v51   ;;  %947 = vperm.xlu0 %4956, %v367_v12   ;;  %v5646_v22 = vpop.f32.mrb[10].mxu1 }
 0x1c9   :  { %v5648_v15 = vpop.f32.mrb[11].mxu1 }
 0x1cc   :  { %4955 = vset.pattern.permute.xlu1 %v6375_v18  ;;  %4957 = vset.pattern.permute.xlu0 %v6365_v57  ;;  %v5652_v17 = vpop.f32.mrb[12].mxu1 }
 0x1cd   :  { %1214 = vperm.xlu1 %4955, %v368_v51   ;;  %982 = vperm.xlu0 %4957, %v367_v12   ;;  %v5654_v19 = vpop.f32.mrb[13].mxu1 }
 0x1d0   :  { %v5656_v20 = vpop.f32.mrb[14].mxu1 }
 0x1d1   :  { %4958 = vset.pattern.permute.xlu1 %v6371_v30  ;;  %4959 = vset.pattern.permute.xlu0 %v6367_v16  ;;  %v5660_v24 = vpop.f32.mrb[15].mxu1 }
 0x1d2   :  { %1026 = vperm.xlu1 %4958, %v367_v12   ;;  %1058 = vperm.xlu0 %4959, %v367_v12  }
 0x1d4   :  { %v5662_v25 = vpop.f32.mrb[16].mxu1 }
 0x1d5   :  { %v5664_v28 = vpop.f32.mrb[17].mxu1 }
 0x1d6   :  { %4960 = vset.pattern.permute.xlu1 %v6369_v55  ;;  %4961 = vset.pattern.permute.xlu0 %v6379_v13 }
 0x1d7   :  { %1102 = vperm.xlu1 %4960, %v367_v12   ;;  %1134 = vperm.xlu0 %4961, %v367_v12  }
 0x1d8   :  { %v5668_v34 = vpop.f32.mrb[18].mxu1 }
 0x1d9   :  { %v5670_v37 = vpop.f32.mrb[19].mxu1 }
 0x1db   :  { %4962 = vset.pattern.permute.xlu1 %v6377_v4  ;;  %4963 = vset.pattern.permute.xlu0 %v6375_v18 }
 0x1dc   :  { %1178 = vperm.xlu1 %4962, %v367_v12   ;;  %1210 = vperm.xlu0 %4963, %v367_v12   ;;  %v4749_v40 = vpop.f32.mrb[20].mxu1  ;;  %v5687_v12 = vpop.eup %5062 }
 0x1dd   :  { %v2133_v26 = vmul.f32 %v5536_v56, %v4749_v40  ;;  %v2048_v33 = vpop.f32.mrb[21].mxu1  ;;  %v5692_v27 = vpop.eup %5064 }
 0x1de   :  { %v2132_v46 = vmul.f32 %v5541_v58, %v2048_v33  ;;  %v5707_v40 = vpop.eup %5066 }
 0x1df   :  { %v2143_v52 = vadd.f32 %v4418_v41, %v2133_v26  ;;  %v868_v26 = vmul.f32 %v5505_v62, %v5639_v9 }
 0x1e0   :  { %v2142_v49 = vadd.f32 %v4418_v41, %v2132_v46  ;;  %4964 = vset.pattern.permute.xlu1 %v6373_v47  ;;  %4965 = vset.pattern.permute.xlu0 %v6365_v57  ;;  %v4756_v51 = vpop.f32.mrb[22].mxu1  ;;  %v5714_v46 = vpop.eup %5068 }
 0x1e1   :  { %994 = vperm.xlu0 %4965, %v5681_v48   ;;  %962 = vperm.xlu1 %4964, %v5681_v48   ;;  %v2123_v63 = vpop.f32.mrb[23].mxu1  ;;  %v2135_v23 = vmul.f32 %v5546_v3, %v4756_v51  ;;  %v869_v51 = vmul.f32 %v5513_v14, %v5648_v15  ;;  %v870_v15 = vmul.f32 %v5510_v6, %v5646_v22 }
 0x1e2   :  { %v2134_v21 = vmul.f32 %v5551_v8, %v2123_v63  ;;  %4759 = vmatprep.mubr.msk.f32.mxu0 %vm93_vm0, %v2142_v49  ;;  %v877_v49 = vadd.f32 %v4381_v31, %v867_v29  ;;  %v359_v22 = vmul.f32 %v5513_v14, %v5624_v53 }
 0x1e3   :  { %4760 = vmatmul.mubr.msk.f32.vlgmr.msra.gmra.mrb[24].mxu0 %vm93_vm0, %v2143_v52  ;;  %v2145_v33 = vadd.f32 %v4418_v41, %v2135_v23  ;;  %v878_v23 = vadd.f32 %v4381_v31, %v868_v26  ;;  %v879_v29 = vadd.f32 %v4381_v31, %v869_v51 }
 0x1e4   :  { %v2144_v32 = vadd.f32 %v4418_v41, %v2134_v21  ;;  %4766 = vmatpush3.msra.mxu0 %v5614_v35  ;;  %v4777_v36 = vpop.f32.mrb[24].mxu1 }
 0x1e5   :  { %v2914_v39 = vmul.f32 %v5687_v12, %v4777_v36  ;;  %4967 = vset.pattern.permute.xlu0 %v6367_v16  ;;  %4966 = vset.pattern.permute.xlu1 %v6371_v30  ;;  %v2894_v10 = vpop.f32.mrb[25].mxu1  ;;  %v4458_v36 = vld [vmem:[%s6356_s6 + $0x10] sm:$0xff] }
 0x1e6   :  { %v2913_v35 = vmul.f32 %v5692_v27, %v2894_v10  ;;  %1070 = vperm.xlu0 %4967, %v5681_v48   ;;  %1038 = vperm.xlu1 %4966, %v5681_v48   ;;  %v1621_v10 = vmul.f32 %v5546_v3, %v5656_v20  ;;  %v1620_v20 = vmul.f32 %v5551_v8, %v5660_v24 }
 0x1e7   :  { %4762 = vmatprep.mubr.msk.f32.mxu0 %vm93_vm0, %v2144_v32  ;;  %4795 = vmatprep.subr.mxu0 %v4447_v38 }
 0x1e8   :  { %v4903_v52 = vpack.c.bf16 %v2914_v39, %v2913_v35  ;;  %4763 = vmatmul.mubr.msk.f32.gmra.mrb[26].mxu0 %vm93_vm0, %v2145_v33  ;;  %v4780_v9 = vpop.f32.mrb[26].mxu1  ;;  %v880_v39 = vadd.f32 %v4381_v31, %v870_v15  ;;  %v369_v31 = vadd.f32 %v5620_v42, %v359_v22 }
 0x1e9   :  { %4767 = vmatprep.mubr.msk.f32.mxu0 %vm93_vm0, %v877_v49  ;;  %v2916_v41 = vmul.f32 %v5707_v40, %v4780_v9  ;;  %v2904_v63 = vpop.f32.mrb[27].mxu1 }
 0x1ea   :  { %v2915_v21 = vmul.f32 %v5714_v46, %v2904_v63  ;;  %4969 = vset.pattern.permute.xlu0 %v6379_v13  ;;  %4968 = vset.pattern.permute.xlu1 %v6369_v55 }
 0x1eb   :  { %4904 = vmatprep.subr.bf16.mxu1 %v4903_v52  ;;  %1146 = vperm.xlu0 %4969, %v5681_v48  }
 0x1ec   :  { %v4907_v32 = vpack.c.bf16 %v2916_v41, %v2915_v21  ;;  %1114 = vperm.xlu1 %4968, %v5681_v48   ;;  %4768 = vmatmul.mubr.msk.f32.vlgmr.msra.gmra.mrb[24].mxu0 %vm93_vm0, %v878_v23  ;;  %v1875_v21 = vmul.f32 %v5541_v58, %v5664_v28  ;;  %v1877_v28 = vmul.f32 %v5551_v8, %v5670_v37 }
 0x1ed   :  { %4906 = vmatpush3.bf16.msra.mxu1 %v4903_v52  ;;  %4770 = vmatprep.mubr.msk.f32.mxu0 %vm93_vm0, %v879_v29  ;;  %v5838_v52 = vpop.permute.xlu0 %4305  ;;  %v4407_v29 = vld [vmem:[%s6355_s5 + $0x1] ss:$0 sm:$0xff] }
 0x1ee   :  { %4796 = vmatpush3.msra.mxu0 %v4447_v38  ;;  %4908 = vmatprep.subr.bf16.mxu1 %v4907_v32  ;;  %v5792_v38 = vpop.permute.xlu1 %4310  ;;  %6400 = vst [vmem:[#allocation9_spill] sm:$0xff] %v5838_v52 }
 0x1ef   :  { %4971 = vset.pattern.permute.xlu0 %v6375_v18  ;;  %4817 = vmatprep.subr.mxu0 %v4458_v36  ;;  %6397 = vst [vmem:[#allocation6_spill] sm:$0xff] %v5792_v38 }
 0x1f0   :  { %4786 = vmatmul.mubr.msk.f32.vlgmr.msra.gmra.mrb[28].mxu1 %vm70_vm1, %v5475_v43  ;;  %4970 = vset.pattern.permute.xlu1 %v6377_v4 }
 0x1f1   :  { %4771 = vmatmul.mubr.msk.f32.gmra.mrb[26].mxu0 %vm93_vm0, %v880_v39  ;;  %4910 = vmatpush3.bf16.msra.mxu1 %v4907_v32  ;;  %v1876_v32 = vmul.f32 %v5536_v56, %v5662_v25  ;;  %v1887_v25 = vadd.f32 %v4407_v29, %v1877_v28  ;;  %v5939_v28 = vsub.s32 7, %v5318_v7 }
 0x1f2   :  { %1222 = vperm.xlu0 %4971, %v5681_v48   ;;  %1190 = vperm.xlu1 %4970, %v5681_v48  }
 0x1f3   :  { %4792 = vmatprep.mubr.msk.f32.mxu1 %vm70_vm1, %v5496_v50  ;;  %4797 = vmatprep.mubr.msk.f32.mxu0 %vm93_vm0, %v5298_v1 }
 0x1f4   :  { %4793 = vmatmul.mubr.msk.f32.vlgmr.msra.gmra.mrb[30].mxu1 %vm70_vm1, %v5483_v45 }
 0x1f5   :  { %4798 = vmatmul.mubr.msk.f32.vlgmr.msra.gmra.mrb[28].mxu0 %vm93_vm0, %v5303_v2  ;;  %4807 = vmatprep.mubr.msk.f32.mxu1 %vm70_vm1, %v5479_v44 }
 0x1f6   :  { %4972 = vset.pattern.permute.xlu1 %v6373_v47  ;;  %4818 = vmatpush3.msra.mxu0 %v4458_v36  ;;  %v1885_v36 = vadd.f32 %v4407_v29, %v1875_v21  ;;  %v5924_v21 = vsub.s32 2, %v5318_v7 }
 0x1f7   :  { %957 = vperm.xlu1 %4972, %v369_v31   ;;  %4800 = vmatprep.mubr.msk.f32.mxu0 %vm93_vm0, %v5313_v5 }
 0x1f8   :  { %6408 = vst [vmem:[#allocation17_spill] sm:$0xff] %v5924_v21 }
 0x1f9   :  { %4801 = vmatmul.mubr.msk.f32.gmra.mrb[30].mxu0 %vm93_vm0, %v5333_v11 }
 0x1fa   :  { %4819 = vmatprep.mubr.msk.f32.mxu0 %vm93_vm0, %v5298_v1  ;;  %v612_v1 = vmul.f32 %v5507_v0, %v5630_v59  ;;  %v1619_v0 = vmul.f32 %v5536_v56, %v5652_v17  ;;  %v615_v59 = vmul.f32 %v5510_v6, %v5632_v60  ;;  %v1878_v56 = vmul.f32 %v5546_v3, %v5668_v34 }
 0x1fb   :  { %4973 = vset.pattern.permute.xlu1 %v6365_v57 }
 0x1fc   :  { %990 = vperm.xlu1 %4973, %v369_v31  }
 0x1fd   :  { %4820 = vmatmul.mubr.msk.f32.vlgmr.msra.gmra.mrb[32].mxu0 %vm93_vm0, %v5303_v2  ;;  %v4372_v2 = vld [vmem:[%s6355_s5] ss:$0 sm:$0xff] }
 0x1fe   :  { %4822 = vmatprep.mubr.msk.f32.mxu0 %vm93_vm0, %v5313_v5  ;;  %v613_v5 = vmul.f32 %v5505_v62, %v5626_v54  ;;  %v622_v42 = vadd.f32 %v4372_v2, %v612_v1  ;;  %v4396_v62 = vld [vmem:[%s6353_s3 + $0x1] ss:$0 sm:$0xff]  ;;  %v614_v54 = vmul.f32 %v5513_v14, %v5634_v61  ;;  %v625_v17 = vadd.f32 %v4372_v2, %v615_v59 }
 0x1ff   :  { %v1629_v53 = vadd.f32 %v4396_v62, %v1619_v0  ;;  %v1618_v14 = vmul.f32 %v5541_v58, %v5654_v19  ;;  %v5812_v26 = vadd.f32 %v4396_v62, %v1621_v10  ;;  %v5827_v49 = vadd.f32 %v4396_v62, %v1620_v20 }
 0x200   :  { %4974 = vset.pattern.permute.xlu1 %v6371_v30  ;;  %v624_v48 = vadd.f32 %v4372_v2, %v614_v54  ;;  %v1886_v58 = vadd.f32 %v4407_v29, %v1876_v32  ;;  %v5915_v10 = vsub.s32 0, %v5318_v7  ;;  %v5930_v32 = vsub.s32 4, %v5318_v7 }
 0x201   :  { %4823 = vmatmul.mubr.msk.f32.gmra.mrb[34].mxu0 %vm93_vm0, %v5333_v11  ;;  %1034 = vperm.xlu1 %4974, %v369_v31   ;;  %v623_v11 = vadd.f32 %v4372_v2, %v613_v5  ;;  %v5800_v6 = vadd.f32 %v4396_v62, %v1618_v14  ;;  %v1888_v2 = vadd.f32 %v4407_v29, %v1878_v56  ;;  %v5927_v29 = vsub.s32 3, %v5318_v7 }
 0x202   :  { %6406 = vst [vmem:[#allocation15_spill] sm:$0xff] %v5915_v10  ;;  %6410 = vst [vmem:[#allocation19_spill] sm:$0xff] %v5930_v32 }
 0x203   :  { %6409 = vst [vmem:[#allocation18_spill] sm:$0xff] %v5927_v29 }
 0x205   :  { %4975 = vset.pattern.permute.xlu1 %v6367_v16 }
 0x206   :  { %1066 = vperm.xlu1 %4975, %v369_v31  }
 0x20a   :  { %4976 = vset.pattern.permute.xlu1 %v6369_v55 }
 0x20b   :  { %1110 = vperm.xlu1 %4976, %v369_v31  }
 0x20f   :  { %4977 = vset.pattern.permute.xlu1 %v6379_v13 }
 0x210   :  { %881 = vxpose.xlu0.b32.start [1/2] (short) (narrow) %v622_v42, 8  ;;  %1142 = vperm.xlu1 %4977, %v369_v31  }
 0x214   :  { %882 = vxpose.xlu0.b32.end [2/2] (short) (narrow) %v623_v11, 8  ;;  %4978 = vset.pattern.permute.xlu1 %v6377_v4 }
 0x215   :  { %1186 = vperm.xlu1 %4978, %v369_v31  }
 0x219   :  { %4979 = vset.pattern.permute.xlu1 %v6375_v18 }
 0x21a   :  { %1218 = vperm.xlu1 %4979, %v369_v31  }
 0x238   :  { %v5798_v61 = vpop.permute.xlu1 %952  ;;  %v5844_v41 = vpop.permute.xlu0 %1030 }
 0x23d   :  { %4980 = vset.pattern.permute.xlu0 %v6373_v47  ;;  %v5804_v60 = vpop.permute.xlu1 %986  ;;  %v5850_v23 = vpop.permute.xlu0 %1106 }
 0x23e   :  { %2217 = vperm.xlu0 %4980, %v1629_v53   ;;  %6402 = vst [vmem:[#allocation11_spill] sm:$0xff] %v5850_v23 }
 0x242   :  { %4983 = vset.pattern.permute.xlu0 %v6367_v16  ;;  %v5810_v19 = vpop.permute.xlu1 %1062  ;;  %v5863_v39 = vpop.permute.xlu0 %1182 }
 0x243   :  { %2327 = vperm.xlu0 %4983, %v1629_v53   ;;  %913 = vxpose.xlu1.b32.start [1/2] (short) (narrow) %v624_v48, 8  ;;  %6403 = vst [vmem:[#allocation12_spill] sm:$0xff] %v5863_v39 }
 0x247   :  { %4985 = vset.pattern.permute.xlu0 %v6379_v13  ;;  %914 = vxpose.xlu1.b32.end [2/2] (short) (narrow) %v625_v17, 8  ;;  %v5816_v33 = vpop.permute.xlu1 %1138  ;;  %v5871_v31 = vpop.permute.xlu0 %947 }
 0x248   :  { %2403 = vperm.xlu0 %4985, %v1629_v53   ;;  %6398 = vst [vmem:[#allocation7_spill] sm:$0xff] %v5816_v33 }
 0x24c   :  { %4987 = vset.pattern.permute.xlu0 %v6375_v18  ;;  %v5822_v35 = vpop.permute.xlu1 %1214  ;;  %v5880_v5 = vpop.permute.xlu0 %982 }
 0x24d   :  { %2479 = vperm.xlu0 %4987, %v1629_v53   ;;  %6399 = vst [vmem:[#allocation8_spill] sm:$0xff] %v5822_v35 }
 0x251   :  { %4992 = vset.pattern.permute.xlu0 %v6369_v55  ;;  %v5831_v51 = vpop.permute.xlu1 %1026  ;;  %v5885_v37 = vpop.permute.xlu0 %1058 }
 0x252   :  { %2367 = vperm.xlu0 %4992, %v5800_v6  }
 0x256   :  { %4994 = vset.pattern.permute.xlu0 %v6377_v4  ;;  %v5835_v24 = vpop.permute.xlu1 %1102  ;;  %v5889_v34 = vpop.permute.xlu0 %1134 }
 0x257   :  { %2443 = vperm.xlu0 %4994, %v5800_v6   ;;  %6404 = vst [vmem:[#allocation13_spill] sm:$0xff] %v5889_v34 }
 0x25b   :  { %4997 = vset.pattern.permute.xlu0 %v6365_v57  ;;  %v5840_v9 = vpop.permute.xlu1 %1178  ;;  %v5893_v11 = vpop.permute.xlu0 %1210 }
 0x25c   :  { %2259 = vperm.xlu0 %4997, %v5812_v26   ;;  %6401 = vst [vmem:[#allocation10_spill] sm:$0xff] %v5840_v9  ;;  %6405 = vst [vmem:[#allocation14_spill] sm:$0xff] %v5893_v11 }
 0x260   :  { %5000 = vset.pattern.permute.xlu0 %v6369_v55  ;;  %v5846_v63 = vpop.permute.xlu1 %962  ;;  %v5897_v62 = vpop.permute.xlu0 %994 }
 0x261   :  { %2379 = vperm.xlu0 %5000, %v5812_v26  }
 0x265   :  { %5002 = vset.pattern.permute.xlu0 %v6377_v4  ;;  %4981 = vset.pattern.permute.xlu1 %v6365_v57  ;;  %v5854_v15 = vpop.permute.xlu1 %1038  ;;  %v5902_v54 = vpop.permute.xlu0 %1070 }
 0x266   :  { %2455 = vperm.xlu0 %5002, %v5812_v26   ;;  %2251 = vperm.xlu1 %4981, %v1629_v53  }
 0x26a   :  { %5006 = vset.pattern.permute.xlu0 %v6371_v30  ;;  %4982 = vset.pattern.permute.xlu1 %v6371_v30  ;;  %v5907_v48 = vpop.permute.xlu0 %1146 }
 0x26b   :  { %2299 = vperm.xlu0 %5006, %v5827_v49   ;;  %2295 = vperm.xlu1 %4982, %v1629_v53   ;;  %v5866_v22 = vpop.permute.xlu1 %1114 }
 0x26f   :  { %4984 = vset.pattern.permute.xlu1 %v6369_v55 }
 0x270   :  { %2371 = vperm.xlu1 %4984, %v1629_v53  }
 0x271   :  { %v5877_v1 = vpop.permute.xlu1 %1190  ;;  %v5911_v14 = vpop.permute.xlu0 %1222 }
 0x274   :  { %4986 = vset.pattern.permute.xlu1 %v6377_v4 }
 0x275   :  { %2447 = vperm.xlu1 %4986, %v1629_v53  }
 0x276   :  { %v958_v8 = vpop.permute.xlu1 %957 }
 0x279   :  { %4988 = vset.pattern.permute.xlu1 %v6373_v47 }
 0x27a   :  { %2212 = vperm.xlu1 %4988, %v5800_v6  }
 0x27b   :  { %v991_v3 = vpop.permute.xlu1 %990 }
 0x27e   :  { %4989 = vset.pattern.permute.xlu1 %v6365_v57 }
 0x27f   :  { %2247 = vperm.xlu1 %4989, %v5800_v6  }
 0x280   :  { %v1035_v42 = vpop.permute.xlu1 %1034 }
 0x283   :  { %4990 = vset.pattern.permute.xlu1 %v6371_v30 }
 0x284   :  { %2291 = vperm.xlu1 %4990, %v5800_v6  }
 0x285   :  { %v1067_v0 = vpop.permute.xlu1 %1066 }
 0x288   :  { %4991 = vset.pattern.permute.xlu1 %v6367_v16 }
 0x289   :  { %2146 = vxpose.xlu0.b32.start [1/2] (short) (narrow) %v1885_v36, 8  ;;  %2323 = vperm.xlu1 %4991, %v5800_v6   ;;  %v5933_v36 = vsub.s32 5, %v5318_v7 }
 0x28a   :  { %v1111_v53 = vpop.permute.xlu1 %1110 }
 0x28d   :  { %2147 = vxpose.xlu0.b32.end [2/2] (short) (narrow) %v1886_v58, 8  ;;  %4993 = vset.pattern.permute.xlu1 %v6379_v13  ;;  %v5936_v58 = vsub.s32 6, %v5318_v7 }
 0x28e   :  { %2399 = vperm.xlu1 %4993, %v5800_v6  }
 0x28f   :  { %v1143_v59 = vpop.permute.xlu1 %1142 }
 0x290   :  { %v5921_v20 = vpop.trf.xlu0 }
 0x291   :  { %2178 = vxpose.xlu0.b32.start [1/2] (short) (narrow) %v1887_v25, 8  ;;  %v5973_v11 = vrot.slane %v5921_v20, %v5930_v32 }
 0x292   :  { %4995 = vset.pattern.permute.xlu1 %v6375_v18 }
 0x293   :  { %2475 = vperm.xlu1 %4995, %v5800_v6  }
 0x294   :  { %v1187_v17 = vpop.permute.xlu1 %1186 }
 0x295   :  { %2179 = vxpose.xlu0.b32.end [2/2] (short) (narrow) %v1888_v2, 8  ;;  %v5945_v2 = vrot.slane %v5921_v20, %v5915_v10 }
 0x297   :  { %4996 = vset.pattern.permute.xlu1 %v6373_v47 }
 0x298   :  { %2227 = vperm.xlu1 %4996, %v5812_v26  }
 0x299   :  { %v1219_v6 = vpop.permute.xlu1 %1218 }
 0x29c   :  { %4998 = vset.pattern.permute.xlu1 %v6371_v30 }
 0x29d   :  { %2303 = vperm.xlu1 %4998, %v5812_v26  }
 0x2a1   :  { %4999 = vset.pattern.permute.xlu1 %v6367_v16 }
 0x2a2   :  { %2335 = vperm.xlu1 %4999, %v5812_v26  }
 0x2a6   :  { %5001 = vset.pattern.permute.xlu1 %v6379_v13 }
 0x2a7   :  { %2411 = vperm.xlu1 %5001, %v5812_v26  }
 0x2ab   :  { %5003 = vset.pattern.permute.xlu1 %v6375_v18 }
 0x2ac   :  { %2487 = vperm.xlu1 %5003, %v5812_v26   ;;  %v5919_v26 = vsub.s32 1, %v5318_v7 }
 0x2ae   :  { %6407 = vst [vmem:[#allocation16_spill] sm:$0xff] %v5919_v26  ;;  %v5955_v7 = vrot.slane %v5921_v20, %v5919_v26 }
 0x2b0   :  { %5004 = vset.pattern.permute.xlu1 %v6373_v47 }
 0x2b1   :  { %2222 = vperm.xlu1 %5004, %v5827_v49  }
 0x2b5   :  { %5005 = vset.pattern.permute.xlu1 %v6365_v57 }
 0x2b6   :  { %2255 = vperm.xlu1 %5005, %v5827_v49  }
 0x2ba   :  { %5007 = vset.pattern.permute.xlu1 %v6367_v16 }
 0x2bb   :  { %2331 = vperm.xlu1 %5007, %v5827_v49  }
 0x2bf   :  { %5008 = vset.pattern.permute.xlu1 %v6369_v55 }
 0x2c0   :  { %2375 = vperm.xlu1 %5008, %v5827_v49  }
 0x2c3   :  { %v5941_v56 = vpop.f32.mrb[28].mxu1  ;;  %v929_v25 = vpop.trf.xlu1 }
 0x2c4   :  { %6411 = vst [vmem:[#allocation20_spill] sm:$0xff] %v5941_v56  ;;  %v5947_v57 = vpop.f32.mrb[29].mxu1  ;;  %5009 = vset.pattern.permute.xlu1 %v6379_v13  ;;  %v972_v16 = vrot.slane %v929_v25, %v5915_v10  ;;  %v1004_v55 = vrot.slane %v929_v25, %v5919_v26  ;;  %v1048_v30 = vrot.slane %v929_v25, %v5924_v21 }
 0x2c5   :  { %6412 = vst [vmem:[#allocation21_spill] sm:$0xff] %v5947_v57  ;;  %2407 = vperm.xlu1 %5009, %v5827_v49   ;;  %v1080_v47 = vrot.slane %v929_v25, %v5927_v29  ;;  %v1124_v18 = vrot.slane %v929_v25, %v5930_v32  ;;  %v1156_v4 = vrot.slane %v929_v25, %v5933_v36 }
 0x2c6   :  { %v5963_v13 = vrot.slane %v5921_v20, %v5924_v21  ;;  %v975_v52 = vmul.f32 %v972_v16, %v958_v8  ;;  %v1007_v38 = vmul.f32 %v1004_v55, %v991_v3  ;;  %v1051_v57 = vmul.f32 %v1048_v30, %v1035_v42 }
 0x2c7   :  { %v5967_v56 = vrot.slane %v5921_v20, %v5927_v29  ;;  %v5969_v26 = vpop.f32.mrb[30].mxu1  ;;  %v1083_v10 = vmul.f32 %v1080_v47, %v1067_v0  ;;  %v1127_v35 = vmul.f32 %v1124_v18, %v1111_v53  ;;  %v1159_v39 = vmul.f32 %v1156_v4, %v1143_v59 }
 0x2c8   :  { %6413 = vst [vmem:[#allocation22_spill] sm:$0xff] %v5969_v26  ;;  %v5975_v9 = vpop.f32.mrb[31].mxu1  ;;  %v4799_v21 = vpop.f32.mrb[28].mxu0  ;;  %v1011_v33 = vadd.f32 %v1007_v38, %v975_v52  ;;  %v1200_v8 = vrot.slane %v929_v25, %v5936_v58  ;;  %v1232_v3 = vrot.slane %v929_v25, %v5939_v28  ;;  %v973_v42 = vmul.f32 %v5945_v2, %v5871_v31 }
 0x2c9   :  { %6414 = vst [vmem:[#allocation23_spill] sm:$0xff] %v5975_v9  ;;  %v3183_v26 = vmul.f32 %v5687_v12, %v4799_v21  ;;  %v3163_v0 = vpop.f32.mrb[29].mxu0  ;;  %v6415_v53 = vmov 6   ;;  %v1087_v59 = vadd.f32 %v1083_v10, %v1051_v57  ;;  %v1163_v29 = vadd.f32 %v1159_v39, %v1127_v35 }
 0x2ca   :  { %5010 = vset.pattern.permute.xlu1 %v6415_v53  ;;  %v1005_v32 = vmul.f32 %v5955_v7, %v5880_v5  ;;  %v3182_v9 = vmul.f32 %v5692_v27, %v3163_v0  ;;  %v1015_v38 = vmul.f32 0.35355338, %v1011_v33  ;;  %v1203_v52 = vmul.f32 %v1200_v8, %v1187_v17 }
 0x2cb   :  { %2451 = vperm.xlu1 %5010, %v5827_v49   ;;  %v1049_v25 = vmul.f32 %v5963_v13, %v5831_v51  ;;  %v1091_v31 = vmul.f32 0.35355338, %v1087_v59  ;;  %v1167_v23 = vmul.f32 0.35355338, %v1163_v29  ;;  %v1235_v21 = vmul.f32 %v1232_v3, %v1219_v6 }
 0x2cc   :  { %v4911_v44 = vpack.c.bf16 %v3183_v26, %v3182_v9  ;;  %v4802_v34 = vpop.f32.mrb[30].mxu0  ;;  %5070 = vtanh.f32 %v1015_v38  ;;  %v976_v57 = vmul.f32 %v972_v16, %v5846_v63  ;;  %v1008_v35 = vmul.f32 %v1004_v55, %v5897_v62  ;;  %v5996_v26 = vpop.permute.xlu0 %2217 }
 0x2cd   :  { %v3185_v39 = vmul.f32 %v5707_v40, %v4802_v34  ;;  %v3173_v5 = vpop.f32.mrb[31].mxu0  ;;  %5072 = vtanh.f32 %v1091_v31  ;;  %v1239_v10 = vadd.f32 %v1235_v21, %v1203_v52  ;;  %v1052_v33 = vmul.f32 %v1048_v30, %v5854_v15 }
 0x2ce   :  { %v3184_v17 = vmul.f32 %v5714_v46, %v3173_v5  ;;  %4912 = vmatprep.subr.bf16.mxu1 %v4911_v44  ;;  %v6416_v51 = vmov 7   ;;  %5074 = vtanh.f32 %v1167_v23  ;;  %v1012_v9 = vadd.f32 %v1008_v35, %v976_v57  ;;  %v6418_v57 = vld [vmem:[#allocation5_spill] sm:$0xff] }
 0x2cf   :  { %5011 = vset.pattern.permute.xlu1 %v6416_v51  ;;  %v1084_v6 = vmul.f32 %v1080_v47, %v5902_v54  ;;  %4914 = vmatpush3.bf16.msra.mxu1 %v4911_v44  ;;  %v1243_v55 = vmul.f32 0.35355338, %v1239_v10  ;;  %v1128_v16 = vmul.f32 %v1124_v18, %v5866_v22  ;;  %v1160_v63 = vmul.f32 %v1156_v4, %v5907_v48 }
 0x2d0   :  { %2483 = vperm.xlu1 %5011, %v5827_v49   ;;  %v1204_v30 = vmul.f32 %v1200_v8, %v5877_v1  ;;  %v4915_v15 = vpack.c.bf16 %v3185_v39, %v3184_v17  ;;  %v4821_v34 = vpop.f32.mrb[32].mxu0  ;;  %v1016_v62 = vmul.f32 0.35355338, %v1012_v9  ;;  %v1236_v23 = vmul.f32 %v1232_v3, %v5911_v14  ;;  %v6419_v17 = vld [vmem:[#allocation11_spill] sm:$0xff] }
 0x2d1   :  { %v1088_v29 = vadd.f32 %v1084_v6, %v1052_v33  ;;  %v1081_v47 = vmul.f32 %v5967_v56, %v5885_v37  ;;  %v3440_v44 = vmul.f32 %v5687_v12, %v4821_v34  ;;  %v3420_v54 = vpop.f32.mrb[33].mxu0  ;;  %5076 = vtanh.f32 %v1243_v55  ;;  %v6420_v6 = vld [vmem:[#allocation7_spill] sm:$0xff]  ;;  %v6422_v34 = vld [vmem:[#allocation14_spill] sm:$0xff] }
 0x2d2   :  { %v1164_v49 = vadd.f32 %v1160_v63, %v1128_v16  ;;  %v3439_v18 = vmul.f32 %v5692_v27, %v3420_v54  ;;  %4808 = vmatmul.mubr.msk.f32.vlgmr.msra.gmra.mrb[32].mxu1 %vm70_vm1, %v5475_v43  ;;  %4916 = vmatprep.subr.bf16.mxu1 %v4915_v15  ;;  %5078 = vtanh.f32 %v1016_v62  ;;  %v1240_v22 = vadd.f32 %v1236_v23, %v1204_v30  ;;  %v6421_v30 = vld [vmem:[#allocation10_spill] sm:$0xff] }
 0x2d3   :  { %v1092_v4 = vmul.f32 0.35355338, %v1088_v29  ;;  %v974_v1 = vmul.f32 %v5945_v2, %v5798_v61  ;;  %v1006_v37 = vmul.f32 %v5955_v7, %v5804_v60  ;;  %v1152_v48 = vrot.slane %v5921_v20, %v5933_v36  ;;  %4918 = vmatpush3.bf16.msra.mxu1 %v4915_v15  ;;  %4814 = vmatprep.mubr.msk.f32.mxu1 %vm70_vm1, %v5496_v50  ;;  %v6021_v2 = vpop.permute.xlu0 %2327 }
 0x2d4   :  { %v1168_v14 = vmul.f32 0.35355338, %v1164_v49  ;;  %v1009_v8 = vadd.f32 %v1005_v32, %v973_v42  ;;  %v4919_v3 = vpack.c.bf16 %v3440_v44, %v3439_v18  ;;  %v4824_v0 = vpop.f32.mrb[34].mxu0  ;;  %v1244_v59 = vmul.f32 0.35355338, %v1240_v22  ;;  %v6423_v49 = vld [vmem:[#allocation12_spill] sm:$0xff] }
 0x2d5   :  { %5080 = vtanh.f32 %v1092_v4  ;;  %v1050_v38 = vmul.f32 %v5963_v13, %v5844_v41  ;;  %v1082_v61 = vmul.f32 %v5967_v56, %v5810_v19  ;;  %v1085_v60 = vadd.f32 %v1081_v47, %v1049_v25  ;;  %v3430_v52 = vpop.f32.mrb[35].mxu0  ;;  %v6417_v56 = vld [vmem:[#allocation13_spill] sm:$0xff] }
 0x2d6   :  { %v3442_v7 = vmul.f32 %v5707_v40, %v4824_v0  ;;  %v5071_v31 = vpop.eup %5070  ;;  %v1196_v32 = vrot.slane %v5921_v20, %v5936_v58  ;;  %v1228_v42 = vrot.slane %v5921_v20, %v5939_v28  ;;  %v3441_v21 = vmul.f32 %v5714_v46, %v3430_v52  ;;  %4815 = vmatmul.mubr.msk.f32.vlgmr.msra.gmra.mrb[34].mxu1 %vm70_vm1, %v5483_v45 }
 0x2d7   :  { %4920 = vmatprep.subr.bf16.mxu1 %v4919_v3  ;;  %5082 = vtanh.f32 %v1168_v14  ;;  %v5073_v13 = vpop.eup %5072  ;;  %v1010_v19 = vadd.f32 %v1006_v37, %v974_v1  ;;  %v1125_v41 = vmul.f32 %v5973_v11, %v5835_v24  ;;  %v1157_v25 = vmul.f32 %v1152_v48, %v6417_v56  ;;  %4829 = vmatprep.mubr.msk.f32.mxu1 %vm70_vm1, %v6418_v57  ;;  %v6043_v29 = vpop.permute.xlu0 %2403  ;;  %v6424_v1 = vld [vmem:[#allocation8_spill] sm:$0xff] }
 0x2d8   :  { %4922 = vmatpush3.bf16.msra.mxu1 %v4919_v3  ;;  %v5075_v35 = vpop.eup %5074  ;;  %v1013_v20 = vmul.f32 0.35355338, %v1009_v8  ;;  %v4923_v39 = vpack.c.bf16 %v3442_v7, %v3441_v21  ;;  %v1099_v5 = vadd.f32 %v5073_v13, %v5071_v31  ;;  %5084 = vtanh.f32 %v1244_v59 }
 0x2d9   :  { %v1086_v10 = vadd.f32 %v1082_v61, %v1050_v38  ;;  %v1089_v33 = vmul.f32 0.35355338, %v1085_v60  ;;  %v1126_v9 = vmul.f32 %v5973_v11, %v6419_v17  ;;  %v1158_v55 = vmul.f32 %v1152_v48, %v6420_v6 }
 0x2da   :  { %4924 = vmatprep.subr.bf16.mxu1 %v4923_v39  ;;  %v1175_v24 = vadd.f32 %v5075_v35, %v1099_v5  ;;  %v1161_v63 = vadd.f32 %v1157_v25, %v1125_v41  ;;  %v1201_v15 = vmul.f32 %v1196_v32, %v6421_v30  ;;  %v1233_v62 = vmul.f32 %v1228_v42, %v6422_v34 }
 0x2db   :  { %4830 = vmatmul.mubr.msk.f32.vlgmr.msra.gmra.mrb[36].mxu1 %vm70_vm1, %v5475_v43  ;;  %v5077_v16 = vpop.eup %5076  ;;  %v1014_v23 = vmul.f32 0.35355338, %v1010_v19  ;;  %5086 = vtanh.f32 %v1013_v20  ;;  %v1090_v44 = vmul.f32 0.35355338, %v1086_v10  ;;  %v1162_v54 = vadd.f32 %v1158_v55, %v1126_v9  ;;  %v6054_v8 = vpop.permute.xlu0 %2479 }
 0x2dc   :  { %4926 = vmatpush3.bf16.msra.mxu1 %v4923_v39  ;;  %4836 = vmatprep.mubr.msk.f32.mxu1 %vm70_vm1, %v5496_v50  ;;  %v5079_v11 = vpop.eup %5078  ;;  %v1251_v47 = vadd.f32 %v5077_v16, %v1175_v24  ;;  %5088 = vtanh.f32 %v1089_v33  ;;  %v1202_v18 = vmul.f32 %v1196_v32, %v6423_v49  ;;  %v1165_v22 = vmul.f32 0.35355338, %v1161_v63 }
 0x2dd   :  { %v1234_v37 = vmul.f32 %v1228_v42, %v6424_v1  ;;  %v1237_v48 = vadd.f32 %v1233_v62, %v1201_v15  ;;  %5090 = vtanh.f32 %v1014_v23  ;;  %v1166_v59 = vmul.f32 0.35355338, %v1162_v54  ;;  %v6426_v54 = vld [vmem:[#allocation16_spill] sm:$0xff]  ;;  %v6428_v1 = vld [vmem:[#allocation18_spill] sm:$0xff] }
 0x2de   :  { %v6050_v4 = vmul.f32 0.25, %v1251_v47  ;;  %5092 = vtanh.f32 %v1090_v44  ;;  %v6425_v44 = vld [vmem:[#allocation15_spill] sm:$0xff] }
 0x2df   :  { %v5081_v43 = vpop.eup %5080  ;;  %4837 = vmatmul.mubr.msk.f32.vlgmr.msra.gmra.mrb[38].mxu1 %vm70_vm1, %v5483_v45  ;;  %5094 = vtanh.f32 %v1165_v22  ;;  %v1238_v38 = vadd.f32 %v1234_v37, %v1202_v18  ;;  %v1241_v61 = vmul.f32 0.35355338, %v1237_v48  ;;  %v2368_v32 = vpop.permute.xlu0 %2367  ;;  %v6427_v18 = vld [vmem:[#allocation17_spill] sm:$0xff]  ;;  %v6429_v48 = vld [vmem:[#allocation19_spill] sm:$0xff] }
 0x2e0   :  { %v1100_v50 = vadd.f32 %v5081_v43, %v5079_v11  ;;  %1289 = vxpose.xlu0.b32.start [1/2] (short) (narrow) %v6050_v4, 16  ;;  %5096 = vtanh.f32 %v1166_v59 }
 0x2e1   :  { %v5083_v14 = vpop.eup %5082  ;;  %5098 = vtanh.f32 %v1241_v61  ;;  %v1242_v42 = vmul.f32 0.35355338, %v1238_v38 }
 0x2e2   :  { %v1176_v3 = vadd.f32 %v5083_v14, %v1100_v50  ;;  %v5085_v0 = vpop.eup %5084 }
 0x2e3   :  { %5100 = vtanh.f32 %v1242_v42  ;;  %v2444_v25 = vpop.permute.xlu0 %2443 }
 0x2e4   :  { %v1252_v45 = vadd.f32 %v5085_v0, %v1176_v3 }
 0x2e5   :  { %v2252_v7 = vpop.permute.xlu1 %2251  ;;  %v5087_v52 = vpop.eup %5086 }
 0x2e6   :  { %v6056_v60 = vmul.f32 0.25, %v1252_v45  ;;  %v5089_v31 = vpop.eup %5088 }
 0x2e7   :  { %v5091_v21 = vpop.eup %5090  ;;  %v1097_v19 = vadd.f32 %v5089_v31, %v5087_v52  ;;  %v6059_v17 = vpop.permute.xlu0 %2259 }
 0x2e8   :  { %1290 = vxpose.xlu0.b32.end [2/2] (short) (narrow) %v6056_v60, 16  ;;  %v5093_v41 = vpop.eup %5092 }
 0x2e9   :  { %v5095_v56 = vpop.eup %5094  ;;  %v1098_v35 = vadd.f32 %v5093_v41, %v5091_v21 }
 0x2ea   :  { %v2296_v13 = vpop.permute.xlu1 %2295  ;;  %v1173_v57 = vadd.f32 %v5095_v56, %v1097_v19  ;;  %v5097_v39 = vpop.eup %5096 }
 0x2eb   :  { %v5099_v5 = vpop.eup %5098  ;;  %v1174_v33 = vadd.f32 %v5097_v39, %v1098_v35  ;;  %v6064_v16 = vpop.permute.xlu0 %2379 }
 0x2ec   :  { %v1249_v10 = vadd.f32 %v5099_v5, %v1173_v57 }
 0x2ed   :  { %v5101_v6 = vpop.eup %5100 }
 0x2ee   :  { %v6061_v55 = vmul.f32 0.25, %v1249_v10  ;;  %v1250_v24 = vadd.f32 %v5101_v6, %v1174_v33 }
 0x2ef   :  { %v2372_v20 = vpop.permute.xlu1 %2371  ;;  %v6069_v34 = vpop.permute.xlu0 %2455 }
 0x2f0   :  { %v6066_v30 = vmul.f32 0.25, %v1250_v24 }
 0x2f3   :  { %v6071_v11 = vpop.permute.xlu0 %2299 }
 0x2f4   :  { %v2448_v9 = vpop.permute.xlu1 %2447 }
 0x2f9   :  { %1257 = vxpose.xlu1.b32.start [1/2] (short) (narrow) %v6061_v55, 16  ;;  %v2213_v63 = vpop.permute.xlu1 %2212 }
 0x2fd   :  { %1258 = vxpose.xlu1.b32.end [2/2] (short) (narrow) %v6066_v30, 16 }
 0x2fe   :  { %v2248_v15 = vpop.permute.xlu1 %2247 }
 0x303   :  { %v2292_v62 = vpop.permute.xlu1 %2291 }
 0x308   :  { %v2324_v23 = vpop.permute.xlu1 %2323 }
 0x309   :  { %v2162_v47 = vpop.trf.xlu0 }
 0x30a   :  { %v2233_v43 = vrot.slane %v2162_v47, %v6425_v44  ;;  %v2265_v49 = vrot.slane %v2162_v47, %v6426_v54  ;;  %v2309_v22 = vrot.slane %v2162_v47, %v6427_v18  ;;  %v2341_v37 = vrot.slane %v2162_v47, %v6428_v1 }
 0x30b   :  { %v2385_v50 = vrot.slane %v2162_v47, %v6429_v48  ;;  %v2417_v14 = vrot.slane %v2162_v47, %v5933_v36  ;;  %v2461_v3 = vrot.slane %v2162_v47, %v5936_v58  ;;  %v2493_v56 = vrot.slane %v2162_v47, %v5939_v28 }
 0x30c   :  { %v2238_v0 = vmul.f32 %v2233_v43, %v2213_v63  ;;  %v2239_v59 = vmul.f32 %v2233_v43, %v5996_v26  ;;  %v2270_v38 = vmul.f32 %v2265_v49, %v2248_v15  ;;  %v2271_v45 = vmul.f32 %v2265_v49, %v2252_v7 }
 0x30d   :  { %v2400_v61 = vpop.permute.xlu1 %2399  ;;  %v2314_v52 = vmul.f32 %v2309_v22, %v2292_v62  ;;  %v2315_v31 = vmul.f32 %v2309_v22, %v2296_v13  ;;  %v2346_v42 = vmul.f32 %v2341_v37, %v2324_v23  ;;  %v2347_v21 = vmul.f32 %v2341_v37, %v6021_v2 }
 0x30e   :  { %v2390_v19 = vmul.f32 %v2385_v50, %v2368_v32  ;;  %v2422_v41 = vmul.f32 %v2417_v14, %v2400_v61  ;;  %v2391_v57 = vmul.f32 %v2385_v50, %v2372_v20  ;;  %v2423_v35 = vmul.f32 %v2417_v14, %v6043_v29 }
 0x30f   :  { %v2274_v5 = vadd.f32 %v2270_v38, %v2238_v0  ;;  %v2275_v10 = vadd.f32 %v2271_v45, %v2239_v59  ;;  %v2351_v33 = vadd.f32 %v2347_v21, %v2315_v31  ;;  %v2466_v26 = vmul.f32 %v2461_v3, %v2444_v25 }
 0x310   :  { %v2426_v39 = vadd.f32 %v2422_v41, %v2390_v19  ;;  %v2350_v7 = vadd.f32 %v2346_v42, %v2314_v52  ;;  %v2467_v63 = vmul.f32 %v2461_v3, %v2448_v9  ;;  %v2499_v13 = vmul.f32 %v2493_v56, %v6054_v8 }
 0x311   :  { %v2427_v2 = vadd.f32 %v2423_v35, %v2391_v57  ;;  %v2278_v62 = vmul.f32 0.35355338, %v2274_v5  ;;  %v2279_v20 = vmul.f32 0.35355338, %v2275_v10  ;;  %v2355_v49 = vmul.f32 0.35355338, %v2351_v33  ;;  %v2194_v22 = vpop.trf.xlu0 }
 0x312   :  { %v2476_v6 = vpop.permute.xlu1 %2475  ;;  %v2430_v24 = vmul.f32 0.35355338, %v2426_v39  ;;  %v2354_v23 = vmul.f32 0.35355338, %v2350_v7  ;;  %v2503_v47 = vadd.f32 %v2499_v13, %v2467_v63  ;;  %v6086_v8 = vrot.slane %v2194_v22, %v6425_v44 }
 0x313   :  { %v2498_v15 = vmul.f32 %v2493_v56, %v2476_v6  ;;  %v2431_v25 = vmul.f32 0.35355338, %v2427_v2  ;;  %v6089_v50 = vrot.slane %v2194_v22, %v6426_v54  ;;  %v2345_v14 = vrot.slane %v2194_v22, %v6428_v1 }
 0x314   :  { %5102 = vtanh.f32 %v2430_v24  ;;  %v2507_v9 = vmul.f32 0.35355338, %v2503_v47  ;;  %v2313_v59 = vrot.slane %v2194_v22, %v6427_v18  ;;  %v2389_v41 = vrot.slane %v2194_v22, %v6429_v48 }
 0x315   :  { %v2502_v32 = vadd.f32 %v2498_v15, %v2466_v26  ;;  %5104 = vtanh.f32 %v2278_v62  ;;  %v2273_v45 = vmul.f32 %v6089_v50, %v6059_v17  ;;  %v2421_v56 = vrot.slane %v2194_v22, %v5933_v36 }
 0x316   :  { %5106 = vtanh.f32 %v2354_v23  ;;  %v2393_v24 = vmul.f32 %v2389_v41, %v6064_v16  ;;  %v2465_v15 = vrot.slane %v2194_v22, %v5936_v58  ;;  %v2497_v2 = vrot.slane %v2194_v22, %v5939_v28 }
 0x317   :  { %v2506_v29 = vmul.f32 0.35355338, %v2502_v32  ;;  %v2228_v43 = vpop.permute.xlu1 %2227 }
 0x318   :  { %v2241_v3 = vmul.f32 %v6086_v8, %v2228_v43  ;;  %v2469_v16 = vmul.f32 %v2465_v15, %v6069_v34 }
 0x319   :  { %5108 = vtanh.f32 %v2506_v29 }
 0x31a   :  { %5110 = vtanh.f32 %v2279_v20  ;;  %v2277_v19 = vadd.f32 %v2273_v45, %v2241_v3  ;;  %v4473_v3 = vld [vmem:[%s6358_s8 + $0x10] sm:$0xff] }
 0x31b   :  { %5112 = vtanh.f32 %v2355_v49  ;;  %4839 = vmatprep.subr.mxu0 %v4473_v3 }
 0x31c   :  { %v2304_v37 = vpop.permute.xlu1 %2303  ;;  %5114 = vtanh.f32 %v2431_v25  ;;  %v2281_v17 = vmul.f32 0.35355338, %v2277_v19  ;;  %4840 = vmatpush3.msra.mxu0 %v4473_v3 }
 0x31d   :  { %5116 = vtanh.f32 %v2507_v9  ;;  %v2317_v31 = vmul.f32 %v2313_v59, %v2304_v37 }
 0x31e   :  { %v5103_v0 = vpop.eup %5102 }
 0x31f   :  { %v5105_v38 = vpop.eup %5104 }
 0x320   :  { %v5107_v52 = vpop.eup %5106 }
 0x321   :  { %v2336_v61 = vpop.permute.xlu1 %2335  ;;  %v2362_v57 = vadd.f32 %v5107_v52, %v5105_v38 }
 0x322   :  { %v2349_v42 = vmul.f32 %v2345_v14, %v2336_v61 }
 0x323   :  { %v5109_v21 = vpop.eup %5108  ;;  %v2438_v10 = vadd.f32 %v5103_v0, %v2362_v57 }
 0x324   :  { %v5111_v35 = vpop.eup %5110  ;;  %v2353_v39 = vadd.f32 %v2349_v42, %v2317_v31 }
 0x325   :  { %v5113_v5 = vpop.eup %5112  ;;  %v2514_v13 = vadd.f32 %v5109_v21, %v2438_v10 }
 0x326   :  { %v2357_v33 = vmul.f32 0.35355338, %v2353_v39  ;;  %v2412_v26 = vpop.permute.xlu1 %2411  ;;  %v2363_v6 = vadd.f32 %v5113_v5, %v5111_v35  ;;  %v5115_v7 = vpop.eup %5114  ;;  %v2316_v5 = vmul.f32 %v2313_v59, %v6071_v11 }
 0x327   :  { %v2425_v63 = vmul.f32 %v2421_v56, %v2412_v26  ;;  %v5117_v62 = vpop.eup %5116  ;;  %v6101_v20 = vmul.f32 0.25, %v2514_v13 }
 0x328   :  { %v2439_v32 = vadd.f32 %v5115_v7, %v2363_v6  ;;  %5118 = vtanh.f32 %v2357_v33 }
 0x329   :  { %v2429_v23 = vadd.f32 %v2425_v63, %v2393_v24  ;;  %5120 = vtanh.f32 %v2281_v17  ;;  %2522 = vxpose.xlu0.b32.start [1/2] (short) (narrow) %v6101_v20, 16 }
 0x32a   :  { %v2515_v47 = vadd.f32 %v5117_v62, %v2439_v32 }
 0x32b   :  { %v2433_v29 = vmul.f32 0.35355338, %v2429_v23  ;;  %v2488_v43 = vpop.permute.xlu1 %2487 }
 0x32c   :  { %v2501_v49 = vmul.f32 %v2497_v2, %v2488_v43  ;;  %v6105_v25 = vmul.f32 0.25, %v2515_v47  ;;  %v6430_v47 = vld [vmem:[#allocation20_spill] sm:$0xff] }
 0x32d   :  { %5122 = vtanh.f32 %v2433_v29  ;;  %v3080_v11 = vmul.f32 %v5687_v12, %v6430_v47 }
 0x32e   :  { %v2505_v9 = vadd.f32 %v2501_v49, %v2469_v16  ;;  %2523 = vxpose.xlu0.b32.end [2/2] (short) (narrow) %v6105_v25, 16  ;;  %v6432_v16 = vmov 2  }
 0x330   :  { %v2509_v22 = vmul.f32 0.35355338, %v2505_v9  ;;  %v2223_v37 = vpop.permute.xlu1 %2222 }
 0x331   :  { %v2240_v33 = vmul.f32 %v6086_v8, %v2223_v37  ;;  %v4446_v8 = vld [vmem:[%s6353_s3 + $0x2] ss:$0 sm:$0xff]  ;;  %v6433_v37 = vmov 4  }
 0x332   :  { %5124 = vtanh.f32 %v2509_v22  ;;  %v5119_v0 = vpop.eup %5118 }
 0x333   :  { %v5121_v38 = vpop.eup %5120 }
 0x334   :  { %v2365_v34 = vadd.f32 %v5121_v38, %v5119_v0 }
 0x335   :  { %v2256_v45 = vpop.permute.xlu1 %2255 }
 0x336   :  { %v2272_v35 = vmul.f32 %v6089_v50, %v2256_v45 }
 0x337   :  { %v5123_v61 = vpop.eup %5122 }
 0x338   :  { %v2441_v52 = vadd.f32 %v5123_v61, %v2365_v34  ;;  %v2276_v7 = vadd.f32 %v2272_v35, %v2240_v33  ;;  %v6434_v61 = vld [vmem:[#allocation21_spill] sm:$0xff] }
 0x33a   :  { %v2332_v31 = vpop.permute.xlu1 %2331  ;;  %v2280_v13 = vmul.f32 0.35355338, %v2276_v7 }
 0x33b   :  { %v2348_v57 = vmul.f32 %v2345_v14, %v2332_v31 }
 0x33c   :  { %v5125_v42 = vpop.eup %5124 }
 0x33d   :  { %v2517_v21 = vadd.f32 %v5125_v42, %v2441_v52  ;;  %v2352_v26 = vadd.f32 %v2348_v57, %v2316_v5  ;;  %v3079_v52 = vmul.f32 %v5692_v27, %v6434_v61  ;;  %v6436_v57 = vmov 5  }
 0x33f   :  { %v2376_v19 = vpop.permute.xlu1 %2375  ;;  %v2356_v63 = vmul.f32 0.35355338, %v2352_v26  ;;  %v6126_v34 = vmul.f32 0.25, %v2517_v21  ;;  %v6435_v21 = vmov 3  }
 0x340   :  { %v2392_v6 = vmul.f32 %v2389_v41, %v2376_v19  ;;  %v3090_v41 = vadd.f32 %v4446_v8, %v3080_v11  ;;  %v6137_v19 = vadd.f32 %v4446_v8, %v3079_v52 }
 0x341   :  { %5126 = vtanh.f32 %v2356_v63 }
 0x342   :  { %5128 = vtanh.f32 %v2280_v13  ;;  %v4457_v13 = vld [vmem:[%s6355_s5 + $0x2] ss:$0 sm:$0xff] }
 0x344   :  { %v2408_v39 = vpop.permute.xlu1 %2407 }
 0x345   :  { %v2424_v10 = vmul.f32 %v2421_v56, %v2408_v39  ;;  %v6431_v56 = vmov 0  }
 0x347   :  { %v2428_v17 = vadd.f32 %v2424_v10, %v2392_v6 }
 0x349   :  { %v2432_v32 = vmul.f32 0.35355338, %v2428_v17 }
 0x34a   :  { %v2452_v24 = vpop.permute.xlu1 %2451 }
 0x34b   :  { %v2468_v23 = vmul.f32 %v2465_v15, %v2452_v24  ;;  %5130 = vtanh.f32 %v2432_v32  ;;  %v5127_v29 = vpop.eup %5126  ;;  %v6439_v24 = vmov 1  }
 0x34c   :  { %v5129_v43 = vpop.eup %5128 }
 0x34f   :  { %v2484_v62 = vpop.permute.xlu1 %2483 }
 0x350   :  { %v2500_v14 = vmul.f32 %v2497_v2, %v2484_v62  ;;  %v2364_v2 = vadd.f32 %v5129_v43, %v5127_v29 }
 0x352   :  { %v2504_v50 = vadd.f32 %v2500_v14, %v2468_v23 }
 0x354   :  { %v2508_v59 = vmul.f32 0.35355338, %v2504_v50 }
 0x355   :  { %v5131_v15 = vpop.eup %5130 }
 0x356   :  { %5132 = vtanh.f32 %v2508_v59  ;;  %v2440_v49 = vadd.f32 %v5131_v15, %v2364_v2  ;;  %v4468_v15 = vld [vmem:[%s6357_s7 + $0x2] ss:$0 sm:$0xff] }
 0x357   :  { %5012 = vset.pattern.permute.xlu0 %v6431_v56 }
 0x358   :  { %3678 = vperm.xlu0 %5012, %v3090_v41  }
 0x35c   :  { %5014 = vset.pattern.permute.xlu0 %v6432_v16 }
 0x35d   :  { %3756 = vperm.xlu0 %5014, %v3090_v41  }
 0x360   :  { %v5133_v9 = vpop.eup %5132 }
 0x361   :  { %v2516_v22 = vadd.f32 %v5133_v9, %v2440_v49  ;;  %5016 = vset.pattern.permute.xlu0 %v6433_v37 }
 0x362   :  { %3832 = vperm.xlu0 %5016, %v3090_v41  }
 0x363   :  { %v6122_v3 = vmul.f32 0.25, %v2516_v22 }
 0x364   :  { %v1305_v0 = vpop.trf.xlu0 }
 0x365   :  { %v1323_v38 = vadd.f32 %v1305_v0, %v6050_v4  ;;  %2554 = vxpose.xlu1.b32.start [1/2] (short) (narrow) %v6122_v3, 16 }
 0x366   :  { %5018 = vset.pattern.permute.xlu0 %v6415_v53 }
 0x367   :  { %v1327_v45 = vmul.f32 0.5, %v1323_v38  ;;  %3908 = vperm.xlu0 %5018, %v3090_v41  }
 0x368   :  { %v1306_v31 = vpop.trf.xlu0 }
 0x369   :  { %1331 = vst.msk [vmem:[%s6364_s14 + $0x10] sm:$0xff] %vm70_vm1, %v1327_v45  ;;  %v1324_v42 = vadd.f32 %v1306_v31, %v6056_v60  ;;  %2555 = vxpose.xlu1.b32.end [2/2] (short) (narrow) %v6126_v34, 16  ;;  %v6437_v60 = vld [vmem:[#allocation22_spill] sm:$0xff] }
 0x36a   :  { %v3082_v35 = vmul.f32 %v5707_v40, %v6437_v60 }
 0x36b   :  { %v1328_v4 = vmul.f32 0.5, %v1324_v42  ;;  %5023 = vset.pattern.permute.xlu0 %v6435_v21 }
 0x36c   :  { %3784 = vperm.xlu0 %5023, %v6137_v19   ;;  %v6152_v10 = vadd.f32 %v4446_v8, %v3082_v35 }
 0x36d   :  { %1332 = vst.msk [vmem:[%s6364_s14 + $0x18] sm:$0xff] %vm70_vm1, %v1328_v4 }
 0x370   :  { %5025 = vset.pattern.permute.xlu0 %v6436_v57 }
 0x371   :  { %3860 = vperm.xlu0 %5025, %v6137_v19  }
 0x375   :  { %5027 = vset.pattern.permute.xlu0 %v6416_v51 }
 0x376   :  { %3936 = vperm.xlu0 %5027, %v6137_v19  }
 0x379   :  { %v1273_v39 = vpop.trf.xlu1 }
 0x37a   :  { %v1321_v5 = vadd.f32 %v1273_v39, %v6061_v55  ;;  %5031 = vset.pattern.permute.xlu0 %v6435_v21  ;;  %v6438_v55 = vld [vmem:[#allocation23_spill] sm:$0xff] }
 0x37b   :  { %3796 = vperm.xlu0 %5031, %v6152_v10   ;;  %v3081_v17 = vmul.f32 %v5714_v46, %v6438_v55 }
 0x37c   :  { %v1325_v33 = vmul.f32 0.5, %v1321_v5 }
 0x37d   :  { %v1274_v26 = vpop.trf.xlu1 }
 0x37e   :  { %1329 = vst.msk [vmem:[%s6364_s14] sm:$0xff] %vm70_vm1, %v1325_v33  ;;  %v1322_v6 = vadd.f32 %v1274_v26, %v6066_v30  ;;  %v6172_v30 = vadd.f32 %v4446_v8, %v3081_v17 }
 0x37f   :  { %5033 = vset.pattern.permute.xlu0 %v6436_v57 }
 0x380   :  { %v1326_v7 = vmul.f32 0.5, %v1322_v6  ;;  %3872 = vperm.xlu0 %5033, %v6152_v10  }
 0x382   :  { %1330 = vst.msk [vmem:[%s6364_s14 + $0x8] sm:$0xff] %vm70_vm1, %v1326_v7 }
 0x384   :  { %5035 = vset.pattern.permute.xlu0 %v6416_v51 }
 0x385   :  { %3948 = vperm.xlu0 %5035, %v6152_v10  }
 0x387   :  { %5013 = vset.pattern.permute.xlu1 %v6439_v24 }
 0x388   :  { %3712 = vperm.xlu1 %5013, %v3090_v41  }
 0x389   :  { %5037 = vset.pattern.permute.xlu0 %v6439_v24 }
 0x38a   :  { %3716 = vperm.xlu0 %5037, %v6172_v30  }
 0x38c   :  { %5015 = vset.pattern.permute.xlu1 %v6435_v21 }
 0x38d   :  { %3788 = vperm.xlu1 %5015, %v3090_v41  }
 0x391   :  { %5017 = vset.pattern.permute.xlu1 %v6436_v57 }
 0x392   :  { %3864 = vperm.xlu1 %5017, %v3090_v41  }
 0x396   :  { %5019 = vset.pattern.permute.xlu1 %v6416_v51 }
 0x397   :  { %3940 = vperm.xlu1 %5019, %v3090_v41  }
 0x39b   :  { %5020 = vset.pattern.permute.xlu1 %v6431_v56 }
 0x39c   :  { %3673 = vperm.xlu1 %5020, %v6137_v19  }
 0x3a0   :  { %5021 = vset.pattern.permute.xlu1 %v6439_v24 }
 0x3a1   :  { %3708 = vperm.xlu1 %5021, %v6137_v19  }
 0x3a5   :  { %5022 = vset.pattern.permute.xlu1 %v6432_v16  ;;  %v4809_v63 = vpop.f32.mrb[32].mxu1 }
 0x3a6   :  { %3752 = vperm.xlu1 %5022, %v6137_v19   ;;  %v3252_v32 = vpop.f32.mrb[33].mxu1  ;;  %v3337_v23 = vmul.f32 %v5687_v12, %v4809_v63 }
 0x3a7   :  { %v3336_v62 = vmul.f32 %v5692_v27, %v3252_v32 }
 0x3a8   :  { %v3347_v8 = vadd.f32 %v4457_v13, %v3337_v23 }
 0x3a9   :  { %v3346_v14 = vadd.f32 %v4457_v13, %v3336_v62  ;;  %v4816_v50 = vpop.f32.mrb[34].mxu1 }
 0x3aa   :  { %5024 = vset.pattern.permute.xlu1 %v6433_v37  ;;  %v3327_v47 = vpop.f32.mrb[35].mxu1  ;;  %v2538_v11 = vpop.trf.xlu0  ;;  %v3339_v0 = vmul.f32 %v5707_v40, %v4816_v50 }
 0x3ab   :  { %3828 = vperm.xlu1 %5024, %v6137_v19   ;;  %3607 = vxpose.xlu0.b32.start [1/2] (short) (narrow) %v3346_v14, 8  ;;  %v2586_v59 = vadd.f32 %v2538_v11, %v6101_v20  ;;  %v3338_v41 = vmul.f32 %v5714_v46, %v3327_v47 }
 0x3ad   :  { %v2590_v43 = vmul.f32 0.5, %v2586_v59  ;;  %v3348_v38 = vadd.f32 %v4457_v13, %v3338_v41 }
 0x3ae   :  { %v4831_v29 = vpop.f32.mrb[36].mxu1  ;;  %v2539_v9 = vpop.trf.xlu0 }
 0x3af   :  { %v3594_v2 = vmul.f32 %v5687_v12, %v4831_v29  ;;  %v3509_v49 = vpop.f32.mrb[37].mxu1  ;;  %5026 = vset.pattern.permute.xlu1 %v6415_v53  ;;  %3608 = vxpose.xlu0.b32.end [2/2] (short) (narrow) %v3347_v8, 8  ;;  %4419 = vst.msk [vmem:[%s6364_s14 + $0x20] sm:$0xff] %vm70_vm1, %v2590_v43  ;;  %v2587_v20 = vadd.f32 %v2539_v9, %v6105_v25 }
 0x3b0   :  { %v3593_v22 = vmul.f32 %v5692_v27, %v3509_v49  ;;  %3904 = vperm.xlu1 %5026, %v6137_v19   ;;  %v3349_v25 = vadd.f32 %v4457_v13, %v3339_v0 }
 0x3b1   :  { %v2591_v61 = vmul.f32 0.5, %v2587_v20  ;;  %v3604_v52 = vadd.f32 %v4468_v15, %v3594_v2 }
 0x3b2   :  { %v3603_v12 = vadd.f32 %v4468_v15, %v3593_v22  ;;  %v4838_v45 = vpop.f32.mrb[38].mxu1 }
 0x3b3   :  { %v3596_v31 = vmul.f32 %v5707_v40, %v4838_v45  ;;  %v3584_v27 = vpop.f32.mrb[39].mxu1  ;;  %3639 = vxpose.xlu0.b32.start [1/2] (short) (narrow) %v3348_v38, 8  ;;  %4420 = vst.msk [vmem:[%s6364_s14 + $0x28] sm:$0xff] %vm70_vm1, %v2591_v61 }
 0x3b4   :  { %v3595_v42 = vmul.f32 %v5714_v46, %v3584_v27  ;;  %4841 = vmatprep.mubr.msk.f32.mxu0 %vm93_vm0, %v3603_v12  ;;  %5028 = vset.pattern.permute.xlu1 %v6431_v56 }
 0x3b5   :  { %4842 = vmatmul.mubr.msk.f32.vlgmr.msra.gmra.mrb[24].mxu0 %vm93_vm0, %v3604_v52  ;;  %3688 = vperm.xlu1 %5028, %v6152_v10   ;;  %v3606_v40 = vadd.f32 %v4468_v15, %v3596_v31 }
 0x3b6   :  { %v3605_v4 = vadd.f32 %v4468_v15, %v3595_v42 }
 0x3b7   :  { %3640 = vxpose.xlu0.b32.end [2/2] (short) (narrow) %v3349_v25, 8 }
 0x3b8   :  { %4844 = vmatprep.mubr.msk.f32.mxu0 %vm93_vm0, %v3605_v4 }
 0x3b9   :  { %4845 = vmatmul.mubr.msk.f32.gmra.mrb[26].mxu0 %vm93_vm0, %v3606_v40  ;;  %5029 = vset.pattern.permute.xlu1 %v6439_v24 }
 0x3ba   :  { %3720 = vperm.xlu1 %5029, %v6152_v10  }
 0x3be   :  { %5030 = vset.pattern.permute.xlu1 %v6432_v16 }
 0x3bf   :  { %3764 = vperm.xlu1 %5030, %v6152_v10  }
 0x3c3   :  { %5032 = vset.pattern.permute.xlu1 %v6433_v37 }
 0x3c4   :  { %3840 = vperm.xlu1 %5032, %v6152_v10  }
 0x3c8   :  { %5034 = vset.pattern.permute.xlu1 %v6415_v53 }
 0x3c9   :  { %3916 = vperm.xlu1 %5034, %v6152_v10  }
 0x3cd   :  { %5036 = vset.pattern.permute.xlu1 %v6431_v56 }
 0x3ce   :  { %3683 = vperm.xlu1 %5036, %v6172_v30  }
 0x3d2   :  { %5038 = vset.pattern.permute.xlu1 %v6432_v16 }
 0x3d3   :  { %3760 = vperm.xlu1 %5038, %v6172_v30  }
 0x3d7   :  { %5039 = vset.pattern.permute.xlu1 %v6435_v21  ;;  %v3679_v21 = vpop.permute.xlu0 %3678 }
 0x3d8   :  { %3792 = vperm.xlu1 %5039, %v6172_v30  }
 0x3dc   :  { %5040 = vset.pattern.permute.xlu1 %v6433_v37 }
 0x3dd   :  { %3836 = vperm.xlu1 %5040, %v6172_v30  }
 0x3e1   :  { %5041 = vset.pattern.permute.xlu1 %v6436_v57 }
 0x3e2   :  { %3868 = vperm.xlu1 %5041, %v6172_v30  }
 0x3e5   :  { %v2570_v46 = vpop.trf.xlu1 }
 0x3e6   :  { %v2588_v19 = vadd.f32 %v2570_v46, %v6122_v3  ;;  %5042 = vset.pattern.permute.xlu1 %v6415_v53  ;;  %v3757_v53 = vpop.permute.xlu0 %3756 }
 0x3e7   :  { %3912 = vperm.xlu1 %5042, %v6172_v30  }
 0x3e8   :  { %v2592_v16 = vmul.f32 0.5, %v2588_v19 }
 0x3e9   :  { %v2571_v60 = vpop.trf.xlu1 }
 0x3ea   :  { %4421 = vst.msk [vmem:[%s6364_s14 + $0x30] sm:$0xff] %vm70_vm1, %v2592_v16  ;;  %v2589_v37 = vadd.f32 %v2571_v60, %v6126_v34  ;;  %v3833_v3 = vpop.permute.xlu0 %3832 }
 0x3eb   :  { %5043 = vset.pattern.permute.xlu1 %v6416_v51  ;;  %v4194_v51 = vld [vmem:[%s6360_s10] sm:$0xff] }
 0x3ec   :  { %v2593_v57 = vmul.f32 0.5, %v2589_v37  ;;  %3944 = vperm.xlu1 %5043, %v6172_v30   ;;  %4847 = vmatprep.subr.mxu1 %v4194_v51 }
 0x3ed   :  { %4848 = vmatpush3.msra.mxu1 %v4194_v51 }
 0x3ee   :  { %4422 = vst.msk [vmem:[%s6364_s14 + $0x38] sm:$0xff] %vm70_vm1, %v2593_v57  ;;  %v3909_v35 = vpop.permute.xlu0 %3908 }
 0x3f2   :  { %v3785_v39 = vpop.permute.xlu0 %3784 }
 0x3f6   :  { %v3861_v10 = vpop.permute.xlu0 %3860 }
 0x3fa   :  { %v3937_v26 = vpop.permute.xlu0 %3936 }
 0x3fe   :  { %v6251_v6 = vpop.permute.xlu0 %3796 }
 0x402   :  { %v6256_v17 = vpop.permute.xlu0 %3872 }
 0x406   :  { %v6258_v30 = vpop.permute.xlu0 %3948 }
 0x407   :  { %v3713_v5 = vpop.permute.xlu1 %3712 }
 0x40a   :  { %v6260_v13 = vpop.permute.xlu0 %3716 }
 0x40c   :  { %v3789_v33 = vpop.permute.xlu1 %3788 }
 0x411   :  { %v3865_v34 = vpop.permute.xlu1 %3864 }
 0x416   :  { %v3941_v7 = vpop.permute.xlu1 %3940 }
 0x41b   :  { %v3674_v55 = vpop.permute.xlu1 %3673 }
 0x420   :  { %v3709_v24 = vpop.permute.xlu1 %3708 }
 0x425   :  { %v3753_v63 = vpop.permute.xlu1 %3752 }
 0x42a   :  { %v3829_v32 = vpop.permute.xlu1 %3828 }
 0x42b   :  { %v3623_v62 = vpop.trf.xlu0 }
 0x42c   :  { %v3694_v23 = vrot.slane %v3623_v62, %v6425_v44  ;;  %v3726_v14 = vrot.slane %v3623_v62, %v6426_v54  ;;  %v3770_v50 = vrot.slane %v3623_v62, %v6427_v18  ;;  %v3802_v47 = vrot.slane %v3623_v62, %v6428_v1 }
 0x42d   :  { %v3846_v11 = vrot.slane %v3623_v62, %v6429_v48  ;;  %v3878_v59 = vrot.slane %v3623_v62, %v5933_v36  ;;  %v3922_v8 = vrot.slane %v3623_v62, %v5936_v58  ;;  %v3954_v41 = vrot.slane %v3623_v62, %v5939_v28 }
 0x42e   :  { %v3699_v29 = vmul.f32 %v3694_v23, %v3674_v55  ;;  %v3700_v43 = vmul.f32 %v3694_v23, %v3679_v21  ;;  %v3731_v15 = vmul.f32 %v3726_v14, %v3709_v24  ;;  %v3732_v2 = vmul.f32 %v3726_v14, %v3713_v5 }
 0x42f   :  { %v3905_v49 = vpop.permute.xlu1 %3904  ;;  %v3775_v9 = vmul.f32 %v3770_v50, %v3753_v63  ;;  %v3776_v22 = vmul.f32 %v3770_v50, %v3757_v53  ;;  %v3807_v20 = vmul.f32 %v3802_v47, %v3785_v39  ;;  %v3808_v0 = vmul.f32 %v3802_v47, %v3789_v33 }
 0x430   :  { %v3735_v38 = vadd.f32 %v3731_v15, %v3699_v29  ;;  %v3736_v12 = vadd.f32 %v3732_v2, %v3700_v43  ;;  %v3851_v45 = vmul.f32 %v3846_v11, %v3829_v32  ;;  %v3852_v61 = vmul.f32 %v3846_v11, %v3833_v3 }
 0x431   :  { %v3811_v52 = vadd.f32 %v3807_v20, %v3775_v9  ;;  %v3812_v31 = vadd.f32 %v3808_v0, %v3776_v22  ;;  %v3883_v27 = vmul.f32 %v3878_v59, %v3861_v10  ;;  %v3884_v42 = vmul.f32 %v3878_v59, %v3865_v34 }
 0x432   :  { %v3739_v25 = vmul.f32 0.35355338, %v3735_v38  ;;  %v3740_v4 = vmul.f32 0.35355338, %v3736_v12  ;;  %v3928_v40 = vmul.f32 %v3922_v8, %v3909_v35  ;;  %v3959_v46 = vmul.f32 %v3954_v41, %v3937_v26 }
 0x433   :  { %v3815_v19 = vmul.f32 0.35355338, %v3811_v52  ;;  %v3816_v16 = vmul.f32 0.35355338, %v3812_v31  ;;  %v3887_v60 = vadd.f32 %v3883_v27, %v3851_v45  ;;  %v3888_v37 = vadd.f32 %v3884_v42, %v3852_v61  ;;  %v3655_v10 = vpop.trf.xlu0 }
 0x434   :  { %5134 = vtanh.f32 %v3739_v25  ;;  %v3960_v21 = vmul.f32 %v3954_v41, %v3941_v7  ;;  %v3927_v57 = vmul.f32 %v3922_v8, %v3905_v49  ;;  %v3689_v53 = vpop.permute.xlu1 %3688  ;;  %v6271_v51 = vrot.slane %v3655_v10, %v6425_v44 }
 0x435   :  { %5136 = vtanh.f32 %v3740_v4  ;;  %v3891_v39 = vmul.f32 0.35355338, %v3887_v60  ;;  %v3892_v5 = vmul.f32 0.35355338, %v3888_v37  ;;  %v6274_v7 = vrot.slane %v3655_v10, %v6426_v54 }
 0x436   :  { %5138 = vtanh.f32 %v3815_v19  ;;  %v3964_v3 = vadd.f32 %v3960_v21, %v3928_v40  ;;  %v3963_v33 = vadd.f32 %v3959_v46, %v3927_v57  ;;  %v3774_v55 = vrot.slane %v3655_v10, %v6427_v18 }
 0x437   :  { %5140 = vtanh.f32 %v3816_v16  ;;  %v3806_v24 = vrot.slane %v3655_v10, %v6428_v1  ;;  %v3702_v62 = vmul.f32 %v6271_v51, %v3689_v53  ;;  %v3850_v54 = vrot.slane %v3655_v10, %v6429_v48 }
 0x438   :  { %5142 = vtanh.f32 %v3891_v39  ;;  %v3967_v34 = vmul.f32 0.35355338, %v3963_v33  ;;  %v3968_v35 = vmul.f32 0.35355338, %v3964_v3  ;;  %v3882_v59 = vrot.slane %v3655_v10, %v5933_v36 }
 0x439   :  { %5144 = vtanh.f32 %v3892_v5  ;;  %v3721_v26 = vpop.permute.xlu1 %3720  ;;  %v3810_v50 = vmul.f32 %v3806_v24, %v6251_v6  ;;  %v3926_v38 = vrot.slane %v3655_v10, %v5936_v58  ;;  %v3958_v48 = vrot.slane %v3655_v10, %v5939_v28 }
 0x43a   :  { %5146 = vtanh.f32 %v3967_v34  ;;  %v3734_v63 = vmul.f32 %v6274_v7, %v3721_v26  ;;  %v3886_v22 = vmul.f32 %v3882_v59, %v6256_v17  ;;  %v3733_v34 = vmul.f32 %v6274_v7, %v6260_v13 }
 0x43b   :  { %5148 = vtanh.f32 %v3968_v35  ;;  %v3962_v42 = vmul.f32 %v3958_v48, %v6258_v30 }
 0x43c   :  { %v3738_v11 = vadd.f32 %v3734_v63, %v3702_v62 }
 0x43e   :  { %v5135_v32 = vpop.eup %5134  ;;  %v3765_v23 = vpop.permute.xlu1 %3764  ;;  %v3742_v9 = vmul.f32 0.35355338, %v3738_v11 }
 0x43f   :  { %v5137_v14 = vpop.eup %5136  ;;  %v3778_v44 = vmul.f32 %v3774_v55, %v3765_v23 }
 0x440   :  { %v5139_v47 = vpop.eup %5138 }
 0x441   :  { %v5141_v18 = vpop.eup %5140  ;;  %v3814_v8 = vadd.f32 %v3810_v50, %v3778_v44  ;;  %v3823_v1 = vadd.f32 %v5139_v47, %v5135_v32 }
 0x442   :  { %v5143_v41 = vpop.eup %5142  ;;  %v3824_v29 = vadd.f32 %v5141_v18, %v5137_v14 }
 0x443   :  { %v5145_v43 = vpop.eup %5144  ;;  %v3818_v15 = vmul.f32 0.35355338, %v3814_v8  ;;  %v3841_v2 = vpop.permute.xlu1 %3840  ;;  %v3899_v49 = vadd.f32 %v5143_v41, %v3823_v1 }
 0x444   :  { %v3854_v6 = vmul.f32 %v3850_v54, %v3841_v2  ;;  %v3900_v20 = vadd.f32 %v5145_v43, %v3824_v29  ;;  %v5147_v0 = vpop.eup %5146  ;;  %v4478_v43 = vld [vmem:[%s6359_s9] ss:$0 sm:$0xff] }
 0x445   :  { %5150 = vtanh.f32 %v3818_v15  ;;  %v3975_v12 = vadd.f32 %v5147_v0, %v3899_v49  ;;  %v5149_v45 = vpop.eup %5148 }
 0x446   :  { %v3890_v36 = vadd.f32 %v3886_v22, %v3854_v6  ;;  %5152 = vtanh.f32 %v3742_v9  ;;  %v3976_v27 = vadd.f32 %v5149_v45, %v3900_v20 }
 0x447   :  { %v6286_v52 = vmul.f32 0.25, %v3975_v12 }
 0x448   :  { %v3894_v61 = vmul.f32 0.35355338, %v3890_v36  ;;  %v3917_v31 = vpop.permute.xlu1 %3916  ;;  %v6290_v58 = vmul.f32 0.25, %v3976_v27 }
 0x449   :  { %v3930_v17 = vmul.f32 %v3926_v38, %v3917_v31  ;;  %3983 = vxpose.xlu1.b32.start [1/2] (short) (narrow) %v6286_v52, 16 }
 0x44a   :  { %5154 = vtanh.f32 %v3894_v61 }
 0x44b   :  { %v3966_v25 = vadd.f32 %v3962_v42, %v3930_v17 }
 0x44d   :  { %v3970_v28 = vmul.f32 0.35355338, %v3966_v25  ;;  %v3684_v4 = vpop.permute.xlu1 %3683  ;;  %3984 = vxpose.xlu1.b32.end [2/2] (short) (narrow) %v6290_v58, 16 }
 0x44e   :  { %v3701_v5 = vmul.f32 %v6271_v51, %v3684_v4 }
 0x44f   :  { %5156 = vtanh.f32 %v3970_v28  ;;  %v5151_v40 = vpop.eup %5150 }
 0x450   :  { %v5153_v46 = vpop.eup %5152  ;;  %v3737_v63 = vadd.f32 %v3733_v34, %v3701_v5 }
 0x451   :  { %v3826_v16 = vadd.f32 %v5153_v46, %v5151_v40 }
 0x452   :  { %v3761_v19 = vpop.permute.xlu1 %3760  ;;  %v3741_v14 = vmul.f32 0.35355338, %v3737_v63  ;;  %v6440_v63 = vld [vmem:[#allocation6_spill] sm:$0xff] }
 0x453   :  { %v3777_v33 = vmul.f32 %v3774_v55, %v3761_v19 }
 0x454   :  { %v5155_v60 = vpop.eup %5154 }
 0x455   :  { %v3902_v37 = vadd.f32 %v5155_v60, %v3826_v16  ;;  %v4302_v16 = vld [vmem:[%s6362_s12 + $0x18] sm:$0xff] }
 0x457   :  { %v3793_v21 = vpop.permute.xlu1 %3792 }
 0x458   :  { %v3809_v39 = vmul.f32 %v3806_v24, %v3793_v21  ;;  %v4301_v24 = vld [vmem:[%s6362_s12 + $0x10] sm:$0xff] }
 0x459   :  { %v5157_v30 = vpop.eup %5156 }
 0x45a   :  { %v3978_v57 = vadd.f32 %v5157_v30, %v3902_v37  ;;  %v3813_v35 = vadd.f32 %v3809_v39, %v3777_v33 }
 0x45c   :  { %v3837_v53 = vpop.permute.xlu1 %3836  ;;  %v3817_v23 = vmul.f32 0.35355338, %v3813_v35  ;;  %v3982_v29 = vmul.f32 0.25, %v3978_v57 }
 0x45d   :  { %v3853_v26 = vmul.f32 %v3850_v54, %v3837_v53 }
 0x45e   :  { %5158 = vtanh.f32 %v3817_v23 }
 0x45f   :  { %5160 = vtanh.f32 %v3741_v14 }
 0x461   :  { %v3869_v3 = vpop.permute.xlu1 %3868 }
 0x462   :  { %v3885_v10 = vmul.f32 %v3882_v59, %v3869_v3 }
 0x464   :  { %v3889_v32 = vadd.f32 %v3885_v10, %v3853_v26 }
 0x466   :  { %v3913_v62 = vpop.permute.xlu1 %3912  ;;  %v3893_v50 = vmul.f32 0.35355338, %v3889_v32 }
 0x467   :  { %v3929_v51 = vmul.f32 %v3926_v38, %v3913_v62  ;;  %v6441_v62 = vld [vmem:[#allocation9_spill] sm:$0xff] }
 0x468   :  { %5162 = vtanh.f32 %v3893_v50  ;;  %v5159_v47 = vpop.eup %5158 }
 0x469   :  { %v5161_v11 = vpop.eup %5160 }
 0x46a   :  { %v3825_v59 = vadd.f32 %v5161_v11, %v5159_v47 }
 0x46b   :  { %v3945_v44 = vpop.permute.xlu1 %3944  ;;  %5044 = vset.pattern.permute.xlu1 %v6431_v56 }
 0x46c   :  { %v3961_v55 = vmul.f32 %v3958_v48, %v3945_v44  ;;  %4315 = vperm.xlu1 %5044, %v4301_v24  }
 0x46e   :  { %v3965_v13 = vadd.f32 %v3961_v55, %v3929_v51 }
 0x470   :  { %v3969_v7 = vmul.f32 0.35355338, %v3965_v13 }
 0x472   :  { %5164 = vtanh.f32 %v3969_v7  ;;  %v5163_v54 = vpop.eup %5162 }
 0x473   :  { %v3901_v18 = vadd.f32 %v5163_v54, %v3825_v59 }
 0x47c   :  { %v5165_v8 = vpop.eup %5164 }
 0x47d   :  { %v3977_v1 = vadd.f32 %v5165_v8, %v3901_v18 }
 0x47f   :  { %v3981_v41 = vmul.f32 0.25, %v3977_v1 }
 0x481   :  { %4015 = vxpose.xlu0.b32.start [1/2] (short) (narrow) %v3981_v41, 16 }
 0x485   :  { %4016 = vxpose.xlu0.b32.end [2/2] (short) (narrow) %v3982_v29, 16 }
 0x488   :  { %v4843_v15 = vpop.f32.mrb[24].mxu0 }
 0x489   :  { %v4171_v2 = vadd.f32 %v4843_v15, %v4478_v43  ;;  %v4140_v49 = vpop.f32.mrb[25].mxu0 }
 0x48a   :  { %v4170_v9 = vadd.f32 %v4478_v43, %v4140_v49 }
 0x48b   :  { %v4180_v22 = vmul.f32 1.442695, %v4171_v2  ;;  %vm4175_vm5 = vcmp.gt.f32.partialorder %v4171_v2, 0.0 }
 0x48c   :  { %v4178_v6 = vmul.f32 1.442695, %v4170_v9  ;;  %v4846_v20 = vpop.f32.mrb[26].mxu0  ;;  %vm4174_vm4 = vcmp.gt.f32.partialorder %v4170_v9, 0.0 }
 0x48d   :  { %5166 = vpow2.f32 %v4180_v22  ;;  %v4173_v0 = vadd.f32 %v4846_v20, %v4478_v43  ;;  %v4150_v38 = vpop.f32.mrb[27].mxu0 }
 0x48e   :  { %5168 = vpow2.f32 %v4178_v6  ;;  %v4172_v48 = vadd.f32 %v4478_v43, %v4150_v38 }
 0x48f   :  { %v4184_v36 = vmul.f32 1.442695, %v4173_v0  ;;  %vm4177_vm7 = vcmp.gt.f32.partialorder %v4173_v0, 0.0 }
 0x490   :  { %v4182_v12 = vmul.f32 1.442695, %v4172_v48  ;;  %vm4176_vm6 = vcmp.gt.f32.partialorder %v4172_v48, 0.0 }
 0x491   :  { %5170 = vpow2.f32 %v4184_v36 }
 0x492   :  { %5172 = vpow2.f32 %v4182_v12 }
 0x497   :  { %v5167_v45 = vpop.eup %5166 }
 0x498   :  { %v5169_v61 = vpop.eup %5168  ;;  %v4480_v31 = vadd.f32 -1.0, %v5167_v45 }
 0x499   :  { %v4479_v27 = vadd.f32 -1.0, %v5169_v61 }
 0x49a   :  { %v4191_v28 = vsel %vm4175_vm5, %v4171_v2, %v4480_v31 }
 0x49b   :  { %v5171_v42 = vpop.eup %5170  ;;  %v4190_v17 = vsel %vm4174_vm4, %v4170_v9, %v4479_v27 }
 0x49c   :  { %v5173_v25 = vpop.eup %5172  ;;  %4849 = vmatprep.mubr.msk.f32.mxu1 %vm93_vm0, %v4190_v17  ;;  %v4482_v4 = vadd.f32 -1.0, %v5171_v42 }
 0x49d   :  { %4850 = vmatmul.mubr.msk.f32.vlgmr.msra.gmra.mrb[40].mxu1 %vm93_vm0, %v4191_v28  ;;  %v4481_v40 = vadd.f32 -1.0, %v5173_v25 }
 0x49e   :  { %v4193_v19 = vsel %vm4177_vm7, %v4173_v0, %v4482_v4 }
 0x49f   :  { %v4192_v46 = vsel %vm4176_vm6, %v4172_v48, %v4481_v40 }
 0x4a0   :  { %4852 = vmatprep.mubr.msk.f32.mxu1 %vm93_vm0, %v4192_v46 }
 0x4a1   :  { %4853 = vmatmul.mubr.msk.f32.gmra.mrb[42].mxu1 %vm93_vm0, %v4193_v19 }
 0x4ae   :  { %5045 = vset.pattern.permute.xlu0 %v6431_v56 }
 0x4af   :  { %4320 = vperm.xlu0 %5045, %v4302_v16  }
 0x4c9   :  { %v3999_v60 = vpop.trf.xlu1 }
 0x4ca   :  { %v4047_v37 = vadd.f32 %v3999_v60, %v6286_v52 }
 0x4cc   :  { %v4051_v21 = vmul.f32 0.5, %v4047_v37 }
 0x4cd   :  { %v4000_v30 = vpop.trf.xlu1 }
 0x4ce   :  { %4469 = vst.msk [vmem:[%s6364_s14 + $0x40] sm:$0xff] %vm70_vm1, %v4051_v21  ;;  %v4048_v57 = vadd.f32 %v4000_v30, %v6290_v58  ;;  %v4483_v58 = vld [vmem:[%s6361_s11] ss:$0 sm:$0xff]  ;;  %s5214_s11 = smov [#allocation2]  }
 0x4d0   :  { %v4052_v53 = vmul.f32 0.5, %v4048_v57 }
 0x4d2   :  { %4470 = vst.msk [vmem:[%s6364_s14 + $0x48] sm:$0xff] %vm70_vm1, %v4052_v53 }
 0x4eb   :  { %v4316_v51 = vpop.permute.xlu1 %4315 }
 0x501   :  { %v4031_v56 = vpop.trf.xlu0 }
 0x502   :  { %v4049_v39 = vadd.f32 %v4031_v56, %v3981_v41 }
 0x504   :  { %v4053_v5 = vmul.f32 0.5, %v4049_v39 }
 0x505   :  { %v4032_v3 = vpop.trf.xlu0 }
 0x506   :  { %4471 = vst.msk [vmem:[%s6364_s14 + $0x50] sm:$0xff] %vm70_vm1, %v4053_v5  ;;  %v4050_v52 = vadd.f32 %v4032_v3, %v3982_v29 }
 0x508   :  { %v4054_v33 = vmul.f32 0.5, %v4050_v52 }
 0x50a   :  { %4472 = vst.msk [vmem:[%s6364_s14 + $0x58] sm:$0xff] %vm70_vm1, %v4054_v33  ;;  %s4340_s14 = sshll.u32 %s5214_s11, 4  ;;  %s4341_s14 = int_to_ptr.vmem [resolvable:$true] %s4340_s14 }
 0x50b   :  { %s5182_s5 = scalar_lea.vmem %s4341_s14, 512  ;;  %p5187_p1 = scmp.lt.s32.totalorder %s4341_s14, %s4341_s14 }
 0x50c   :  { %p5183_p0 = scmp.ne.s32.totalorder %s4341_s14, %s5182_s5  ;;  %p5188_p2 = scmp.lt.s32.totalorder %s5182_s5, %s5182_s5 }
 0x50e   :  { %p5189_p3 = por %p5188_p2, %p5187_p1 }
 0x510   :  { %p5190_p4 = pnand %p5189_p3, %p5183_p0 }
 0x52e   :  { %v4321_v50 = vpop.permute.xlu0 %4320 }
 0x570   :  { %v4851_v10 = vpop.f32.mrb[40].mxu1 }
 0x571   :  { %v4286_v34 = vadd.f32 %v4851_v10, %v4483_v58  ;;  %v4280_v35 = vpop.f32.mrb[41].mxu1 }
 0x572   :  { %v4281_v26 = vadd.f32 %v4483_v58, %v4280_v35 }
 0x573   :  { %v4324_v32 = vmul.f32 %v6440_v63, %v4286_v34 }
 0x574   :  { %v4323_v23 = vmul.f32 %v6441_v62, %v4281_v26  ;;  %v4854_v14 = vpop.f32.mrb[42].mxu1 }
 0x575   :  { %5174 = vtanh.f32 %v4324_v32  ;;  %v4296_v24 = vadd.f32 %v4854_v14, %v4483_v58  ;;  %v4290_v44 = vpop.f32.mrb[43].mxu1 }
 0x576   :  { %5176 = vtanh.f32 %v4323_v23  ;;  %v4291_v55 = vadd.f32 %v4483_v58, %v4290_v44 }
 0x577   :  { %v4326_v13 = vmul.f32 %v4321_v50, %v4296_v24 }
 0x578   :  { %v4325_v7 = vmul.f32 %v4316_v51, %v4291_v55 }
 0x579   :  { %5178 = vtanh.f32 %v4326_v13 }
 0x57a   :  { %5180 = vtanh.f32 %v4325_v7 }
 0x57f   :  { %v5175_v47 = vpop.eup %5174 }
 0x580   :  { %v5177_v11 = vpop.eup %5176  ;;  %4332 = vst.msk [vmem:[#allocation2 + $0x8] sm:$0xff] %vm93_vm0, %v5175_v47 }
 0x581   :  { %4331 = vst.msk [vmem:[#allocation2] sm:$0xff] %vm93_vm0, %v5177_v11 }
 0x583   :  { %v5179_v54 = vpop.eup %5178 }
 0x584   :  { %v5181_v59 = vpop.eup %5180  ;;  %4334 = vst.msk [vmem:[#allocation2 + $0x18] sm:$0xff] %vm93_vm0, %v5179_v54 }
 0x585   :  { %4333 = vst.msk [vmem:[#allocation2 + $0x10] sm:$0xff] %vm93_vm0, %v5181_v59 }
 0x586   :  { %5193 = shalt.err (!%p5190_p4)
}
 0x587   :  { %s5194_s22 = scalar_lea.hbm %s6363_s13, 512 }
 0x588   :  { %p5195_p5 = scmp.ne.s32.totalorder %s6363_s13, %s5194_s22  ;;  %p5198_p6 = scmp.lt.u32.totalorder %s5194_s22, %s6363_s13 }
 0x58a   :  { %p5200_p7 = pnand %p5198_p6, %p5195_p5 }
 0x58c   :  { %5203 = shalt.err (!%p5200_p7)
}
 0x58d   :  { %s5215_s24 = smov 128   ;;  %s5216_s25 = smov 8  }
 0x58e   :  { %4346 = dma.vmem_to_hbm [thread:$0]  %s4341_s14, 512, %s6363_s13, [#allocation3], %s5215_s24, %s5215_s24, %s5216_s25  }
 0x58f   :  { %5204 = dma.done.wait [#allocation3], 512  }
 0x590   :  { %5205 = vsyncadd [#allocation3], 4294966784 }
 0x591   :  { %4354 = vsyncpa [#allocation3], 1 }

</bundles_post_ra>
